<compile_context>
chip_gen: v5e
topology: v5e:2x2
jax: 0.10.0
libtpu: 0.0.40
codegen_flags: <defaults>
</compile_context>

<pallas_src>
import numpy as np

import jax
import jax.numpy as jnp
from jax.experimental import pallas as pl
from jax.experimental.pallas import tpu as pltpu


def _round_up(n, m):
    return ((n + m - 1) // m) * m


# ----------------------------- the fused Pallas kernel ----------------------------
def fused_cnn_kernel(x_ref, m1_ref, m2_ref, m3_ref, m4_ref,
                     s1_ref, s2_ref, s3_ref, s4_ref,
                     fcw_ref, fcb_ref, o_ref):
    """Whole network in one kernel invocation (no grid, everything VMEM-resident).

    x_ref  : (B, 256)       flattened 16x16 single-channel input image.
    m*_ref : (R_in, 4*PB)   per-layer folded matrix: im2col gather + zero padding +
                            conv weights + BN scale.  Columns are ordered
                            [pool_phase(4), pq, cout] with each phase block padded to
                            PB = round_up(hw_out*cout, 128) lanes (pad cols are 0).
    s*_ref : (1, 4*PB)      folded shift = beta + (conv_bias - mean)*scale; 0 on pads.
    fcw_ref: (PB_4, 9)      FC weight, zero pad rows.     fcb_ref: (1, 9) FC bias.
    o_ref  : (B, 9)         logits.
    """

    def mm(a, b):
        return jnp.dot(a, b, preferred_element_type=jnp.float32,
                       precision=jax.lax.Precision.HIGHEST)

    def conv_bn_relu_pool(act, m_ref, shift_ref):
        # conv (+bias, +BN) in one matmul, then ReLU; the 2x2 max-pool is a max over
        # the four 128-aligned pool-phase lane blocks (whole-vreg VPU maxima).
        y = jnp.maximum(mm(act, m_ref[...]) + shift_ref[...], 0.0)
        pb = y.shape[1] // 4
        return jnp.maximum(jnp.maximum(y[:, :pb], y[:, pb:2 * pb]),
                           jnp.maximum(y[:, 2 * pb:3 * pb], y[:, 3 * pb:]))

    a = conv_bn_relu_pool(x_ref[...], m1_ref, s1_ref)   # (B, 256)  cols [pq(64), c(4)]
    a = conv_bn_relu_pool(a, m2_ref, s2_ref)            # (B, 128)  cols [pq(16), c(8)]
    a = conv_bn_relu_pool(a, m3_ref, s3_ref)            # (B, 128)  cols [pq(4), c(16), pad]
    a = conv_bn_relu_pool(a, m4_ref, s4_ref)            # (B, 128)  cols [c(81), pad]
    o_ref[...] = mm(a, fcw_ref[...]) + fcb_ref[...]     # (B, 9)


# ----------------------------- host-side folding -----------------------------------
def prepare_fused_params(params, eps=1e-5):
    """Fold conv bias + BatchNorm (eval mode), the 3x3 im2col gather (incl. zero
    padding) and the pool-phase reordering of every conv layer into one matrix per
    layer, with each pool-phase column block padded to a multiple of 128 lanes so the
    in-kernel pooling slices are vreg-aligned.  Done once per parameter set."""
    Hs = [16, 8, 4, 2]                                   # per-layer input spatial size
    ms, shifts = [], []
    cin0 = params["conv"][0]["w"].shape[2]               # == 1
    rows_in = Hs[0] * Hs[0] * cin0                       # layer-1 input rows (256)

    for l, lp in enumerate(params["conv"]):
        w = np.asarray(lp["w"], np.float32)              # (3, 3, cin, cout) HWIO
        cin, cout = w.shape[2], w.shape[3]
        scale = np.asarray(lp["gamma"], np.float32) / np.sqrt(
            np.asarray(lp["var"], np.float32) + eps)
        shift = (np.asarray(lp["beta"], np.float32)
                 + (np.asarray(lp["b"], np.float32)
                    - np.asarray(lp["mean"], np.float32)) * scale)
        w_s = w * scale                                   # BN scale folded into weights

        H = Hs[l]
        Ho = H // 2
        PB = _round_up(Ho * Ho * cout, 128)               # 128-aligned phase block width
        M = np.zeros((rows_in, 4 * PB), np.float32)
        S = np.zeros((1, 4 * PB), np.float32)

        # Input row index convention: (y*H + x)*cin + c  (matches the previous layer's
        # pooled [pq, cout] column order; for layer 1, cin == 1, so it equals the
        # NCHW flatten of the 16x16 image).
        for phase in range(4):
            py, px = divmod(phase, 2)
            for p in range(Ho):
                for q in range(Ho):
                    c0 = phase * PB + (p * Ho + q) * cout
                    S[0, c0:c0 + cout] = shift
                    for dy in range(3):
                        for dx in range(3):
                            y = 2 * p + py + dy - 1
                            x = 2 * q + px + dx - 1
                            if 0 <= y < H and 0 <= x < H:          # else: zero padding
                                r0 = (y * H + x) * cin
                                M[r0:r0 + cin, c0:c0 + cout] += w_s[dy, dx]

        ms.append(jnp.asarray(M))
        shifts.append(jnp.asarray(S))
        rows_in = PB                                       # next layer reads padded pooled lanes

    fcw = np.zeros((rows_in, 9), np.float32)               # rows_in == PB of layer 4 (128)
    fcw[:81, :] = np.asarray(params["fc"]["w"], np.float32)  # pad rows stay zero
    fcb = np.asarray(params["fc"]["b"], np.float32).reshape(1, 9)
    return dict(ms=ms, shifts=shifts, fcw=jnp.asarray(fcw), fcb=jnp.asarray(fcb))


def cnn_forward(x_nchw, fused):
    """x_nchw: (B, 1, 16, 16) -> logits (B, 9) via one fused pallas_call."""
    B = x_nchw.shape[0]
    x_flat = x_nchw.reshape(B, -1)                        # cin == 1: no-copy reshape
    operands = [x_flat, *fused["ms"], *fused["shifts"], fused["fcw"], fused["fcb"]]
    vmem = pl.BlockSpec(memory_space=pltpu.MemorySpace.VMEM)
    return pl.pallas_call(
        fused_cnn_kernel,
        out_shape=jax.ShapeDtypeStruct((B, 9), jnp.float32),
        in_specs=[vmem] * len(operands),
        out_specs=vmem,
    )(*operands)


# ----------------------------- reference (pure JAX/XLA) ----------------------------
def cnn_reference(x_nchw, params, eps=1e-5):
    x = jnp.transpose(x_nchw, (0, 2, 3, 1))
    for lp in params["conv"]:
        y = jax.lax.conv_general_dilated(
            x, lp["w"], window_strides=(1, 1), padding="SAME",
            dimension_numbers=("NHWC", "HWIO", "NHWC"),
            precision=jax.lax.Precision.HIGHEST)
        y = y + lp["b"]
        scale = lp["gamma"] / jnp.sqrt(lp["var"] + eps)
        y = y * scale + (lp["beta"] - lp["mean"] * scale)
        y = jnp.maximum(y, 0.0)
        x = jax.lax.reduce_window(
            y, -jnp.inf, jax.lax.max, (1, 2, 2, 1), (1, 2, 2, 1), "VALID")
    feat = x.reshape(x.shape[0], -1)
    return jnp.dot(feat, params["fc"]["w"],
                   precision=jax.lax.Precision.HIGHEST) + params["fc"]["b"]


# ----------------------------- deterministic parameters ----------------------------
def init_params(key):
    # Same shapes as the PyTorch module; values are synthetic & deterministic.
    layer_io = [(1, 4), (4, 8), (8, 16), (16, 81)]
    conv_params = []
    for i, (cin, cout) in enumerate(layer_io):
        kw, kb = jax.random.split(jax.random.fold_in(key, i))
        w = jax.random.normal(kw, (3, 3, cin, cout), jnp.float32) / jnp.sqrt(9.0 * cin)
        b = 0.01 * jax.random.normal(kb, (cout,), jnp.float32)
        idx = jnp.arange(cout, dtype=jnp.float32)
        conv_params.append(dict(
            w=w, b=b,
            gamma=1.0 + 0.1 * jnp.cos(idx),
            beta=0.05 * jnp.sin(idx),
            mean=0.02 * idx,
            var=1.0 + 0.05 * idx,
        ))
    kw, kb = jax.random.split(jax.random.fold_in(key, 99))
    fc_w = jax.random.normal(kw, (81, 9), jnp.float32) / jnp.sqrt(81.0)
    fc_b = 0.01 * jax.random.normal(kb, (9,), jnp.float32)
    return {"conv": conv_params, "fc": {"w": fc_w, "b": fc_b}}


# ----------------------------- main -----------------------------------------------
if __name__ == "__main__":
    key = jax.random.PRNGKey(0)
    params = init_params(jax.random.fold_in(key, 1))
    # PyTorch forward implies: 16x16 single-channel input -> (B, 81) -> fc -> (B, 9)
    x = jax.random.normal(jax.random.fold_in(key, 2), (2, 1, 16, 16), jnp.float32)

    fused = prepare_fused_params(params)
    fwd = jax.jit(lambda xx: cnn_forward(xx, fused))

    out = jax.block_until_ready(fwd(x))
    assert out.shape == (2, 9), out.shape

    ref = jax.block_until_ready(cnn_reference(x, params))
    max_diff = float(jnp.max(jnp.abs(out - ref)))
    assert jnp.allclose(out, ref, atol=2e-4, rtol=2e-4), f"max abs diff {max_diff}"

    print("KERNEL_OK")
</pallas_src>

<mosaic_0001>
module attributes {stable_mosaic.version = 11 : i64} {
  func.func @fused_cnn_kernel(%arg0: memref<2x256xf32, #tpu.memory_space<vmem>>, %arg1: memref<256x1024xf32, #tpu.memory_space<vmem>>, %arg2: memref<256x512xf32, #tpu.memory_space<vmem>>, %arg3: memref<128x512xf32, #tpu.memory_space<vmem>>, %arg4: memref<128x512xf32, #tpu.memory_space<vmem>>, %arg5: memref<1x1024xf32, #tpu.memory_space<vmem>>, %arg6: memref<1x512xf32, #tpu.memory_space<vmem>>, %arg7: memref<1x512xf32, #tpu.memory_space<vmem>>, %arg8: memref<1x512xf32, #tpu.memory_space<vmem>>, %arg9: memref<128x9xf32, #tpu.memory_space<vmem>>, %arg10: memref<1x9xf32, #tpu.memory_space<vmem>>, %arg11: memref<2x9xf32, #tpu.memory_space<vmem>>) attributes {dimension_semantics = [], scalar_prefetch = 0 : i64, scratch_operands = 0 : i64, tpu.core_type = #tpu.core_type<tc>} {
    %c0 = arith.constant 0 : index
    %c0_0 = arith.constant 0 : index
    %0 = vector.load %arg0[%c0, %c0_0] : memref<2x256xf32, #tpu.memory_space<vmem>>, vector<2x256xf32>
    %c0_1 = arith.constant 0 : index
    %c0_2 = arith.constant 0 : index
    %1 = vector.load %arg1[%c0_1, %c0_2] : memref<256x1024xf32, #tpu.memory_space<vmem>>, vector<256x1024xf32>
    %cst = arith.constant dense<0.000000e+00> : vector<2x1024xf32>
    %2 = tpu.matmul %0, %1, %cst {dimension_numbers = #tpu.dot_dimension_numbers<[1], [0], [0], [1], [0, 0, 1, 1], [], []>, precision = #tpu.contract_precision<fp32>} : vector<2x256xf32>, vector<256x1024xf32>, vector<2x1024xf32> -> vector<2x1024xf32>
    %c0_3 = arith.constant 0 : index
    %c0_4 = arith.constant 0 : index
    %3 = vector.load %arg5[%c0_3, %c0_4] : memref<1x1024xf32, #tpu.memory_space<vmem>>, vector<1x1024xf32>
    %4 = vector.broadcast %3 : vector<1x1024xf32> to vector<2x1024xf32>
    %5 = arith.addf %2, %4 : vector<2x1024xf32>
    %cst_5 = arith.constant 0.000000e+00 : f32
    %6 = vector.broadcast %cst_5 : f32 to vector<2x1024xf32>
    %7 = arith.maximumf %5, %6 : vector<2x1024xf32>
    %8 = vector.extract_strided_slice %7 {offsets = [0, 0], sizes = [2, 256], strides = [1, 1]} : vector<2x1024xf32> to vector<2x256xf32>
    %9 = vector.extract_strided_slice %7 {offsets = [0, 256], sizes = [2, 256], strides = [1, 1]} : vector<2x1024xf32> to vector<2x256xf32>
    %10 = arith.maximumf %8, %9 : vector<2x256xf32>
    %11 = vector.extract_strided_slice %7 {offsets = [0, 512], sizes = [2, 256], strides = [1, 1]} : vector<2x1024xf32> to vector<2x256xf32>
    %12 = vector.extract_strided_slice %7 {offsets = [0, 768], sizes = [2, 256], strides = [1, 1]} : vector<2x1024xf32> to vector<2x256xf32>
    %13 = arith.maximumf %11, %12 : vector<2x256xf32>
    %14 = arith.maximumf %10, %13 : vector<2x256xf32>
    %c0_6 = arith.constant 0 : index
    %c0_7 = arith.constant 0 : index
    %15 = vector.load %arg2[%c0_6, %c0_7] : memref<256x512xf32, #tpu.memory_space<vmem>>, vector<256x512xf32>
    %cst_8 = arith.constant dense<0.000000e+00> : vector<2x512xf32>
    %16 = tpu.matmul %14, %15, %cst_8 {dimension_numbers = #tpu.dot_dimension_numbers<[1], [0], [0], [1], [0, 0, 1, 1], [], []>, precision = #tpu.contract_precision<fp32>} : vector<2x256xf32>, vector<256x512xf32>, vector<2x512xf32> -> vector<2x512xf32>
    %c0_9 = arith.constant 0 : index
    %c0_10 = arith.constant 0 : index
    %17 = vector.load %arg6[%c0_9, %c0_10] : memref<1x512xf32, #tpu.memory_space<vmem>>, vector<1x512xf32>
    %18 = vector.broadcast %17 : vector<1x512xf32> to vector<2x512xf32>
    %19 = arith.addf %16, %18 : vector<2x512xf32>
    %cst_11 = arith.constant 0.000000e+00 : f32
    %20 = vector.broadcast %cst_11 : f32 to vector<2x512xf32>
    %21 = arith.maximumf %19, %20 : vector<2x512xf32>
    %22 = vector.extract_strided_slice %21 {offsets = [0, 0], sizes = [2, 128], strides = [1, 1]} : vector<2x512xf32> to vector<2x128xf32>
    %23 = vector.extract_strided_slice %21 {offsets = [0, 128], sizes = [2, 128], strides = [1, 1]} : vector<2x512xf32> to vector<2x128xf32>
    %24 = arith.maximumf %22, %23 : vector<2x128xf32>
    %25 = vector.extract_strided_slice %21 {offsets = [0, 256], sizes = [2, 128], strides = [1, 1]} : vector<2x512xf32> to vector<2x128xf32>
    %26 = vector.extract_strided_slice %21 {offsets = [0, 384], sizes = [2, 128], strides = [1, 1]} : vector<2x512xf32> to vector<2x128xf32>
    %27 = arith.maximumf %25, %26 : vector<2x128xf32>
    %28 = arith.maximumf %24, %27 : vector<2x128xf32>
    %c0_12 = arith.constant 0 : index
    %c0_13 = arith.constant 0 : index
    %29 = vector.load %arg3[%c0_12, %c0_13] : memref<128x512xf32, #tpu.memory_space<vmem>>, vector<128x512xf32>
    %cst_14 = arith.constant dense<0.000000e+00> : vector<2x512xf32>
    %30 = tpu.matmul %28, %29, %cst_14 {dimension_numbers = #tpu.dot_dimension_numbers<[1], [0], [0], [1], [0, 0, 1, 1], [], []>, precision = #tpu.contract_precision<fp32>} : vector<2x128xf32>, vector<128x512xf32>, vector<2x512xf32> -> vector<2x512xf32>
    %c0_15 = arith.constant 0 : index
    %c0_16 = arith.constant 0 : index
    %31 = vector.load %arg7[%c0_15, %c0_16] : memref<1x512xf32, #tpu.memory_space<vmem>>, vector<1x512xf32>
    %32 = vector.broadcast %31 : vector<1x512xf32> to vector<2x512xf32>
    %33 = arith.addf %30, %32 : vector<2x512xf32>
    %cst_17 = arith.constant 0.000000e+00 : f32
    %34 = vector.broadcast %cst_17 : f32 to vector<2x512xf32>
    %35 = arith.maximumf %33, %34 : vector<2x512xf32>
    %36 = vector.extract_strided_slice %35 {offsets = [0, 0], sizes = [2, 128], strides = [1, 1]} : vector<2x512xf32> to vector<2x128xf32>
    %37 = vector.extract_strided_slice %35 {offsets = [0, 128], sizes = [2, 128], strides = [1, 1]} : vector<2x512xf32> to vector<2x128xf32>
    %38 = arith.maximumf %36, %37 : vector<2x128xf32>
    %39 = vector.extract_strided_slice %35 {offsets = [0, 256], sizes = [2, 128], strides = [1, 1]} : vector<2x512xf32> to vector<2x128xf32>
    %40 = vector.extract_strided_slice %35 {offsets = [0, 384], sizes = [2, 128], strides = [1, 1]} : vector<2x512xf32> to vector<2x128xf32>
    %41 = arith.maximumf %39, %40 : vector<2x128xf32>
    %42 = arith.maximumf %38, %41 : vector<2x128xf32>
    %c0_18 = arith.constant 0 : index
    %c0_19 = arith.constant 0 : index
    %43 = vector.load %arg4[%c0_18, %c0_19] : memref<128x512xf32, #tpu.memory_space<vmem>>, vector<128x512xf32>
    %cst_20 = arith.constant dense<0.000000e+00> : vector<2x512xf32>
    %44 = tpu.matmul %42, %43, %cst_20 {dimension_numbers = #tpu.dot_dimension_numbers<[1], [0], [0], [1], [0, 0, 1, 1], [], []>, precision = #tpu.contract_precision<fp32>} : vector<2x128xf32>, vector<128x512xf32>, vector<2x512xf32> -> vector<2x512xf32>
    %c0_21 = arith.constant 0 : index
    %c0_22 = arith.constant 0 : index
    %45 = vector.load %arg8[%c0_21, %c0_22] : memref<1x512xf32, #tpu.memory_space<vmem>>, vector<1x512xf32>
    %46 = vector.broadcast %45 : vector<1x512xf32> to vector<2x512xf32>
    %47 = arith.addf %44, %46 : vector<2x512xf32>
    %cst_23 = arith.constant 0.000000e+00 : f32
    %48 = vector.broadcast %cst_23 : f32 to vector<2x512xf32>
    %49 = arith.maximumf %47, %48 : vector<2x512xf32>
    %50 = vector.extract_strided_slice %49 {offsets = [0, 0], sizes = [2, 128], strides = [1, 1]} : vector<2x512xf32> to vector<2x128xf32>
    %51 = vector.extract_strided_slice %49 {offsets = [0, 128], sizes = [2, 128], strides = [1, 1]} : vector<2x512xf32> to vector<2x128xf32>
    %52 = arith.maximumf %50, %51 : vector<2x128xf32>
    %53 = vector.extract_strided_slice %49 {offsets = [0, 256], sizes = [2, 128], strides = [1, 1]} : vector<2x512xf32> to vector<2x128xf32>
    %54 = vector.extract_strided_slice %49 {offsets = [0, 384], sizes = [2, 128], strides = [1, 1]} : vector<2x512xf32> to vector<2x128xf32>
    %55 = arith.maximumf %53, %54 : vector<2x128xf32>
    %56 = arith.maximumf %52, %55 : vector<2x128xf32>
    %c0_24 = arith.constant 0 : index
    %c0_25 = arith.constant 0 : index
    %57 = vector.load %arg9[%c0_24, %c0_25] : memref<128x9xf32, #tpu.memory_space<vmem>>, vector<128x9xf32>
    %cst_26 = arith.constant dense<0.000000e+00> : vector<2x9xf32>
    %58 = tpu.matmul %56, %57, %cst_26 {dimension_numbers = #tpu.dot_dimension_numbers<[1], [0], [0], [1], [0, 0, 1, 1], [], []>, precision = #tpu.contract_precision<fp32>} : vector<2x128xf32>, vector<128x9xf32>, vector<2x9xf32> -> vector<2x9xf32>
    %c0_27 = arith.constant 0 : index
    %c0_28 = arith.constant 0 : index
    %59 = vector.load %arg10[%c0_27, %c0_28] : memref<1x9xf32, #tpu.memory_space<vmem>>, vector<1x9xf32>
    %60 = vector.broadcast %59 : vector<1x9xf32> to vector<2x9xf32>
    %61 = arith.addf %58, %60 : vector<2x9xf32>
    %c0_29 = arith.constant 0 : index
    %c0_30 = arith.constant 0 : index
    %62 = vector.load %arg11[%c0_29, %c0_30] : memref<2x9xf32, #tpu.memory_space<vmem>>, vector<2x9xf32>
    tpu.vector_store %arg11[%c0_29, %c0_30], %61 {strides = array<i32>} : memref<2x9xf32, #tpu.memory_space<vmem>>, vector<2x9xf32>,
    return
  }
}

</mosaic_0001>

<bundles_post_ra>
// kernel: _lambda_.1
= control target key start
LH: loop header
LB: loop body
LE: loop exit
PB: predicated region body
PF: predicated region fallthrough
CT: control target
= control target key end

     0   :  { %16 = vsyncpa [#allocation3], 0  ;;  %s20806_s0 = inlined_call_operand.vmem [shape: f32[2,256], index: 0, kind: input, shape index: {}]   ;;  %s20807_s1 = inlined_call_operand.hbm [shape: f32[256,1024], index: 1, kind: input, shape index: {}]   ;;  %s20808_s2 = inlined_call_operand.hbm [shape: f32[256,512], index: 2, kind: input, shape index: {}]   ;;  %s20809_s3 = inlined_call_operand.hbm [shape: f32[128,512], index: 3, kind: input, shape index: {}]   ;;  %s20810_s4 = inlined_call_operand.hbm [shape: f32[128,512], index: 4, kind: input, shape index: {}]   ;;  %s20811_s5 = inlined_call_operand.vmem [shape: f32[1,1024], index: 5, kind: input, shape index: {}]   ;;  %s20812_s6 = inlined_call_operand.vmem [shape: f32[1,512], index: 6, kind: input, shape index: {}]   ;;  %s20813_s7 = inlined_call_operand.vmem [shape: f32[1,512], index: 7, kind: input, shape index: {}]   ;;  %s20814_s8 = inlined_call_operand.vmem [shape: f32[1,512], index: 8, kind: input, shape index: {}]   ;;  %s20815_s9 = inlined_call_operand.hbm [shape: f32[128,9], index: 9, kind: input, shape index: {}]   ;;  %s20816_s10 = inlined_call_operand.vmem [shape: f32[1,9], index: 10, kind: input, shape index: {}]   ;;  %s20817_s11 = inlined_call_operand.hbm [shape: f32[2,9], index: 11, kind: output, shape index: {}]  }
   0x1   :  { %17 = vsyncpa [#allocation6], 0 }
   0x2   :  { %18 = vsyncpa [#allocation9], 0  ;;  %s39_s19 = sshll.u32 %s20808_s2, 4  ;;  %s40_s19 = int_to_ptr.hbm [resolvable:$true] %s39_s19 }
   0x3   :  { %19 = vsyncpa [#allocation4], 0  ;;  %s12180_s20 = smov [#allocation5]   ;;  %s65_s24 = sshll.u32 %s20810_s4, 4  ;;  %s66_s24 = int_to_ptr.hbm [resolvable:$true] %s65_s24 }
   0x4   :  { %s41_s21 = sshll.u32 %s12180_s20, 4  ;;  %s12181_s25 = smov 512   ;;  %s42_s21 = int_to_ptr.vmem [resolvable:$true] %s41_s21 }
   0x5   :  { %s12182_s26 = smov 32   ;;  %s12183_s27 = smov [#allocation8]  }
   0x6   :  { %47 = dma.hbm_to_vmem [thread:$0]  %s40_s19, 16384, %s42_s21, [#allocation6], %s12181_s25, %s12181_s25, %s12182_s26  }
   0x7   :  { %s67_s28 = sshll.u32 %s12183_s27, 4  ;;  %s26_s12 = sshll.u32 %s20807_s1, 4  ;;  %s68_s28 = int_to_ptr.vmem [resolvable:$true] %s67_s28  ;;  %s27_s12 = int_to_ptr.hbm [resolvable:$true] %s26_s12 }
   0x8   :  { %73 = dma.hbm_to_vmem [thread:$0]  %s66_s24, 8192, %s68_s28, [#allocation9], %s12181_s25, %s12181_s25, %s12182_s26  }
   0x9   :  { %s12184_s2 = smov [#allocation2]   ;;  %s52_s4 = sshll.u32 %s20809_s3, 4  ;;  %s53_s4 = int_to_ptr.hbm [resolvable:$true] %s52_s4 }
   0xa   :  { %s28_s13 = sshll.u32 %s12184_s2, 4  ;;  %s12185_s16 = smov 1024   ;;  %s29_s13 = int_to_ptr.vmem [resolvable:$true] %s28_s13 }
   0xb   :  { %s12186_s17 = smov 64   ;;  %s12187_s18 = smov [#allocation7]  }
   0xc   :  { %34 = dma.hbm_to_vmem [thread:$0]  %s27_s12, 32768, %s29_s13, [#allocation3], %s12185_s16, %s12185_s16, %s12186_s17  }
   0xd   :  { %s54_s19 = sshll.u32 %s12187_s18, 4  ;;  %s86_s1 = sshll.u32 %s20815_s9, 4  ;;  %s55_s19 = int_to_ptr.vmem [resolvable:$true] %s54_s19  ;;  %s87_s1 = int_to_ptr.hbm [resolvable:$true] %s86_s1 }
   0xe   :  { %60 = dma.hbm_to_vmem [thread:$0]  %s53_s4, 8192, %s55_s19, [#allocation6], %s12181_s25, %s12181_s25, %s12182_s26  }
   0xf   :  { %s12188_s22 = smov [#allocation10]   ;;  %s12189_s24 = smov 128  }
  0x10   :  { %s88_s23 = sshll.u32 %s12188_s22, 4  ;;  %s12190_s27 = smov 8   ;;  %s89_s23 = int_to_ptr.vmem [resolvable:$true] %s88_s23 }
  0x11   :  { %94 = dma.hbm_to_vmem [thread:$0]  %s87_s1, 2048, %s89_s23, [#allocation9], %s12189_s24, %s12189_s24, %s12190_s27  }
  0x12   :  { %12172 = dma.done.wait [#allocation3], 32768  }
  0x13   :  { %12173 = vsyncadd [#allocation3], 4294934528 }
  0x14   :  { %12174 = dma.done.wait [#allocation6], 24576  }
  0x15   :  { %12175 = vsyncadd [#allocation6], 4294942720 }
  0x16   :  { %12176 = dma.done.wait [#allocation9], 10240  }
  0x17   :  { %12177 = vsyncadd [#allocation9], 4294957056  ;;  %v238_v0 = vld [vmem:[#allocation2 + $0x3c0] sm:$0xff]  ;;  %v117_v55 = vld [vmem:[%s20806_s0] sm:$0xf]  ;;  %s12191_s15 = smov [#allocation11]  }
  0x18   :  { %v230_v1 = vld [vmem:[#allocation2 + $0x380] sm:$0xff]  ;;  %v12267_v3 = vand.u32 4294901760, %v238_v0  ;;  %393 = vst [vmem:[#allocation1] ss:$4 sm:$0xff] %v117_v55  ;;  %s11999_s4 = sshll.u32 %s12191_s15, 4  ;;  %s12001_s18 = sshll.u32 %s20817_s11, 4  ;;  %s12000_s4 = int_to_ptr.vmem [resolvable:$true] %s11999_s4  ;;  %s12002_s18 = int_to_ptr.hbm [resolvable:$true] %s12001_s18 }
  0x19   :  { %v222_v2 = vld [vmem:[#allocation2 + $0x340] sm:$0xff]  ;;  %v12269_v4 = vand.u32 4294901760, %v230_v1  ;;  %vm11992_vm0 = vcmask 66560  }
  0x1a   :  { %v12271_v5 = vand.u32 4294901760, %v222_v2  ;;  %v214_v6 = vld [vmem:[#allocation2 + $0x300] sm:$0xff]  ;;  %399 = vmatpush.msra.mxu0 %v12267_v3  ;;  %v12281_v14 = vsub.f32 %v238_v0, %v12267_v3  ;;  %595 = vmatpush.msra.mxu3 %v12267_v3 }
  0x1b   :  { %v206_v7 = vld [vmem:[#allocation2 + $0x2c0] sm:$0xff]  ;;  %v12273_v9 = vand.u32 4294901760, %v214_v6  ;;  %v12284_v15 = vsub.f32 %v230_v1, %v12269_v4 }
  0x1c   :  { %v198_v8 = vld [vmem:[#allocation2 + $0x280] sm:$0xff]  ;;  %v12275_v10 = vand.u32 4294901760, %v206_v7  ;;  %v12288_v16 = vsub.f32 %v222_v2, %v12271_v5  ;;  %401 = vmatpush.msra.mxu0 %v12269_v4  ;;  %542 = vmatpush.msra.mxu2 %v12281_v14  ;;  %v441_v22 = vand.u32 4294901760, %v12281_v14 }
  0x1d   :  { %v12277_v11 = vand.u32 4294901760, %v198_v8  ;;  %v190_v12 = vld [vmem:[#allocation2 + $0x240] sm:$0xff]  ;;  %v12293_v18 = vsub.f32 %v214_v6, %v12273_v9  ;;  %v20833_v23 = vand.u32 4294901760, %v12284_v15  ;;  %597 = vmatpush.msra.mxu3 %v12269_v4 }
  0x1e   :  { %v182_v13 = vld [vmem:[#allocation2 + $0x200] sm:$0xff]  ;;  %v12290_v17 = vand.u32 4294901760, %v190_v12  ;;  %v12296_v19 = vsub.f32 %v206_v7, %v12275_v10  ;;  %v20831_v24 = vand.u32 4294901760, %v12288_v16  ;;  %403 = vmatpush.msra.mxu0 %v12271_v5  ;;  %545 = vmatpush.msra.mxu2 %v12284_v15  ;;  %v442_v30 = vsub.f32 %v12281_v14, %v441_v22 }
  0x1f   :  { %v12299_v20 = vsub.f32 %v198_v8, %v12277_v11  ;;  %v174_v21 = vld [vmem:[#allocation2 + $0x1c0] sm:$0xff]  ;;  %v12306_v25 = vand.u32 4294901760, %v182_v13  ;;  %v20830_v27 = vand.u32 4294901760, %v12293_v18  ;;  %v448_v31 = vsub.f32 %v12284_v15, %v20833_v23  ;;  %599 = vmatpush.msra.mxu3 %v12271_v5 }
  0x20   :  { %v166_v26 = vld [vmem:[#allocation2 + $0x180] sm:$0xff]  ;;  %v20827_v28 = vand.u32 4294901760, %v12296_v19  ;;  %v12312_v29 = vsub.f32 %v190_v12, %v12290_v17  ;;  %v454_v32 = vsub.f32 %v12288_v16, %v20831_v24  ;;  %v12325_v33 = vand.u32 4294901760, %v174_v21  ;;  %405 = vmatpush.msra.mxu0 %v12273_v9  ;;  %548 = vmatpush.msra.mxu2 %v12288_v16 }
  0x21   :  { %v12328_v34 = vand.u32 4294901760, %v166_v26  ;;  %v20825_v35 = vand.u32 4294901760, %v12299_v20  ;;  %v158_v36 = vld [vmem:[#allocation2 + $0x140] sm:$0xff]  ;;  %v443_v37 = vand.u32 4294901760, %v442_v30  ;;  %v449_v38 = vand.u32 4294901760, %v448_v31  ;;  %601 = vmatpush.msra.mxu3 %v12273_v9 }
  0x22   :  { %v460_v39 = vsub.f32 %v12293_v18, %v20830_v27  ;;  %v12337_v40 = vsub.f32 %v182_v13, %v12306_v25  ;;  %v466_v41 = vsub.f32 %v12296_v19, %v20827_v28  ;;  %v150_v42 = vld [vmem:[#allocation2 + $0x100] sm:$0xff]  ;;  %407 = vmatpush.msra.mxu0 %v12275_v10  ;;  %v455_v43 = vand.u32 4294901760, %v454_v32  ;;  %551 = vmatpush.msra.mxu2 %v12293_v18 }
  0x23   :  { %444 = vmatpush.msra.mxu1 %v443_v37  ;;  %v12344_v44 = vand.u32 4294901760, %v158_v36  ;;  %v20824_v45 = vand.u32 4294901760, %v12312_v29  ;;  %v12348_v46 = vsub.f32 %v174_v21, %v12325_v33  ;;  %v142_v47 = vld [vmem:[#allocation2 + $0xc0] sm:$0xff]  ;;  %603 = vmatpush.msra.mxu3 %v12275_v10  ;;  %v472_v48 = vsub.f32 %v12299_v20, %v20825_v35 }
  0x24   :  { %409 = vmatpush.msra.mxu0 %v12277_v11  ;;  %v461_v49 = vand.u32 4294901760, %v460_v39  ;;  %v12356_v50 = vand.u32 4294901760, %v150_v42  ;;  %v20823_v51 = vand.u32 4294901760, %v12337_v40  ;;  %v12360_v52 = vsub.f32 %v166_v26, %v12328_v34  ;;  %554 = vmatpush.msra.mxu2 %v12296_v19  ;;  %v134_v54 = vld [vmem:[#allocation2 + $0x80] sm:$0xff] }
  0x25   :  { %450 = vmatpush.msra.mxu1 %v449_v38  ;;  %605 = vmatpush.msra.mxu3 %v12277_v11  ;;  %v12364_v53 = vand.u32 4294901760, %v142_v47  ;;  %v467_v56 = vand.u32 4294901760, %v466_v41  ;;  %v478_v57 = vsub.f32 %v12312_v29, %v20824_v45  ;;  %v20822_v58 = vand.u32 4294901760, %v12348_v46  ;;  %v366_v60 = vld [vmem:[#allocation2 + $0x7c0] sm:$0xff] }
  0x26   :  { %411 = vmatpush.msra.mxu0 %v12290_v17  ;;  %v12375_v59 = vsub.f32 %v158_v36, %v12344_v44  ;;  %557 = vmatpush.msra.mxu2 %v12299_v20  ;;  %v473_v61 = vand.u32 4294901760, %v472_v48  ;;  %v126_v62 = vld [vmem:[#allocation2 + $0x40] sm:$0xff]  ;;  %v484_v63 = vsub.f32 %v12337_v40, %v20823_v51  ;;  %v12383_v0 = vand.u32 4294901760, %v134_v54 }
  0x27   :  { %456 = vmatpush.msra.mxu1 %v455_v43  ;;  %607 = vmatpush.msra.mxu3 %v12290_v17  ;;  %v20821_v1 = vand.u32 4294901760, %v12360_v52  ;;  %v12387_v2 = vsub.f32 %v150_v42, %v12356_v50  ;;  %v118_v6 = vld [vmem:[#allocation2] sm:$0xff]  ;;  %v12392_v8 = vsub.f32 %v142_v47, %v12364_v53  ;;  %v12394_v12 = vand.u32 4294901760, %v366_v60 }
  0x28   :  { %413 = vmatpush.msra.mxu0 %v12306_v25  ;;  %v358_v7 = vld [vmem:[#allocation2 + $0x780] sm:$0xff]  ;;  %560 = vmatpush.msra.mxu2 %v12312_v29  ;;  %v479_v13 = vand.u32 4294901760, %v478_v57  ;;  %v490_v21 = vsub.f32 %v12348_v46, %v20822_v58  ;;  %v12400_v26 = vand.u32 4294901760, %v126_v62  ;;  %v20819_v30 = vand.u32 4294901760, %v12375_v59 }
  0x29   :  { %462 = vmatpush.msra.mxu1 %v461_v49  ;;  %609 = vmatpush.msra.mxu3 %v12306_v25  ;;  %v12405_v31 = vand.u32 4294901760, %v118_v6  ;;  %v12407_v32 = vand.u32 4294901760, %v358_v7  ;;  %v350_v36 = vld [vmem:[#allocation2 + $0x740] sm:$0xff]  ;;  %v485_v37 = vand.u32 4294901760, %v484_v63  ;;  %v496_v38 = vsub.f32 %v12360_v52, %v20821_v1 }
  0x2a   :  { %415 = vmatpush.msra.mxu0 %v12325_v33  ;;  %563 = vmatpush.msra.mxu2 %v12337_v40  ;;  %v20818_v39 = vand.u32 4294901760, %v12387_v2  ;;  %v12415_v41 = vsub.f32 %v134_v54, %v12383_v0  ;;  %v20820_v42 = vand.u32 4294901760, %v12392_v8  ;;  %v12421_v43 = vsub.f32 %v366_v60, %v12394_v12  ;;  %v342_v47 = vld [vmem:[#allocation2 + $0x700] sm:$0xff] }
  0x2b   :  { %468 = vmatpush.msra.mxu1 %v467_v56  ;;  %611 = vmatpush.msra.mxu3 %v12325_v33  ;;  %21200 = vst [vmem:[#allocation16_spill] sm:$0xff] %v12405_v31  ;;  %v491_v48 = vand.u32 4294901760, %v490_v21  ;;  %v502_v49 = vsub.f32 %v12375_v59, %v20819_v30  ;;  %v12428_v54 = vsub.f32 %v126_v62, %v12400_v26  ;;  %v12430_v55 = vand.u32 4294901760, %v350_v36  ;;  %v334_v60 = vld [vmem:[#allocation2 + $0x6c0] sm:$0xff] }
  0x2c   :  { %417 = vmatpush.msra.mxu0 %v12328_v34  ;;  %566 = vmatpush.msra.mxu2 %v12348_v46  ;;  %v12435_v56 = vsub.f32 %v118_v6, %v12405_v31  ;;  %v12438_v57 = vsub.f32 %v358_v7, %v12407_v32  ;;  %v508_v62 = vsub.f32 %v12387_v2, %v20818_v39  ;;  %v20826_v63 = vand.u32 4294901760, %v12415_v41  ;;  %v326_v21 = vld [vmem:[#allocation2 + $0x680] sm:$0xff] }
  0x2d   :  { %474 = vmatpush.msra.mxu1 %v473_v61  ;;  %613 = vmatpush.msra.mxu3 %v12328_v34  ;;  %v497_v61 = vand.u32 4294901760, %v496_v38  ;;  %v514_v6 = vsub.f32 %v12392_v8, %v20820_v42  ;;  %v20828_v7 = vand.u32 4294901760, %v12421_v43  ;;  %v20829_v38 = vand.u32 4294901760, %v12428_v54  ;;  %v318_v58 = vld [vmem:[#allocation2 + $0x640] sm:$0xff] }
  0x2e   :  { %419 = vmatpush.msra.mxu0 %v12344_v44  ;;  %569 = vmatpush.msra.mxu2 %v12360_v52  ;;  %v12456_v39 = vsub.f32 %v350_v36, %v12430_v55  ;;  %v12458_v30 = vand.u32 4294901760, %v334_v60  ;;  %v20834_v42 = vand.u32 4294901760, %v12435_v56  ;;  %v20832_v1 = vand.u32 4294901760, %v12438_v57  ;;  %v310_v45 = vld [vmem:[#allocation2 + $0x600] sm:$0xff] }
  0x2f   :  { %480 = vmatpush.msra.mxu1 %v479_v13  ;;  %615 = vmatpush.msra.mxu3 %v12344_v44  ;;  %v12445_v13 = vand.u32 4294901760, %v342_v47  ;;  %v520_v36 = vsub.f32 %v12415_v41, %v20826_v63  ;;  %v12471_v51 = vand.u32 4294901760, %v326_v21  ;;  %v515_v35 = vand.u32 4294901760, %v514_v6  ;;  %v302_v6 = vld [vmem:[#allocation2 + $0x5c0] sm:$0xff] }
  0x30   :  { %421 = vmatpush.msra.mxu0 %v12356_v50  ;;  %572 = vmatpush.msra.mxu2 %v12375_v59  ;;  %v12484_v63 = vsub.f32 %v334_v60, %v12458_v30  ;;  %v12486_v28 = vand.u32 4294901760, %v318_v58  ;;  %v532_v60 = vsub.f32 %v12435_v56, %v20834_v42  ;;  %v12506_v23 = vand.u32 4294901760, %v302_v6 }
  0x31   :  { %486 = vmatpush.msra.mxu1 %v485_v37  ;;  %617 = vmatpush.msra.mxu3 %v12356_v50  ;;  %v503_v37 = vand.u32 4294901760, %v502_v49  ;;  %v12469_v49 = vsub.f32 %v342_v47, %v12445_v13  ;;  %v526_v47 = vsub.f32 %v12428_v54, %v20829_v38  ;;  %v521_v38 = vand.u32 4294901760, %v520_v36 }
  0x32   :  { %423 = vmatpush.msra.mxu0 %v12364_v53  ;;  %575 = vmatpush.msra.mxu2 %v12387_v2  ;;  %v12501_v24 = vsub.f32 %v326_v21, %v12471_v51  ;;  %v21201_v36 = vand.u32 4294901760, %v12456_v39  ;;  %v12514_v27 = vsub.f32 %v318_v58, %v12486_v28  ;;  %v21202_v14 = vand.u32 4294901760, %v12284_v15 }
  0x33   :  { %492 = vmatpush.msra.mxu1 %v491_v48  ;;  %619 = vmatpush.msra.mxu3 %v12364_v53  ;;  %v509_v48 = vand.u32 4294901760, %v508_v62  ;;  %v294_v62 = vld [vmem:[#allocation2 + $0x580] sm:$0xff]  ;;  %v21204_v15 = vand.u32 4294901760, %v12288_v16  ;;  %v21206_v16 = vand.u32 4294901760, %v12293_v18  ;;  %v21208_v18 = vand.u32 4294901760, %v12296_v19 }
  0x34   :  { %425 = vmatpush.msra.mxu0 %v12383_v0  ;;  %578 = vmatpush.msra.mxu2 %v12392_v8  ;;  %v795_v42 = vsub.f32 %v12456_v39, %v21201_v36  ;;  %v21203_v36 = vand.u32 4294901760, %v12469_v49  ;;  %v21210_v19 = vand.u32 4294901760, %v12299_v20  ;;  %v21213_v20 = vand.u32 4294901760, %v12312_v29 }
  0x35   :  { %498 = vmatpush.msra.mxu1 %v497_v61  ;;  %621 = vmatpush.msra.mxu3 %v12383_v0  ;;  %v783_v61 = vsub.f32 %v12421_v43, %v20828_v7  ;;  %v12493_v7 = vand.u32 4294901760, %v310_v45  ;;  %v21215_v29 = vand.u32 4294901760, %v12337_v40  ;;  %v21217_v40 = vand.u32 4294901760, %v12348_v46 }
  0x36   :  { %427 = vmatpush.msra.mxu0 %v12400_v26  ;;  %581 = vmatpush.msra.mxu2 %v12415_v41  ;;  %v801_v21 = vsub.f32 %v12469_v49, %v21203_v36  ;;  %v21219_v46 = vand.u32 4294901760, %v12360_v52 }
  0x37   :  { %504 = vmatpush.msra.mxu1 %v503_v37  ;;  %623 = vmatpush.msra.mxu3 %v12400_v26  ;;  %v789_v37 = vsub.f32 %v12438_v57, %v20832_v1  ;;  %v784_v1 = vand.u32 4294901760, %v783_v61  ;;  %v286_v61 = vld [vmem:[#allocation2 + $0x540] sm:$0xff] }
  0x38   :  { %429 = vmatpush.msra.mxu0 %v12405_v31  ;;  %584 = vmatpush.msra.mxu2 %v12428_v54  ;;  %v12539_v58 = vand.u32 4294901760, %v286_v61 }
  0x39   :  { %510 = vmatpush.msra.mxu1 %v509_v48  ;;  %v527_v48 = vand.u32 4294901760, %v526_v47  ;;  %625 = vmatpush.msra.mxu3 %v12405_v31  ;;  %v533_v47 = vand.u32 4294901760, %v532_v60  ;;  %v12527_v31 = vand.u32 4294901760, %v294_v62  ;;  %v21205_v60 = vand.u32 4294901760, %v12484_v63 }
  0x3a   :  { %636 = vmatpush.msrb.mxu0 %v441_v22  ;;  %587 = vmatpush.msra.mxu2 %v12435_v56  ;;  %v790_v22 = vand.u32 4294901760, %v789_v37  ;;  %v278_v37 = vld [vmem:[#allocation2 + $0x500] sm:$0xff] }
  0x3b   :  { %516 = vmatpush.msra.mxu1 %v515_v35  ;;  %v12520_v35 = vsub.f32 %v310_v45, %v12493_v7  ;;  %785 = vmatpush.msrb.mxu3 %v784_v1  ;;  %v12532_v45 = vsub.f32 %v302_v6, %v12506_v23  ;;  %v270_v6 = vld [vmem:[#allocation2 + $0x4c0] sm:$0xff]  ;;  %v12551_v36 = vand.u32 4294901760, %v278_v37 }
  0x3c   :  { %640 = vmatpush.msrb.mxu0 %v21202_v14  ;;  %740 = vmatpush.msrb.mxu2 %v12394_v12  ;;  %v807_v14 = vsub.f32 %v12484_v63, %v21205_v60  ;;  %v12549_v60 = vsub.f32 %v294_v62, %v12527_v31  ;;  %v12562_v62 = vsub.f32 %v286_v61, %v12539_v58  ;;  %v12564_v1 = vand.u32 4294901760, %v270_v6 }
  0x3d   :  { %522 = vmatpush.msra.mxu1 %v521_v38  ;;  %v796_v38 = vand.u32 4294901760, %v795_v42  ;;  %791 = vmatpush.msrb.mxu3 %v790_v22  ;;  %v21207_v42 = vand.u32 4294901760, %v12501_v24  ;;  %v12575_v61 = vsub.f32 %v278_v37, %v12551_v36 }
  0x3e   :  { %644 = vmatpush.msrb.mxu0 %v21204_v15  ;;  %742 = vmatpush.msrb.mxu2 %v12407_v32 }
  0x3f   :  { %528 = vmatpush.msra.mxu1 %v527_v48  ;;  %v802_v48 = vand.u32 4294901760, %v801_v21  ;;  %v813_v15 = vsub.f32 %v12501_v24, %v21207_v42  ;;  %797 = vmatpush.msrb.mxu3 %v796_v38  ;;  %v808_v21 = vand.u32 4294901760, %v807_v14  ;;  %v262_v38 = vld [vmem:[#allocation2 + $0x480] sm:$0xff] }
  0x40   :  { %648 = vmatpush.msrb.mxu0 %v21206_v16  ;;  %744 = vmatpush.msrb.mxu2 %v12430_v55  ;;  %v21209_v16 = vand.u32 4294901760, %v12514_v27  ;;  %v12587_v37 = vand.u32 4294901760, %v262_v38 }
  0x41   :  { %534 = vmatpush.msra.mxu1 %v533_v47  ;;  %v394_v47 = vld.sshfl [vmem:[#allocation1] sm:$0xff pattern:$0x73625140]  ;;  %803 = vmatpush.msrb.mxu3 %v802_v48  ;;  %v814_v14 = vand.u32 4294901760, %v813_v15 }
  0x42   :  { %652 = vmatpush.msrb.mxu0 %v21208_v18  ;;  %746 = vmatpush.msrb.mxu2 %v12445_v13  ;;  %v819_v42 = vsub.f32 %v12514_v27, %v21209_v16  ;;  %v12577_v22 = vand.u32 4294901760, %v394_v47  ;;  %v12590_v16 = vsub.f32 %v270_v6, %v12564_v1 }
  0x43   :  { %703 = vmatpush.msrb.mxu1 %v12267_v3  ;;  %v21211_v3 = vand.u32 4294901760, %v12520_v35  ;;  %809 = vmatpush.msrb.mxu3 %v808_v21  ;;  %v21216_v21 = vand.u32 4294901760, %v12549_v60 }
  0x44   :  { %656 = vmatpush.msrb.mxu0 %v21210_v19  ;;  %748 = vmatpush.msrb.mxu2 %v12458_v30  ;;  %21212 = vst [vmem:[#allocation17_spill] sm:$0xff] %v12577_v22  ;;  %v820_v48 = vand.u32 4294901760, %v819_v42  ;;  %v12601_v15 = vsub.f32 %v394_v47, %v12577_v22  ;;  %v12614_v47 = vsub.f32 %v262_v38, %v12587_v37 }
  0x45   :  { %705 = vmatpush.msrb.mxu1 %v12269_v4  ;;  %v825_v18 = vsub.f32 %v12520_v35, %v21211_v3  ;;  %v21214_v4 = vand.u32 4294901760, %v12532_v45  ;;  %v254_v3 = vld [vmem:[#allocation2 + $0x440] sm:$0xff]  ;;  %815 = vmatpush.msrb.mxu3 %v814_v14  ;;  %v837_v42 = vsub.f32 %v12549_v60, %v21216_v21 }
  0x46   :  { %660 = vmatpush.msrb.mxu0 %v21213_v20  ;;  %750 = vmatpush.msrb.mxu2 %v12471_v51  ;;  %v246_v20 = vld [vmem:[#allocation2 + $0x400] sm:$0xff]  ;;  %v12603_v6 = vand.u32 4294901760, %v254_v3 }
  0x47   :  { %707 = vmatpush.msrb.mxu1 %v12271_v5  ;;  %v831_v19 = vsub.f32 %v12532_v45, %v21214_v4  ;;  %v826_v5 = vand.u32 4294901760, %v825_v18  ;;  %v848_v4 = vand.u32 4294901760, %v12575_v61  ;;  %821 = vmatpush.msrb.mxu3 %v820_v48  ;;  %v21218_v18 = vand.u32 4294901760, %v12562_v62 }
  0x48   :  { %664 = vmatpush.msrb.mxu0 %v21215_v29  ;;  %752 = vmatpush.msrb.mxu2 %v12486_v28  ;;  %v854_v29 = vand.u32 4294901760, %v12590_v16  ;;  %v12616_v21 = vand.u32 4294901760, %v246_v20  ;;  %v12626_v48 = vand.u32 4294901760, %v12601_v15  ;;  %v12629_v38 = vsub.f32 %v254_v3, %v12603_v6 }
  0x49   :  { %709 = vmatpush.msrb.mxu1 %v12273_v9  ;;  %v832_v9 = vand.u32 4294901760, %v831_v19  ;;  %v843_v14 = vsub.f32 %v12562_v62, %v21218_v18  ;;  %827 = vmatpush.msrb.mxu3 %v826_v5  ;;  %v849_v19 = vsub.f32 %v12575_v61, %v848_v4  ;;  %v860_v5 = vand.u32 4294901760, %v12614_v47 }
  0x4a   :  { %668 = vmatpush.msrb.mxu0 %v21217_v40  ;;  %754 = vmatpush.msrb.mxu2 %v12493_v7  ;;  %21220 = vst [vmem:[#allocation18_spill] sm:$0xff] %v12626_v48  ;;  %v21221_v40 = vand.u32 4294901760, %v12375_v59  ;;  %v855_v52 = vsub.f32 %v12590_v16, %v854_v29  ;;  %v21222_v3 = vand.u32 4294901760, %v12387_v2  ;;  %v395_v59 = vld.sshfl [vmem:[#allocation1 + $0x8] sm:$0xff pattern:$0x73625140] }
  0x4b   :  { %711 = vmatpush.msrb.mxu1 %v12275_v10  ;;  %v838_v10 = vand.u32 4294901760, %v837_v42  ;;  %833 = vmatpush.msrb.mxu3 %v832_v9  ;;  %v12640_v42 = vsub.f32 %v246_v20, %v12616_v21  ;;  %v433_v9 = vsub.f32 %v12601_v15, %v12626_v48  ;;  %v866_v18 = vand.u32 4294901760, %v12629_v38 }
  0x4c   :  { %672 = vmatpush.msrb.mxu0 %v21219_v46  ;;  %756 = vmatpush.msrb.mxu2 %v12506_v23  ;;  %v856_v2 = vand.u32 4294901760, %v855_v52  ;;  %v12657_v46 = vand.u32 4294901760, %v395_v59 }
  0x4d   :  { %713 = vmatpush.msrb.mxu1 %v12277_v11  ;;  %v844_v11 = vand.u32 4294901760, %v843_v14  ;;  %839 = vmatpush.msrb.mxu3 %v838_v10  ;;  %v21223_v14 = vand.u32 4294901760, %v12392_v8  ;;  %v872_v20 = vand.u32 4294901760, %v12640_v42  ;;  %v21225_v10 = vand.u32 4294901760, %v12415_v41 }
  0x4e   :  { %676 = vmatpush.msrb.mxu0 %v21221_v40  ;;  %758 = vmatpush.msrb.mxu2 %v12527_v31  ;;  %21224 = vst [vmem:[#allocation19_spill] sm:$0xff] %v12657_v46  ;;  %v867_v8 = vsub.f32 %v12629_v38, %v866_v18  ;;  %v12676_v40 = vsub.f32 %v395_v59, %v12657_v46 }
  0x4f   :  { %715 = vmatpush.msrb.mxu1 %v12290_v17  ;;  %v850_v17 = vand.u32 4294901760, %v849_v19  ;;  %845 = vmatpush.msrb.mxu3 %v844_v11  ;;  %v21226_v19 = vand.u32 4294901760, %v12428_v54  ;;  %v21228_v11 = vand.u32 4294901760, %v12435_v56  ;;  %v21232_v56 = vld [vmem:[#allocation16_spill] sm:$0xff] }
  0x50   :  { %680 = vmatpush.msrb.mxu0 %v21222_v3  ;;  %760 = vmatpush.msrb.mxu2 %v12539_v58  ;;  %21227 = vst [vmem:[#allocation20_spill] sm:$0xff] %v12676_v40  ;;  %v12687_v52 = vand.u32 4294901760, %v12676_v40 }
  0x51   :  { %717 = vmatpush.msrb.mxu1 %v12306_v25  ;;  %v861_v25 = vsub.f32 %v12614_v47, %v860_v5  ;;  %851 = vmatpush.msrb.mxu3 %v850_v17  ;;  %v175_v17 = vld [vmem:[#allocation2 + $0x1c8] sm:$0xff] }
  0x52   :  { %684 = vmatpush.msrb.mxu0 %v21223_v14  ;;  %762 = vmatpush.msrb.mxu2 %v12551_v36  ;;  %21229 = vst [vmem:[#allocation21_spill] sm:$0xff] %v12687_v52  ;;  %v167_v14 = vld [vmem:[#allocation2 + $0x188] sm:$0xff] }
  0x53   :  { %719 = vmatpush.msrb.mxu1 %v12325_v33  ;;  %v12663_v33 = vand.u32 4294901760, %v433_v9  ;;  %857 = vmatpush.msrb.mxu3 %v856_v2  ;;  %v862_v41 = vand.u32 4294901760, %v861_v25  ;;  %v12831_v2 = vand.u32 4294901760, %v175_v17 }
  0x54   :  { %688 = vmatpush.msrb.mxu0 %v21225_v10  ;;  %764 = vmatpush.msrb.mxu2 %v12564_v1 }
  0x55   :  { %721 = vmatpush.msrb.mxu1 %v12328_v34  ;;  %v873_v34 = vsub.f32 %v12640_v42, %v872_v20  ;;  %435 = vmatmul.f32.vlgmr.msra.gmra.mxu0 %v12663_v33 }
  0x56   :  { %692 = vmatpush.msrb.mxu0 %v21226_v19  ;;  %766 = vmatpush.msrb.mxu2 %v12587_v37  ;;  %v159_v19 = vld [vmem:[#allocation2 + $0x148] sm:$0xff] }
  0x57   :  { %723 = vmatpush.msrb.mxu1 %v12344_v44  ;;  %v868_v44 = vand.u32 4294901760, %v867_v8  ;;  %863 = vmatpush.msrb.mxu3 %v862_v41  ;;  %v874_v54 = vand.u32 4294901760, %v873_v34 }
  0x58   :  { %696 = vmatpush.msrb.mxu0 %v21228_v11  ;;  %768 = vmatpush.msrb.mxu2 %v12603_v6 }
  0x59   :  { %725 = vmatpush.msrb.mxu1 %v12356_v50  ;;  %869 = vmatpush.msrb.mxu3 %v868_v44  ;;  %v21230_v50 = vand.u32 4294901760, %v12421_v43 }
  0x5a   :  { %883 = vmatpush.msra.mxu0 %v12421_v43  ;;  %770 = vmatpush.msrb.mxu2 %v12616_v21 }
  0x5b   :  { %727 = vmatpush.msrb.mxu1 %v12364_v53  ;;  %590 = vmatmul.f32.vlgmr.msra.gmra.mxu2 %v12601_v15  ;;  %v774_v53 = vsub.f32 %v12676_v40, %v12687_v52 }
  0x5c   :  { %886 = vmatpush.msra.mxu0 %v12438_v57  ;;  %977 = vmatpush.msra.mxu2 %v21230_v50 }
  0x5d   :  { %729 = vmatpush.msrb.mxu1 %v12383_v0  ;;  %875 = vmatpush.msrb.mxu3 %v874_v54  ;;  %v21231_v0 = vand.u32 4294901760, %v12438_v57  ;;  %v12708_v43 = vand.u32 4294901760, %v774_v53  ;;  %v21235_v57 = vand.u32 4294901760, %v12469_v49  ;;  %v12858_v54 = vsub.f32 %v175_v17, %v12831_v2  ;;  %v367_v17 = vld [vmem:[#allocation2 + $0x7c8] sm:$0xff] }
  0x5e   :  { %889 = vmatpush.msra.mxu0 %v12456_v39  ;;  %629 = vmatmul.f32.vlgmr.msra.gmra.mxu3 %v12626_v48 }
  0x5f   :  { %731 = vmatpush.msrb.mxu1 %v12400_v26  ;;  %981 = vmatpush.msra.mxu2 %v21231_v0  ;;  %v21233_v26 = vand.u32 4294901760, %v12456_v39  ;;  %21234 = vst [vmem:[#allocation16_spill] sm:$0xff] %v12708_v43  ;;  %v21236_v39 = vand.u32 4294901760, %v12484_v63  ;;  %v12864_v0 = vand.u32 4294901760, %v159_v19 }
  0x60   :  { %892 = vmatpush.msra.mxu0 %v12469_v49  ;;  %1044 = vmatpush.msra.mxu3 %v12394_v12 }
  0x61   :  { %733 = vmatpush.msrb.mxu1 %v21232_v56  ;;  %985 = vmatpush.msra.mxu2 %v21233_v26 }
  0x62   :  { %895 = vmatpush.msra.mxu0 %v12484_v63  ;;  %536 = vmatmul.f32.vlgmr.msra.gmra.mxu1 %v12577_v22 }
  0x63   :  { %936 = vmatpush.msra.mxu1 %v12394_v12  ;;  %1046 = vmatpush.msra.mxu3 %v12407_v32  ;;  %v21237_v12 = vand.u32 4294901760, %v12501_v24 }
  0x64   :  { %898 = vmatpush.msra.mxu0 %v12501_v24  ;;  %989 = vmatpush.msra.mxu2 %v21235_v57  ;;  %v21239_v24 = vand.u32 4294901760, %v12520_v35  ;;  %v143_v57 = vld [vmem:[#allocation2 + $0xc8] sm:$0xff] }
  0x65   :  { %938 = vmatpush.msra.mxu1 %v12407_v32  ;;  %1048 = vmatpush.msra.mxu3 %v12430_v55  ;;  %v21238_v32 = vand.u32 4294901760, %v12514_v27 }
  0x66   :  { %776 = vmatmul.f32.vlgmr.msrb.gmra.mxu2 %v12708_v43  ;;  %901 = vmatpush.msra.mxu0 %v12514_v27  ;;  %v231_v27 = vld [vmem:[#allocation2 + $0x388] sm:$0xff] }
  0x67   :  { %940 = vmatpush.msra.mxu1 %v12430_v55  ;;  %993 = vmatpush.msra.mxu2 %v21236_v39  ;;  %v239_v55 = vld [vmem:[#allocation2 + $0x3c8] sm:$0xff]  ;;  %v12758_v49 = vand.u32 4294901760, %v231_v27 }
  0x68   :  { %1050 = vmatpush.msra.mxu3 %v12445_v13  ;;  %698 = vmatmul.f32.vlgmr.msrb.gmra.mxu0 %v12577_v22  ;;  %v12751_v63 = vand.u32 4294901760, %v239_v55 }
  0x69   :  { %877 = vmatmul.f32.vlgmr.msrb.gmra.mxu3 %v12657_v46  ;;  %904 = vmatpush.msra.mxu0 %v12520_v35 }
  0x6a   :  { %942 = vmatpush.msra.mxu1 %v12445_v13  ;;  %997 = vmatpush.msra.mxu2 %v21237_v12  ;;  %v21242_v13 = vand.u32 4294901760, %v12562_v62 }
  0x6b   :  { %1052 = vmatpush.msra.mxu3 %v12458_v30  ;;  %735 = vmatmul.f32.vlgmr.msrb.gmra.mxu1 %v12577_v22 }
  0x6c   :  { %907 = vmatpush.msra.mxu0 %v12532_v45  ;;  %944 = vmatpush.msra.mxu1 %v12458_v30  ;;  %v21240_v30 = vand.u32 4294901760, %v12532_v45  ;;  %v207_v45 = vld [vmem:[#allocation2 + $0x2c8] sm:$0xff] }
  0x6d   :  { %1001 = vmatpush.msra.mxu2 %v21238_v32  ;;  %1054 = vmatpush.msra.mxu3 %v12471_v51 }
  0x6e   :  { %910 = vmatpush.msra.mxu0 %v12549_v60  ;;  %946 = vmatpush.msra.mxu1 %v12471_v51  ;;  %v21241_v51 = vand.u32 4294901760, %v12549_v60  ;;  %v12778_v60 = vsub.f32 %v231_v27, %v12758_v49 }
  0x6f   :  { %1005 = vmatpush.msra.mxu2 %v21239_v24  ;;  %1056 = vmatpush.msra.mxu3 %v12486_v28 }
  0x70   :  { %913 = vmatpush.msra.mxu0 %v12562_v62  ;;  %948 = vmatpush.msra.mxu1 %v12486_v28  ;;  %v223_v28 = vld [vmem:[#allocation2 + $0x348] sm:$0xff] }
  0x71   :  { %1009 = vmatpush.msra.mxu2 %v21240_v30  ;;  %1058 = vmatpush.msra.mxu3 %v12493_v7  ;;  %v12765_v35 = vand.u32 4294901760, %v223_v28  ;;  %v199_v62 = vld [vmem:[#allocation2 + $0x288] sm:$0xff] }
  0x72   :  { %916 = vmatpush.msra.mxu0 %v12575_v61  ;;  %950 = vmatpush.msra.mxu1 %v12493_v7  ;;  %v215_v7 = vld [vmem:[#allocation2 + $0x308] sm:$0xff] }
  0x73   :  { %1013 = vmatpush.msra.mxu2 %v21241_v51  ;;  %1060 = vmatpush.msra.mxu3 %v12506_v23  ;;  %v12789_v61 = vsub.f32 %v223_v28, %v12765_v35  ;;  %v135_v30 = vld [vmem:[#allocation2 + $0x88] sm:$0xff]  ;;  %v12886_v28 = vand.u32 4294901760, %v143_v57 }
  0x74   :  { %919 = vmatpush.msra.mxu0 %v12590_v16  ;;  %952 = vmatpush.msra.mxu1 %v12506_v23  ;;  %v12768_v23 = vsub.f32 %v239_v55, %v12751_v63  ;;  %v20837_v55 = vand.u32 4294901760, %v12858_v54 }
  0x75   :  { %1017 = vmatpush.msra.mxu2 %v21242_v13  ;;  %1062 = vmatpush.msra.mxu3 %v12527_v31  ;;  %v20846_v3 = vand.u32 4294901760, %v12789_v61  ;;  %v12889_v13 = vsub.f32 %v159_v19, %v12864_v0 }
  0x76   :  { %922 = vmatpush.msra.mxu0 %v12614_v47  ;;  %954 = vmatpush.msra.mxu1 %v12527_v31  ;;  %v12775_v31 = vand.u32 4294901760, %v215_v7  ;;  %v20849_v16 = vand.u32 4294901760, %v12768_v23 }
  0x77   :  { %1021 = vmatpush.msra.mxu2 %v848_v4  ;;  %1064 = vmatpush.msra.mxu3 %v12539_v58  ;;  %v191_v4 = vld [vmem:[#allocation2 + $0x248] sm:$0xff]  ;;  %v20838_v19 = vand.u32 4294901760, %v12889_v13 }
  0x78   :  { %925 = vmatpush.msra.mxu0 %v12629_v38  ;;  %956 = vmatpush.msra.mxu1 %v12539_v58  ;;  %v12785_v58 = vand.u32 4294901760, %v207_v45  ;;  %v12800_v47 = vsub.f32 %v215_v7, %v12775_v31  ;;  %v12810_v38 = vand.u32 4294901760, %v191_v4 }
  0x79   :  { %1025 = vmatpush.msra.mxu2 %v854_v29  ;;  %1066 = vmatpush.msra.mxu3 %v12551_v36  ;;  %v20847_v29 = vand.u32 4294901760, %v12778_v60 }
  0x7a   :  { %928 = vmatpush.msra.mxu0 %v12640_v42  ;;  %958 = vmatpush.msra.mxu1 %v12551_v36  ;;  %v12796_v36 = vand.u32 4294901760, %v199_v62  ;;  %v12814_v59 = vsub.f32 %v207_v45, %v12785_v58  ;;  %v20844_v9 = vand.u32 4294901760, %v12800_v47  ;;  %v12840_v8 = vsub.f32 %v191_v4, %v12810_v38  ;;  %v127_v45 = vld [vmem:[#allocation2 + $0x48] sm:$0xff] }
  0x7b   :  { %1029 = vmatpush.msra.mxu2 %v860_v5  ;;  %1068 = vmatpush.msra.mxu3 %v12564_v1  ;;  %v183_v5 = vld [vmem:[#allocation2 + $0x208] sm:$0xff] }
  0x7c   :  { %931 = vmatmul.f32.vlgmr.msra.gmra.mxu0 %v12676_v40  ;;  %960 = vmatpush.msra.mxu1 %v12564_v1  ;;  %v1124_v1 = vsub.f32 %v12768_v23, %v20849_v16  ;;  %v12823_v42 = vand.u32 4294901760, %v183_v5  ;;  %v20843_v10 = vand.u32 4294901760, %v12814_v59  ;;  %v1142_v34 = vsub.f32 %v12800_v47, %v20844_v9 }
  0x7d   :  { %1081 = vmatpush.msrb.mxu0 %v12751_v63  ;;  %1033 = vmatpush.msra.mxu2 %v866_v18  ;;  %v12827_v18 = vsub.f32 %v199_v62, %v12796_v36  ;;  %v20840_v56 = vand.u32 4294901760, %v12840_v8 }
  0x7e   :  { %1070 = vmatpush.msra.mxu3 %v12587_v37  ;;  %962 = vmatpush.msra.mxu1 %v12587_v37  ;;  %v1130_v37 = vsub.f32 %v12778_v60, %v20847_v29  ;;  %v1125_v25 = vand.u32 4294901760, %v1124_v1  ;;  %v12853_v44 = vsub.f32 %v183_v5, %v12823_v42  ;;  %v1148_v53 = vsub.f32 %v12814_v59, %v20843_v10 }
  0x7f   :  { %1083 = vmatpush.msrb.mxu0 %v12758_v49  ;;  %1037 = vmatpush.msra.mxu2 %v872_v20  ;;  %v1136_v20 = vsub.f32 %v12789_v61, %v20846_v3  ;;  %v20841_v11 = vand.u32 4294901760, %v12827_v18  ;;  %v1143_v39 = vand.u32 4294901760, %v1142_v34  ;;  %v1160_v51 = vsub.f32 %v12840_v8, %v20840_v56 }
  0x80   :  { %1072 = vmatpush.msra.mxu3 %v12603_v6  ;;  %1039 = vmatmul.f32.vlgmr.msra.gmra.mxu2 %v12657_v46  ;;  %v1131_v41 = vand.u32 4294901760, %v1130_v37  ;;  %v20839_v24 = vand.u32 4294901760, %v12853_v44  ;;  %v1149_v27 = vand.u32 4294901760, %v1148_v53  ;;  %v12898_v5 = vand.u32 4294901760, %v135_v30 }
  0x81   :  { %1085 = vmatpush.msrb.mxu0 %v12765_v35  ;;  %1224 = vmatpush.msrb.mxu2 %v12768_v23  ;;  %v1137_v50 = vand.u32 4294901760, %v1136_v20  ;;  %v1154_v12 = vsub.f32 %v12827_v18, %v20841_v11  ;;  %v1172_v37 = vsub.f32 %v12858_v54, %v20837_v55  ;;  %v12909_v20 = vand.u32 4294901760, %v127_v45  ;;  %v343_v55 = vld [vmem:[#allocation2 + $0x708] sm:$0xff] }
  0x82   :  { %964 = vmatpush.msra.mxu1 %v12603_v6  ;;  %1074 = vmatpush.msra.mxu3 %v12616_v21  ;;  %v12844_v6 = vand.u32 4294901760, %v167_v14  ;;  %v1166_v4 = vsub.f32 %v12853_v44, %v20839_v24  ;;  %v335_v11 = vld [vmem:[#allocation2 + $0x6c8] sm:$0xff] }
  0x83   :  { %1076 = vmatmul.f32.vlgmr.msra.gmra.mxu3 %v12657_v46  ;;  %1087 = vmatpush.msrb.mxu0 %v12775_v31  ;;  %v1155_v62 = vand.u32 4294901760, %v1154_v12  ;;  %v12927_v12 = vsub.f32 %v135_v30, %v12898_v5  ;;  %v12971_v9 = vand.u32 4294901760, %v335_v11  ;;  %v21245_v46 = vand.u32 4294901760, %v12768_v23 }
  0x84   :  { %1227 = vmatpush.msrb.mxu2 %v12778_v60  ;;  %1277 = vmatpush.msrb.mxu3 %v12751_v63  ;;  %v12870_v26 = vsub.f32 %v167_v14, %v12844_v6  ;;  %v119_v14 = vld [vmem:[#allocation2 + $0x8] sm:$0xff]  ;;  %v1167_v53 = vand.u32 4294901760, %v1166_v4 }
  0x85   :  { %966 = vmatpush.msra.mxu1 %v12616_v21  ;;  %1089 = vmatpush.msrb.mxu0 %v12785_v58  ;;  %v151_v21 = vld [vmem:[#allocation2 + $0x108] sm:$0xff] }
  0x86   :  { %970 = vmatmul.f32.vlgmr.msra.gmra.mxu1 %v12687_v52  ;;  %1230 = vmatpush.msrb.mxu2 %v12789_v61  ;;  %v12876_v32 = vand.u32 4294901760, %v151_v21  ;;  %v20836_v7 = vand.u32 4294901760, %v12870_v26 }
  0x87   :  { %1126 = vmatpush.msrb.mxu1 %v1125_v25  ;;  %1279 = vmatpush.msrb.mxu3 %v12758_v49  ;;  %v1161_v25 = vand.u32 4294901760, %v1160_v51  ;;  %v351_v51 = vld [vmem:[#allocation2 + $0x748] sm:$0xff] }
  0x88   :  { %1091 = vmatpush.msrb.mxu0 %v12796_v36  ;;  %1233 = vmatpush.msrb.mxu2 %v12800_v47  ;;  %v12901_v1 = vsub.f32 %v151_v21, %v12876_v32  ;;  %v1178_v34 = vsub.f32 %v12870_v26, %v20836_v7  ;;  %v12920_v21 = vand.u32 4294901760, %v367_v17  ;;  %v12937_v7 = vsub.f32 %v127_v45, %v12909_v20 }
  0x89   :  { %1132 = vmatpush.msrb.mxu1 %v1131_v41  ;;  %1281 = vmatpush.msrb.mxu3 %v12765_v35  ;;  %v12913_v41 = vsub.f32 %v143_v57, %v12886_v28  ;;  %v20848_v45 = vand.u32 4294901760, %v12927_v12  ;;  %v12954_v56 = vand.u32 4294901760, %v351_v51 }
  0x8a   :  { %1093 = vmatpush.msrb.mxu0 %v12810_v38  ;;  %1236 = vmatpush.msrb.mxu2 %v12814_v59  ;;  %v20842_v57 = vand.u32 4294901760, %v12901_v1 }
  0x8b   :  { %1138 = vmatpush.msrb.mxu1 %v1137_v50  ;;  %1283 = vmatpush.msrb.mxu3 %v12775_v31  ;;  %v359_v50 = vld [vmem:[#allocation2 + $0x788] sm:$0xff]  ;;  %v20845_v4 = vand.u32 4294901760, %v12913_v41  ;;  %v12979_v3 = vsub.f32 %v351_v51, %v12954_v56 }
  0x8c   :  { %1095 = vmatpush.msrb.mxu0 %v12823_v42  ;;  %1239 = vmatpush.msrb.mxu2 %v12827_v18  ;;  %v12939_v30 = vand.u32 4294901760, %v359_v50 }
  0x8d   :  { %1144 = vmatpush.msrb.mxu1 %v1143_v39  ;;  %1285 = vmatpush.msrb.mxu3 %v12785_v58  ;;  %v12923_v39 = vand.u32 4294901760, %v119_v14 }
  0x8e   :  { %1097 = vmatpush.msrb.mxu0 %v12831_v2  ;;  %1242 = vmatpush.msrb.mxu2 %v12840_v8  ;;  %21244 = vst [vmem:[#allocation23_spill] sm:$0xff] %v12939_v30 }
  0x8f   :  { %1150 = vmatpush.msrb.mxu1 %v1149_v27  ;;  %1287 = vmatpush.msrb.mxu3 %v12796_v36  ;;  %21243 = vst [vmem:[#allocation22_spill] sm:$0xff] %v12923_v39  ;;  %v1173_v27 = vand.u32 4294901760, %v1172_v37  ;;  %v1179_v37 = vand.u32 4294901760, %v1178_v34  ;;  %v12952_v24 = vsub.f32 %v119_v14, %v12923_v39  ;;  %v20850_v14 = vand.u32 4294901760, %v12937_v7 }
  0x90   :  { %1099 = vmatpush.msrb.mxu0 %v12844_v6  ;;  %1245 = vmatpush.msrb.mxu2 %v12853_v44 }
  0x91   :  { %1156 = vmatpush.msrb.mxu1 %v1155_v62  ;;  %1289 = vmatpush.msrb.mxu3 %v12810_v38  ;;  %v1184_v62 = vsub.f32 %v12889_v13, %v20838_v19  ;;  %v1190_v19 = vsub.f32 %v12901_v1, %v20842_v57  ;;  %v12966_v57 = vsub.f32 %v359_v50, %v12939_v30  ;;  %v20858_v50 = vand.u32 4294901760, %v12952_v24 }
  0x92   :  { %1101 = vmatpush.msrb.mxu0 %v12864_v0  ;;  %1248 = vmatpush.msrb.mxu2 %v12858_v54 }
  0x93   :  { %1162 = vmatpush.msrb.mxu1 %v1161_v25  ;;  %1291 = vmatpush.msrb.mxu3 %v12823_v42  ;;  %v12944_v25 = vsub.f32 %v367_v17, %v12920_v21  ;;  %v12958_v17 = vand.u32 4294901760, %v343_v55  ;;  %v1185_v34 = vand.u32 4294901760, %v1184_v62  ;;  %v1191_v62 = vand.u32 4294901760, %v1190_v19 }
  0x94   :  { %1103 = vmatpush.msrb.mxu0 %v12876_v32  ;;  %1251 = vmatpush.msrb.mxu2 %v12870_v26  ;;  %v1214_v16 = vsub.f32 %v12952_v24, %v20858_v50 }
  0x95   :  { %1168 = vmatpush.msrb.mxu1 %v1167_v53  ;;  %1293 = vmatpush.msrb.mxu3 %v12831_v2  ;;  %v1196_v53 = vsub.f32 %v12913_v41, %v20845_v4  ;;  %v20857_v10 = vand.u32 4294901760, %v12944_v25  ;;  %v1202_v4 = vsub.f32 %v12927_v12, %v20848_v45  ;;  %v12984_v29 = vsub.f32 %v343_v55, %v12958_v17 }
  0x96   :  { %1105 = vmatpush.msrb.mxu0 %v12886_v28  ;;  %1254 = vmatpush.msrb.mxu2 %v12889_v13  ;;  %v1208_v45 = vsub.f32 %v12937_v7, %v20850_v14 }
  0x97   :  { %1174 = vmatpush.msrb.mxu1 %v1173_v27  ;;  %1295 = vmatpush.msrb.mxu3 %v12844_v6  ;;  %v327_v27 = vld [vmem:[#allocation2 + $0x688] sm:$0xff]  ;;  %v1197_v19 = vand.u32 4294901760, %v1196_v53  ;;  %v1465_v55 = vsub.f32 %v12944_v25, %v20857_v10  ;;  %v1203_v14 = vand.u32 4294901760, %v1202_v4 }
  0x98   :  { %1107 = vmatpush.msrb.mxu0 %v12898_v5  ;;  %1257 = vmatpush.msrb.mxu2 %v12901_v1  ;;  %v12991_v51 = vand.u32 4294901760, %v327_v27  ;;  %v311_v53 = vld [vmem:[#allocation2 + $0x608] sm:$0xff]  ;;  %v1209_v4 = vand.u32 4294901760, %v1208_v45  ;;  %v1215_v45 = vand.u32 4294901760, %v1214_v16 }
  0x99   :  { %1180 = vmatpush.msrb.mxu1 %v1179_v37  ;;  %1297 = vmatpush.msrb.mxu3 %v12864_v0  ;;  %v319_v37 = vld [vmem:[#allocation2 + $0x648] sm:$0xff]  ;;  %v13019_v43 = vand.u32 4294901760, %v311_v53  ;;  %v1466_v23 = vand.u32 4294901760, %v1465_v55  ;;  %v21250_v55 = vand.u32 4294901760, %v12984_v29 }
  0x9a   :  { %1109 = vmatpush.msrb.mxu0 %v12909_v20  ;;  %1260 = vmatpush.msrb.mxu2 %v12913_v41  ;;  %v13006_v40 = vand.u32 4294901760, %v319_v37  ;;  %v303_v10 = vld [vmem:[#allocation2 + $0x5c8] sm:$0xff]  ;;  %v13017_v52 = vsub.f32 %v327_v27, %v12991_v51 }
  0x9b   :  { %1186 = vmatpush.msrb.mxu1 %v1185_v34  ;;  %1299 = vmatpush.msrb.mxu3 %v12876_v32  ;;  %v12999_v34 = vsub.f32 %v335_v11, %v12971_v9  ;;  %v295_v11 = vld [vmem:[#allocation2 + $0x588] sm:$0xff]  ;;  %v13032_v48 = vand.u32 4294901760, %v303_v10 }
  0x9c   :  { %1111 = vmatpush.msrb.mxu0 %v12923_v39  ;;  %1263 = vmatpush.msrb.mxu2 %v12927_v12  ;;  %v13030_v22 = vsub.f32 %v319_v37, %v13006_v40  ;;  %v13043_v37 = vsub.f32 %v311_v53, %v13019_v43 }
  0x9d   :  { %1192 = vmatpush.msrb.mxu1 %v1191_v62  ;;  %1301 = vmatpush.msrb.mxu3 %v12886_v28  ;;  %v21246_v62 = vand.u32 4294901760, %v12966_v57  ;;  %v13055_v53 = vsub.f32 %v303_v10, %v13032_v48 }
  0x9e   :  { %1318 = vmatpush.msra.mxu0 %v21245_v46  ;;  %1266 = vmatpush.msrb.mxu2 %v12937_v7  ;;  %v21247_v46 = vand.u32 4294901760, %v12778_v60  ;;  %v21249_v60 = vand.u32 4294901760, %v12789_v61  ;;  %v21251_v61 = vand.u32 4294901760, %v12800_v47  ;;  %v21253_v47 = vand.u32 4294901760, %v12814_v59 }
  0x9f   :  { %1198 = vmatpush.msrb.mxu1 %v1197_v19  ;;  %1303 = vmatpush.msrb.mxu3 %v12898_v5  ;;  %v1471_v50 = vsub.f32 %v12966_v57, %v21246_v62  ;;  %v21248_v62 = vand.u32 4294901760, %v12979_v3  ;;  %v13045_v19 = vand.u32 4294901760, %v295_v11  ;;  %v21255_v59 = vand.u32 4294901760, %v12827_v18 }
  0xa0   :  { %1322 = vmatpush.msra.mxu0 %v21247_v46  ;;  %1269 = vmatpush.msrb.mxu2 %v12952_v24  ;;  %v287_v46 = vld [vmem:[#allocation2 + $0x548] sm:$0xff]  ;;  %v21256_v18 = vand.u32 4294901760, %v12840_v8 }
  0xa1   :  { %1204 = vmatpush.msrb.mxu1 %v1203_v14  ;;  %1305 = vmatpush.msrb.mxu3 %v12909_v20  ;;  %v1477_v27 = vsub.f32 %v12979_v3, %v21248_v62  ;;  %v1483_v14 = vsub.f32 %v12984_v29, %v21250_v55  ;;  %v1472_v16 = vand.u32 4294901760, %v1471_v50  ;;  %v20868_v62 = vand.u32 4294901760, %v13030_v22 }
  0xa2   :  { %1326 = vmatpush.msra.mxu0 %v21249_v60  ;;  %1422 = vmatpush.msra.mxu2 %v12920_v21  ;;  %v21252_v60 = vand.u32 4294901760, %v12999_v34  ;;  %v13068_v10 = vsub.f32 %v295_v11, %v13045_v19 }
  0xa3   :  { %1210 = vmatpush.msrb.mxu1 %v1209_v4  ;;  %1307 = vmatpush.msrb.mxu3 %v12923_v39  ;;  %v279_v4 = vld [vmem:[#allocation2 + $0x508] sm:$0xff]  ;;  %v1478_v50 = vand.u32 4294901760, %v1477_v27  ;;  %v13057_v39 = vand.u32 4294901760, %v287_v46  ;;  %v1506_v27 = vand.u32 4294901760, %v13043_v37 }
  0xa4   :  { %1330 = vmatpush.msra.mxu0 %v21251_v61  ;;  %1424 = vmatpush.msra.mxu2 %v12939_v30  ;;  %v1489_v55 = vsub.f32 %v12999_v34, %v21252_v60  ;;  %v1484_v61 = vand.u32 4294901760, %v1483_v14  ;;  %v271_v30 = vld [vmem:[#allocation2 + $0x4c8] sm:$0xff]  ;;  %v13070_v60 = vand.u32 4294901760, %v279_v4  ;;  %v1501_v14 = vsub.f32 %v13030_v22, %v20868_v62 }
  0xa5   :  { %1467 = vmatpush.msra.mxu3 %v1466_v23  ;;  %1216 = vmatpush.msrb.mxu1 %v1215_v45  ;;  %v21254_v23 = vand.u32 4294901760, %v13017_v52  ;;  %v13081_v11 = vsub.f32 %v287_v46, %v13057_v39  ;;  %v21257_v62 = vand.u32 4294901760, %v12853_v44  ;;  %v21258_v44 = vand.u32 4294901760, %v12858_v54 }
  0xa6   :  { %1334 = vmatpush.msra.mxu0 %v21253_v47  ;;  %1426 = vmatpush.msra.mxu2 %v12954_v56  ;;  %v13083_v47 = vand.u32 4294901760, %v271_v30  ;;  %v13094_v46 = vsub.f32 %v279_v4, %v13070_v60  ;;  %v1502_v8 = vand.u32 4294901760, %v1501_v14 }
  0xa7   :  { %1385 = vmatpush.msra.mxu1 %v12751_v63  ;;  %1473 = vmatpush.msra.mxu3 %v1472_v16  ;;  %v1495_v45 = vsub.f32 %v13017_v52, %v21254_v23  ;;  %v1490_v63 = vand.u32 4294901760, %v1489_v55  ;;  %v1512_v16 = vand.u32 4294901760, %v13055_v53  ;;  %v263_v23 = vld [vmem:[#allocation2 + $0x488] sm:$0xff]  ;;  %v1507_v55 = vsub.f32 %v13043_v37, %v1506_v27 }
  0xa8   :  { %1338 = vmatpush.msra.mxu0 %v21255_v59  ;;  %1428 = vmatpush.msra.mxu2 %v12958_v17  ;;  %v255_v59 = vld [vmem:[#allocation2 + $0x448] sm:$0xff]  ;;  %v13107_v4 = vsub.f32 %v271_v30, %v13083_v47  ;;  %v1530_v14 = vand.u32 4294901760, %v13094_v46  ;;  %v21259_v30 = vand.u32 4294901760, %v12870_v26  ;;  %v21260_v26 = vand.u32 4294901760, %v12889_v13 }
  0xa9   :  { %1387 = vmatpush.msra.mxu1 %v12758_v49  ;;  %1479 = vmatpush.msra.mxu3 %v1478_v50  ;;  %v1496_v49 = vand.u32 4294901760, %v1495_v45  ;;  %v1518_v50 = vand.u32 4294901760, %v13068_v10  ;;  %v1524_v45 = vand.u32 4294901760, %v13081_v11 }
  0xaa   :  { %1342 = vmatpush.msra.mxu0 %v21256_v18  ;;  %1430 = vmatpush.msra.mxu2 %v12971_v9  ;;  %v247_v18 = vld [vmem:[#allocation2 + $0x408] sm:$0xff] }
  0xab   :  { %1389 = vmatpush.msra.mxu1 %v12765_v35  ;;  %1485 = vmatpush.msra.mxu3 %v1484_v61  ;;  %v13099_v35 = vand.u32 4294901760, %v263_v23  ;;  %v1513_v61 = vsub.f32 %v13055_v53, %v1512_v16 }
  0xac   :  { %1346 = vmatpush.msra.mxu0 %v21257_v62  ;;  %1432 = vmatpush.msra.mxu2 %v12991_v51  ;;  %v1508_v62 = vand.u32 4294901760, %v1507_v55  ;;  %v1525_v55 = vsub.f32 %v13081_v11, %v1524_v45 }
  0xad   :  { %1391 = vmatpush.msra.mxu1 %v12775_v31  ;;  %1491 = vmatpush.msra.mxu3 %v1490_v63  ;;  %v13112_v31 = vand.u32 4294901760, %v255_v59  ;;  %v1519_v63 = vsub.f32 %v13068_v10, %v1518_v50  ;;  %v13123_v54 = vsub.f32 %v263_v23, %v13099_v35 }
  0xae   :  { %1350 = vmatpush.msra.mxu0 %v21258_v44  ;;  %1434 = vmatpush.msra.mxu2 %v13006_v40  ;;  %v1536_v44 = vand.u32 4294901760, %v13107_v4 }
  0xaf   :  { %1393 = vmatpush.msra.mxu1 %v12785_v58  ;;  %1497 = vmatpush.msra.mxu3 %v1496_v49  ;;  %v13125_v58 = vand.u32 4294901760, %v247_v18  ;;  %v1514_v49 = vand.u32 4294901760, %v1513_v61  ;;  %v1520_v23 = vand.u32 4294901760, %v1519_v63  ;;  %v21261_v61 = vand.u32 4294901760, %v12901_v1 }
  0xb0   :  { %1354 = vmatpush.msra.mxu0 %v21259_v30  ;;  %1436 = vmatpush.msra.mxu2 %v13019_v43  ;;  %v1542_v13 = vand.u32 4294901760, %v13123_v54  ;;  %v21262_v63 = vand.u32 4294901760, %v12913_v41 }
  0xb1   :  { %1395 = vmatpush.msra.mxu1 %v12796_v36  ;;  %1503 = vmatpush.msra.mxu3 %v1502_v8  ;;  %v13136_v36 = vsub.f32 %v255_v59, %v13112_v31  ;;  %v1531_v8 = vsub.f32 %v13094_v46, %v1530_v14  ;;  %v1526_v59 = vand.u32 4294901760, %v1525_v55 }
  0xb2   :  { %1358 = vmatpush.msra.mxu0 %v21260_v26  ;;  %1438 = vmatpush.msra.mxu2 %v13032_v48  ;;  %v1543_v30 = vsub.f32 %v13123_v54, %v1542_v13  ;;  %v21269_v26 = vld [vmem:[#allocation22_spill] sm:$0xff] }
  0xb3   :  { %1397 = vmatpush.msra.mxu1 %v12810_v38  ;;  %1509 = vmatpush.msra.mxu3 %v1508_v62  ;;  %v13147_v38 = vsub.f32 %v247_v18, %v13125_v58  ;;  %v1537_v62 = vsub.f32 %v13107_v4, %v1536_v44  ;;  %v1532_v1 = vand.u32 4294901760, %v1531_v8  ;;  %v21263_v18 = vand.u32 4294901760, %v12927_v12  ;;  %v21274_v8 = vld [vmem:[#allocation16_spill] sm:$0xff] }
  0xb4   :  { %1362 = vmatpush.msra.mxu0 %v21261_v61  ;;  %1440 = vmatpush.msra.mxu2 %v13045_v19  ;;  %v1544_v55 = vand.u32 4294901760, %v1543_v30 }
  0xb5   :  { %1399 = vmatpush.msra.mxu1 %v12823_v42  ;;  %1515 = vmatpush.msra.mxu3 %v1514_v49  ;;  %v1548_v42 = vand.u32 4294901760, %v13136_v36  ;;  %v1554_v41 = vand.u32 4294901760, %v13147_v38  ;;  %v21264_v49 = vand.u32 4294901760, %v12937_v7 }
  0xb6   :  { %1366 = vmatpush.msra.mxu0 %v21262_v63  ;;  %1442 = vmatpush.msra.mxu2 %v13057_v39 }
  0xb7   :  { %1401 = vmatpush.msra.mxu1 %v12831_v2  ;;  %1521 = vmatpush.msra.mxu3 %v1520_v23  ;;  %v1538_v2 = vand.u32 4294901760, %v1537_v62  ;;  %v1549_v12 = vsub.f32 %v13136_v36, %v1548_v42  ;;  %v1555_v7 = vsub.f32 %v13147_v38, %v1554_v41  ;;  %v21270_v23 = vld [vmem:[#allocation17_spill] sm:$0xff] }
  0xb8   :  { %1370 = vmatpush.msra.mxu0 %v21263_v18  ;;  %1444 = vmatpush.msra.mxu2 %v13070_v60  ;;  %v160_v18 = vld [vmem:[#allocation2 + $0x150] sm:$0xff] }
  0xb9   :  { %1403 = vmatpush.msra.mxu1 %v12844_v6  ;;  %1527 = vmatpush.msra.mxu3 %v1526_v59  ;;  %v21265_v6 = vand.u32 4294901760, %v12952_v24  ;;  %v21266_v24 = vand.u32 4294901760, %v12944_v25 }
  0xba   :  { %1374 = vmatpush.msra.mxu0 %v21264_v49  ;;  %1446 = vmatpush.msra.mxu2 %v13083_v47 }
  0xbb   :  { %1405 = vmatpush.msra.mxu1 %v12864_v0  ;;  %1533 = vmatpush.msra.mxu3 %v1532_v1  ;;  %v1550_v0 = vand.u32 4294901760, %v1549_v12  ;;  %v21280_v12 = vld [vmem:[#allocation21_spill] sm:$0xff] }
  0xbc   :  { %1378 = vmatpush.msra.mxu0 %v21265_v6  ;;  %1448 = vmatpush.msra.mxu2 %v13099_v35 }
  0xbd   :  { %1407 = vmatpush.msra.mxu1 %v12876_v32  ;;  %1539 = vmatpush.msra.mxu3 %v1538_v2  ;;  %v1556_v32 = vand.u32 4294901760, %v1555_v7 }
  0xbe   :  { %1117 = vmatmul.f32.vlgmr.msrb.gmra.mxu0 %v12663_v33  ;;  %1450 = vmatpush.msra.mxu2 %v13112_v31 }
  0xbf   :  { %1409 = vmatpush.msra.mxu1 %v12886_v28  ;;  %1565 = vmatpush.msrb.mxu0 %v12944_v25  ;;  %v21267_v28 = vld [vmem:[#allocation18_spill] sm:$0xff]  ;;  %v21271_v25 = vand.u32 4294901760, %v12979_v3 }
  0xc0   :  { %1545 = vmatpush.msra.mxu3 %v1544_v55  ;;  %1452 = vmatpush.msra.mxu2 %v13125_v58 }
  0xc1   :  { %1411 = vmatpush.msra.mxu1 %v12898_v5  ;;  %1568 = vmatpush.msrb.mxu0 %v12966_v57  ;;  %v21268_v5 = vand.u32 4294901760, %v12966_v57  ;;  %v21273_v57 = vand.u32 4294901760, %v12984_v29 }
  0xc2   :  { %1551 = vmatpush.msra.mxu3 %v1550_v0  ;;  %1272 = vmatmul.f32.vlgmr.msrb.gmra.mxu2 %v12601_v15  ;;  %v13356_v0 = vand.u32 4294901760, %v160_v18 }
  0xc3   :  { %1571 = vmatpush.msrb.mxu0 %v12979_v3  ;;  %1659 = vmatpush.msrb.mxu2 %v21266_v24  ;;  %v21275_v3 = vand.u32 4294901760, %v12999_v34 }
  0xc4   :  { %1413 = vmatpush.msra.mxu1 %v12909_v20  ;;  %1557 = vmatpush.msra.mxu3 %v1556_v32  ;;  %v21272_v20 = vld [vmem:[#allocation23_spill] sm:$0xff] }
  0xc5   :  { %1311 = vmatmul.f32.vlgmr.msrb.gmra.mxu3 %v21267_v28  ;;  %1574 = vmatpush.msrb.mxu0 %v12984_v29  ;;  %v21277_v29 = vand.u32 4294901760, %v13017_v52 }
  0xc6   :  { %1663 = vmatpush.msrb.mxu2 %v21268_v5  ;;  %1726 = vmatpush.msrb.mxu3 %v12920_v21  ;;  %v144_v5 = vld [vmem:[#allocation2 + $0xd0] sm:$0xff] }
  0xc7   :  { %1415 = vmatpush.msra.mxu1 %v21269_v26  ;;  %1577 = vmatpush.msrb.mxu0 %v12999_v34  ;;  %v208_v34 = vld [vmem:[#allocation2 + $0x2d0] sm:$0xff] }
  0xc8   :  { %1218 = vmatmul.f32.vlgmr.msrb.gmra.mxu1 %v21270_v23  ;;  %1667 = vmatpush.msrb.mxu2 %v21271_v25 }
  0xc9   :  { %1618 = vmatpush.msrb.mxu1 %v12920_v21  ;;  %1728 = vmatpush.msrb.mxu3 %v21272_v20  ;;  %v21276_v21 = vld [vmem:[#allocation19_spill] sm:$0xff] }
  0xca   :  { %1580 = vmatpush.msrb.mxu0 %v13017_v52  ;;  %1671 = vmatpush.msrb.mxu2 %v21273_v57  ;;  %v240_v52 = vld [vmem:[#allocation2 + $0x3d0] sm:$0xff] }
  0xcb   :  { %1620 = vmatpush.msrb.mxu1 %v21272_v20  ;;  %1730 = vmatpush.msrb.mxu3 %v12954_v56 }
  0xcc   :  { %1458 = vmatmul.f32.vlgmr.msra.gmra.mxu2 %v21274_v8  ;;  %1583 = vmatpush.msrb.mxu0 %v13030_v22 }
  0xcd   :  { %1622 = vmatpush.msrb.mxu1 %v12954_v56  ;;  %1675 = vmatpush.msrb.mxu2 %v21275_v3  ;;  %v21278_v56 = vand.u32 4294901760, %v13030_v22  ;;  %v232_v22 = vld [vmem:[#allocation2 + $0x390] sm:$0xff] }
  0xce   :  { %1732 = vmatpush.msrb.mxu3 %v12958_v17  ;;  %1380 = vmatmul.f32.vlgmr.msra.gmra.mxu0 %v21270_v23 }
  0xcf   :  { %1559 = vmatmul.f32.vlgmr.msra.gmra.mxu3 %v21276_v21  ;;  %1586 = vmatpush.msrb.mxu0 %v13043_v37 }
  0xd0   :  { %1624 = vmatpush.msrb.mxu1 %v12958_v17  ;;  %1679 = vmatpush.msrb.mxu2 %v21277_v29  ;;  %v13250_v17 = vand.u32 4294901760, %v232_v22  ;;  %v136_v29 = vld [vmem:[#allocation2 + $0x90] sm:$0xff] }
  0xd1   :  { %1734 = vmatpush.msrb.mxu3 %v12971_v9  ;;  %1417 = vmatmul.f32.vlgmr.msra.gmra.mxu1 %v21270_v23 }
  0xd2   :  { %1589 = vmatpush.msrb.mxu0 %v13055_v53  ;;  %1626 = vmatpush.msrb.mxu1 %v12971_v9  ;;  %v13243_v9 = vand.u32 4294901760, %v240_v52  ;;  %v13270_v37 = vsub.f32 %v232_v22, %v13250_v17  ;;  %v200_v53 = vld [vmem:[#allocation2 + $0x290] sm:$0xff]  ;;  %v13378_v22 = vand.u32 4294901760, %v144_v5 }
  0xd3   :  { %1683 = vmatpush.msrb.mxu2 %v21278_v56  ;;  %1736 = vmatpush.msrb.mxu3 %v12991_v51 }
  0xd4   :  { %1592 = vmatpush.msrb.mxu0 %v13068_v10  ;;  %1628 = vmatpush.msrb.mxu1 %v12991_v51 }
  0xd5   :  { %1687 = vmatpush.msrb.mxu2 %v1506_v27  ;;  %1738 = vmatpush.msrb.mxu3 %v13006_v40 }
  0xd6   :  { %1595 = vmatpush.msrb.mxu0 %v13081_v11  ;;  %1630 = vmatpush.msrb.mxu1 %v13006_v40  ;;  %v224_v40 = vld [vmem:[#allocation2 + $0x350] sm:$0xff] }
  0xd7   :  { %1691 = vmatpush.msrb.mxu2 %v1512_v16  ;;  %1740 = vmatpush.msrb.mxu3 %v13019_v43  ;;  %v13257_v51 = vand.u32 4294901760, %v224_v40  ;;  %v21279_v16 = vld [vmem:[#allocation20_spill] sm:$0xff]  ;;  %v192_v11 = vld [vmem:[#allocation2 + $0x250] sm:$0xff] }
  0xd8   :  { %1598 = vmatpush.msrb.mxu0 %v13094_v46  ;;  %1632 = vmatpush.msrb.mxu1 %v13019_v43  ;;  %v216_v43 = vld [vmem:[#allocation2 + $0x310] sm:$0xff] }
  0xd9   :  { %1695 = vmatpush.msrb.mxu2 %v1518_v50  ;;  %1742 = vmatpush.msrb.mxu3 %v13032_v48  ;;  %v13281_v10 = vsub.f32 %v224_v40, %v13257_v51  ;;  %v20880_v50 = vand.u32 4294901760, %v13270_v37  ;;  %v13381_v40 = vsub.f32 %v160_v18, %v13356_v0 }
  0xda   :  { %1601 = vmatpush.msrb.mxu0 %v13107_v4  ;;  %1634 = vmatpush.msrb.mxu1 %v13032_v48  ;;  %v13260_v48 = vsub.f32 %v240_v52, %v13243_v9  ;;  %v13302_v4 = vand.u32 4294901760, %v192_v11 }
  0xdb   :  { %1699 = vmatpush.msrb.mxu2 %v1524_v45  ;;  %1744 = vmatpush.msrb.mxu3 %v13045_v19  ;;  %v184_v45 = vld [vmem:[#allocation2 + $0x210] sm:$0xff]  ;;  %v20871_v18 = vand.u32 4294901760, %v13381_v40 }
  0xdc   :  { %1604 = vmatpush.msrb.mxu0 %v13123_v54  ;;  %1636 = vmatpush.msrb.mxu1 %v13045_v19  ;;  %v13267_v19 = vand.u32 4294901760, %v216_v43  ;;  %v20882_v27 = vand.u32 4294901760, %v13260_v48  ;;  %v13332_v1 = vsub.f32 %v192_v11, %v13302_v4 }
  0xdd   :  { %1703 = vmatpush.msrb.mxu2 %v1530_v14  ;;  %1746 = vmatpush.msrb.mxu3 %v13057_v39  ;;  %v20879_v14 = vand.u32 4294901760, %v13281_v10 }
  0xde   :  { %1607 = vmatpush.msrb.mxu0 %v13136_v36  ;;  %1638 = vmatpush.msrb.mxu1 %v13057_v39  ;;  %v13277_v39 = vand.u32 4294901760, %v208_v34  ;;  %v13292_v46 = vsub.f32 %v216_v43, %v13267_v19  ;;  %v13315_v36 = vand.u32 4294901760, %v184_v45  ;;  %v20873_v32 = vand.u32 4294901760, %v13332_v1 }
  0xdf   :  { %1707 = vmatpush.msrb.mxu2 %v1536_v44  ;;  %1748 = vmatpush.msrb.mxu3 %v13070_v60  ;;  %v176_v44 = vld [vmem:[#allocation2 + $0x1d0] sm:$0xff]  ;;  %v1818_v63 = vsub.f32 %v13281_v10, %v20879_v14 }
  0xe0   :  { %1610 = vmatpush.msrb.mxu0 %v13147_v38  ;;  %1640 = vmatpush.msrb.mxu1 %v13070_v60  ;;  %v13288_v60 = vand.u32 4294901760, %v200_v53  ;;  %v13306_v54 = vsub.f32 %v208_v34, %v13277_v39  ;;  %v20877_v61 = vand.u32 4294901760, %v13292_v46  ;;  %v168_v38 = vld [vmem:[#allocation2 + $0x190] sm:$0xff]  ;;  %v13323_v59 = vand.u32 4294901760, %v176_v44 }
  0xe1   :  { %1711 = vmatpush.msrb.mxu2 %v1542_v13  ;;  %1750 = vmatpush.msrb.mxu3 %v13083_v47  ;;  %v13345_v49 = vsub.f32 %v184_v45, %v13315_v36  ;;  %v1819_v55 = vand.u32 4294901760, %v1818_v63  ;;  %v1842_v52 = vsub.f32 %v13332_v1, %v20873_v32  ;;  %v128_v34 = vld [vmem:[#allocation2 + $0x50] sm:$0xff]  ;;  %v13390_v45 = vand.u32 4294901760, %v136_v29 }
  0xe2   :  { %1613 = vmatmul.f32.vlgmr.msrb.gmra.mxu0 %v21279_v16  ;;  %1642 = vmatpush.msrb.mxu1 %v13083_v47  ;;  %v1806_v47 = vsub.f32 %v13260_v48, %v20882_v27  ;;  %v13319_v13 = vsub.f32 %v200_v53, %v13288_v60  ;;  %v13350_v6 = vsub.f32 %v176_v44, %v13323_v59  ;;  %v368_v44 = vld [vmem:[#allocation2 + $0x7d0] sm:$0xff]  ;;  %v13401_v63 = vand.u32 4294901760, %v128_v34 }
  0xe3   :  { %1763 = vmatpush.msra.mxu0 %v13243_v9  ;;  %1715 = vmatpush.msrb.mxu2 %v1548_v42  ;;  %v20876_v42 = vand.u32 4294901760, %v13306_v54  ;;  %v20872_v57 = vand.u32 4294901760, %v13345_v49 }
  0xe4   :  { %1752 = vmatpush.msrb.mxu3 %v13099_v35  ;;  %1644 = vmatpush.msrb.mxu1 %v13099_v35  ;;  %v1812_v35 = vsub.f32 %v13270_v37, %v20880_v50  ;;  %v1807_v62 = vand.u32 4294901760, %v1806_v47  ;;  %v20874_v2 = vand.u32 4294901760, %v13319_v13  ;;  %v20870_v3 = vand.u32 4294901760, %v13350_v6 }
  0xe5   :  { %1765 = vmatpush.msra.mxu0 %v13250_v17  ;;  %1719 = vmatpush.msrb.mxu2 %v1554_v41  ;;  %v1824_v41 = vsub.f32 %v13292_v46, %v20877_v61  ;;  %v1830_v7 = vsub.f32 %v13306_v54, %v20876_v42  ;;  %v1848_v11 = vsub.f32 %v13345_v49, %v20872_v57 }
  0xe6   :  { %1754 = vmatpush.msrb.mxu3 %v13112_v31  ;;  %1721 = vmatmul.f32.vlgmr.msrb.gmra.mxu2 %v21276_v21  ;;  %v1813_v30 = vand.u32 4294901760, %v1812_v35  ;;  %v1836_v25 = vsub.f32 %v13319_v13, %v20874_v2  ;;  %v1854_v35 = vsub.f32 %v13350_v6, %v20870_v3  ;;  %v344_v3 = vld [vmem:[#allocation2 + $0x710] sm:$0xff] }
  0xe7   :  { %1767 = vmatpush.msra.mxu0 %v13257_v51  ;;  %1906 = vmatpush.msra.mxu2 %v13260_v48  ;;  %v1825_v26 = vand.u32 4294901760, %v1824_v41  ;;  %v1831_v56 = vand.u32 4294901760, %v1830_v7  ;;  %v1849_v7 = vand.u32 4294901760, %v1848_v11  ;;  %v336_v2 = vld [vmem:[#allocation2 + $0x6d0] sm:$0xff] }
  0xe8   :  { %1646 = vmatpush.msrb.mxu1 %v13112_v31  ;;  %1756 = vmatpush.msrb.mxu3 %v13125_v58  ;;  %v13336_v31 = vand.u32 4294901760, %v168_v38  ;;  %v1837_v53 = vand.u32 4294901760, %v1836_v25  ;;  %v13419_v25 = vsub.f32 %v136_v29, %v13390_v45  ;;  %v13463_v61 = vand.u32 4294901760, %v336_v2 }
  0xe9   :  { %1758 = vmatmul.f32.vlgmr.msrb.gmra.mxu3 %v21276_v21  ;;  %1769 = vmatpush.msra.mxu0 %v13267_v19  ;;  %v21283_v21 = vand.u32 4294901760, %v13260_v48 }
  0xea   :  { %1909 = vmatpush.msra.mxu2 %v13270_v37  ;;  %1959 = vmatpush.msra.mxu3 %v13243_v9  ;;  %v13362_v24 = vsub.f32 %v168_v38, %v13336_v31  ;;  %v120_v38 = vld [vmem:[#allocation2 + $0x10] sm:$0xff] }
  0xeb   :  { %1648 = vmatpush.msrb.mxu1 %v13125_v58  ;;  %1771 = vmatpush.msra.mxu0 %v13277_v39  ;;  %v152_v58 = vld [vmem:[#allocation2 + $0x110] sm:$0xff] }
  0xec   :  { %1652 = vmatmul.f32.vlgmr.msrb.gmra.mxu1 %v21280_v12  ;;  %1912 = vmatpush.msra.mxu2 %v13281_v10  ;;  %v13368_v20 = vand.u32 4294901760, %v152_v58  ;;  %v20869_v43 = vand.u32 4294901760, %v13362_v24 }
  0xed   :  { %1808 = vmatpush.msra.mxu1 %v1807_v62  ;;  %1961 = vmatpush.msra.mxu3 %v13250_v17  ;;  %v1843_v62 = vand.u32 4294901760, %v1842_v52  ;;  %v352_v52 = vld [vmem:[#allocation2 + $0x750] sm:$0xff] }
  0xee   :  { %1773 = vmatpush.msra.mxu0 %v13288_v60  ;;  %1915 = vmatpush.msra.mxu2 %v13292_v46  ;;  %v13393_v47 = vsub.f32 %v152_v58, %v13368_v20  ;;  %v1860_v41 = vsub.f32 %v13362_v24, %v20869_v43  ;;  %v13412_v58 = vand.u32 4294901760, %v368_v44  ;;  %v13429_v43 = vsub.f32 %v128_v34, %v13401_v63 }
  0xef   :  { %1814 = vmatpush.msra.mxu1 %v1813_v30  ;;  %1963 = vmatpush.msra.mxu3 %v13257_v51  ;;  %v13405_v30 = vsub.f32 %v144_v5, %v13378_v22  ;;  %v20881_v34 = vand.u32 4294901760, %v13419_v25  ;;  %v13446_v32 = vand.u32 4294901760, %v352_v52 }
  0xf0   :  { %1775 = vmatpush.msra.mxu0 %v13302_v4  ;;  %1918 = vmatpush.msra.mxu2 %v13306_v54  ;;  %v20875_v5 = vand.u32 4294901760, %v13393_v47 }
  0xf1   :  { %1820 = vmatpush.msra.mxu1 %v1819_v55  ;;  %1965 = vmatpush.msra.mxu3 %v13267_v19  ;;  %v360_v55 = vld [vmem:[#allocation2 + $0x790] sm:$0xff]  ;;  %v20878_v11 = vand.u32 4294901760, %v13405_v30  ;;  %v13471_v14 = vsub.f32 %v352_v52, %v13446_v32 }
  0xf2   :  { %1777 = vmatpush.msra.mxu0 %v13315_v36  ;;  %1921 = vmatpush.msra.mxu2 %v13319_v13  ;;  %v13431_v29 = vand.u32 4294901760, %v360_v55 }
  0xf3   :  { %1826 = vmatpush.msra.mxu1 %v1825_v26  ;;  %1967 = vmatpush.msra.mxu3 %v13277_v39  ;;  %v13415_v26 = vand.u32 4294901760, %v120_v38 }
  0xf4   :  { %1779 = vmatpush.msra.mxu0 %v13323_v59  ;;  %1924 = vmatpush.msra.mxu2 %v13332_v1  ;;  %21282 = vst [vmem:[#allocation23_spill] sm:$0xff] %v13431_v29 }
  0xf5   :  { %1832 = vmatpush.msra.mxu1 %v1831_v56  ;;  %1969 = vmatpush.msra.mxu3 %v13288_v60  ;;  %21281 = vst [vmem:[#allocation22_spill] sm:$0xff] %v13415_v26  ;;  %v1855_v56 = vand.u32 4294901760, %v1854_v35  ;;  %v1861_v35 = vand.u32 4294901760, %v1860_v41  ;;  %v13444_v57 = vsub.f32 %v120_v38, %v13415_v26  ;;  %v20883_v38 = vand.u32 4294901760, %v13429_v43 }
  0xf6   :  { %1781 = vmatpush.msra.mxu0 %v13336_v31  ;;  %1927 = vmatpush.msra.mxu2 %v13345_v49 }
  0xf7   :  { %1838 = vmatpush.msra.mxu1 %v1837_v53  ;;  %1971 = vmatpush.msra.mxu3 %v13302_v4  ;;  %v1866_v53 = vsub.f32 %v13381_v40, %v20871_v18  ;;  %v1872_v18 = vsub.f32 %v13393_v47, %v20875_v5  ;;  %v13458_v5 = vsub.f32 %v360_v55, %v13431_v29  ;;  %v20886_v55 = vand.u32 4294901760, %v13444_v57 }
  0xf8   :  { %1783 = vmatpush.msra.mxu0 %v13356_v0  ;;  %1930 = vmatpush.msra.mxu2 %v13350_v6 }
  0xf9   :  { %1844 = vmatpush.msra.mxu1 %v1843_v62  ;;  %1973 = vmatpush.msra.mxu3 %v13315_v36  ;;  %v13436_v62 = vsub.f32 %v368_v44, %v13412_v58  ;;  %v13450_v44 = vand.u32 4294901760, %v344_v3  ;;  %v1867_v41 = vand.u32 4294901760, %v1866_v53  ;;  %v1873_v53 = vand.u32 4294901760, %v1872_v18 }
  0xfa   :  { %1785 = vmatpush.msra.mxu0 %v13368_v20  ;;  %1933 = vmatpush.msra.mxu2 %v13362_v24  ;;  %v1896_v27 = vsub.f32 %v13444_v57, %v20886_v55 }
  0xfb   :  { %1850 = vmatpush.msra.mxu1 %v1849_v7  ;;  %1975 = vmatpush.msra.mxu3 %v13323_v59  ;;  %v1878_v7 = vsub.f32 %v13405_v30, %v20878_v11  ;;  %v20885_v42 = vand.u32 4294901760, %v13436_v62  ;;  %v1884_v11 = vsub.f32 %v13419_v25, %v20881_v34  ;;  %v13476_v50 = vsub.f32 %v344_v3, %v13450_v44 }
  0xfc   :  { %1787 = vmatpush.msra.mxu0 %v13378_v22  ;;  %1936 = vmatpush.msra.mxu2 %v13381_v40  ;;  %v1890_v34 = vsub.f32 %v13429_v43, %v20883_v38 }
  0xfd   :  { %1856 = vmatpush.msra.mxu1 %v1855_v56  ;;  %1977 = vmatpush.msra.mxu3 %v13336_v31  ;;  %v328_v56 = vld [vmem:[#allocation2 + $0x690] sm:$0xff]  ;;  %v1879_v18 = vand.u32 4294901760, %v1878_v7  ;;  %v2147_v3 = vsub.f32 %v13436_v62, %v20885_v42  ;;  %v1885_v38 = vand.u32 4294901760, %v1884_v11 }
  0xfe   :  { %1789 = vmatpush.msra.mxu0 %v13390_v45  ;;  %1939 = vmatpush.msra.mxu2 %v13393_v47  ;;  %v13483_v52 = vand.u32 4294901760, %v328_v56  ;;  %v312_v7 = vld [vmem:[#allocation2 + $0x610] sm:$0xff]  ;;  %v1891_v11 = vand.u32 4294901760, %v1890_v34  ;;  %v1897_v34 = vand.u32 4294901760, %v1896_v27 }
  0xff   :  { %1862 = vmatpush.msra.mxu1 %v1861_v35  ;;  %1979 = vmatpush.msra.mxu3 %v13356_v0  ;;  %v320_v35 = vld [vmem:[#allocation2 + $0x650] sm:$0xff]  ;;  %v13511_v8 = vand.u32 4294901760, %v312_v7  ;;  %v2148_v48 = vand.u32 4294901760, %v2147_v3  ;;  %v21288_v3 = vand.u32 4294901760, %v13476_v50 }
 0x100   :  { %1791 = vmatpush.msra.mxu0 %v13401_v63  ;;  %1942 = vmatpush.msra.mxu2 %v13405_v30  ;;  %v13498_v16 = vand.u32 4294901760, %v320_v35  ;;  %v304_v42 = vld [vmem:[#allocation2 + $0x5d0] sm:$0xff]  ;;  %v13509_v12 = vsub.f32 %v328_v56, %v13483_v52 }
 0x101   :  { %1868 = vmatpush.msra.mxu1 %v1867_v41  ;;  %1981 = vmatpush.msra.mxu3 %v13368_v20  ;;  %v13491_v41 = vsub.f32 %v336_v2, %v13463_v61  ;;  %v296_v2 = vld [vmem:[#allocation2 + $0x590] sm:$0xff]  ;;  %v13524_v28 = vand.u32 4294901760, %v304_v42 }
 0x102   :  { %1793 = vmatpush.msra.mxu0 %v13415_v26  ;;  %1945 = vmatpush.msra.mxu2 %v13419_v25  ;;  %v13522_v23 = vsub.f32 %v320_v35, %v13498_v16  ;;  %v13535_v35 = vsub.f32 %v312_v7, %v13511_v8 }
 0x103   :  { %1874 = vmatpush.msra.mxu1 %v1873_v53  ;;  %1983 = vmatpush.msra.mxu3 %v13378_v22  ;;  %v21284_v53 = vand.u32 4294901760, %v13458_v5  ;;  %v13547_v7 = vsub.f32 %v304_v42, %v13524_v28 }
 0x104   :  { %2000 = vmatpush.msrb.mxu0 %v21283_v21  ;;  %1948 = vmatpush.msra.mxu2 %v13429_v43  ;;  %v21285_v21 = vand.u32 4294901760, %v13270_v37  ;;  %v21287_v37 = vand.u32 4294901760, %v13281_v10  ;;  %v21289_v10 = vand.u32 4294901760, %v13292_v46  ;;  %v21291_v46 = vand.u32 4294901760, %v13306_v54 }
 0x105   :  { %1880 = vmatpush.msra.mxu1 %v1879_v18  ;;  %1985 = vmatpush.msra.mxu3 %v13390_v45  ;;  %v2153_v55 = vsub.f32 %v13458_v5, %v21284_v53  ;;  %v21286_v53 = vand.u32 4294901760, %v13471_v14  ;;  %v13537_v18 = vand.u32 4294901760, %v296_v2  ;;  %v21293_v54 = vand.u32 4294901760, %v13319_v13 }
 0x106   :  { %2004 = vmatpush.msrb.mxu0 %v21285_v21  ;;  %1951 = vmatpush.msra.mxu2 %v13444_v57  ;;  %v288_v21 = vld [vmem:[#allocation2 + $0x550] sm:$0xff]  ;;  %v21294_v13 = vand.u32 4294901760, %v13332_v1 }
 0x107   :  { %1886 = vmatpush.msra.mxu1 %v1885_v38  ;;  %1987 = vmatpush.msra.mxu3 %v13401_v63  ;;  %v2159_v56 = vsub.f32 %v13471_v14, %v21286_v53  ;;  %v2165_v38 = vsub.f32 %v13476_v50, %v21288_v3  ;;  %v2154_v27 = vand.u32 4294901760, %v2153_v55  ;;  %v20891_v53 = vand.u32 4294901760, %v13522_v23 }
 0x108   :  { %2008 = vmatpush.msrb.mxu0 %v21287_v37  ;;  %2104 = vmatpush.msrb.mxu2 %v13412_v58  ;;  %v21290_v37 = vand.u32 4294901760, %v13491_v41  ;;  %v13560_v42 = vsub.f32 %v296_v2, %v13537_v18 }
 0x109   :  { %1892 = vmatpush.msra.mxu1 %v1891_v11  ;;  %1989 = vmatpush.msra.mxu3 %v13415_v26  ;;  %v280_v11 = vld [vmem:[#allocation2 + $0x510] sm:$0xff]  ;;  %v2160_v55 = vand.u32 4294901760, %v2159_v56  ;;  %v13549_v26 = vand.u32 4294901760, %v288_v21  ;;  %v2188_v56 = vand.u32 4294901760, %v13535_v35 }
 0x10a   :  { %2012 = vmatpush.msrb.mxu0 %v21289_v10  ;;  %2106 = vmatpush.msrb.mxu2 %v13431_v29  ;;  %v2171_v3 = vsub.f32 %v13491_v41, %v21290_v37  ;;  %v2166_v10 = vand.u32 4294901760, %v2165_v38  ;;  %v272_v29 = vld [vmem:[#allocation2 + $0x4d0] sm:$0xff]  ;;  %v13562_v37 = vand.u32 4294901760, %v280_v11  ;;  %v2183_v38 = vsub.f32 %v13522_v23, %v20891_v53 }
 0x10b   :  { %2149 = vmatpush.msrb.mxu3 %v2148_v48  ;;  %1898 = vmatpush.msra.mxu1 %v1897_v34  ;;  %v21292_v48 = vand.u32 4294901760, %v13509_v12  ;;  %v13573_v2 = vsub.f32 %v288_v21, %v13549_v26  ;;  %v21295_v53 = vand.u32 4294901760, %v13345_v49  ;;  %v21296_v49 = vand.u32 4294901760, %v13350_v6 }
 0x10c   :  { %2016 = vmatpush.msrb.mxu0 %v21291_v46  ;;  %2108 = vmatpush.msrb.mxu2 %v13446_v32  ;;  %v13575_v46 = vand.u32 4294901760, %v272_v29  ;;  %v13586_v21 = vsub.f32 %v280_v11, %v13562_v37  ;;  %v2184_v1 = vand.u32 4294901760, %v2183_v38 }
 0x10d   :  { %2067 = vmatpush.msrb.mxu1 %v13243_v9  ;;  %2155 = vmatpush.msrb.mxu3 %v2154_v27  ;;  %v2177_v34 = vsub.f32 %v13509_v12, %v21292_v48  ;;  %v2172_v9 = vand.u32 4294901760, %v2171_v3  ;;  %v2194_v27 = vand.u32 4294901760, %v13547_v7  ;;  %v264_v48 = vld [vmem:[#allocation2 + $0x490] sm:$0xff]  ;;  %v2189_v3 = vsub.f32 %v13535_v35, %v2188_v56 }
 0x10e   :  { %2020 = vmatpush.msrb.mxu0 %v21293_v54  ;;  %2110 = vmatpush.msrb.mxu2 %v13450_v44  ;;  %v256_v54 = vld [vmem:[#allocation2 + $0x450] sm:$0xff]  ;;  %v13599_v11 = vsub.f32 %v272_v29, %v13575_v46  ;;  %v2212_v38 = vand.u32 4294901760, %v13586_v21  ;;  %v21297_v29 = vand.u32 4294901760, %v13362_v24  ;;  %v21298_v24 = vand.u32 4294901760, %v13381_v40 }
 0x10f   :  { %2069 = vmatpush.msrb.mxu1 %v13250_v17  ;;  %2161 = vmatpush.msrb.mxu3 %v2160_v55  ;;  %v2178_v17 = vand.u32 4294901760, %v2177_v34  ;;  %v2200_v55 = vand.u32 4294901760, %v13560_v42  ;;  %v2206_v34 = vand.u32 4294901760, %v13573_v2 }
 0x110   :  { %2024 = vmatpush.msrb.mxu0 %v21294_v13  ;;  %2112 = vmatpush.msrb.mxu2 %v13463_v61  ;;  %v248_v13 = vld [vmem:[#allocation2 + $0x410] sm:$0xff] }
 0x111   :  { %2071 = vmatpush.msrb.mxu1 %v13257_v51  ;;  %2167 = vmatpush.msrb.mxu3 %v2166_v10  ;;  %v13591_v51 = vand.u32 4294901760, %v264_v48  ;;  %v2195_v10 = vsub.f32 %v13547_v7, %v2194_v27 }
 0x112   :  { %2028 = vmatpush.msrb.mxu0 %v21295_v53  ;;  %2114 = vmatpush.msrb.mxu2 %v13483_v52  ;;  %v2190_v53 = vand.u32 4294901760, %v2189_v3  ;;  %v2207_v3 = vsub.f32 %v13573_v2, %v2206_v34 }
 0x113   :  { %2073 = vmatpush.msrb.mxu1 %v13267_v19  ;;  %2173 = vmatpush.msrb.mxu3 %v2172_v9  ;;  %v13604_v19 = vand.u32 4294901760, %v256_v54  ;;  %v2201_v9 = vsub.f32 %v13560_v42, %v2200_v55  ;;  %v13615_v6 = vsub.f32 %v264_v48, %v13591_v51 }
 0x114   :  { %2032 = vmatpush.msrb.mxu0 %v21296_v49  ;;  %2116 = vmatpush.msrb.mxu2 %v13498_v16  ;;  %v2218_v49 = vand.u32 4294901760, %v13599_v11 }
 0x115   :  { %2075 = vmatpush.msrb.mxu1 %v13277_v39  ;;  %2179 = vmatpush.msrb.mxu3 %v2178_v17  ;;  %v13617_v39 = vand.u32 4294901760, %v248_v13  ;;  %v2196_v17 = vand.u32 4294901760, %v2195_v10  ;;  %v2202_v48 = vand.u32 4294901760, %v2201_v9  ;;  %v21299_v10 = vand.u32 4294901760, %v13393_v47 }
 0x116   :  { %2036 = vmatpush.msrb.mxu0 %v21297_v29  ;;  %2118 = vmatpush.msrb.mxu2 %v13511_v8  ;;  %v2224_v40 = vand.u32 4294901760, %v13615_v6  ;;  %v21300_v9 = vand.u32 4294901760, %v13405_v30 }
 0x117   :  { %2077 = vmatpush.msrb.mxu1 %v13288_v60  ;;  %2185 = vmatpush.msrb.mxu3 %v2184_v1  ;;  %v13628_v60 = vsub.f32 %v256_v54, %v13604_v19  ;;  %v2213_v1 = vsub.f32 %v13586_v21, %v2212_v38  ;;  %v2208_v54 = vand.u32 4294901760, %v2207_v3 }
 0x118   :  { %2040 = vmatpush.msrb.mxu0 %v21298_v24  ;;  %2120 = vmatpush.msrb.mxu2 %v13524_v28  ;;  %v2225_v29 = vsub.f32 %v13615_v6, %v2224_v40  ;;  %v21307_v24 = vld [vmem:[#allocation22_spill] sm:$0xff] }
 0x119   :  { %2079 = vmatpush.msrb.mxu1 %v13302_v4  ;;  %2191 = vmatpush.msrb.mxu3 %v2190_v53  ;;  %v13639_v4 = vsub.f32 %v248_v13, %v13617_v39  ;;  %v2219_v53 = vsub.f32 %v13599_v11, %v2218_v49  ;;  %v2214_v47 = vand.u32 4294901760, %v2213_v1  ;;  %v21301_v13 = vand.u32 4294901760, %v13419_v25  ;;  %v21312_v1 = vld [vmem:[#allocation16_spill] sm:$0xff] }
 0x11a   :  { %2044 = vmatpush.msrb.mxu0 %v21299_v10  ;;  %2122 = vmatpush.msrb.mxu2 %v13537_v18  ;;  %v2226_v3 = vand.u32 4294901760, %v2225_v29 }
 0x11b   :  { %2081 = vmatpush.msrb.mxu1 %v13315_v36  ;;  %2197 = vmatpush.msrb.mxu3 %v2196_v17  ;;  %v2230_v36 = vand.u32 4294901760, %v13628_v60  ;;  %v2236_v30 = vand.u32 4294901760, %v13639_v4  ;;  %v21302_v17 = vand.u32 4294901760, %v13429_v43 }
 0x11c   :  { %2048 = vmatpush.msrb.mxu0 %v21300_v9  ;;  %2124 = vmatpush.msrb.mxu2 %v13549_v26 }
 0x11d   :  { %2083 = vmatpush.msrb.mxu1 %v13323_v59  ;;  %2203 = vmatpush.msrb.mxu3 %v2202_v48  ;;  %v2220_v59 = vand.u32 4294901760, %v2219_v53  ;;  %v2231_v25 = vsub.f32 %v13628_v60, %v2230_v36  ;;  %v2237_v43 = vsub.f32 %v13639_v4, %v2236_v30  ;;  %v21308_v48 = vld [vmem:[#allocation17_spill] sm:$0xff] }
 0x11e   :  { %2052 = vmatpush.msrb.mxu0 %v21301_v13  ;;  %2126 = vmatpush.msrb.mxu2 %v13562_v37  ;;  %v161_v13 = vld [vmem:[#allocation2 + $0x158] sm:$0xff] }
 0x11f   :  { %2085 = vmatpush.msrb.mxu1 %v13336_v31  ;;  %2209 = vmatpush.msrb.mxu3 %v2208_v54  ;;  %v21303_v31 = vand.u32 4294901760, %v13444_v57  ;;  %v21304_v57 = vand.u32 4294901760, %v13436_v62 }
 0x120   :  { %2056 = vmatpush.msrb.mxu0 %v21302_v17  ;;  %2128 = vmatpush.msrb.mxu2 %v13575_v46 }
 0x121   :  { %2087 = vmatpush.msrb.mxu1 %v13356_v0  ;;  %2215 = vmatpush.msrb.mxu3 %v2214_v47  ;;  %v2232_v0 = vand.u32 4294901760, %v2231_v25  ;;  %v21318_v25 = vld [vmem:[#allocation21_spill] sm:$0xff] }
 0x122   :  { %2060 = vmatpush.msrb.mxu0 %v21303_v31  ;;  %2130 = vmatpush.msrb.mxu2 %v13591_v51 }
 0x123   :  { %2089 = vmatpush.msrb.mxu1 %v13368_v20  ;;  %2221 = vmatpush.msrb.mxu3 %v2220_v59  ;;  %v2238_v20 = vand.u32 4294901760, %v2237_v43 }
 0x124   :  { %1799 = vmatmul.f32.vlgmr.msra.gmra.mxu0 %v12663_v33  ;;  %2132 = vmatpush.msrb.mxu2 %v13604_v19 }
 0x125   :  { %2091 = vmatpush.msrb.mxu1 %v13378_v22  ;;  %2247 = vmatpush.msra.mxu0 %v13436_v62  ;;  %v21305_v22 = vld [vmem:[#allocation18_spill] sm:$0xff]  ;;  %v21309_v62 = vand.u32 4294901760, %v13471_v14 }
 0x126   :  { %2227 = vmatpush.msrb.mxu3 %v2226_v3  ;;  %2134 = vmatpush.msrb.mxu2 %v13617_v39 }
 0x127   :  { %2093 = vmatpush.msrb.mxu1 %v13390_v45  ;;  %2250 = vmatpush.msra.mxu0 %v13458_v5  ;;  %v21306_v45 = vand.u32 4294901760, %v13458_v5  ;;  %v21311_v5 = vand.u32 4294901760, %v13476_v50 }
 0x128   :  { %2233 = vmatpush.msrb.mxu3 %v2232_v0  ;;  %1954 = vmatmul.f32.vlgmr.msra.gmra.mxu2 %v12601_v15  ;;  %v13848_v0 = vand.u32 4294901760, %v161_v13 }
 0x129   :  { %2253 = vmatpush.msra.mxu0 %v13471_v14  ;;  %2341 = vmatpush.msra.mxu2 %v21304_v57  ;;  %v21313_v14 = vand.u32 4294901760, %v13491_v41 }
 0x12a   :  { %2095 = vmatpush.msrb.mxu1 %v13401_v63  ;;  %2239 = vmatpush.msrb.mxu3 %v2238_v20  ;;  %v21310_v63 = vld [vmem:[#allocation23_spill] sm:$0xff] }
 0x12b   :  { %1993 = vmatmul.f32.vlgmr.msra.gmra.mxu3 %v21305_v22  ;;  %2256 = vmatpush.msra.mxu0 %v13476_v50  ;;  %v21315_v50 = vand.u32 4294901760, %v13509_v12 }
 0x12c   :  { %2345 = vmatpush.msra.mxu2 %v21306_v45  ;;  %2408 = vmatpush.msra.mxu3 %v13412_v58  ;;  %v145_v45 = vld [vmem:[#allocation2 + $0xd8] sm:$0xff] }
 0x12d   :  { %2097 = vmatpush.msrb.mxu1 %v21307_v24  ;;  %2259 = vmatpush.msra.mxu0 %v13491_v41  ;;  %v209_v41 = vld [vmem:[#allocation2 + $0x2d8] sm:$0xff] }
 0x12e   :  { %1900 = vmatmul.f32.vlgmr.msra.gmra.mxu1 %v21308_v48  ;;  %2349 = vmatpush.msra.mxu2 %v21309_v62 }
 0x12f   :  { %2300 = vmatpush.msra.mxu1 %v13412_v58  ;;  %2410 = vmatpush.msra.mxu3 %v21310_v63  ;;  %v21314_v58 = vld [vmem:[#allocation19_spill] sm:$0xff] }
 0x130   :  { %2262 = vmatpush.msra.mxu0 %v13509_v12  ;;  %2353 = vmatpush.msra.mxu2 %v21311_v5  ;;  %v241_v12 = vld [vmem:[#allocation2 + $0x3d8] sm:$0xff] }
 0x131   :  { %2302 = vmatpush.msra.mxu1 %v21310_v63  ;;  %2412 = vmatpush.msra.mxu3 %v13446_v32 }
 0x132   :  { %2140 = vmatmul.f32.vlgmr.msrb.gmra.mxu2 %v21312_v1  ;;  %2265 = vmatpush.msra.mxu0 %v13522_v23 }
 0x133   :  { %2304 = vmatpush.msra.mxu1 %v13446_v32  ;;  %2357 = vmatpush.msra.mxu2 %v21313_v14  ;;  %v21316_v32 = vand.u32 4294901760, %v13522_v23  ;;  %v233_v23 = vld [vmem:[#allocation2 + $0x398] sm:$0xff] }
 0x134   :  { %2414 = vmatpush.msra.mxu3 %v13450_v44  ;;  %2062 = vmatmul.f32.vlgmr.msrb.gmra.mxu0 %v21308_v48 }
 0x135   :  { %2241 = vmatmul.f32.vlgmr.msrb.gmra.mxu3 %v21314_v58  ;;  %2268 = vmatpush.msra.mxu0 %v13535_v35 }
 0x136   :  { %2306 = vmatpush.msra.mxu1 %v13450_v44  ;;  %2361 = vmatpush.msra.mxu2 %v21315_v50  ;;  %v13742_v44 = vand.u32 4294901760, %v233_v23  ;;  %v137_v50 = vld [vmem:[#allocation2 + $0x98] sm:$0xff] }
 0x137   :  { %2416 = vmatpush.msra.mxu3 %v13463_v61  ;;  %2099 = vmatmul.f32.vlgmr.msrb.gmra.mxu1 %v21308_v48 }
 0x138   :  { %2271 = vmatpush.msra.mxu0 %v13547_v7  ;;  %2308 = vmatpush.msra.mxu1 %v13463_v61  ;;  %v13735_v61 = vand.u32 4294901760, %v241_v12  ;;  %v13762_v35 = vsub.f32 %v233_v23, %v13742_v44  ;;  %v201_v7 = vld [vmem:[#allocation2 + $0x298] sm:$0xff]  ;;  %v13870_v23 = vand.u32 4294901760, %v145_v45 }
 0x139   :  { %2365 = vmatpush.msra.mxu2 %v21316_v32  ;;  %2418 = vmatpush.msra.mxu3 %v13483_v52 }
 0x13a   :  { %2274 = vmatpush.msra.mxu0 %v13560_v42  ;;  %2310 = vmatpush.msra.mxu1 %v13483_v52 }
 0x13b   :  { %2369 = vmatpush.msra.mxu2 %v2188_v56  ;;  %2420 = vmatpush.msra.mxu3 %v13498_v16 }
 0x13c   :  { %2277 = vmatpush.msra.mxu0 %v13573_v2  ;;  %2312 = vmatpush.msra.mxu1 %v13498_v16  ;;  %v225_v16 = vld [vmem:[#allocation2 + $0x358] sm:$0xff] }
 0x13d   :  { %2373 = vmatpush.msra.mxu2 %v2194_v27  ;;  %2422 = vmatpush.msra.mxu3 %v13511_v8  ;;  %v13749_v52 = vand.u32 4294901760, %v225_v16  ;;  %v21317_v27 = vld [vmem:[#allocation20_spill] sm:$0xff]  ;;  %v193_v2 = vld [vmem:[#allocation2 + $0x258] sm:$0xff] }
 0x13e   :  { %2280 = vmatpush.msra.mxu0 %v13586_v21  ;;  %2314 = vmatpush.msra.mxu1 %v13511_v8  ;;  %v217_v8 = vld [vmem:[#allocation2 + $0x318] sm:$0xff] }
 0x13f   :  { %2377 = vmatpush.msra.mxu2 %v2200_v55  ;;  %2424 = vmatpush.msra.mxu3 %v13524_v28  ;;  %v13773_v42 = vsub.f32 %v225_v16, %v13749_v52  ;;  %v20903_v55 = vand.u32 4294901760, %v13762_v35  ;;  %v13873_v16 = vsub.f32 %v161_v13, %v13848_v0 }
 0x140   :  { %2283 = vmatpush.msra.mxu0 %v13599_v11  ;;  %2316 = vmatpush.msra.mxu1 %v13524_v28  ;;  %v13752_v28 = vsub.f32 %v241_v12, %v13735_v61  ;;  %v13794_v11 = vand.u32 4294901760, %v193_v2 }
 0x141   :  { %2381 = vmatpush.msra.mxu2 %v2206_v34  ;;  %2426 = vmatpush.msra.mxu3 %v13537_v18  ;;  %v185_v34 = vld [vmem:[#allocation2 + $0x218] sm:$0xff]  ;;  %v20894_v13 = vand.u32 4294901760, %v13873_v16 }
 0x142   :  { %2286 = vmatpush.msra.mxu0 %v13615_v6  ;;  %2318 = vmatpush.msra.mxu1 %v13537_v18  ;;  %v13759_v18 = vand.u32 4294901760, %v217_v8  ;;  %v20905_v56 = vand.u32 4294901760, %v13752_v28  ;;  %v13824_v47 = vsub.f32 %v193_v2, %v13794_v11 }
 0x143   :  { %2385 = vmatpush.msra.mxu2 %v2212_v38  ;;  %2428 = vmatpush.msra.mxu3 %v13549_v26  ;;  %v20902_v38 = vand.u32 4294901760, %v13773_v42 }
 0x144   :  { %2289 = vmatpush.msra.mxu0 %v13628_v60  ;;  %2320 = vmatpush.msra.mxu1 %v13549_v26  ;;  %v13769_v26 = vand.u32 4294901760, %v209_v41  ;;  %v13784_v21 = vsub.f32 %v217_v8, %v13759_v18  ;;  %v13807_v60 = vand.u32 4294901760, %v185_v34  ;;  %v20896_v20 = vand.u32 4294901760, %v13824_v47 }
 0x145   :  { %2389 = vmatpush.msra.mxu2 %v2218_v49  ;;  %2430 = vmatpush.msra.mxu3 %v13562_v37  ;;  %v177_v49 = vld [vmem:[#allocation2 + $0x1d8] sm:$0xff]  ;;  %v2500_v9 = vsub.f32 %v13773_v42, %v20902_v38 }
 0x146   :  { %2292 = vmatpush.msra.mxu0 %v13639_v4  ;;  %2322 = vmatpush.msra.mxu1 %v13562_v37  ;;  %v13780_v37 = vand.u32 4294901760, %v201_v7  ;;  %v13798_v6 = vsub.f32 %v209_v41, %v13769_v26  ;;  %v20900_v10 = vand.u32 4294901760, %v13784_v21  ;;  %v169_v4 = vld [vmem:[#allocation2 + $0x198] sm:$0xff]  ;;  %v13815_v54 = vand.u32 4294901760, %v177_v49 }
 0x147   :  { %2393 = vmatpush.msra.mxu2 %v2224_v40  ;;  %2432 = vmatpush.msra.mxu3 %v13575_v46  ;;  %v13837_v17 = vsub.f32 %v185_v34, %v13807_v60  ;;  %v2501_v3 = vand.u32 4294901760, %v2500_v9  ;;  %v2524_v12 = vsub.f32 %v13824_v47, %v20896_v20  ;;  %v129_v41 = vld [vmem:[#allocation2 + $0x58] sm:$0xff]  ;;  %v13882_v34 = vand.u32 4294901760, %v137_v50 }
 0x148   :  { %2295 = vmatmul.f32.vlgmr.msra.gmra.mxu0 %v21317_v27  ;;  %2324 = vmatpush.msra.mxu1 %v13575_v46  ;;  %v2488_v46 = vsub.f32 %v13752_v28, %v20905_v56  ;;  %v13811_v40 = vsub.f32 %v201_v7, %v13780_v37  ;;  %v13842_v31 = vsub.f32 %v177_v49, %v13815_v54  ;;  %v369_v49 = vld [vmem:[#allocation2 + $0x7d8] sm:$0xff]  ;;  %v13893_v9 = vand.u32 4294901760, %v129_v41 }
 0x149   :  { %2445 = vmatpush.msrb.mxu0 %v13735_v61  ;;  %2397 = vmatpush.msra.mxu2 %v2230_v36  ;;  %v20899_v36 = vand.u32 4294901760, %v13798_v6  ;;  %v20895_v5 = vand.u32 4294901760, %v13837_v17 }
 0x14a   :  { %2434 = vmatpush.msra.mxu3 %v13591_v51  ;;  %2326 = vmatpush.msra.mxu1 %v13591_v51  ;;  %v2494_v51 = vsub.f32 %v13762_v35, %v20903_v55  ;;  %v2489_v53 = vand.u32 4294901760, %v2488_v46  ;;  %v20897_v59 = vand.u32 4294901760, %v13811_v40  ;;  %v20893_v14 = vand.u32 4294901760, %v13842_v31 }
 0x14b   :  { %2447 = vmatpush.msrb.mxu0 %v13742_v44  ;;  %2401 = vmatpush.msra.mxu2 %v2236_v30  ;;  %v2506_v30 = vsub.f32 %v13784_v21, %v20900_v10  ;;  %v2512_v43 = vsub.f32 %v13798_v6, %v20899_v36  ;;  %v2530_v2 = vsub.f32 %v13837_v17, %v20895_v5 }
 0x14c   :  { %2436 = vmatpush.msra.mxu3 %v13604_v19  ;;  %2403 = vmatmul.f32.vlgmr.msra.gmra.mxu2 %v21314_v58  ;;  %v2495_v29 = vand.u32 4294901760, %v2494_v51  ;;  %v2518_v62 = vsub.f32 %v13811_v40, %v20897_v59  ;;  %v2536_v51 = vsub.f32 %v13842_v31, %v20893_v14  ;;  %v345_v14 = vld [vmem:[#allocation2 + $0x718] sm:$0xff] }
 0x14d   :  { %2449 = vmatpush.msrb.mxu0 %v13749_v52  ;;  %2588 = vmatpush.msrb.mxu2 %v13752_v28  ;;  %v2507_v24 = vand.u32 4294901760, %v2506_v30  ;;  %v2513_v32 = vand.u32 4294901760, %v2512_v43  ;;  %v2531_v43 = vand.u32 4294901760, %v2530_v2  ;;  %v337_v59 = vld [vmem:[#allocation2 + $0x6d8] sm:$0xff] }
 0x14e   :  { %2328 = vmatpush.msra.mxu1 %v13604_v19  ;;  %2438 = vmatpush.msra.mxu3 %v13617_v39  ;;  %v13828_v19 = vand.u32 4294901760, %v169_v4  ;;  %v2519_v7 = vand.u32 4294901760, %v2518_v62  ;;  %v13911_v62 = vsub.f32 %v137_v50, %v13882_v34  ;;  %v13955_v10 = vand.u32 4294901760, %v337_v59 }
 0x14f   :  { %2440 = vmatmul.f32.vlgmr.msra.gmra.mxu3 %v21314_v58  ;;  %2451 = vmatpush.msrb.mxu0 %v13759_v18  ;;  %v21321_v58 = vand.u32 4294901760, %v13752_v28 }
 0x150   :  { %2591 = vmatpush.msrb.mxu2 %v13762_v35  ;;  %2641 = vmatpush.msrb.mxu3 %v13735_v61  ;;  %v13854_v57 = vsub.f32 %v169_v4, %v13828_v19  ;;  %v121_v4 = vld [vmem:[#allocation2 + $0x18] sm:$0xff] }
 0x151   :  { %2330 = vmatpush.msra.mxu1 %v13617_v39  ;;  %2453 = vmatpush.msrb.mxu0 %v13769_v26  ;;  %v153_v39 = vld [vmem:[#allocation2 + $0x118] sm:$0xff] }
 0x152   :  { %2334 = vmatmul.f32.vlgmr.msra.gmra.mxu1 %v21318_v25  ;;  %2594 = vmatpush.msrb.mxu2 %v13773_v42  ;;  %v13860_v63 = vand.u32 4294901760, %v153_v39  ;;  %v20892_v8 = vand.u32 4294901760, %v13854_v57 }
 0x153   :  { %2490 = vmatpush.msrb.mxu1 %v2489_v53  ;;  %2643 = vmatpush.msrb.mxu3 %v13742_v44  ;;  %v2525_v53 = vand.u32 4294901760, %v2524_v12  ;;  %v353_v12 = vld [vmem:[#allocation2 + $0x758] sm:$0xff] }
 0x154   :  { %2455 = vmatpush.msrb.mxu0 %v13780_v37  ;;  %2597 = vmatpush.msrb.mxu2 %v13784_v21  ;;  %v13885_v46 = vsub.f32 %v153_v39, %v13860_v63  ;;  %v2542_v30 = vsub.f32 %v13854_v57, %v20892_v8  ;;  %v13904_v39 = vand.u32 4294901760, %v369_v49  ;;  %v13921_v8 = vsub.f32 %v129_v41, %v13893_v9 }
 0x155   :  { %2496 = vmatpush.msrb.mxu1 %v2495_v29  ;;  %2645 = vmatpush.msrb.mxu3 %v13749_v52  ;;  %v13897_v29 = vsub.f32 %v145_v45, %v13870_v23  ;;  %v20904_v41 = vand.u32 4294901760, %v13911_v62  ;;  %v13938_v20 = vand.u32 4294901760, %v353_v12 }
 0x156   :  { %2457 = vmatpush.msrb.mxu0 %v13794_v11  ;;  %2600 = vmatpush.msrb.mxu2 %v13798_v6  ;;  %v20898_v45 = vand.u32 4294901760, %v13885_v46 }
 0x157   :  { %2502 = vmatpush.msrb.mxu1 %v2501_v3  ;;  %2647 = vmatpush.msrb.mxu3 %v13759_v18  ;;  %v361_v3 = vld [vmem:[#allocation2 + $0x798] sm:$0xff]  ;;  %v20901_v2 = vand.u32 4294901760, %v13897_v29  ;;  %v13963_v38 = vsub.f32 %v353_v12, %v13938_v20 }
 0x158   :  { %2459 = vmatpush.msrb.mxu0 %v13807_v60  ;;  %2603 = vmatpush.msrb.mxu2 %v13811_v40  ;;  %v13923_v50 = vand.u32 4294901760, %v361_v3 }
 0x159   :  { %2508 = vmatpush.msrb.mxu1 %v2507_v24  ;;  %2649 = vmatpush.msrb.mxu3 %v13769_v26  ;;  %v13907_v24 = vand.u32 4294901760, %v121_v4 }
 0x15a   :  { %2461 = vmatpush.msrb.mxu0 %v13815_v54  ;;  %2606 = vmatpush.msrb.mxu2 %v13824_v47  ;;  %21320 = vst [vmem:[#allocation23_spill] sm:$0xff] %v13923_v50 }
 0x15b   :  { %2514 = vmatpush.msrb.mxu1 %v2513_v32  ;;  %2651 = vmatpush.msrb.mxu3 %v13780_v37  ;;  %21319 = vst [vmem:[#allocation22_spill] sm:$0xff] %v13907_v24  ;;  %v2537_v32 = vand.u32 4294901760, %v2536_v51  ;;  %v2543_v51 = vand.u32 4294901760, %v2542_v30  ;;  %v13936_v5 = vsub.f32 %v121_v4, %v13907_v24  ;;  %v20906_v4 = vand.u32 4294901760, %v13921_v8 }
 0x15c   :  { %2463 = vmatpush.msrb.mxu0 %v13828_v19  ;;  %2609 = vmatpush.msrb.mxu2 %v13837_v17 }
 0x15d   :  { %2520 = vmatpush.msrb.mxu1 %v2519_v7  ;;  %2653 = vmatpush.msrb.mxu3 %v13794_v11  ;;  %v2548_v7 = vsub.f32 %v13873_v16, %v20894_v13  ;;  %v2554_v13 = vsub.f32 %v13885_v46, %v20898_v45  ;;  %v13950_v45 = vsub.f32 %v361_v3, %v13923_v50  ;;  %v20909_v3 = vand.u32 4294901760, %v13936_v5 }
 0x15e   :  { %2465 = vmatpush.msrb.mxu0 %v13848_v0  ;;  %2612 = vmatpush.msrb.mxu2 %v13842_v31 }
 0x15f   :  { %2526 = vmatpush.msrb.mxu1 %v2525_v53  ;;  %2655 = vmatpush.msrb.mxu3 %v13807_v60  ;;  %v13928_v53 = vsub.f32 %v369_v49, %v13904_v39  ;;  %v13942_v49 = vand.u32 4294901760, %v345_v14  ;;  %v2549_v30 = vand.u32 4294901760, %v2548_v7  ;;  %v2555_v7 = vand.u32 4294901760, %v2554_v13 }
 0x160   :  { %2467 = vmatpush.msrb.mxu0 %v13860_v63  ;;  %2615 = vmatpush.msrb.mxu2 %v13854_v57  ;;  %v2578_v56 = vsub.f32 %v13936_v5, %v20909_v3 }
 0x161   :  { %2532 = vmatpush.msrb.mxu1 %v2531_v43  ;;  %2657 = vmatpush.msrb.mxu3 %v13815_v54  ;;  %v2560_v43 = vsub.f32 %v13897_v29, %v20901_v2  ;;  %v20908_v36 = vand.u32 4294901760, %v13928_v53  ;;  %v2566_v2 = vsub.f32 %v13911_v62, %v20904_v41  ;;  %v13968_v55 = vsub.f32 %v345_v14, %v13942_v49 }
 0x162   :  { %2469 = vmatpush.msrb.mxu0 %v13870_v23  ;;  %2618 = vmatpush.msrb.mxu2 %v13873_v16  ;;  %v2572_v41 = vsub.f32 %v13921_v8, %v20906_v4 }
 0x163   :  { %2538 = vmatpush.msrb.mxu1 %v2537_v32  ;;  %2659 = vmatpush.msrb.mxu3 %v13828_v19  ;;  %v329_v32 = vld [vmem:[#allocation2 + $0x698] sm:$0xff]  ;;  %v2561_v13 = vand.u32 4294901760, %v2560_v43  ;;  %v2829_v14 = vsub.f32 %v13928_v53, %v20908_v36  ;;  %v2567_v4 = vand.u32 4294901760, %v2566_v2 }
 0x164   :  { %2471 = vmatpush.msrb.mxu0 %v13882_v34  ;;  %2621 = vmatpush.msrb.mxu2 %v13885_v46  ;;  %v13975_v12 = vand.u32 4294901760, %v329_v32  ;;  %v313_v43 = vld [vmem:[#allocation2 + $0x618] sm:$0xff]  ;;  %v2573_v2 = vand.u32 4294901760, %v2572_v41  ;;  %v2579_v41 = vand.u32 4294901760, %v2578_v56 }
 0x165   :  { %2544 = vmatpush.msrb.mxu1 %v2543_v51  ;;  %2661 = vmatpush.msrb.mxu3 %v13848_v0  ;;  %v321_v51 = vld [vmem:[#allocation2 + $0x658] sm:$0xff]  ;;  %v14003_v1 = vand.u32 4294901760, %v313_v43  ;;  %v2830_v28 = vand.u32 4294901760, %v2829_v14  ;;  %v21326_v14 = vand.u32 4294901760, %v13968_v55 }
 0x166   :  { %2473 = vmatpush.msrb.mxu0 %v13893_v9  ;;  %2624 = vmatpush.msrb.mxu2 %v13897_v29  ;;  %v13990_v27 = vand.u32 4294901760, %v321_v51  ;;  %v305_v36 = vld [vmem:[#allocation2 + $0x5d8] sm:$0xff]  ;;  %v14001_v25 = vsub.f32 %v329_v32, %v13975_v12 }
 0x167   :  { %2550 = vmatpush.msrb.mxu1 %v2549_v30  ;;  %2663 = vmatpush.msrb.mxu3 %v13860_v63  ;;  %v13983_v30 = vsub.f32 %v337_v59, %v13955_v10  ;;  %v297_v59 = vld [vmem:[#allocation2 + $0x598] sm:$0xff]  ;;  %v14016_v22 = vand.u32 4294901760, %v305_v36 }
 0x168   :  { %2475 = vmatpush.msrb.mxu0 %v13907_v24  ;;  %2627 = vmatpush.msrb.mxu2 %v13911_v62  ;;  %v14014_v48 = vsub.f32 %v321_v51, %v13990_v27  ;;  %v14027_v51 = vsub.f32 %v313_v43, %v14003_v1 }
 0x169   :  { %2556 = vmatpush.msrb.mxu1 %v2555_v7  ;;  %2665 = vmatpush.msrb.mxu3 %v13870_v23  ;;  %v21322_v7 = vand.u32 4294901760, %v13950_v45  ;;  %v14039_v43 = vsub.f32 %v305_v36, %v14016_v22 }
 0x16a   :  { %2682 = vmatpush.msra.mxu0 %v21321_v58  ;;  %2630 = vmatpush.msrb.mxu2 %v13921_v8  ;;  %v21323_v58 = vand.u32 4294901760, %v13762_v35  ;;  %v21325_v35 = vand.u32 4294901760, %v13773_v42  ;;  %v21327_v42 = vand.u32 4294901760, %v13784_v21  ;;  %v21329_v21 = vand.u32 4294901760, %v13798_v6 }
 0x16b   :  { %2562 = vmatpush.msrb.mxu1 %v2561_v13  ;;  %2667 = vmatpush.msrb.mxu3 %v13882_v34  ;;  %v2835_v3 = vsub.f32 %v13950_v45, %v21322_v7  ;;  %v21324_v7 = vand.u32 4294901760, %v13963_v38  ;;  %v14029_v13 = vand.u32 4294901760, %v297_v59  ;;  %v21331_v6 = vand.u32 4294901760, %v13811_v40 }
 0x16c   :  { %2686 = vmatpush.msra.mxu0 %v21323_v58  ;;  %2633 = vmatpush.msrb.mxu2 %v13936_v5  ;;  %v289_v58 = vld [vmem:[#allocation2 + $0x558] sm:$0xff]  ;;  %v21332_v40 = vand.u32 4294901760, %v13824_v47 }
 0x16d   :  { %2568 = vmatpush.msrb.mxu1 %v2567_v4  ;;  %2669 = vmatpush.msrb.mxu3 %v13893_v9  ;;  %v2841_v32 = vsub.f32 %v13963_v38, %v21324_v7  ;;  %v2847_v4 = vsub.f32 %v13968_v55, %v21326_v14  ;;  %v2836_v56 = vand.u32 4294901760, %v2835_v3  ;;  %v20914_v7 = vand.u32 4294901760, %v14014_v48 }
 0x16e   :  { %2690 = vmatpush.msra.mxu0 %v21325_v35  ;;  %2786 = vmatpush.msra.mxu2 %v13904_v39  ;;  %v21328_v35 = vand.u32 4294901760, %v13983_v30  ;;  %v14052_v36 = vsub.f32 %v297_v59, %v14029_v13 }
 0x16f   :  { %2574 = vmatpush.msrb.mxu1 %v2573_v2  ;;  %2671 = vmatpush.msrb.mxu3 %v13907_v24  ;;  %v281_v2 = vld [vmem:[#allocation2 + $0x518] sm:$0xff]  ;;  %v2842_v3 = vand.u32 4294901760, %v2841_v32  ;;  %v14041_v24 = vand.u32 4294901760, %v289_v58  ;;  %v2870_v32 = vand.u32 4294901760, %v14027_v51 }
 0x170   :  { %2694 = vmatpush.msra.mxu0 %v21327_v42  ;;  %2788 = vmatpush.msra.mxu2 %v13923_v50  ;;  %v2853_v14 = vsub.f32 %v13983_v30, %v21328_v35  ;;  %v2848_v42 = vand.u32 4294901760, %v2847_v4  ;;  %v273_v50 = vld [vmem:[#allocation2 + $0x4d8] sm:$0xff]  ;;  %v14054_v35 = vand.u32 4294901760, %v281_v2  ;;  %v2865_v4 = vsub.f32 %v14014_v48, %v20914_v7 }
 0x171   :  { %2831 = vmatpush.msra.mxu3 %v2830_v28  ;;  %2580 = vmatpush.msrb.mxu1 %v2579_v41  ;;  %v21330_v28 = vand.u32 4294901760, %v14001_v25  ;;  %v14065_v59 = vsub.f32 %v289_v58, %v14041_v24  ;;  %v21333_v7 = vand.u32 4294901760, %v13837_v17  ;;  %v21334_v17 = vand.u32 4294901760, %v13842_v31 }
 0x172   :  { %2698 = vmatpush.msra.mxu0 %v21329_v21  ;;  %2790 = vmatpush.msra.mxu2 %v13938_v20  ;;  %v14067_v21 = vand.u32 4294901760, %v273_v50  ;;  %v14078_v58 = vsub.f32 %v281_v2, %v14054_v35  ;;  %v2866_v47 = vand.u32 4294901760, %v2865_v4 }
 0x173   :  { %2749 = vmatpush.msra.mxu1 %v13735_v61  ;;  %2837 = vmatpush.msra.mxu3 %v2836_v56  ;;  %v2859_v41 = vsub.f32 %v14001_v25, %v21330_v28  ;;  %v2854_v61 = vand.u32 4294901760, %v2853_v14  ;;  %v2876_v56 = vand.u32 4294901760, %v14039_v43  ;;  %v265_v28 = vld [vmem:[#allocation2 + $0x498] sm:$0xff]  ;;  %v2871_v14 = vsub.f32 %v14027_v51, %v2870_v32 }
 0x174   :  { %2702 = vmatpush.msra.mxu0 %v21331_v6  ;;  %2792 = vmatpush.msra.mxu2 %v13942_v49  ;;  %v257_v6 = vld [vmem:[#allocation2 + $0x458] sm:$0xff]  ;;  %v14091_v2 = vsub.f32 %v273_v50, %v14067_v21  ;;  %v2894_v4 = vand.u32 4294901760, %v14078_v58  ;;  %v21335_v50 = vand.u32 4294901760, %v13854_v57  ;;  %v21336_v57 = vand.u32 4294901760, %v13873_v16 }
 0x175   :  { %2751 = vmatpush.msra.mxu1 %v13742_v44  ;;  %2843 = vmatpush.msra.mxu3 %v2842_v3  ;;  %v2860_v44 = vand.u32 4294901760, %v2859_v41  ;;  %v2882_v3 = vand.u32 4294901760, %v14052_v36  ;;  %v2888_v41 = vand.u32 4294901760, %v14065_v59 }
 0x176   :  { %2706 = vmatpush.msra.mxu0 %v21332_v40  ;;  %2794 = vmatpush.msra.mxu2 %v13955_v10  ;;  %v249_v40 = vld [vmem:[#allocation2 + $0x418] sm:$0xff] }
 0x177   :  { %2753 = vmatpush.msra.mxu1 %v13749_v52  ;;  %2849 = vmatpush.msra.mxu3 %v2848_v42  ;;  %v14083_v52 = vand.u32 4294901760, %v265_v28  ;;  %v2877_v42 = vsub.f32 %v14039_v43, %v2876_v56 }
 0x178   :  { %2710 = vmatpush.msra.mxu0 %v21333_v7  ;;  %2796 = vmatpush.msra.mxu2 %v13975_v12  ;;  %v2872_v7 = vand.u32 4294901760, %v2871_v14  ;;  %v2889_v14 = vsub.f32 %v14065_v59, %v2888_v41 }
 0x179   :  { %2755 = vmatpush.msra.mxu1 %v13759_v18  ;;  %2855 = vmatpush.msra.mxu3 %v2854_v61  ;;  %v14096_v18 = vand.u32 4294901760, %v257_v6  ;;  %v2883_v61 = vsub.f32 %v14052_v36, %v2882_v3  ;;  %v14107_v31 = vsub.f32 %v265_v28, %v14083_v52 }
 0x17a   :  { %2714 = vmatpush.msra.mxu0 %v21334_v17  ;;  %2798 = vmatpush.msra.mxu2 %v13990_v27  ;;  %v2900_v17 = vand.u32 4294901760, %v14091_v2 }
 0x17b   :  { %2757 = vmatpush.msra.mxu1 %v13769_v26  ;;  %2861 = vmatpush.msra.mxu3 %v2860_v44  ;;  %v14109_v26 = vand.u32 4294901760, %v249_v40  ;;  %v2878_v44 = vand.u32 4294901760, %v2877_v42  ;;  %v2884_v28 = vand.u32 4294901760, %v2883_v61  ;;  %v21337_v42 = vand.u32 4294901760, %v13885_v46 }
 0x17c   :  { %2718 = vmatpush.msra.mxu0 %v21335_v50  ;;  %2800 = vmatpush.msra.mxu2 %v14003_v1  ;;  %v2906_v16 = vand.u32 4294901760, %v14107_v31  ;;  %v21338_v61 = vand.u32 4294901760, %v13897_v29 }
 0x17d   :  { %2759 = vmatpush.msra.mxu1 %v13780_v37  ;;  %2867 = vmatpush.msra.mxu3 %v2866_v47  ;;  %v14120_v37 = vsub.f32 %v257_v6, %v14096_v18  ;;  %v2895_v47 = vsub.f32 %v14078_v58, %v2894_v4  ;;  %v2890_v6 = vand.u32 4294901760, %v2889_v14 }
 0x17e   :  { %2722 = vmatpush.msra.mxu0 %v21336_v57  ;;  %2802 = vmatpush.msra.mxu2 %v14016_v22  ;;  %v2907_v50 = vsub.f32 %v14107_v31, %v2906_v16  ;;  %v21345_v57 = vld [vmem:[#allocation22_spill] sm:$0xff] }
 0x17f   :  { %2761 = vmatpush.msra.mxu1 %v13794_v11  ;;  %2873 = vmatpush.msra.mxu3 %v2872_v7  ;;  %v14131_v11 = vsub.f32 %v249_v40, %v14109_v26  ;;  %v2901_v7 = vsub.f32 %v14091_v2, %v2900_v17  ;;  %v2896_v46 = vand.u32 4294901760, %v2895_v47  ;;  %v21339_v40 = vand.u32 4294901760, %v13911_v62  ;;  %v21350_v47 = vld [vmem:[#allocation16_spill] sm:$0xff] }
 0x180   :  { %2726 = vmatpush.msra.mxu0 %v21337_v42  ;;  %2804 = vmatpush.msra.mxu2 %v14029_v13  ;;  %v2908_v14 = vand.u32 4294901760, %v2907_v50 }
 0x181   :  { %2763 = vmatpush.msra.mxu1 %v13807_v60  ;;  %2879 = vmatpush.msra.mxu3 %v2878_v44  ;;  %v2912_v60 = vand.u32 4294901760, %v14120_v37  ;;  %v2918_v29 = vand.u32 4294901760, %v14131_v11  ;;  %v21340_v44 = vand.u32 4294901760, %v13921_v8 }
 0x182   :  { %2730 = vmatpush.msra.mxu0 %v21338_v61  ;;  %2806 = vmatpush.msra.mxu2 %v14041_v24 }
 0x183   :  { %2765 = vmatpush.msra.mxu1 %v13815_v54  ;;  %2885 = vmatpush.msra.mxu3 %v2884_v28  ;;  %v2902_v54 = vand.u32 4294901760, %v2901_v7  ;;  %v2913_v62 = vsub.f32 %v14120_v37, %v2912_v60  ;;  %v2919_v8 = vsub.f32 %v14131_v11, %v2918_v29  ;;  %v21346_v28 = vld [vmem:[#allocation17_spill] sm:$0xff] }
 0x184   :  { %2734 = vmatpush.msra.mxu0 %v21339_v40  ;;  %2808 = vmatpush.msra.mxu2 %v14054_v35  ;;  %v162_v40 = vld [vmem:[#allocation2 + $0x160] sm:$0xff] }
 0x185   :  { %2767 = vmatpush.msra.mxu1 %v13828_v19  ;;  %2891 = vmatpush.msra.mxu3 %v2890_v6  ;;  %v21341_v19 = vand.u32 4294901760, %v13936_v5  ;;  %v21342_v5 = vand.u32 4294901760, %v13928_v53 }
 0x186   :  { %2738 = vmatpush.msra.mxu0 %v21340_v44  ;;  %2810 = vmatpush.msra.mxu2 %v14067_v21 }
 0x187   :  { %2769 = vmatpush.msra.mxu1 %v13848_v0  ;;  %2897 = vmatpush.msra.mxu3 %v2896_v46  ;;  %v2914_v0 = vand.u32 4294901760, %v2913_v62  ;;  %v21356_v62 = vld [vmem:[#allocation21_spill] sm:$0xff] }
 0x188   :  { %2742 = vmatpush.msra.mxu0 %v21341_v19  ;;  %2812 = vmatpush.msra.mxu2 %v14083_v52 }
 0x189   :  { %2771 = vmatpush.msra.mxu1 %v13860_v63  ;;  %2903 = vmatpush.msra.mxu3 %v2902_v54  ;;  %v2920_v63 = vand.u32 4294901760, %v2919_v8 }
 0x18a   :  { %2481 = vmatmul.f32.vlgmr.msrb.gmra.mxu0 %v12663_v33  ;;  %2814 = vmatpush.msra.mxu2 %v14096_v18 }
 0x18b   :  { %2773 = vmatpush.msra.mxu1 %v13870_v23  ;;  %2929 = vmatpush.msrb.mxu0 %v13928_v53  ;;  %v21343_v23 = vld [vmem:[#allocation18_spill] sm:$0xff]  ;;  %v21347_v53 = vand.u32 4294901760, %v13963_v38 }
 0x18c   :  { %2909 = vmatpush.msra.mxu3 %v2908_v14  ;;  %2816 = vmatpush.msra.mxu2 %v14109_v26 }
 0x18d   :  { %2775 = vmatpush.msra.mxu1 %v13882_v34  ;;  %2932 = vmatpush.msrb.mxu0 %v13950_v45  ;;  %v21344_v34 = vand.u32 4294901760, %v13950_v45  ;;  %v21349_v45 = vand.u32 4294901760, %v13968_v55 }
 0x18e   :  { %2915 = vmatpush.msra.mxu3 %v2914_v0  ;;  %2636 = vmatmul.f32.vlgmr.msrb.gmra.mxu2 %v12601_v15  ;;  %v14340_v0 = vand.u32 4294901760, %v162_v40 }
 0x18f   :  { %2935 = vmatpush.msrb.mxu0 %v13963_v38  ;;  %3023 = vmatpush.msrb.mxu2 %v21342_v5  ;;  %v21351_v38 = vand.u32 4294901760, %v13983_v30 }
 0x190   :  { %2777 = vmatpush.msra.mxu1 %v13893_v9  ;;  %2921 = vmatpush.msra.mxu3 %v2920_v63  ;;  %v21348_v9 = vld [vmem:[#allocation23_spill] sm:$0xff] }
 0x191   :  { %2675 = vmatmul.f32.vlgmr.msrb.gmra.mxu3 %v21343_v23  ;;  %2938 = vmatpush.msrb.mxu0 %v13968_v55  ;;  %v21353_v55 = vand.u32 4294901760, %v14001_v25 }
 0x192   :  { %3027 = vmatpush.msrb.mxu2 %v21344_v34  ;;  %3090 = vmatpush.msrb.mxu3 %v13904_v39  ;;  %v146_v34 = vld [vmem:[#allocation2 + $0xe0] sm:$0xff] }
 0x193   :  { %2779 = vmatpush.msra.mxu1 %v21345_v57  ;;  %2941 = vmatpush.msrb.mxu0 %v13983_v30  ;;  %v210_v30 = vld [vmem:[#allocation2 + $0x2e0] sm:$0xff] }
 0x194   :  { %2582 = vmatmul.f32.vlgmr.msrb.gmra.mxu1 %v21346_v28  ;;  %3031 = vmatpush.msrb.mxu2 %v21347_v53 }
 0x195   :  { %2982 = vmatpush.msrb.mxu1 %v13904_v39  ;;  %3092 = vmatpush.msrb.mxu3 %v21348_v9  ;;  %v21352_v39 = vld [vmem:[#allocation19_spill] sm:$0xff] }
 0x196   :  { %2944 = vmatpush.msrb.mxu0 %v14001_v25  ;;  %3035 = vmatpush.msrb.mxu2 %v21349_v45  ;;  %v242_v25 = vld [vmem:[#allocation2 + $0x3e0] sm:$0xff] }
 0x197   :  { %2984 = vmatpush.msrb.mxu1 %v21348_v9  ;;  %3094 = vmatpush.msrb.mxu3 %v13938_v20 }
 0x198   :  { %2822 = vmatmul.f32.vlgmr.msra.gmra.mxu2 %v21350_v47  ;;  %2947 = vmatpush.msrb.mxu0 %v14014_v48 }
 0x199   :  { %2986 = vmatpush.msrb.mxu1 %v13938_v20  ;;  %3039 = vmatpush.msrb.mxu2 %v21351_v38  ;;  %v21354_v20 = vand.u32 4294901760, %v14014_v48  ;;  %v234_v48 = vld [vmem:[#allocation2 + $0x3a0] sm:$0xff] }
 0x19a   :  { %3096 = vmatpush.msrb.mxu3 %v13942_v49  ;;  %2744 = vmatmul.f32.vlgmr.msra.gmra.mxu0 %v21346_v28 }
 0x19b   :  { %2923 = vmatmul.f32.vlgmr.msra.gmra.mxu3 %v21352_v39  ;;  %2950 = vmatpush.msrb.mxu0 %v14027_v51 }
 0x19c   :  { %2988 = vmatpush.msrb.mxu1 %v13942_v49  ;;  %3043 = vmatpush.msrb.mxu2 %v21353_v55  ;;  %v14234_v49 = vand.u32 4294901760, %v234_v48  ;;  %v138_v55 = vld [vmem:[#allocation2 + $0xa0] sm:$0xff] }
 0x19d   :  { %3098 = vmatpush.msrb.mxu3 %v13955_v10  ;;  %2781 = vmatmul.f32.vlgmr.msra.gmra.mxu1 %v21346_v28 }
 0x19e   :  { %2953 = vmatpush.msrb.mxu0 %v14039_v43  ;;  %2990 = vmatpush.msrb.mxu1 %v13955_v10  ;;  %v14227_v10 = vand.u32 4294901760, %v242_v25  ;;  %v14254_v51 = vsub.f32 %v234_v48, %v14234_v49  ;;  %v202_v43 = vld [vmem:[#allocation2 + $0x2a0] sm:$0xff]  ;;  %v14362_v48 = vand.u32 4294901760, %v146_v34 }
 0x19f   :  { %3047 = vmatpush.msrb.mxu2 %v21354_v20  ;;  %3100 = vmatpush.msrb.mxu3 %v13975_v12 }
 0x1a0   :  { %2956 = vmatpush.msrb.mxu0 %v14052_v36  ;;  %2992 = vmatpush.msrb.mxu1 %v13975_v12 }
 0x1a1   :  { %3051 = vmatpush.msrb.mxu2 %v2870_v32  ;;  %3102 = vmatpush.msrb.mxu3 %v13990_v27 }
 0x1a2   :  { %2959 = vmatpush.msrb.mxu0 %v14065_v59  ;;  %2994 = vmatpush.msrb.mxu1 %v13990_v27  ;;  %v226_v27 = vld [vmem:[#allocation2 + $0x360] sm:$0xff] }
 0x1a3   :  { %3055 = vmatpush.msrb.mxu2 %v2876_v56  ;;  %3104 = vmatpush.msrb.mxu3 %v14003_v1  ;;  %v14241_v12 = vand.u32 4294901760, %v226_v27  ;;  %v21355_v56 = vld [vmem:[#allocation20_spill] sm:$0xff] }
 0x1a4   :  { %2962 = vmatpush.msrb.mxu0 %v14078_v58  ;;  %2996 = vmatpush.msrb.mxu1 %v14003_v1  ;;  %v218_v1 = vld [vmem:[#allocation2 + $0x320] sm:$0xff] }
 0x1a5   :  { %3059 = vmatpush.msrb.mxu2 %v2882_v3  ;;  %3106 = vmatpush.msrb.mxu3 %v14016_v22  ;;  %v14265_v36 = vsub.f32 %v226_v27, %v14241_v12  ;;  %v194_v59 = vld [vmem:[#allocation2 + $0x260] sm:$0xff]  ;;  %v20926_v3 = vand.u32 4294901760, %v14254_v51  ;;  %v14365_v27 = vsub.f32 %v162_v40, %v14340_v0 }
 0x1a6   :  { %2965 = vmatpush.msrb.mxu0 %v14091_v2  ;;  %2998 = vmatpush.msrb.mxu1 %v14016_v22  ;;  %v14244_v22 = vsub.f32 %v242_v25, %v14227_v10  ;;  %v14286_v2 = vand.u32 4294901760, %v194_v59 }
 0x1a7   :  { %3063 = vmatpush.msrb.mxu2 %v2888_v41  ;;  %3108 = vmatpush.msrb.mxu3 %v14029_v13  ;;  %v186_v41 = vld [vmem:[#allocation2 + $0x220] sm:$0xff]  ;;  %v20917_v40 = vand.u32 4294901760, %v14365_v27 }
 0x1a8   :  { %2968 = vmatpush.msrb.mxu0 %v14107_v31  ;;  %3000 = vmatpush.msrb.mxu1 %v14029_v13  ;;  %v14251_v13 = vand.u32 4294901760, %v218_v1  ;;  %v20928_v32 = vand.u32 4294901760, %v14244_v22  ;;  %v14316_v46 = vsub.f32 %v194_v59, %v14286_v2 }
 0x1a9   :  { %3067 = vmatpush.msrb.mxu2 %v2894_v4  ;;  %3110 = vmatpush.msrb.mxu3 %v14041_v24  ;;  %v20925_v4 = vand.u32 4294901760, %v14265_v36 }
 0x1aa   :  { %2971 = vmatpush.msrb.mxu0 %v14120_v37  ;;  %3002 = vmatpush.msrb.mxu1 %v14041_v24  ;;  %v14261_v24 = vand.u32 4294901760, %v210_v30  ;;  %v14276_v58 = vsub.f32 %v218_v1, %v14251_v13  ;;  %v14299_v37 = vand.u32 4294901760, %v186_v41  ;;  %v20919_v63 = vand.u32 4294901760, %v14316_v46 }
 0x1ab   :  { %3071 = vmatpush.msrb.mxu2 %v2900_v17  ;;  %3112 = vmatpush.msrb.mxu3 %v14054_v35  ;;  %v178_v17 = vld [vmem:[#allocation2 + $0x1e0] sm:$0xff]  ;;  %v3182_v61 = vsub.f32 %v14265_v36, %v20925_v4 }
 0x1ac   :  { %2974 = vmatpush.msrb.mxu0 %v14131_v11  ;;  %3004 = vmatpush.msrb.mxu1 %v14054_v35  ;;  %v14272_v35 = vand.u32 4294901760, %v202_v43  ;;  %v14290_v31 = vsub.f32 %v210_v30, %v14261_v24  ;;  %v20923_v42 = vand.u32 4294901760, %v14276_v58  ;;  %v170_v11 = vld [vmem:[#allocation2 + $0x1a0] sm:$0xff]  ;;  %v14307_v6 = vand.u32 4294901760, %v178_v17 }
 0x1ad   :  { %3075 = vmatpush.msrb.mxu2 %v2906_v16  ;;  %3114 = vmatpush.msrb.mxu3 %v14067_v21  ;;  %v14329_v44 = vsub.f32 %v186_v41, %v14299_v37  ;;  %v3183_v14 = vand.u32 4294901760, %v3182_v61  ;;  %v3206_v25 = vsub.f32 %v14316_v46, %v20919_v63  ;;  %v130_v30 = vld [vmem:[#allocation2 + $0x60] sm:$0xff]  ;;  %v14374_v41 = vand.u32 4294901760, %v138_v55 }
 0x1ae   :  { %2977 = vmatmul.f32.vlgmr.msrb.gmra.mxu0 %v21355_v56  ;;  %3006 = vmatpush.msrb.mxu1 %v14067_v21  ;;  %v3170_v21 = vsub.f32 %v14244_v22, %v20928_v32  ;;  %v14303_v16 = vsub.f32 %v202_v43, %v14272_v35  ;;  %v14334_v19 = vsub.f32 %v178_v17, %v14307_v6  ;;  %v370_v17 = vld [vmem:[#allocation2 + $0x7e0] sm:$0xff]  ;;  %v14385_v61 = vand.u32 4294901760, %v130_v30 }
 0x1af   :  { %3127 = vmatpush.msra.mxu0 %v14227_v10  ;;  %3079 = vmatpush.msrb.mxu2 %v2912_v60  ;;  %v20922_v60 = vand.u32 4294901760, %v14290_v31  ;;  %v20918_v45 = vand.u32 4294901760, %v14329_v44 }
 0x1b0   :  { %3116 = vmatpush.msrb.mxu3 %v14083_v52  ;;  %3008 = vmatpush.msrb.mxu1 %v14083_v52  ;;  %v3176_v52 = vsub.f32 %v14254_v51, %v20926_v3  ;;  %v3171_v7 = vand.u32 4294901760, %v3170_v21  ;;  %v20920_v54 = vand.u32 4294901760, %v14303_v16  ;;  %v20916_v38 = vand.u32 4294901760, %v14334_v19 }
 0x1b1   :  { %3129 = vmatpush.msra.mxu0 %v14234_v49  ;;  %3083 = vmatpush.msrb.mxu2 %v2918_v29  ;;  %v3188_v29 = vsub.f32 %v14276_v58, %v20923_v42  ;;  %v3194_v8 = vsub.f32 %v14290_v31, %v20922_v60  ;;  %v3212_v59 = vsub.f32 %v14329_v44, %v20918_v45 }
 0x1b2   :  { %3118 = vmatpush.msrb.mxu3 %v14096_v18  ;;  %3085 = vmatmul.f32.vlgmr.msrb.gmra.mxu2 %v21352_v39  ;;  %v3177_v50 = vand.u32 4294901760, %v3176_v52  ;;  %v3200_v53 = vsub.f32 %v14303_v16, %v20920_v54  ;;  %v3218_v52 = vsub.f32 %v14334_v19, %v20916_v38  ;;  %v346_v38 = vld [vmem:[#allocation2 + $0x720] sm:$0xff] }
 0x1b3   :  { %3131 = vmatpush.msra.mxu0 %v14241_v12  ;;  %3270 = vmatpush.msra.mxu2 %v14244_v22  ;;  %v3189_v57 = vand.u32 4294901760, %v3188_v29  ;;  %v3195_v20 = vand.u32 4294901760, %v3194_v8  ;;  %v3213_v8 = vand.u32 4294901760, %v3212_v59  ;;  %v338_v54 = vld [vmem:[#allocation2 + $0x6e0] sm:$0xff] }
 0x1b4   :  { %3010 = vmatpush.msrb.mxu1 %v14096_v18  ;;  %3120 = vmatpush.msrb.mxu3 %v14109_v26  ;;  %v14320_v18 = vand.u32 4294901760, %v170_v11  ;;  %v3201_v43 = vand.u32 4294901760, %v3200_v53  ;;  %v14403_v53 = vsub.f32 %v138_v55, %v14374_v41  ;;  %v14447_v42 = vand.u32 4294901760, %v338_v54 }
 0x1b5   :  { %3122 = vmatmul.f32.vlgmr.msrb.gmra.mxu3 %v21352_v39  ;;  %3133 = vmatpush.msra.mxu0 %v14251_v13  ;;  %v21359_v39 = vand.u32 4294901760, %v14244_v22 }
 0x1b6   :  { %3273 = vmatpush.msra.mxu2 %v14254_v51  ;;  %3323 = vmatpush.msra.mxu3 %v14227_v10  ;;  %v14346_v5 = vsub.f32 %v170_v11, %v14320_v18  ;;  %v122_v11 = vld [vmem:[#allocation2 + $0x20] sm:$0xff] }
 0x1b7   :  { %3012 = vmatpush.msrb.mxu1 %v14109_v26  ;;  %3135 = vmatpush.msra.mxu0 %v14261_v24  ;;  %v154_v26 = vld [vmem:[#allocation2 + $0x120] sm:$0xff] }
 0x1b8   :  { %3016 = vmatmul.f32.vlgmr.msrb.gmra.mxu1 %v21356_v62  ;;  %3276 = vmatpush.msra.mxu2 %v14265_v36  ;;  %v14352_v9 = vand.u32 4294901760, %v154_v26  ;;  %v20915_v1 = vand.u32 4294901760, %v14346_v5 }
 0x1b9   :  { %3172 = vmatpush.msra.mxu1 %v3171_v7  ;;  %3325 = vmatpush.msra.mxu3 %v14234_v49  ;;  %v3207_v7 = vand.u32 4294901760, %v3206_v25  ;;  %v354_v25 = vld [vmem:[#allocation2 + $0x760] sm:$0xff] }
 0x1ba   :  { %3137 = vmatpush.msra.mxu0 %v14272_v35  ;;  %3279 = vmatpush.msra.mxu2 %v14276_v58  ;;  %v14377_v21 = vsub.f32 %v154_v26, %v14352_v9  ;;  %v3224_v29 = vsub.f32 %v14346_v5, %v20915_v1  ;;  %v14396_v26 = vand.u32 4294901760, %v370_v17  ;;  %v14413_v1 = vsub.f32 %v130_v30, %v14385_v61 }
 0x1bb   :  { %3178 = vmatpush.msra.mxu1 %v3177_v50  ;;  %3327 = vmatpush.msra.mxu3 %v14241_v12  ;;  %v14389_v50 = vsub.f32 %v146_v34, %v14362_v48  ;;  %v20927_v30 = vand.u32 4294901760, %v14403_v53  ;;  %v14430_v63 = vand.u32 4294901760, %v354_v25 }
 0x1bc   :  { %3139 = vmatpush.msra.mxu0 %v14286_v2  ;;  %3282 = vmatpush.msra.mxu2 %v14290_v31  ;;  %v20921_v34 = vand.u32 4294901760, %v14377_v21 }
 0x1bd   :  { %3184 = vmatpush.msra.mxu1 %v3183_v14  ;;  %3329 = vmatpush.msra.mxu3 %v14251_v13  ;;  %v362_v14 = vld [vmem:[#allocation2 + $0x7a0] sm:$0xff]  ;;  %v20924_v59 = vand.u32 4294901760, %v14389_v50  ;;  %v14455_v4 = vsub.f32 %v354_v25, %v14430_v63 }
 0x1be   :  { %3141 = vmatpush.msra.mxu0 %v14299_v37  ;;  %3285 = vmatpush.msra.mxu2 %v14303_v16  ;;  %v14415_v55 = vand.u32 4294901760, %v362_v14 }
 0x1bf   :  { %3190 = vmatpush.msra.mxu1 %v3189_v57  ;;  %3331 = vmatpush.msra.mxu3 %v14261_v24  ;;  %v14399_v57 = vand.u32 4294901760, %v122_v11 }
 0x1c0   :  { %3143 = vmatpush.msra.mxu0 %v14307_v6  ;;  %3288 = vmatpush.msra.mxu2 %v14316_v46  ;;  %21358 = vst [vmem:[#allocation23_spill] sm:$0xff] %v14415_v55 }
 0x1c1   :  { %3196 = vmatpush.msra.mxu1 %v3195_v20  ;;  %3333 = vmatpush.msra.mxu3 %v14272_v35  ;;  %21357 = vst [vmem:[#allocation22_spill] sm:$0xff] %v14399_v57  ;;  %v3219_v20 = vand.u32 4294901760, %v3218_v52  ;;  %v3225_v52 = vand.u32 4294901760, %v3224_v29  ;;  %v14428_v45 = vsub.f32 %v122_v11, %v14399_v57  ;;  %v20929_v11 = vand.u32 4294901760, %v14413_v1 }
 0x1c2   :  { %3145 = vmatpush.msra.mxu0 %v14320_v18  ;;  %3291 = vmatpush.msra.mxu2 %v14329_v44 }
 0x1c3   :  { %3202 = vmatpush.msra.mxu1 %v3201_v43  ;;  %3335 = vmatpush.msra.mxu3 %v14286_v2  ;;  %v3230_v43 = vsub.f32 %v14365_v27, %v20917_v40  ;;  %v3236_v40 = vsub.f32 %v14377_v21, %v20921_v34  ;;  %v14442_v34 = vsub.f32 %v362_v14, %v14415_v55  ;;  %v20932_v14 = vand.u32 4294901760, %v14428_v45 }
 0x1c4   :  { %3147 = vmatpush.msra.mxu0 %v14340_v0  ;;  %3294 = vmatpush.msra.mxu2 %v14334_v19 }
 0x1c5   :  { %3208 = vmatpush.msra.mxu1 %v3207_v7  ;;  %3337 = vmatpush.msra.mxu3 %v14299_v37  ;;  %v14420_v7 = vsub.f32 %v370_v17, %v14396_v26  ;;  %v14434_v17 = vand.u32 4294901760, %v346_v38  ;;  %v3231_v29 = vand.u32 4294901760, %v3230_v43  ;;  %v3237_v43 = vand.u32 4294901760, %v3236_v40 }
 0x1c6   :  { %3149 = vmatpush.msra.mxu0 %v14352_v9  ;;  %3297 = vmatpush.msra.mxu2 %v14346_v5  ;;  %v3260_v32 = vsub.f32 %v14428_v45, %v20932_v14 }
 0x1c7   :  { %3214 = vmatpush.msra.mxu1 %v3213_v8  ;;  %3339 = vmatpush.msra.mxu3 %v14307_v6  ;;  %v3242_v8 = vsub.f32 %v14389_v50, %v20924_v59  ;;  %v20931_v60 = vand.u32 4294901760, %v14420_v7  ;;  %v3248_v59 = vsub.f32 %v14403_v53, %v20927_v30  ;;  %v14460_v3 = vsub.f32 %v346_v38, %v14434_v17 }
 0x1c8   :  { %3151 = vmatpush.msra.mxu0 %v14362_v48  ;;  %3300 = vmatpush.msra.mxu2 %v14365_v27  ;;  %v3254_v30 = vsub.f32 %v14413_v1, %v20929_v11 }
 0x1c9   :  { %3220 = vmatpush.msra.mxu1 %v3219_v20  ;;  %3341 = vmatpush.msra.mxu3 %v14320_v18  ;;  %v330_v20 = vld [vmem:[#allocation2 + $0x6a0] sm:$0xff]  ;;  %v3243_v40 = vand.u32 4294901760, %v3242_v8  ;;  %v3511_v38 = vsub.f32 %v14420_v7, %v20931_v60  ;;  %v3249_v11 = vand.u32 4294901760, %v3248_v59 }
 0x1ca   :  { %3153 = vmatpush.msra.mxu0 %v14374_v41  ;;  %3303 = vmatpush.msra.mxu2 %v14377_v21  ;;  %v14467_v25 = vand.u32 4294901760, %v330_v20  ;;  %v314_v8 = vld [vmem:[#allocation2 + $0x620] sm:$0xff]  ;;  %v3255_v59 = vand.u32 4294901760, %v3254_v30  ;;  %v3261_v30 = vand.u32 4294901760, %v3260_v32 }
 0x1cb   :  { %3226 = vmatpush.msra.mxu1 %v3225_v52  ;;  %3343 = vmatpush.msra.mxu3 %v14340_v0  ;;  %v322_v52 = vld [vmem:[#allocation2 + $0x660] sm:$0xff]  ;;  %v14495_v47 = vand.u32 4294901760, %v314_v8  ;;  %v3512_v22 = vand.u32 4294901760, %v3511_v38  ;;  %v21364_v38 = vand.u32 4294901760, %v14460_v3 }
 0x1cc   :  { %3155 = vmatpush.msra.mxu0 %v14385_v61  ;;  %3306 = vmatpush.msra.mxu2 %v14389_v50  ;;  %v14482_v56 = vand.u32 4294901760, %v322_v52  ;;  %v306_v60 = vld [vmem:[#allocation2 + $0x5e0] sm:$0xff]  ;;  %v14493_v62 = vsub.f32 %v330_v20, %v14467_v25 }
 0x1cd   :  { %3232 = vmatpush.msra.mxu1 %v3231_v29  ;;  %3345 = vmatpush.msra.mxu3 %v14352_v9  ;;  %v14475_v29 = vsub.f32 %v338_v54, %v14447_v42  ;;  %v298_v54 = vld [vmem:[#allocation2 + $0x5a0] sm:$0xff]  ;;  %v14508_v23 = vand.u32 4294901760, %v306_v60 }
 0x1ce   :  { %3157 = vmatpush.msra.mxu0 %v14399_v57  ;;  %3309 = vmatpush.msra.mxu2 %v14403_v53  ;;  %v14506_v28 = vsub.f32 %v322_v52, %v14482_v56  ;;  %v14519_v52 = vsub.f32 %v314_v8, %v14495_v47 }
 0x1cf   :  { %3238 = vmatpush.msra.mxu1 %v3237_v43  ;;  %3347 = vmatpush.msra.mxu3 %v14362_v48  ;;  %v21360_v43 = vand.u32 4294901760, %v14442_v34  ;;  %v14531_v8 = vsub.f32 %v306_v60, %v14508_v23 }
 0x1d0   :  { %3364 = vmatpush.msrb.mxu0 %v21359_v39  ;;  %3312 = vmatpush.msra.mxu2 %v14413_v1  ;;  %v21361_v39 = vand.u32 4294901760, %v14254_v51  ;;  %v21363_v51 = vand.u32 4294901760, %v14265_v36  ;;  %v21365_v36 = vand.u32 4294901760, %v14276_v58  ;;  %v21367_v58 = vand.u32 4294901760, %v14290_v31 }
 0x1d1   :  { %3244 = vmatpush.msra.mxu1 %v3243_v40  ;;  %3349 = vmatpush.msra.mxu3 %v14374_v41  ;;  %v3517_v14 = vsub.f32 %v14442_v34, %v21360_v43  ;;  %v21362_v43 = vand.u32 4294901760, %v14455_v4  ;;  %v14521_v40 = vand.u32 4294901760, %v298_v54  ;;  %v21369_v31 = vand.u32 4294901760, %v14303_v16 }
 0x1d2   :  { %3368 = vmatpush.msrb.mxu0 %v21361_v39  ;;  %3315 = vmatpush.msra.mxu2 %v14428_v45  ;;  %v290_v39 = vld [vmem:[#allocation2 + $0x560] sm:$0xff]  ;;  %v21370_v16 = vand.u32 4294901760, %v14316_v46 }
 0x1d3   :  { %3250 = vmatpush.msra.mxu1 %v3249_v11  ;;  %3351 = vmatpush.msra.mxu3 %v14385_v61  ;;  %v3523_v20 = vsub.f32 %v14455_v4, %v21362_v43  ;;  %v3529_v11 = vsub.f32 %v14460_v3, %v21364_v38  ;;  %v3518_v32 = vand.u32 4294901760, %v3517_v14  ;;  %v20937_v43 = vand.u32 4294901760, %v14506_v28 }
 0x1d4   :  { %3372 = vmatpush.msrb.mxu0 %v21363_v51  ;;  %3468 = vmatpush.msrb.mxu2 %v14396_v26  ;;  %v21366_v51 = vand.u32 4294901760, %v14475_v29  ;;  %v14544_v60 = vsub.f32 %v298_v54, %v14521_v40 }
 0x1d5   :  { %3256 = vmatpush.msra.mxu1 %v3255_v59  ;;  %3353 = vmatpush.msra.mxu3 %v14399_v57  ;;  %v282_v59 = vld [vmem:[#allocation2 + $0x520] sm:$0xff]  ;;  %v3524_v14 = vand.u32 4294901760, %v3523_v20  ;;  %v14533_v57 = vand.u32 4294901760, %v290_v39  ;;  %v3552_v20 = vand.u32 4294901760, %v14519_v52 }
 0x1d6   :  { %3376 = vmatpush.msrb.mxu0 %v21365_v36  ;;  %3470 = vmatpush.msrb.mxu2 %v14415_v55  ;;  %v3535_v38 = vsub.f32 %v14475_v29, %v21366_v51  ;;  %v3530_v36 = vand.u32 4294901760, %v3529_v11  ;;  %v274_v55 = vld [vmem:[#allocation2 + $0x4e0] sm:$0xff]  ;;  %v14546_v51 = vand.u32 4294901760, %v282_v59  ;;  %v3547_v11 = vsub.f32 %v14506_v28, %v20937_v43 }
 0x1d7   :  { %3513 = vmatpush.msrb.mxu3 %v3512_v22  ;;  %3262 = vmatpush.msra.mxu1 %v3261_v30  ;;  %v21368_v22 = vand.u32 4294901760, %v14493_v62  ;;  %v14557_v54 = vsub.f32 %v290_v39, %v14533_v57  ;;  %v21371_v43 = vand.u32 4294901760, %v14329_v44  ;;  %v21372_v44 = vand.u32 4294901760, %v14334_v19 }
 0x1d8   :  { %3380 = vmatpush.msrb.mxu0 %v21367_v58  ;;  %3472 = vmatpush.msrb.mxu2 %v14430_v63  ;;  %v14559_v58 = vand.u32 4294901760, %v274_v55  ;;  %v14570_v39 = vsub.f32 %v282_v59, %v14546_v51  ;;  %v3548_v46 = vand.u32 4294901760, %v3547_v11 }
 0x1d9   :  { %3431 = vmatpush.msrb.mxu1 %v14227_v10  ;;  %3519 = vmatpush.msrb.mxu3 %v3518_v32  ;;  %v3541_v30 = vsub.f32 %v14493_v62, %v21368_v22  ;;  %v3536_v10 = vand.u32 4294901760, %v3535_v38  ;;  %v3558_v32 = vand.u32 4294901760, %v14531_v8  ;;  %v266_v22 = vld [vmem:[#allocation2 + $0x4a0] sm:$0xff]  ;;  %v3553_v38 = vsub.f32 %v14519_v52, %v3552_v20 }
 0x1da   :  { %3384 = vmatpush.msrb.mxu0 %v21369_v31  ;;  %3474 = vmatpush.msrb.mxu2 %v14434_v17  ;;  %v258_v31 = vld [vmem:[#allocation2 + $0x460] sm:$0xff]  ;;  %v14583_v59 = vsub.f32 %v274_v55, %v14559_v58  ;;  %v3576_v11 = vand.u32 4294901760, %v14570_v39  ;;  %v21373_v55 = vand.u32 4294901760, %v14346_v5  ;;  %v21374_v5 = vand.u32 4294901760, %v14365_v27 }
 0x1db   :  { %3433 = vmatpush.msrb.mxu1 %v14234_v49  ;;  %3525 = vmatpush.msrb.mxu3 %v3524_v14  ;;  %v3542_v49 = vand.u32 4294901760, %v3541_v30  ;;  %v3564_v14 = vand.u32 4294901760, %v14544_v60  ;;  %v3570_v30 = vand.u32 4294901760, %v14557_v54 }
 0x1dc   :  { %3388 = vmatpush.msrb.mxu0 %v21370_v16  ;;  %3476 = vmatpush.msrb.mxu2 %v14447_v42  ;;  %v250_v16 = vld [vmem:[#allocation2 + $0x420] sm:$0xff] }
 0x1dd   :  { %3435 = vmatpush.msrb.mxu1 %v14241_v12  ;;  %3531 = vmatpush.msrb.mxu3 %v3530_v36  ;;  %v14575_v12 = vand.u32 4294901760, %v266_v22  ;;  %v3559_v36 = vsub.f32 %v14531_v8, %v3558_v32 }
 0x1de   :  { %3392 = vmatpush.msrb.mxu0 %v21371_v43  ;;  %3478 = vmatpush.msrb.mxu2 %v14467_v25  ;;  %v3554_v43 = vand.u32 4294901760, %v3553_v38  ;;  %v3571_v38 = vsub.f32 %v14557_v54, %v3570_v30 }
 0x1df   :  { %3437 = vmatpush.msrb.mxu1 %v14251_v13  ;;  %3537 = vmatpush.msrb.mxu3 %v3536_v10  ;;  %v14588_v13 = vand.u32 4294901760, %v258_v31  ;;  %v3565_v10 = vsub.f32 %v14544_v60, %v3564_v14  ;;  %v14599_v19 = vsub.f32 %v266_v22, %v14575_v12 }
 0x1e0   :  { %3396 = vmatpush.msrb.mxu0 %v21372_v44  ;;  %3480 = vmatpush.msrb.mxu2 %v14482_v56  ;;  %v3582_v44 = vand.u32 4294901760, %v14583_v59 }
 0x1e1   :  { %3439 = vmatpush.msrb.mxu1 %v14261_v24  ;;  %3543 = vmatpush.msrb.mxu3 %v3542_v49  ;;  %v14601_v24 = vand.u32 4294901760, %v250_v16  ;;  %v3560_v49 = vand.u32 4294901760, %v3559_v36  ;;  %v3566_v22 = vand.u32 4294901760, %v3565_v10  ;;  %v21375_v36 = vand.u32 4294901760, %v14377_v21 }
 0x1e2   :  { %3400 = vmatpush.msrb.mxu0 %v21373_v55  ;;  %3482 = vmatpush.msrb.mxu2 %v14495_v47  ;;  %v3588_v27 = vand.u32 4294901760, %v14599_v19  ;;  %v21376_v10 = vand.u32 4294901760, %v14389_v50 }
 0x1e3   :  { %3441 = vmatpush.msrb.mxu1 %v14272_v35  ;;  %3549 = vmatpush.msrb.mxu3 %v3548_v46  ;;  %v14612_v35 = vsub.f32 %v258_v31, %v14588_v13  ;;  %v3577_v46 = vsub.f32 %v14570_v39, %v3576_v11  ;;  %v3572_v31 = vand.u32 4294901760, %v3571_v38 }
 0x1e4   :  { %3404 = vmatpush.msrb.mxu0 %v21374_v5  ;;  %3484 = vmatpush.msrb.mxu2 %v14508_v23  ;;  %v3589_v55 = vsub.f32 %v14599_v19, %v3588_v27  ;;  %v21383_v5 = vld [vmem:[#allocation22_spill] sm:$0xff] }
 0x1e5   :  { %3443 = vmatpush.msrb.mxu1 %v14286_v2  ;;  %3555 = vmatpush.msrb.mxu3 %v3554_v43  ;;  %v14623_v2 = vsub.f32 %v250_v16, %v14601_v24  ;;  %v3583_v43 = vsub.f32 %v14583_v59, %v3582_v44  ;;  %v3578_v21 = vand.u32 4294901760, %v3577_v46  ;;  %v21377_v16 = vand.u32 4294901760, %v14403_v53  ;;  %v21388_v46 = vld [vmem:[#allocation16_spill] sm:$0xff] }
 0x1e6   :  { %3408 = vmatpush.msrb.mxu0 %v21375_v36  ;;  %3486 = vmatpush.msrb.mxu2 %v14521_v40  ;;  %v3590_v38 = vand.u32 4294901760, %v3589_v55 }
 0x1e7   :  { %3445 = vmatpush.msrb.mxu1 %v14299_v37  ;;  %3561 = vmatpush.msrb.mxu3 %v3560_v49  ;;  %v3594_v37 = vand.u32 4294901760, %v14612_v35  ;;  %v3600_v50 = vand.u32 4294901760, %v14623_v2  ;;  %v21378_v49 = vand.u32 4294901760, %v14413_v1 }
 0x1e8   :  { %3412 = vmatpush.msrb.mxu0 %v21376_v10  ;;  %3488 = vmatpush.msrb.mxu2 %v14533_v57 }
 0x1e9   :  { %3447 = vmatpush.msrb.mxu1 %v14307_v6  ;;  %3567 = vmatpush.msrb.mxu3 %v3566_v22  ;;  %v3584_v6 = vand.u32 4294901760, %v3583_v43  ;;  %v3595_v53 = vsub.f32 %v14612_v35, %v3594_v37  ;;  %v3601_v1 = vsub.f32 %v14623_v2, %v3600_v50  ;;  %v21384_v22 = vld [vmem:[#allocation17_spill] sm:$0xff] }
 0x1ea   :  { %3416 = vmatpush.msrb.mxu0 %v21377_v16  ;;  %3490 = vmatpush.msrb.mxu2 %v14546_v51  ;;  %v163_v16 = vld [vmem:[#allocation2 + $0x168] sm:$0xff] }
 0x1eb   :  { %3449 = vmatpush.msrb.mxu1 %v14320_v18  ;;  %3573 = vmatpush.msrb.mxu3 %v3572_v31  ;;  %v21379_v18 = vand.u32 4294901760, %v14428_v45  ;;  %v21380_v45 = vand.u32 4294901760, %v14420_v7 }
 0x1ec   :  { %3420 = vmatpush.msrb.mxu0 %v21378_v49  ;;  %3492 = vmatpush.msrb.mxu2 %v14559_v58 }
 0x1ed   :  { %3451 = vmatpush.msrb.mxu1 %v14340_v0  ;;  %3579 = vmatpush.msrb.mxu3 %v3578_v21  ;;  %v3596_v0 = vand.u32 4294901760, %v3595_v53  ;;  %v21394_v53 = vld [vmem:[#allocation21_spill] sm:$0xff] }
 0x1ee   :  { %3424 = vmatpush.msrb.mxu0 %v21379_v18  ;;  %3494 = vmatpush.msrb.mxu2 %v14575_v12 }
 0x1ef   :  { %3453 = vmatpush.msrb.mxu1 %v14352_v9  ;;  %3585 = vmatpush.msrb.mxu3 %v3584_v6  ;;  %v3602_v9 = vand.u32 4294901760, %v3601_v1 }
 0x1f0   :  { %3163 = vmatmul.f32.vlgmr.msra.gmra.mxu0 %v12663_v33  ;;  %3496 = vmatpush.msrb.mxu2 %v14588_v13 }
 0x1f1   :  { %3455 = vmatpush.msrb.mxu1 %v14362_v48  ;;  %3611 = vmatpush.msra.mxu0 %v14420_v7  ;;  %v21381_v48 = vld [vmem:[#allocation18_spill] sm:$0xff]  ;;  %v21385_v7 = vand.u32 4294901760, %v14455_v4 }
 0x1f2   :  { %3591 = vmatpush.msrb.mxu3 %v3590_v38  ;;  %3498 = vmatpush.msrb.mxu2 %v14601_v24 }
 0x1f3   :  { %3457 = vmatpush.msrb.mxu1 %v14374_v41  ;;  %3614 = vmatpush.msra.mxu0 %v14442_v34  ;;  %v21382_v41 = vand.u32 4294901760, %v14442_v34  ;;  %v21387_v34 = vand.u32 4294901760, %v14460_v3 }
 0x1f4   :  { %3597 = vmatpush.msrb.mxu3 %v3596_v0  ;;  %3318 = vmatmul.f32.vlgmr.msra.gmra.mxu2 %v12601_v15  ;;  %v14832_v0 = vand.u32 4294901760, %v163_v16 }
 0x1f5   :  { %3617 = vmatpush.msra.mxu0 %v14455_v4  ;;  %3705 = vmatpush.msra.mxu2 %v21380_v45  ;;  %v21389_v4 = vand.u32 4294901760, %v14475_v29 }
 0x1f6   :  { %3459 = vmatpush.msrb.mxu1 %v14385_v61  ;;  %3603 = vmatpush.msrb.mxu3 %v3602_v9  ;;  %v21386_v61 = vld [vmem:[#allocation23_spill] sm:$0xff] }
 0x1f7   :  { %3357 = vmatmul.f32.vlgmr.msra.gmra.mxu3 %v21381_v48  ;;  %3620 = vmatpush.msra.mxu0 %v14460_v3  ;;  %v21391_v3 = vand.u32 4294901760, %v14493_v62 }
 0x1f8   :  { %3709 = vmatpush.msra.mxu2 %v21382_v41  ;;  %3772 = vmatpush.msra.mxu3 %v14396_v26  ;;  %v147_v41 = vld [vmem:[#allocation2 + $0xe8] sm:$0xff] }
 0x1f9   :  { %3461 = vmatpush.msrb.mxu1 %v21383_v5  ;;  %3623 = vmatpush.msra.mxu0 %v14475_v29  ;;  %v211_v29 = vld [vmem:[#allocation2 + $0x2e8] sm:$0xff] }
 0x1fa   :  { %3264 = vmatmul.f32.vlgmr.msra.gmra.mxu1 %v21384_v22  ;;  %3713 = vmatpush.msra.mxu2 %v21385_v7 }
 0x1fb   :  { %3664 = vmatpush.msra.mxu1 %v14396_v26  ;;  %3774 = vmatpush.msra.mxu3 %v21386_v61  ;;  %v21390_v26 = vld [vmem:[#allocation19_spill] sm:$0xff] }
 0x1fc   :  { %3626 = vmatpush.msra.mxu0 %v14493_v62  ;;  %3717 = vmatpush.msra.mxu2 %v21387_v34  ;;  %v243_v62 = vld [vmem:[#allocation2 + $0x3e8] sm:$0xff] }
 0x1fd   :  { %3666 = vmatpush.msra.mxu1 %v21386_v61  ;;  %3776 = vmatpush.msra.mxu3 %v14430_v63 }
 0x1fe   :  { %3504 = vmatmul.f32.vlgmr.msrb.gmra.mxu2 %v21388_v46  ;;  %3629 = vmatpush.msra.mxu0 %v14506_v28 }
 0x1ff   :  { %3668 = vmatpush.msra.mxu1 %v14430_v63  ;;  %3721 = vmatpush.msra.mxu2 %v21389_v4  ;;  %v21392_v63 = vand.u32 4294901760, %v14506_v28  ;;  %v235_v28 = vld [vmem:[#allocation2 + $0x3a8] sm:$0xff] }
 0x200   :  { %3778 = vmatpush.msra.mxu3 %v14434_v17  ;;  %3426 = vmatmul.f32.vlgmr.msrb.gmra.mxu0 %v21384_v22 }
 0x201   :  { %3605 = vmatmul.f32.vlgmr.msrb.gmra.mxu3 %v21390_v26  ;;  %3632 = vmatpush.msra.mxu0 %v14519_v52 }
 0x202   :  { %3670 = vmatpush.msra.mxu1 %v14434_v17  ;;  %3725 = vmatpush.msra.mxu2 %v21391_v3  ;;  %v14726_v17 = vand.u32 4294901760, %v235_v28  ;;  %v139_v3 = vld [vmem:[#allocation2 + $0xa8] sm:$0xff] }
 0x203   :  { %3780 = vmatpush.msra.mxu3 %v14447_v42  ;;  %3463 = vmatmul.f32.vlgmr.msrb.gmra.mxu1 %v21384_v22 }
 0x204   :  { %3635 = vmatpush.msra.mxu0 %v14531_v8  ;;  %3672 = vmatpush.msra.mxu1 %v14447_v42  ;;  %v14719_v42 = vand.u32 4294901760, %v243_v62  ;;  %v14746_v52 = vsub.f32 %v235_v28, %v14726_v17  ;;  %v203_v8 = vld [vmem:[#allocation2 + $0x2a8] sm:$0xff]  ;;  %v14854_v28 = vand.u32 4294901760, %v147_v41 }
 0x205   :  { %3729 = vmatpush.msra.mxu2 %v21392_v63  ;;  %3782 = vmatpush.msra.mxu3 %v14467_v25 }
 0x206   :  { %3638 = vmatpush.msra.mxu0 %v14544_v60  ;;  %3674 = vmatpush.msra.mxu1 %v14467_v25 }
 0x207   :  { %3733 = vmatpush.msra.mxu2 %v3552_v20  ;;  %3784 = vmatpush.msra.mxu3 %v14482_v56 }
 0x208   :  { %3641 = vmatpush.msra.mxu0 %v14557_v54  ;;  %3676 = vmatpush.msra.mxu1 %v14482_v56  ;;  %v227_v56 = vld [vmem:[#allocation2 + $0x368] sm:$0xff] }
 0x209   :  { %3737 = vmatpush.msra.mxu2 %v3558_v32  ;;  %3786 = vmatpush.msra.mxu3 %v14495_v47  ;;  %v14733_v25 = vand.u32 4294901760, %v227_v56  ;;  %v21393_v32 = vld [vmem:[#allocation20_spill] sm:$0xff] }
 0x20a   :  { %3644 = vmatpush.msra.mxu0 %v14570_v39  ;;  %3678 = vmatpush.msra.mxu1 %v14495_v47  ;;  %v219_v47 = vld [vmem:[#allocation2 + $0x328] sm:$0xff] }
 0x20b   :  { %3741 = vmatpush.msra.mxu2 %v3564_v14  ;;  %3788 = vmatpush.msra.mxu3 %v14508_v23  ;;  %v14757_v60 = vsub.f32 %v227_v56, %v14733_v25  ;;  %v195_v54 = vld [vmem:[#allocation2 + $0x268] sm:$0xff]  ;;  %v20949_v14 = vand.u32 4294901760, %v14746_v52  ;;  %v14857_v56 = vsub.f32 %v163_v16, %v14832_v0 }
 0x20c   :  { %3647 = vmatpush.msra.mxu0 %v14583_v59  ;;  %3680 = vmatpush.msra.mxu1 %v14508_v23  ;;  %v14736_v23 = vsub.f32 %v243_v62, %v14719_v42  ;;  %v14778_v59 = vand.u32 4294901760, %v195_v54 }
 0x20d   :  { %3745 = vmatpush.msra.mxu2 %v3570_v30  ;;  %3790 = vmatpush.msra.mxu3 %v14521_v40  ;;  %v187_v30 = vld [vmem:[#allocation2 + $0x228] sm:$0xff]  ;;  %v20940_v16 = vand.u32 4294901760, %v14857_v56 }
 0x20e   :  { %3650 = vmatpush.msra.mxu0 %v14599_v19  ;;  %3682 = vmatpush.msra.mxu1 %v14521_v40  ;;  %v14743_v40 = vand.u32 4294901760, %v219_v47  ;;  %v20951_v20 = vand.u32 4294901760, %v14736_v23  ;;  %v14808_v21 = vsub.f32 %v195_v54, %v14778_v59 }
 0x20f   :  { %3749 = vmatpush.msra.mxu2 %v3576_v11  ;;  %3792 = vmatpush.msra.mxu3 %v14533_v57  ;;  %v20948_v11 = vand.u32 4294901760, %v14757_v60 }
 0x210   :  { %3653 = vmatpush.msra.mxu0 %v14612_v35  ;;  %3684 = vmatpush.msra.mxu1 %v14533_v57  ;;  %v14753_v57 = vand.u32 4294901760, %v211_v29  ;;  %v14768_v39 = vsub.f32 %v219_v47, %v14743_v40  ;;  %v14791_v35 = vand.u32 4294901760, %v187_v30  ;;  %v20942_v9 = vand.u32 4294901760, %v14808_v21 }
 0x211   :  { %3753 = vmatpush.msra.mxu2 %v3582_v44  ;;  %3794 = vmatpush.msra.mxu3 %v14546_v51  ;;  %v179_v44 = vld [vmem:[#allocation2 + $0x1e8] sm:$0xff]  ;;  %v3864_v10 = vsub.f32 %v14757_v60, %v20948_v11 }
 0x212   :  { %3656 = vmatpush.msra.mxu0 %v14623_v2  ;;  %3686 = vmatpush.msra.mxu1 %v14546_v51  ;;  %v14764_v51 = vand.u32 4294901760, %v203_v8  ;;  %v14782_v19 = vsub.f32 %v211_v29, %v14753_v57  ;;  %v20946_v36 = vand.u32 4294901760, %v14768_v39  ;;  %v171_v2 = vld [vmem:[#allocation2 + $0x1a8] sm:$0xff]  ;;  %v14799_v31 = vand.u32 4294901760, %v179_v44 }
 0x213   :  { %3757 = vmatpush.msra.mxu2 %v3588_v27  ;;  %3796 = vmatpush.msra.mxu3 %v14559_v58  ;;  %v14821_v49 = vsub.f32 %v187_v30, %v14791_v35  ;;  %v3865_v38 = vand.u32 4294901760, %v3864_v10  ;;  %v3888_v62 = vsub.f32 %v14808_v21, %v20942_v9  ;;  %v131_v29 = vld [vmem:[#allocation2 + $0x68] sm:$0xff]  ;;  %v14866_v30 = vand.u32 4294901760, %v139_v3 }
 0x214   :  { %3659 = vmatmul.f32.vlgmr.msra.gmra.mxu0 %v21393_v32  ;;  %3688 = vmatpush.msra.mxu1 %v14559_v58  ;;  %v3852_v58 = vsub.f32 %v14736_v23, %v20951_v20  ;;  %v14795_v27 = vsub.f32 %v203_v8, %v14764_v51  ;;  %v14826_v18 = vsub.f32 %v179_v44, %v14799_v31  ;;  %v371_v44 = vld [vmem:[#allocation2 + $0x7e8] sm:$0xff]  ;;  %v14877_v10 = vand.u32 4294901760, %v131_v29 }
 0x215   :  { %3809 = vmatpush.msrb.mxu0 %v14719_v42  ;;  %3761 = vmatpush.msra.mxu2 %v3594_v37  ;;  %v20945_v37 = vand.u32 4294901760, %v14782_v19  ;;  %v20941_v34 = vand.u32 4294901760, %v14821_v49 }
 0x216   :  { %3798 = vmatpush.msra.mxu3 %v14575_v12  ;;  %3690 = vmatpush.msra.mxu1 %v14575_v12  ;;  %v3858_v12 = vsub.f32 %v14746_v52, %v20949_v14  ;;  %v3853_v43 = vand.u32 4294901760, %v3852_v58  ;;  %v20943_v6 = vand.u32 4294901760, %v14795_v27  ;;  %v20939_v4 = vand.u32 4294901760, %v14826_v18 }
 0x217   :  { %3811 = vmatpush.msrb.mxu0 %v14726_v17  ;;  %3765 = vmatpush.msra.mxu2 %v3600_v50  ;;  %v3870_v50 = vsub.f32 %v14768_v39, %v20946_v36  ;;  %v3876_v1 = vsub.f32 %v14782_v19, %v20945_v37  ;;  %v3894_v54 = vsub.f32 %v14821_v49, %v20941_v34 }
 0x218   :  { %3800 = vmatpush.msra.mxu3 %v14588_v13  ;;  %3767 = vmatmul.f32.vlgmr.msra.gmra.mxu2 %v21390_v26  ;;  %v3859_v55 = vand.u32 4294901760, %v3858_v12  ;;  %v3882_v7 = vsub.f32 %v14795_v27, %v20943_v6  ;;  %v3900_v12 = vsub.f32 %v14826_v18, %v20939_v4  ;;  %v347_v4 = vld [vmem:[#allocation2 + $0x728] sm:$0xff] }
 0x219   :  { %3813 = vmatpush.msrb.mxu0 %v14733_v25  ;;  %3952 = vmatpush.msrb.mxu2 %v14736_v23  ;;  %v3871_v5 = vand.u32 4294901760, %v3870_v50  ;;  %v3877_v63 = vand.u32 4294901760, %v3876_v1  ;;  %v3895_v1 = vand.u32 4294901760, %v3894_v54  ;;  %v339_v6 = vld [vmem:[#allocation2 + $0x6e8] sm:$0xff] }
 0x21a   :  { %3692 = vmatpush.msra.mxu1 %v14588_v13  ;;  %3802 = vmatpush.msra.mxu3 %v14601_v24  ;;  %v14812_v13 = vand.u32 4294901760, %v171_v2  ;;  %v3883_v8 = vand.u32 4294901760, %v3882_v7  ;;  %v14895_v7 = vsub.f32 %v139_v3, %v14866_v30  ;;  %v14939_v36 = vand.u32 4294901760, %v339_v6 }
 0x21b   :  { %3804 = vmatmul.f32.vlgmr.msra.gmra.mxu3 %v21390_v26  ;;  %3815 = vmatpush.msrb.mxu0 %v14743_v40  ;;  %v21397_v26 = vand.u32 4294901760, %v14736_v23 }
 0x21c   :  { %3955 = vmatpush.msrb.mxu2 %v14746_v52  ;;  %4005 = vmatpush.msrb.mxu3 %v14719_v42  ;;  %v14838_v45 = vsub.f32 %v171_v2, %v14812_v13  ;;  %v123_v2 = vld [vmem:[#allocation2 + $0x28] sm:$0xff] }
 0x21d   :  { %3694 = vmatpush.msra.mxu1 %v14601_v24  ;;  %3817 = vmatpush.msrb.mxu0 %v14753_v57  ;;  %v155_v24 = vld [vmem:[#allocation2 + $0x128] sm:$0xff] }
 0x21e   :  { %3698 = vmatmul.f32.vlgmr.msra.gmra.mxu1 %v21394_v53  ;;  %3958 = vmatpush.msrb.mxu2 %v14757_v60  ;;  %v14844_v61 = vand.u32 4294901760, %v155_v24  ;;  %v20938_v47 = vand.u32 4294901760, %v14838_v45 }
 0x21f   :  { %3854 = vmatpush.msrb.mxu1 %v3853_v43  ;;  %4007 = vmatpush.msrb.mxu3 %v14726_v17  ;;  %v3889_v43 = vand.u32 4294901760, %v3888_v62  ;;  %v355_v62 = vld [vmem:[#allocation2 + $0x768] sm:$0xff] }
 0x220   :  { %3819 = vmatpush.msrb.mxu0 %v14764_v51  ;;  %3961 = vmatpush.msrb.mxu2 %v14768_v39  ;;  %v14869_v58 = vsub.f32 %v155_v24, %v14844_v61  ;;  %v3906_v50 = vsub.f32 %v14838_v45, %v20938_v47  ;;  %v14888_v24 = vand.u32 4294901760, %v371_v44  ;;  %v14905_v47 = vsub.f32 %v131_v29, %v14877_v10 }
 0x221   :  { %3860 = vmatpush.msrb.mxu1 %v3859_v55  ;;  %4009 = vmatpush.msrb.mxu3 %v14733_v25  ;;  %v14881_v55 = vsub.f32 %v147_v41, %v14854_v28  ;;  %v20950_v29 = vand.u32 4294901760, %v14895_v7  ;;  %v14922_v9 = vand.u32 4294901760, %v355_v62 }
 0x222   :  { %3821 = vmatpush.msrb.mxu0 %v14778_v59  ;;  %3964 = vmatpush.msrb.mxu2 %v14782_v19  ;;  %v20944_v41 = vand.u32 4294901760, %v14869_v58 }
 0x223   :  { %3866 = vmatpush.msrb.mxu1 %v3865_v38  ;;  %4011 = vmatpush.msrb.mxu3 %v14743_v40  ;;  %v363_v38 = vld [vmem:[#allocation2 + $0x7a8] sm:$0xff]  ;;  %v20947_v54 = vand.u32 4294901760, %v14881_v55  ;;  %v14947_v11 = vsub.f32 %v355_v62, %v14922_v9 }
 0x224   :  { %3823 = vmatpush.msrb.mxu0 %v14791_v35  ;;  %3967 = vmatpush.msrb.mxu2 %v14795_v27  ;;  %v14907_v3 = vand.u32 4294901760, %v363_v38 }
 0x225   :  { %3872 = vmatpush.msrb.mxu1 %v3871_v5  ;;  %4013 = vmatpush.msrb.mxu3 %v14753_v57  ;;  %v14891_v5 = vand.u32 4294901760, %v123_v2 }
 0x226   :  { %3825 = vmatpush.msrb.mxu0 %v14799_v31  ;;  %3970 = vmatpush.msrb.mxu2 %v14808_v21  ;;  %21396 = vst [vmem:[#allocation23_spill] sm:$0xff] %v14907_v3 }
 0x227   :  { %3878 = vmatpush.msrb.mxu1 %v3877_v63  ;;  %4015 = vmatpush.msrb.mxu3 %v14764_v51  ;;  %21395 = vst [vmem:[#allocation22_spill] sm:$0xff] %v14891_v5  ;;  %v3901_v63 = vand.u32 4294901760, %v3900_v12  ;;  %v3907_v12 = vand.u32 4294901760, %v3906_v50  ;;  %v14920_v34 = vsub.f32 %v123_v2, %v14891_v5  ;;  %v20952_v2 = vand.u32 4294901760, %v14905_v47 }
 0x228   :  { %3827 = vmatpush.msrb.mxu0 %v14812_v13  ;;  %3973 = vmatpush.msrb.mxu2 %v14821_v49 }
 0x229   :  { %3884 = vmatpush.msrb.mxu1 %v3883_v8  ;;  %4017 = vmatpush.msrb.mxu3 %v14778_v59  ;;  %v3912_v8 = vsub.f32 %v14857_v56, %v20940_v16  ;;  %v3918_v16 = vsub.f32 %v14869_v58, %v20944_v41  ;;  %v14934_v41 = vsub.f32 %v363_v38, %v14907_v3  ;;  %v20955_v38 = vand.u32 4294901760, %v14920_v34 }
 0x22a   :  { %3829 = vmatpush.msrb.mxu0 %v14832_v0  ;;  %3976 = vmatpush.msrb.mxu2 %v14826_v18 }
 0x22b   :  { %3890 = vmatpush.msrb.mxu1 %v3889_v43  ;;  %4019 = vmatpush.msrb.mxu3 %v14791_v35  ;;  %v14912_v43 = vsub.f32 %v371_v44, %v14888_v24  ;;  %v14926_v44 = vand.u32 4294901760, %v347_v4  ;;  %v3913_v50 = vand.u32 4294901760, %v3912_v8  ;;  %v3919_v8 = vand.u32 4294901760, %v3918_v16 }
 0x22c   :  { %3831 = vmatpush.msrb.mxu0 %v14844_v61  ;;  %3979 = vmatpush.msrb.mxu2 %v14838_v45  ;;  %v3942_v20 = vsub.f32 %v14920_v34, %v20955_v38 }
 0x22d   :  { %3896 = vmatpush.msrb.mxu1 %v3895_v1  ;;  %4021 = vmatpush.msrb.mxu3 %v14799_v31  ;;  %v3924_v1 = vsub.f32 %v14881_v55, %v20947_v54  ;;  %v20954_v37 = vand.u32 4294901760, %v14912_v43  ;;  %v3930_v54 = vsub.f32 %v14895_v7, %v20950_v29  ;;  %v14952_v14 = vsub.f32 %v347_v4, %v14926_v44 }
 0x22e   :  { %3833 = vmatpush.msrb.mxu0 %v14854_v28  ;;  %3982 = vmatpush.msrb.mxu2 %v14857_v56  ;;  %v3936_v29 = vsub.f32 %v14905_v47, %v20952_v2 }
 0x22f   :  { %3902 = vmatpush.msrb.mxu1 %v3901_v63  ;;  %4023 = vmatpush.msrb.mxu3 %v14812_v13  ;;  %v331_v63 = vld [vmem:[#allocation2 + $0x6a8] sm:$0xff]  ;;  %v3925_v16 = vand.u32 4294901760, %v3924_v1  ;;  %v4193_v4 = vsub.f32 %v14912_v43, %v20954_v37  ;;  %v3931_v2 = vand.u32 4294901760, %v3930_v54 }
 0x230   :  { %3835 = vmatpush.msrb.mxu0 %v14866_v30  ;;  %3985 = vmatpush.msrb.mxu2 %v14869_v58  ;;  %v14959_v62 = vand.u32 4294901760, %v331_v63  ;;  %v315_v1 = vld [vmem:[#allocation2 + $0x628] sm:$0xff]  ;;  %v3937_v54 = vand.u32 4294901760, %v3936_v29  ;;  %v3943_v29 = vand.u32 4294901760, %v3942_v20 }
 0x231   :  { %3908 = vmatpush.msrb.mxu1 %v3907_v12  ;;  %4025 = vmatpush.msrb.mxu3 %v14832_v0  ;;  %v323_v12 = vld [vmem:[#allocation2 + $0x668] sm:$0xff]  ;;  %v14987_v46 = vand.u32 4294901760, %v315_v1  ;;  %v4194_v23 = vand.u32 4294901760, %v4193_v4  ;;  %v21402_v4 = vand.u32 4294901760, %v14952_v14 }
 0x232   :  { %3837 = vmatpush.msrb.mxu0 %v14877_v10  ;;  %3988 = vmatpush.msrb.mxu2 %v14881_v55  ;;  %v14974_v32 = vand.u32 4294901760, %v323_v12  ;;  %v307_v37 = vld [vmem:[#allocation2 + $0x5e8] sm:$0xff]  ;;  %v14985_v53 = vsub.f32 %v331_v63, %v14959_v62 }
 0x233   :  { %3914 = vmatpush.msrb.mxu1 %v3913_v50  ;;  %4027 = vmatpush.msrb.mxu3 %v14844_v61  ;;  %v14967_v50 = vsub.f32 %v339_v6, %v14939_v36  ;;  %v299_v6 = vld [vmem:[#allocation2 + $0x5a8] sm:$0xff]  ;;  %v15000_v48 = vand.u32 4294901760, %v307_v37 }
 0x234   :  { %3839 = vmatpush.msrb.mxu0 %v14891_v5  ;;  %3991 = vmatpush.msrb.mxu2 %v14895_v7  ;;  %v14998_v22 = vsub.f32 %v323_v12, %v14974_v32  ;;  %v15011_v12 = vsub.f32 %v315_v1, %v14987_v46 }
 0x235   :  { %3920 = vmatpush.msrb.mxu1 %v3919_v8  ;;  %4029 = vmatpush.msrb.mxu3 %v14854_v28  ;;  %v21398_v8 = vand.u32 4294901760, %v14934_v41  ;;  %v15023_v1 = vsub.f32 %v307_v37, %v15000_v48 }
 0x236   :  { %4046 = vmatpush.msra.mxu0 %v21397_v26  ;;  %3994 = vmatpush.msrb.mxu2 %v14905_v47  ;;  %v21399_v26 = vand.u32 4294901760, %v14746_v52  ;;  %v21401_v52 = vand.u32 4294901760, %v14757_v60  ;;  %v21403_v60 = vand.u32 4294901760, %v14768_v39  ;;  %v21405_v39 = vand.u32 4294901760, %v14782_v19 }
 0x237   :  { %3926 = vmatpush.msrb.mxu1 %v3925_v16  ;;  %4031 = vmatpush.msrb.mxu3 %v14866_v30  ;;  %v4199_v38 = vsub.f32 %v14934_v41, %v21398_v8  ;;  %v21400_v8 = vand.u32 4294901760, %v14947_v11  ;;  %v15013_v16 = vand.u32 4294901760, %v299_v6  ;;  %v21407_v19 = vand.u32 4294901760, %v14795_v27 }
 0x238   :  { %4050 = vmatpush.msra.mxu0 %v21399_v26  ;;  %3997 = vmatpush.msrb.mxu2 %v14920_v34  ;;  %v291_v26 = vld [vmem:[#allocation2 + $0x568] sm:$0xff]  ;;  %v21408_v27 = vand.u32 4294901760, %v14808_v21 }
 0x239   :  { %3932 = vmatpush.msrb.mxu1 %v3931_v2  ;;  %4033 = vmatpush.msrb.mxu3 %v14877_v10  ;;  %v4205_v63 = vsub.f32 %v14947_v11, %v21400_v8  ;;  %v4211_v2 = vsub.f32 %v14952_v14, %v21402_v4  ;;  %v4200_v20 = vand.u32 4294901760, %v4199_v38  ;;  %v20960_v8 = vand.u32 4294901760, %v14998_v22 }
 0x23a   :  { %4054 = vmatpush.msra.mxu0 %v21401_v52  ;;  %4150 = vmatpush.msra.mxu2 %v14888_v24  ;;  %v21404_v52 = vand.u32 4294901760, %v14967_v50  ;;  %v15036_v37 = vsub.f32 %v299_v6, %v15013_v16 }
 0x23b   :  { %3938 = vmatpush.msrb.mxu1 %v3937_v54  ;;  %4035 = vmatpush.msrb.mxu3 %v14891_v5  ;;  %v283_v54 = vld [vmem:[#allocation2 + $0x528] sm:$0xff]  ;;  %v4206_v38 = vand.u32 4294901760, %v4205_v63  ;;  %v15025_v5 = vand.u32 4294901760, %v291_v26  ;;  %v4234_v63 = vand.u32 4294901760, %v15011_v12 }
 0x23c   :  { %4058 = vmatpush.msra.mxu0 %v21403_v60  ;;  %4152 = vmatpush.msra.mxu2 %v14907_v3  ;;  %v4217_v4 = vsub.f32 %v14967_v50, %v21404_v52  ;;  %v4212_v60 = vand.u32 4294901760, %v4211_v2  ;;  %v275_v3 = vld [vmem:[#allocation2 + $0x4e8] sm:$0xff]  ;;  %v15038_v52 = vand.u32 4294901760, %v283_v54  ;;  %v4229_v2 = vsub.f32 %v14998_v22, %v20960_v8 }
 0x23d   :  { %4195 = vmatpush.msra.mxu3 %v4194_v23  ;;  %3944 = vmatpush.msrb.mxu1 %v3943_v29  ;;  %v21406_v23 = vand.u32 4294901760, %v14985_v53  ;;  %v15049_v6 = vsub.f32 %v291_v26, %v15025_v5  ;;  %v21409_v8 = vand.u32 4294901760, %v14821_v49  ;;  %v21410_v49 = vand.u32 4294901760, %v14826_v18 }
 0x23e   :  { %4062 = vmatpush.msra.mxu0 %v21405_v39  ;;  %4154 = vmatpush.msra.mxu2 %v14922_v9  ;;  %v15051_v39 = vand.u32 4294901760, %v275_v3  ;;  %v15062_v26 = vsub.f32 %v283_v54, %v15038_v52  ;;  %v4230_v21 = vand.u32 4294901760, %v4229_v2 }
 0x23f   :  { %4113 = vmatpush.msra.mxu1 %v14719_v42  ;;  %4201 = vmatpush.msra.mxu3 %v4200_v20  ;;  %v4223_v29 = vsub.f32 %v14985_v53, %v21406_v23  ;;  %v4218_v42 = vand.u32 4294901760, %v4217_v4  ;;  %v4240_v20 = vand.u32 4294901760, %v15023_v1  ;;  %v267_v23 = vld [vmem:[#allocation2 + $0x4a8] sm:$0xff]  ;;  %v4235_v4 = vsub.f32 %v15011_v12, %v4234_v63 }
 0x240   :  { %4066 = vmatpush.msra.mxu0 %v21407_v19  ;;  %4156 = vmatpush.msra.mxu2 %v14926_v44  ;;  %v259_v19 = vld [vmem:[#allocation2 + $0x468] sm:$0xff]  ;;  %v15075_v54 = vsub.f32 %v275_v3, %v15051_v39  ;;  %v4258_v2 = vand.u32 4294901760, %v15062_v26  ;;  %v21411_v3 = vand.u32 4294901760, %v14838_v45  ;;  %v21412_v45 = vand.u32 4294901760, %v14857_v56 }
 0x241   :  { %4115 = vmatpush.msra.mxu1 %v14726_v17  ;;  %4207 = vmatpush.msra.mxu3 %v4206_v38  ;;  %v4224_v17 = vand.u32 4294901760, %v4223_v29  ;;  %v4246_v38 = vand.u32 4294901760, %v15036_v37  ;;  %v4252_v29 = vand.u32 4294901760, %v15049_v6 }
 0x242   :  { %4070 = vmatpush.msra.mxu0 %v21408_v27  ;;  %4158 = vmatpush.msra.mxu2 %v14939_v36  ;;  %v251_v27 = vld [vmem:[#allocation2 + $0x428] sm:$0xff] }
 0x243   :  { %4117 = vmatpush.msra.mxu1 %v14733_v25  ;;  %4213 = vmatpush.msra.mxu3 %v4212_v60  ;;  %v15067_v25 = vand.u32 4294901760, %v267_v23  ;;  %v4241_v60 = vsub.f32 %v15023_v1, %v4240_v20 }
 0x244   :  { %4074 = vmatpush.msra.mxu0 %v21409_v8  ;;  %4160 = vmatpush.msra.mxu2 %v14959_v62  ;;  %v4236_v8 = vand.u32 4294901760, %v4235_v4  ;;  %v4253_v4 = vsub.f32 %v15049_v6, %v4252_v29 }
 0x245   :  { %4119 = vmatpush.msra.mxu1 %v14743_v40  ;;  %4219 = vmatpush.msra.mxu3 %v4218_v42  ;;  %v15080_v40 = vand.u32 4294901760, %v259_v19  ;;  %v4247_v42 = vsub.f32 %v15036_v37, %v4246_v38  ;;  %v15091_v18 = vsub.f32 %v267_v23, %v15067_v25 }
 0x246   :  { %4078 = vmatpush.msra.mxu0 %v21410_v49  ;;  %4162 = vmatpush.msra.mxu2 %v14974_v32  ;;  %v4264_v49 = vand.u32 4294901760, %v15075_v54 }
 0x247   :  { %4121 = vmatpush.msra.mxu1 %v14753_v57  ;;  %4225 = vmatpush.msra.mxu3 %v4224_v17  ;;  %v15093_v57 = vand.u32 4294901760, %v251_v27  ;;  %v4242_v17 = vand.u32 4294901760, %v4241_v60  ;;  %v4248_v23 = vand.u32 4294901760, %v4247_v42  ;;  %v21413_v60 = vand.u32 4294901760, %v14869_v58 }
 0x248   :  { %4082 = vmatpush.msra.mxu0 %v21411_v3  ;;  %4164 = vmatpush.msra.mxu2 %v14987_v46  ;;  %v4270_v56 = vand.u32 4294901760, %v15091_v18  ;;  %v21414_v42 = vand.u32 4294901760, %v14881_v55 }
 0x249   :  { %4123 = vmatpush.msra.mxu1 %v14764_v51  ;;  %4231 = vmatpush.msra.mxu3 %v4230_v21  ;;  %v15104_v51 = vsub.f32 %v259_v19, %v15080_v40  ;;  %v4259_v21 = vsub.f32 %v15062_v26, %v4258_v2  ;;  %v4254_v19 = vand.u32 4294901760, %v4253_v4 }
 0x24a   :  { %4086 = vmatpush.msra.mxu0 %v21412_v45  ;;  %4166 = vmatpush.msra.mxu2 %v15000_v48  ;;  %v4271_v3 = vsub.f32 %v15091_v18, %v4270_v56  ;;  %v21421_v45 = vld [vmem:[#allocation22_spill] sm:$0xff] }
 0x24b   :  { %4125 = vmatpush.msra.mxu1 %v14778_v59  ;;  %4237 = vmatpush.msra.mxu3 %v4236_v8  ;;  %v15115_v59 = vsub.f32 %v251_v27, %v15093_v57  ;;  %v4265_v8 = vsub.f32 %v15075_v54, %v4264_v49  ;;  %v4260_v58 = vand.u32 4294901760, %v4259_v21  ;;  %v21415_v27 = vand.u32 4294901760, %v14895_v7  ;;  %v21426_v21 = vld [vmem:[#allocation16_spill] sm:$0xff] }
 0x24c   :  { %4090 = vmatpush.msra.mxu0 %v21413_v60  ;;  %4168 = vmatpush.msra.mxu2 %v15013_v16  ;;  %v4272_v4 = vand.u32 4294901760, %v4271_v3 }
 0x24d   :  { %4127 = vmatpush.msra.mxu1 %v14791_v35  ;;  %4243 = vmatpush.msra.mxu3 %v4242_v17  ;;  %v4276_v35 = vand.u32 4294901760, %v15104_v51  ;;  %v4282_v55 = vand.u32 4294901760, %v15115_v59  ;;  %v21416_v17 = vand.u32 4294901760, %v14905_v47 }
 0x24e   :  { %4094 = vmatpush.msra.mxu0 %v21414_v42  ;;  %4170 = vmatpush.msra.mxu2 %v15025_v5 }
 0x24f   :  { %4129 = vmatpush.msra.mxu1 %v14799_v31  ;;  %4249 = vmatpush.msra.mxu3 %v4248_v23  ;;  %v4266_v31 = vand.u32 4294901760, %v4265_v8  ;;  %v4277_v7 = vsub.f32 %v15104_v51, %v4276_v35  ;;  %v4283_v47 = vsub.f32 %v15115_v59, %v4282_v55  ;;  %v21422_v23 = vld [vmem:[#allocation17_spill] sm:$0xff] }
 0x250   :  { %4098 = vmatpush.msra.mxu0 %v21415_v27  ;;  %4172 = vmatpush.msra.mxu2 %v15038_v52  ;;  %v164_v27 = vld [vmem:[#allocation2 + $0x170] sm:$0xff] }
 0x251   :  { %4131 = vmatpush.msra.mxu1 %v14812_v13  ;;  %4255 = vmatpush.msra.mxu3 %v4254_v19  ;;  %v21417_v13 = vand.u32 4294901760, %v14920_v34  ;;  %v21418_v34 = vand.u32 4294901760, %v14912_v43 }
 0x252   :  { %4102 = vmatpush.msra.mxu0 %v21416_v17  ;;  %4174 = vmatpush.msra.mxu2 %v15051_v39 }
 0x253   :  { %4133 = vmatpush.msra.mxu1 %v14832_v0  ;;  %4261 = vmatpush.msra.mxu3 %v4260_v58  ;;  %v4278_v0 = vand.u32 4294901760, %v4277_v7  ;;  %v21432_v7 = vld [vmem:[#allocation21_spill] sm:$0xff] }
 0x254   :  { %4106 = vmatpush.msra.mxu0 %v21417_v13  ;;  %4176 = vmatpush.msra.mxu2 %v15067_v25 }
 0x255   :  { %4135 = vmatpush.msra.mxu1 %v14844_v61  ;;  %4267 = vmatpush.msra.mxu3 %v4266_v31  ;;  %v4284_v61 = vand.u32 4294901760, %v4283_v47 }
 0x256   :  { %3845 = vmatmul.f32.vlgmr.msrb.gmra.mxu0 %v12663_v33  ;;  %4178 = vmatpush.msra.mxu2 %v15080_v40 }
 0x257   :  { %4137 = vmatpush.msra.mxu1 %v14854_v28  ;;  %4293 = vmatpush.msrb.mxu0 %v14912_v43  ;;  %v21419_v28 = vld [vmem:[#allocation18_spill] sm:$0xff]  ;;  %v21423_v43 = vand.u32 4294901760, %v14947_v11 }
 0x258   :  { %4273 = vmatpush.msra.mxu3 %v4272_v4  ;;  %4180 = vmatpush.msra.mxu2 %v15093_v57 }
 0x259   :  { %4139 = vmatpush.msra.mxu1 %v14866_v30  ;;  %4296 = vmatpush.msrb.mxu0 %v14934_v41  ;;  %v21420_v30 = vand.u32 4294901760, %v14934_v41  ;;  %v21425_v41 = vand.u32 4294901760, %v14952_v14 }
 0x25a   :  { %4279 = vmatpush.msra.mxu3 %v4278_v0  ;;  %4000 = vmatmul.f32.vlgmr.msrb.gmra.mxu2 %v12601_v15  ;;  %v15324_v0 = vand.u32 4294901760, %v164_v27 }
 0x25b   :  { %4299 = vmatpush.msrb.mxu0 %v14947_v11  ;;  %4387 = vmatpush.msrb.mxu2 %v21418_v34  ;;  %v21427_v11 = vand.u32 4294901760, %v14967_v50 }
 0x25c   :  { %4141 = vmatpush.msra.mxu1 %v14877_v10  ;;  %4285 = vmatpush.msra.mxu3 %v4284_v61  ;;  %v21424_v10 = vld [vmem:[#allocation23_spill] sm:$0xff] }
 0x25d   :  { %4039 = vmatmul.f32.vlgmr.msrb.gmra.mxu3 %v21419_v28  ;;  %4302 = vmatpush.msrb.mxu0 %v14952_v14  ;;  %v21429_v14 = vand.u32 4294901760, %v14985_v53 }
 0x25e   :  { %4391 = vmatpush.msrb.mxu2 %v21420_v30  ;;  %4454 = vmatpush.msrb.mxu3 %v14888_v24  ;;  %v148_v30 = vld [vmem:[#allocation2 + $0xf0] sm:$0xff] }
 0x25f   :  { %4143 = vmatpush.msra.mxu1 %v21421_v45  ;;  %4305 = vmatpush.msrb.mxu0 %v14967_v50  ;;  %v212_v50 = vld [vmem:[#allocation2 + $0x2f0] sm:$0xff] }
 0x260   :  { %3946 = vmatmul.f32.vlgmr.msrb.gmra.mxu1 %v21422_v23  ;;  %4395 = vmatpush.msrb.mxu2 %v21423_v43 }
 0x261   :  { %4346 = vmatpush.msrb.mxu1 %v14888_v24  ;;  %4456 = vmatpush.msrb.mxu3 %v21424_v10  ;;  %v21428_v24 = vld [vmem:[#allocation19_spill] sm:$0xff] }
 0x262   :  { %4308 = vmatpush.msrb.mxu0 %v14985_v53  ;;  %4399 = vmatpush.msrb.mxu2 %v21425_v41  ;;  %v244_v53 = vld [vmem:[#allocation2 + $0x3f0] sm:$0xff] }
 0x263   :  { %4348 = vmatpush.msrb.mxu1 %v21424_v10  ;;  %4458 = vmatpush.msrb.mxu3 %v14922_v9 }
 0x264   :  { %4186 = vmatmul.f32.vlgmr.msra.gmra.mxu2 %v21426_v21  ;;  %4311 = vmatpush.msrb.mxu0 %v14998_v22 }
 0x265   :  { %4350 = vmatpush.msrb.mxu1 %v14922_v9  ;;  %4403 = vmatpush.msrb.mxu2 %v21427_v11  ;;  %v21430_v9 = vand.u32 4294901760, %v14998_v22  ;;  %v236_v22 = vld [vmem:[#allocation2 + $0x3b0] sm:$0xff] }
 0x266   :  { %4460 = vmatpush.msrb.mxu3 %v14926_v44  ;;  %4108 = vmatmul.f32.vlgmr.msra.gmra.mxu0 %v21422_v23 }
 0x267   :  { %4287 = vmatmul.f32.vlgmr.msra.gmra.mxu3 %v21428_v24  ;;  %4314 = vmatpush.msrb.mxu0 %v15011_v12 }
 0x268   :  { %4352 = vmatpush.msrb.mxu1 %v14926_v44  ;;  %4407 = vmatpush.msrb.mxu2 %v21429_v14  ;;  %v15218_v44 = vand.u32 4294901760, %v236_v22  ;;  %v140_v14 = vld [vmem:[#allocation2 + $0xb0] sm:$0xff] }
 0x269   :  { %4462 = vmatpush.msrb.mxu3 %v14939_v36  ;;  %4145 = vmatmul.f32.vlgmr.msra.gmra.mxu1 %v21422_v23 }
 0x26a   :  { %4317 = vmatpush.msrb.mxu0 %v15023_v1  ;;  %4354 = vmatpush.msrb.mxu1 %v14939_v36  ;;  %v15211_v36 = vand.u32 4294901760, %v244_v53  ;;  %v15238_v12 = vsub.f32 %v236_v22, %v15218_v44  ;;  %v204_v1 = vld [vmem:[#allocation2 + $0x2b0] sm:$0xff]  ;;  %v15346_v22 = vand.u32 4294901760, %v148_v30 }
 0x26b   :  { %4411 = vmatpush.msrb.mxu2 %v21430_v9  ;;  %4464 = vmatpush.msrb.mxu3 %v14959_v62 }
 0x26c   :  { %4320 = vmatpush.msrb.mxu0 %v15036_v37  ;;  %4356 = vmatpush.msrb.mxu1 %v14959_v62 }
 0x26d   :  { %4415 = vmatpush.msrb.mxu2 %v4234_v63  ;;  %4466 = vmatpush.msrb.mxu3 %v14974_v32 }
 0x26e   :  { %4323 = vmatpush.msrb.mxu0 %v15049_v6  ;;  %4358 = vmatpush.msrb.mxu1 %v14974_v32  ;;  %v228_v32 = vld [vmem:[#allocation2 + $0x370] sm:$0xff] }
 0x26f   :  { %4419 = vmatpush.msrb.mxu2 %v4240_v20  ;;  %4468 = vmatpush.msrb.mxu3 %v14987_v46  ;;  %v15225_v62 = vand.u32 4294901760, %v228_v32  ;;  %v21431_v20 = vld [vmem:[#allocation20_spill] sm:$0xff]  ;;  %v196_v6 = vld [vmem:[#allocation2 + $0x270] sm:$0xff] }
 0x270   :  { %4326 = vmatpush.msrb.mxu0 %v15062_v26  ;;  %4360 = vmatpush.msrb.mxu1 %v14987_v46  ;;  %v220_v46 = vld [vmem:[#allocation2 + $0x330] sm:$0xff] }
 0x271   :  { %4423 = vmatpush.msrb.mxu2 %v4246_v38  ;;  %4470 = vmatpush.msrb.mxu3 %v15000_v48  ;;  %v15249_v37 = vsub.f32 %v228_v32, %v15225_v62  ;;  %v20972_v38 = vand.u32 4294901760, %v15238_v12  ;;  %v15349_v32 = vsub.f32 %v164_v27, %v15324_v0 }
 0x272   :  { %4329 = vmatpush.msrb.mxu0 %v15075_v54  ;;  %4362 = vmatpush.msrb.mxu1 %v15000_v48  ;;  %v15228_v48 = vsub.f32 %v244_v53, %v15211_v36  ;;  %v15270_v54 = vand.u32 4294901760, %v196_v6 }
 0x273   :  { %4427 = vmatpush.msrb.mxu2 %v4252_v29  ;;  %4472 = vmatpush.msrb.mxu3 %v15013_v16  ;;  %v188_v29 = vld [vmem:[#allocation2 + $0x230] sm:$0xff]  ;;  %v20963_v27 = vand.u32 4294901760, %v15349_v32 }
 0x274   :  { %4332 = vmatpush.msrb.mxu0 %v15091_v18  ;;  %4364 = vmatpush.msrb.mxu1 %v15013_v16  ;;  %v15235_v16 = vand.u32 4294901760, %v220_v46  ;;  %v20974_v63 = vand.u32 4294901760, %v15228_v48  ;;  %v15300_v58 = vsub.f32 %v196_v6, %v15270_v54 }
 0x275   :  { %4431 = vmatpush.msrb.mxu2 %v4258_v2  ;;  %4474 = vmatpush.msrb.mxu3 %v15025_v5  ;;  %v20971_v2 = vand.u32 4294901760, %v15249_v37 }
 0x276   :  { %4335 = vmatpush.msrb.mxu0 %v15104_v51  ;;  %4366 = vmatpush.msrb.mxu1 %v15025_v5  ;;  %v15245_v5 = vand.u32 4294901760, %v212_v50  ;;  %v15260_v26 = vsub.f32 %v220_v46, %v15235_v16  ;;  %v15283_v51 = vand.u32 4294901760, %v188_v29  ;;  %v20965_v61 = vand.u32 4294901760, %v15300_v58 }
 0x277   :  { %4435 = vmatpush.msrb.mxu2 %v4264_v49  ;;  %4476 = vmatpush.msrb.mxu3 %v15038_v52  ;;  %v180_v49 = vld [vmem:[#allocation2 + $0x1f0] sm:$0xff]  ;;  %v4546_v42 = vsub.f32 %v15249_v37, %v20971_v2 }
 0x278   :  { %4338 = vmatpush.msrb.mxu0 %v15115_v59  ;;  %4368 = vmatpush.msrb.mxu1 %v15038_v52  ;;  %v15256_v52 = vand.u32 4294901760, %v204_v1  ;;  %v15274_v18 = vsub.f32 %v212_v50, %v15245_v5  ;;  %v20969_v60 = vand.u32 4294901760, %v15260_v26  ;;  %v172_v59 = vld [vmem:[#allocation2 + $0x1b0] sm:$0xff]  ;;  %v15291_v19 = vand.u32 4294901760, %v180_v49 }
 0x279   :  { %4439 = vmatpush.msrb.mxu2 %v4270_v56  ;;  %4478 = vmatpush.msrb.mxu3 %v15051_v39  ;;  %v15313_v17 = vsub.f32 %v188_v29, %v15283_v51  ;;  %v4547_v4 = vand.u32 4294901760, %v4546_v42  ;;  %v4570_v53 = vsub.f32 %v15300_v58, %v20965_v61  ;;  %v132_v50 = vld [vmem:[#allocation2 + $0x70] sm:$0xff]  ;;  %v15358_v29 = vand.u32 4294901760, %v140_v14 }
 0x27a   :  { %4341 = vmatmul.f32.vlgmr.msrb.gmra.mxu0 %v21431_v20  ;;  %4370 = vmatpush.msrb.mxu1 %v15051_v39  ;;  %v4534_v39 = vsub.f32 %v15228_v48, %v20974_v63  ;;  %v15287_v56 = vsub.f32 %v204_v1, %v15256_v52  ;;  %v15318_v13 = vsub.f32 %v180_v49, %v15291_v19  ;;  %v372_v49 = vld [vmem:[#allocation2 + $0x7f0] sm:$0xff]  ;;  %v15369_v42 = vand.u32 4294901760, %v132_v50 }
 0x27b   :  { %4491 = vmatpush.msra.mxu0 %v15211_v36  ;;  %4443 = vmatpush.msrb.mxu2 %v4276_v35  ;;  %v20968_v35 = vand.u32 4294901760, %v15274_v18  ;;  %v20964_v41 = vand.u32 4294901760, %v15313_v17 }
 0x27c   :  { %4480 = vmatpush.msrb.mxu3 %v15067_v25  ;;  %4372 = vmatpush.msrb.mxu1 %v15067_v25  ;;  %v4540_v25 = vsub.f32 %v15238_v12, %v20972_v38  ;;  %v4535_v8 = vand.u32 4294901760, %v4534_v39  ;;  %v20966_v31 = vand.u32 4294901760, %v15287_v56  ;;  %v20962_v11 = vand.u32 4294901760, %v15318_v13 }
 0x27d   :  { %4493 = vmatpush.msra.mxu0 %v15218_v44  ;;  %4447 = vmatpush.msrb.mxu2 %v4282_v55  ;;  %v4552_v55 = vsub.f32 %v15260_v26, %v20969_v60  ;;  %v4558_v47 = vsub.f32 %v15274_v18, %v20968_v35  ;;  %v4576_v6 = vsub.f32 %v15313_v17, %v20964_v41 }
 0x27e   :  { %4482 = vmatpush.msrb.mxu3 %v15080_v40  ;;  %4449 = vmatmul.f32.vlgmr.msrb.gmra.mxu2 %v21428_v24  ;;  %v4541_v3 = vand.u32 4294901760, %v4540_v25  ;;  %v4564_v43 = vsub.f32 %v15287_v56, %v20966_v31  ;;  %v4582_v25 = vsub.f32 %v15318_v13, %v20962_v11  ;;  %v348_v11 = vld [vmem:[#allocation2 + $0x730] sm:$0xff] }
 0x27f   :  { %4495 = vmatpush.msra.mxu0 %v15225_v62  ;;  %4634 = vmatpush.msra.mxu2 %v15228_v48  ;;  %v4553_v45 = vand.u32 4294901760, %v4552_v55  ;;  %v4559_v9 = vand.u32 4294901760, %v4558_v47  ;;  %v4577_v47 = vand.u32 4294901760, %v4576_v6  ;;  %v340_v31 = vld [vmem:[#allocation2 + $0x6f0] sm:$0xff] }
 0x280   :  { %4374 = vmatpush.msrb.mxu1 %v15080_v40  ;;  %4484 = vmatpush.msrb.mxu3 %v15093_v57  ;;  %v15304_v40 = vand.u32 4294901760, %v172_v59  ;;  %v4565_v1 = vand.u32 4294901760, %v4564_v43  ;;  %v15387_v43 = vsub.f32 %v140_v14, %v15358_v29  ;;  %v15431_v60 = vand.u32 4294901760, %v340_v31 }
 0x281   :  { %4486 = vmatmul.f32.vlgmr.msrb.gmra.mxu3 %v21428_v24  ;;  %4497 = vmatpush.msra.mxu0 %v15235_v16  ;;  %v21435_v24 = vand.u32 4294901760, %v15228_v48 }
 0x282   :  { %4637 = vmatpush.msra.mxu2 %v15238_v12  ;;  %4687 = vmatpush.msra.mxu3 %v15211_v36  ;;  %v15330_v34 = vsub.f32 %v172_v59, %v15304_v40  ;;  %v124_v59 = vld [vmem:[#allocation2 + $0x30] sm:$0xff] }
 0x283   :  { %4376 = vmatpush.msrb.mxu1 %v15093_v57  ;;  %4499 = vmatpush.msra.mxu0 %v15245_v5  ;;  %v156_v57 = vld [vmem:[#allocation2 + $0x130] sm:$0xff] }
 0x284   :  { %4380 = vmatmul.f32.vlgmr.msrb.gmra.mxu1 %v21432_v7  ;;  %4640 = vmatpush.msra.mxu2 %v15249_v37  ;;  %v15336_v10 = vand.u32 4294901760, %v156_v57  ;;  %v20961_v46 = vand.u32 4294901760, %v15330_v34 }
 0x285   :  { %4536 = vmatpush.msra.mxu1 %v4535_v8  ;;  %4689 = vmatpush.msra.mxu3 %v15218_v44  ;;  %v4571_v8 = vand.u32 4294901760, %v4570_v53  ;;  %v356_v53 = vld [vmem:[#allocation2 + $0x770] sm:$0xff] }
 0x286   :  { %4501 = vmatpush.msra.mxu0 %v15256_v52  ;;  %4643 = vmatpush.msra.mxu2 %v15260_v26  ;;  %v15361_v39 = vsub.f32 %v156_v57, %v15336_v10  ;;  %v4588_v55 = vsub.f32 %v15330_v34, %v20961_v46  ;;  %v15380_v57 = vand.u32 4294901760, %v372_v49  ;;  %v15397_v46 = vsub.f32 %v132_v50, %v15369_v42 }
 0x287   :  { %4542 = vmatpush.msra.mxu1 %v4541_v3  ;;  %4691 = vmatpush.msra.mxu3 %v15225_v62  ;;  %v15373_v3 = vsub.f32 %v148_v30, %v15346_v22  ;;  %v20973_v50 = vand.u32 4294901760, %v15387_v43  ;;  %v15414_v61 = vand.u32 4294901760, %v356_v53 }
 0x288   :  { %4503 = vmatpush.msra.mxu0 %v15270_v54  ;;  %4646 = vmatpush.msra.mxu2 %v15274_v18  ;;  %v20967_v30 = vand.u32 4294901760, %v15361_v39 }
 0x289   :  { %4548 = vmatpush.msra.mxu1 %v4547_v4  ;;  %4693 = vmatpush.msra.mxu3 %v15235_v16  ;;  %v364_v4 = vld [vmem:[#allocation2 + $0x7b0] sm:$0xff]  ;;  %v20970_v6 = vand.u32 4294901760, %v15373_v3  ;;  %v15439_v2 = vsub.f32 %v356_v53, %v15414_v61 }
 0x28a   :  { %4505 = vmatpush.msra.mxu0 %v15283_v51  ;;  %4649 = vmatpush.msra.mxu2 %v15287_v56  ;;  %v15399_v14 = vand.u32 4294901760, %v364_v4 }
 0x28b   :  { %4554 = vmatpush.msra.mxu1 %v4553_v45  ;;  %4695 = vmatpush.msra.mxu3 %v15245_v5  ;;  %v15383_v45 = vand.u32 4294901760, %v124_v59 }
 0x28c   :  { %4507 = vmatpush.msra.mxu0 %v15291_v19  ;;  %4652 = vmatpush.msra.mxu2 %v15300_v58  ;;  %21434 = vst [vmem:[#allocation23_spill] sm:$0xff] %v15399_v14 }
 0x28d   :  { %4560 = vmatpush.msra.mxu1 %v4559_v9  ;;  %4697 = vmatpush.msra.mxu3 %v15256_v52  ;;  %21433 = vst [vmem:[#allocation22_spill] sm:$0xff] %v15383_v45  ;;  %v4583_v9 = vand.u32 4294901760, %v4582_v25  ;;  %v4589_v25 = vand.u32 4294901760, %v4588_v55  ;;  %v15412_v41 = vsub.f32 %v124_v59, %v15383_v45  ;;  %v20975_v59 = vand.u32 4294901760, %v15397_v46 }
 0x28e   :  { %4509 = vmatpush.msra.mxu0 %v15304_v40  ;;  %4655 = vmatpush.msra.mxu2 %v15313_v17 }
 0x28f   :  { %4566 = vmatpush.msra.mxu1 %v4565_v1  ;;  %4699 = vmatpush.msra.mxu3 %v15270_v54  ;;  %v4594_v1 = vsub.f32 %v15349_v32, %v20963_v27  ;;  %v4600_v27 = vsub.f32 %v15361_v39, %v20967_v30  ;;  %v15426_v30 = vsub.f32 %v364_v4, %v15399_v14  ;;  %v20978_v4 = vand.u32 4294901760, %v15412_v41 }
 0x290   :  { %4511 = vmatpush.msra.mxu0 %v15324_v0  ;;  %4658 = vmatpush.msra.mxu2 %v15318_v13 }
 0x291   :  { %4572 = vmatpush.msra.mxu1 %v4571_v8  ;;  %4701 = vmatpush.msra.mxu3 %v15283_v51  ;;  %v15404_v8 = vsub.f32 %v372_v49, %v15380_v57  ;;  %v15418_v49 = vand.u32 4294901760, %v348_v11  ;;  %v4595_v55 = vand.u32 4294901760, %v4594_v1  ;;  %v4601_v1 = vand.u32 4294901760, %v4600_v27 }
 0x292   :  { %4513 = vmatpush.msra.mxu0 %v15336_v10  ;;  %4661 = vmatpush.msra.mxu2 %v15330_v34  ;;  %v4624_v63 = vsub.f32 %v15412_v41, %v20978_v4 }
 0x293   :  { %4578 = vmatpush.msra.mxu1 %v4577_v47  ;;  %4703 = vmatpush.msra.mxu3 %v15291_v19  ;;  %v4606_v47 = vsub.f32 %v15373_v3, %v20970_v6  ;;  %v20977_v35 = vand.u32 4294901760, %v15404_v8  ;;  %v4612_v6 = vsub.f32 %v15387_v43, %v20973_v50  ;;  %v15444_v38 = vsub.f32 %v348_v11, %v15418_v49 }
 0x294   :  { %4515 = vmatpush.msra.mxu0 %v15346_v22  ;;  %4664 = vmatpush.msra.mxu2 %v15349_v32  ;;  %v4618_v50 = vsub.f32 %v15397_v46, %v20975_v59 }
 0x295   :  { %4584 = vmatpush.msra.mxu1 %v4583_v9  ;;  %4705 = vmatpush.msra.mxu3 %v15304_v40  ;;  %v332_v9 = vld [vmem:[#allocation2 + $0x6b0] sm:$0xff]  ;;  %v4607_v27 = vand.u32 4294901760, %v4606_v47  ;;  %v4875_v11 = vsub.f32 %v15404_v8, %v20977_v35  ;;  %v4613_v59 = vand.u32 4294901760, %v4612_v6 }
 0x296   :  { %4517 = vmatpush.msra.mxu0 %v15358_v29  ;;  %4667 = vmatpush.msra.mxu2 %v15361_v39  ;;  %v15451_v53 = vand.u32 4294901760, %v332_v9  ;;  %v316_v47 = vld [vmem:[#allocation2 + $0x630] sm:$0xff]  ;;  %v4619_v6 = vand.u32 4294901760, %v4618_v50  ;;  %v4625_v50 = vand.u32 4294901760, %v4624_v63 }
 0x297   :  { %4590 = vmatpush.msra.mxu1 %v4589_v25  ;;  %4707 = vmatpush.msra.mxu3 %v15324_v0  ;;  %v324_v25 = vld [vmem:[#allocation2 + $0x670] sm:$0xff]  ;;  %v15479_v21 = vand.u32 4294901760, %v316_v47  ;;  %v4876_v48 = vand.u32 4294901760, %v4875_v11  ;;  %v21440_v11 = vand.u32 4294901760, %v15444_v38 }
 0x298   :  { %4519 = vmatpush.msra.mxu0 %v15369_v42  ;;  %4670 = vmatpush.msra.mxu2 %v15373_v3  ;;  %v15466_v20 = vand.u32 4294901760, %v324_v25  ;;  %v308_v35 = vld [vmem:[#allocation2 + $0x5f0] sm:$0xff]  ;;  %v15477_v7 = vsub.f32 %v332_v9, %v15451_v53 }
 0x299   :  { %4596 = vmatpush.msra.mxu1 %v4595_v55  ;;  %4709 = vmatpush.msra.mxu3 %v15336_v10  ;;  %v15459_v55 = vsub.f32 %v340_v31, %v15431_v60  ;;  %v300_v31 = vld [vmem:[#allocation2 + $0x5b0] sm:$0xff]  ;;  %v15492_v28 = vand.u32 4294901760, %v308_v35 }
 0x29a   :  { %4521 = vmatpush.msra.mxu0 %v15383_v45  ;;  %4673 = vmatpush.msra.mxu2 %v15387_v43  ;;  %v15490_v23 = vsub.f32 %v324_v25, %v15466_v20  ;;  %v15503_v25 = vsub.f32 %v316_v47, %v15479_v21 }
 0x29b   :  { %4602 = vmatpush.msra.mxu1 %v4601_v1  ;;  %4711 = vmatpush.msra.mxu3 %v15346_v22  ;;  %v21436_v1 = vand.u32 4294901760, %v15426_v30  ;;  %v15515_v47 = vsub.f32 %v308_v35, %v15492_v28 }
 0x29c   :  { %4728 = vmatpush.msrb.mxu0 %v21435_v24  ;;  %4676 = vmatpush.msra.mxu2 %v15397_v46  ;;  %v21437_v24 = vand.u32 4294901760, %v15238_v12  ;;  %v21439_v12 = vand.u32 4294901760, %v15249_v37  ;;  %v21441_v37 = vand.u32 4294901760, %v15260_v26  ;;  %v21443_v26 = vand.u32 4294901760, %v15274_v18 }
 0x29d   :  { %4608 = vmatpush.msra.mxu1 %v4607_v27  ;;  %4713 = vmatpush.msra.mxu3 %v15358_v29  ;;  %v4881_v4 = vsub.f32 %v15426_v30, %v21436_v1  ;;  %v21438_v1 = vand.u32 4294901760, %v15439_v2  ;;  %v15505_v27 = vand.u32 4294901760, %v300_v31  ;;  %v21445_v18 = vand.u32 4294901760, %v15287_v56 }
 0x29e   :  { %4732 = vmatpush.msrb.mxu0 %v21437_v24  ;;  %4679 = vmatpush.msra.mxu2 %v15412_v41  ;;  %v292_v24 = vld [vmem:[#allocation2 + $0x570] sm:$0xff]  ;;  %v21446_v56 = vand.u32 4294901760, %v15300_v58  ;;  %v21448_v58 = vand.u32 4294901760, %v15313_v17  ;;  %v21449_v17 = vand.u32 4294901760, %v15318_v13 }
 0x29f   :  { %4614 = vmatpush.msra.mxu1 %v4613_v59  ;;  %4715 = vmatpush.msra.mxu3 %v15369_v42  ;;  %v4887_v9 = vsub.f32 %v15439_v2, %v21438_v1  ;;  %v4893_v59 = vsub.f32 %v15444_v38, %v21440_v11  ;;  %v4882_v63 = vand.u32 4294901760, %v4881_v4  ;;  %v20983_v1 = vand.u32 4294901760, %v15490_v23 }
 0x2a0   :  { %4736 = vmatpush.msrb.mxu0 %v21439_v12  ;;  %4832 = vmatpush.msrb.mxu2 %v15380_v57  ;;  %v21442_v12 = vand.u32 4294901760, %v15459_v55  ;;  %v15528_v35 = vsub.f32 %v300_v31, %v15505_v27 }
 0x2a1   :  { %4620 = vmatpush.msra.mxu1 %v4619_v6  ;;  %4717 = vmatpush.msra.mxu3 %v15383_v45  ;;  %v284_v6 = vld [vmem:[#allocation2 + $0x530] sm:$0xff]  ;;  %v4888_v4 = vand.u32 4294901760, %v4887_v9  ;;  %v15517_v45 = vand.u32 4294901760, %v292_v24  ;;  %v20984_v9 = vand.u32 4294901760, %v15503_v25 }
 0x2a2   :  { %4740 = vmatpush.msrb.mxu0 %v21441_v37  ;;  %4834 = vmatpush.msrb.mxu2 %v15399_v14  ;;  %v4899_v11 = vsub.f32 %v15459_v55, %v21442_v12  ;;  %v4894_v37 = vand.u32 4294901760, %v4893_v59  ;;  %v276_v14 = vld [vmem:[#allocation2 + $0x4f0] sm:$0xff]  ;;  %v15530_v12 = vand.u32 4294901760, %v284_v6  ;;  %v4911_v59 = vsub.f32 %v15490_v23, %v20983_v1 }
 0x2a3   :  { %4877 = vmatpush.msrb.mxu3 %v4876_v48  ;;  %4626 = vmatpush.msra.mxu1 %v4625_v50  ;;  %v21444_v48 = vand.u32 4294901760, %v15477_v7  ;;  %v15541_v31 = vsub.f32 %v292_v24, %v15517_v45  ;;  %v4928_v24 = vand.u32 4294901760, %v15528_v35  ;;  %v260_v1 = vld [vmem:[#allocation2 + $0x470] sm:$0xff] }
 0x2a4   :  { %4744 = vmatpush.msrb.mxu0 %v21443_v26  ;;  %4836 = vmatpush.msrb.mxu2 %v15414_v61  ;;  %v15543_v26 = vand.u32 4294901760, %v276_v14 }
 0x2a5   :  { %4795 = vmatpush.msrb.mxu1 %v15211_v36  ;;  %4883 = vmatpush.msrb.mxu3 %v4882_v63  ;;  %v4905_v50 = vsub.f32 %v15477_v7, %v21444_v48  ;;  %v4900_v36 = vand.u32 4294901760, %v4899_v11  ;;  %v20985_v63 = vand.u32 4294901760, %v15515_v47  ;;  %v268_v48 = vld [vmem:[#allocation2 + $0x4b0] sm:$0xff] }
 0x2a6   :  { %4748 = vmatpush.msrb.mxu0 %v21445_v18  ;;  %4838 = vmatpush.msrb.mxu2 %v15418_v49  ;;  %v15556_v18 = vsub.f32 %v284_v6, %v15530_v12  ;;  %v15569_v6 = vsub.f32 %v276_v14, %v15543_v26 }
 0x2a7   :  { %4797 = vmatpush.msrb.mxu1 %v15218_v44  ;;  %4889 = vmatpush.msrb.mxu3 %v4888_v4  ;;  %v15548_v44 = vpop.f32.mrf.mxu0  ;;  %v4906_v11 = vand.u32 4294901760, %v4905_v50  ;;  %v4917_v4 = vsub.f32 %v15503_v25, %v20984_v9  ;;  %v4923_v50 = vsub.f32 %v15515_v47, %v20985_v63  ;;  %v252_v9 = vld [vmem:[#allocation2 + $0x430] sm:$0xff]  ;;  %v21451_v63 = vand.u32 4294901760, %v15330_v34 }
 0x2a8   :  { %4752 = vmatpush.msrb.mxu0 %v21446_v56  ;;  %21447 = vst [vmem:[#allocation24_spill] sm:$0xff] %v15548_v44  ;;  %4840 = vmatpush.msrb.mxu2 %v15431_v60  ;;  %v4934_v56 = vand.u32 4294901760, %v15541_v31  ;;  %v4940_v14 = vand.u32 4294901760, %v15556_v18  ;;  %v15589_v13 = vand.u32 4294901760, %v252_v9  ;;  %v21452_v34 = vand.u32 4294901760, %v15349_v32 }
 0x2a9   :  { %4799 = vmatpush.msrb.mxu1 %v15225_v62  ;;  %4895 = vmatpush.msrb.mxu3 %v4894_v37  ;;  %v15561_v62 = vand.u32 4294901760, %v268_v48  ;;  %v4912_v37 = vand.u32 4294901760, %v4911_v59  ;;  %v4929_v59 = vsub.f32 %v15528_v35, %v4928_v24 }
 0x2aa   :  { %4756 = vmatpush.msrb.mxu0 %v21448_v58  ;;  %4842 = vmatpush.msrb.mxu2 %v15451_v53  ;;  %v15576_v58 = vpop.f32.mrf.mxu1  ;;  %v15613_v32 = vsub.f32 %v252_v9, %v15589_v13 }
 0x2ab   :  { %4801 = vmatpush.msrb.mxu1 %v15235_v16  ;;  %4901 = vmatpush.msrb.mxu3 %v4900_v36  ;;  %v15574_v16 = vand.u32 4294901760, %v260_v1  ;;  %21450 = vst [vmem:[#allocation25_spill] sm:$0xff] %v15576_v58  ;;  %v4918_v36 = vand.u32 4294901760, %v4917_v4  ;;  %v4935_v4 = vsub.f32 %v15541_v31, %v4934_v56 }
 0x2ac   :  { %4760 = vmatpush.msrb.mxu0 %v21449_v17  ;;  %4844 = vmatpush.msrb.mxu2 %v15466_v20  ;;  %v4946_v17 = vand.u32 4294901760, %v15569_v6 }
 0x2ad   :  { %4803 = vmatpush.msrb.mxu1 %v15245_v5  ;;  %4907 = vmatpush.msrb.mxu3 %v4906_v11  ;;  %v15587_v5 = vsub.f32 %v268_v48, %v15561_v62  ;;  %v4924_v11 = vand.u32 4294901760, %v4923_v50  ;;  %v4930_v48 = vand.u32 4294901760, %v4929_v59  ;;  %v21454_v50 = vand.u32 4294901760, %v15361_v39 }
 0x2ae   :  { %4764 = vmatpush.msrb.mxu0 %v21451_v63  ;;  %4846 = vmatpush.msrb.mxu2 %v15479_v21  ;;  %v15602_v63 = vpop.f32.mrf.mxu2  ;;  %v4947_v59 = vsub.f32 %v15569_v6, %v4946_v17  ;;  %v21456_v39 = vand.u32 4294901760, %v15373_v3 }
 0x2af   :  { %4805 = vmatpush.msrb.mxu1 %v15256_v52  ;;  %4913 = vmatpush.msrb.mxu3 %v4912_v37  ;;  %v15600_v52 = vsub.f32 %v260_v1, %v15574_v16  ;;  %21453 = vst [vmem:[#allocation26_spill] sm:$0xff] %v15602_v63  ;;  %v4941_v37 = vsub.f32 %v15556_v18, %v4940_v14  ;;  %v15615_v1 = vpop.f32.mrf.mxu0 }
 0x2b0   :  { %4768 = vmatpush.msrb.mxu0 %v21452_v34  ;;  %4848 = vmatpush.msrb.mxu2 %v15492_v28  ;;  %21455 = vst [vmem:[#allocation27_spill] sm:$0xff] %v15615_v1  ;;  %v15625_v34 = vpop.f32.mrf.mxu3 }
 0x2b1   :  { %4807 = vmatpush.msrb.mxu1 %v15270_v54  ;;  %4919 = vmatpush.msrb.mxu3 %v4918_v36  ;;  %v4952_v54 = vand.u32 4294901760, %v15587_v5  ;;  %v4936_v36 = vand.u32 4294901760, %v4935_v4  ;;  %21457 = vst [vmem:[#allocation28_spill] sm:$0xff] %v15625_v34  ;;  %v4942_v9 = vand.u32 4294901760, %v4941_v37  ;;  %v4964_v4 = vand.u32 4294901760, %v15613_v32  ;;  %v341_v34 = vld [vmem:[#allocation2 + $0x6f8] sm:$0xff] }
 0x2b2   :  { %4772 = vmatpush.msrb.mxu0 %v21454_v50  ;;  %4850 = vmatpush.msrb.mxu2 %v15505_v27  ;;  %v4948_v50 = vand.u32 4294901760, %v4947_v59 }
 0x2b3   :  { %4809 = vmatpush.msrb.mxu1 %v15283_v51  ;;  %4925 = vmatpush.msrb.mxu3 %v4924_v11  ;;  %v4958_v51 = vand.u32 4294901760, %v15600_v52  ;;  %v21458_v11 = vand.u32 4294901760, %v15387_v43  ;;  %v4953_v3 = vsub.f32 %v15587_v5, %v4952_v54  ;;  %v21461_v43 = vand.u32 4294901760, %v15412_v41 }
 0x2b4   :  { %4776 = vmatpush.msrb.mxu0 %v21456_v39  ;;  %4852 = vmatpush.msrb.mxu2 %v15517_v45 }
 0x2b5   :  { %4811 = vmatpush.msrb.mxu1 %v15291_v19  ;;  %4931 = vmatpush.msrb.mxu3 %v4930_v48  ;;  %v15635_v19 = vpop.f32.mrf.mxu1  ;;  %v21460_v48 = vand.u32 4294901760, %v15397_v46  ;;  %v4954_v37 = vand.u32 4294901760, %v4953_v3  ;;  %v4965_v46 = vsub.f32 %v15613_v32, %v4964_v4  ;;  %v21470_v3 = vand.u32 4294901760, %v15426_v30 }
 0x2b6   :  { %4780 = vmatpush.msrb.mxu0 %v21458_v11  ;;  %21459 = vst [vmem:[#allocation29_spill] sm:$0xff] %v15635_v19  ;;  %4854 = vmatpush.msrb.mxu2 %v15530_v12  ;;  %v21469_v11 = vld [vmem:[#allocation18_spill] sm:$0xff] }
 0x2b7   :  { %4813 = vmatpush.msrb.mxu1 %v15304_v40  ;;  %4937 = vmatpush.msrb.mxu3 %v4936_v36  ;;  %v4959_v40 = vsub.f32 %v15600_v52, %v4958_v51  ;;  %v15651_v36 = vpop.f32.mrf.mxu2 }
 0x2b8   :  { %4784 = vmatpush.msrb.mxu0 %v21460_v48  ;;  %4856 = vmatpush.msrb.mxu2 %v15543_v26  ;;  %21462 = vst [vmem:[#allocation30_spill] sm:$0xff] %v15651_v36  ;;  %v15661_v59 = vpop.f32.mrf.mxu3 }
 0x2b9   :  { %4815 = vmatpush.msrb.mxu1 %v15324_v0  ;;  %4943 = vmatpush.msrb.mxu3 %v4942_v9  ;;  %v15653_v0 = vpop.f32.mrf.mxu0  ;;  %v4960_v41 = vand.u32 4294901760, %v4959_v40  ;;  %21464 = vst [vmem:[#allocation32_spill] sm:$0xff] %v15661_v59 }
 0x2ba   :  { %4788 = vmatpush.msrb.mxu0 %v21461_v43  ;;  %21463 = vst [vmem:[#allocation31_spill] sm:$0xff] %v15653_v0  ;;  %4858 = vmatpush.msrb.mxu2 %v15561_v62  ;;  %v21476_v43 = vld [vmem:[#allocation23_spill] sm:$0xff] }
 0x2bb   :  { %4817 = vmatpush.msrb.mxu1 %v15336_v10  ;;  %4949 = vmatpush.msrb.mxu3 %v4948_v50  ;;  %v4966_v10 = vand.u32 4294901760, %v4965_v46  ;;  %v21471_v50 = vld [vmem:[#allocation22_spill] sm:$0xff]  ;;  %v21482_v46 = vld [vmem:[#allocation19_spill] sm:$0xff] }
 0x2bc   :  { %4527 = vmatmul.f32.vlgmr.msra.gmra.mxu0 %v12663_v33  ;;  %4860 = vmatpush.msrb.mxu2 %v15574_v16  ;;  %v125_v0 = vld [vmem:[#allocation2 + $0x38] sm:$0xff] }
 0x2bd   :  { %4819 = vmatpush.msrb.mxu1 %v15346_v22  ;;  %4975 = vmatpush.msra.mxu0 %v15404_v8  ;;  %v15663_v39 = vpop.f32.mrf.mxu1  ;;  %v21466_v22 = vand.u32 4294901760, %v15404_v8  ;;  %v21472_v8 = vld [vmem:[#allocation17_spill] sm:$0xff] }
 0x2be   :  { %4955 = vmatpush.msrb.mxu3 %v4954_v37  ;;  %21465 = vst [vmem:[#allocation33_spill] sm:$0xff] %v15663_v39  ;;  %4862 = vmatpush.msrb.mxu2 %v15589_v13  ;;  %v21478_v37 = vld [vmem:[#allocation16_spill] sm:$0xff]  ;;  %v373_v39 = vld [vmem:[#allocation2 + $0x7f8] sm:$0xff] }
 0x2bf   :  { %4821 = vmatpush.msrb.mxu1 %v15358_v29  ;;  %4978 = vmatpush.msra.mxu0 %v15426_v30  ;;  %v15672_v29 = vpop.f32.mrf.mxu2  ;;  %v21477_v30 = vand.u32 4294901760, %v15444_v38 }
 0x2c0   :  { %4961 = vmatpush.msrb.mxu3 %v4960_v41  ;;  %4682 = vmatmul.f32.vlgmr.msra.gmra.mxu2 %v12601_v15  ;;  %21467 = vst [vmem:[#allocation34_spill] sm:$0xff] %v15672_v29  ;;  %v15686_v48 = vpop.f32.mrf.mxu3  ;;  %v21483_v41 = vand.u32 4294901760, %v15477_v7 }
 0x2c1   :  { %4981 = vmatpush.msra.mxu0 %v15439_v2  ;;  %5069 = vmatpush.msra.mxu2 %v21466_v22  ;;  %v15674_v9 = vpop.f32.mrf.mxu0  ;;  %21474 = vst [vmem:[#allocation22_spill] sm:$0xff] %v15686_v48  ;;  %v21490_v22 = vand.u32 4294901760, %v15515_v47  ;;  %v133_v48 = vld [vmem:[#allocation2 + $0x78] sm:$0xff] }
 0x2c2   :  { %4823 = vmatpush.msrb.mxu1 %v15369_v42  ;;  %4967 = vmatpush.msrb.mxu3 %v4966_v10  ;;  %21468 = vst [vmem:[#allocation35_spill] sm:$0xff] %v15674_v9  ;;  %v21473_v42 = vand.u32 4294901760, %v15439_v2 }
 0x2c3   :  { %4721 = vmatmul.f32.vlgmr.msra.gmra.mxu3 %v21469_v11  ;;  %4984 = vmatpush.msra.mxu0 %v15444_v38 }
 0x2c4   :  { %5073 = vmatpush.msra.mxu2 %v21470_v3  ;;  %5136 = vmatpush.msra.mxu3 %v15380_v57 }
 0x2c5   :  { %4825 = vmatpush.msrb.mxu1 %v21471_v50  ;;  %4987 = vmatpush.msra.mxu0 %v15459_v55  ;;  %v15688_v40 = vpop.f32.mrf.mxu1 }
 0x2c6   :  { %4628 = vmatmul.f32.vlgmr.msra.gmra.mxu1 %v21472_v8  ;;  %5077 = vmatpush.msra.mxu2 %v21473_v42  ;;  %21475 = vst [vmem:[#allocation36_spill] sm:$0xff] %v15688_v40  ;;  %v21495_v42 = vld [vmem:[#allocation20_spill] sm:$0xff] }
 0x2c7   :  { %5028 = vmatpush.msra.mxu1 %v15380_v57  ;;  %5138 = vmatpush.msra.mxu3 %v21476_v43  ;;  %v15699_v2 = vpop.f32.mrf.mxu2  ;;  %v21480_v57 = vand.u32 4294901760, %v15459_v55  ;;  %v21486_v55 = vand.u32 4294901760, %v15490_v23 }
 0x2c8   :  { %4990 = vmatpush.msra.mxu0 %v15477_v7  ;;  %5081 = vmatpush.msra.mxu2 %v21477_v30  ;;  %21479 = vst [vmem:[#allocation23_spill] sm:$0xff] %v15699_v2  ;;  %v15713_v10 = vpop.f32.mrf.mxu3  ;;  %v21487_v7 = vand.u32 4294901760, %v15503_v25 }
 0x2c9   :  { %5030 = vmatpush.msra.mxu1 %v21476_v43  ;;  %5140 = vmatpush.msra.mxu3 %v15414_v61  ;;  %v15706_v38 = vpop.f32.mrf.mxu0  ;;  %21484 = vst [vmem:[#allocation38_spill] sm:$0xff] %v15713_v10  ;;  %v197_v43 = vld [vmem:[#allocation2 + $0x278] sm:$0xff] }
 0x2ca   :  { %4868 = vmatmul.f32.vlgmr.msrb.gmra.mxu2 %v21478_v37  ;;  %4993 = vmatpush.msra.mxu0 %v15490_v23  ;;  %21481 = vst [vmem:[#allocation37_spill] sm:$0xff] %v15706_v38  ;;  %v141_v10 = vld [vmem:[#allocation2 + $0xb8] sm:$0xff] }
 0x2cb   :  { %5032 = vmatpush.msra.mxu1 %v15414_v61  ;;  %5085 = vmatpush.msra.mxu2 %v21480_v57  ;;  %v15914_v29 = vand.u32 4294901760, %v141_v10 }
 0x2cc   :  { %5142 = vmatpush.msra.mxu3 %v15418_v49  ;;  %4790 = vmatmul.f32.vlgmr.msrb.gmra.mxu0 %v21472_v8 }
 0x2cd   :  { %4969 = vmatmul.f32.vlgmr.msrb.gmra.mxu3 %v21482_v46  ;;  %4996 = vmatpush.msra.mxu0 %v15503_v25  ;;  %v15719_v61 = vpop.f32.mrf.mxu1  ;;  %v229_v25 = vld [vmem:[#allocation2 + $0x378] sm:$0xff]  ;;  %v15947_v59 = vsub.f32 %v141_v10, %v15914_v29 }
 0x2ce   :  { %5034 = vmatpush.msra.mxu1 %v15418_v49  ;;  %5089 = vmatpush.msra.mxu2 %v21483_v41  ;;  %21485 = vst [vmem:[#allocation39_spill] sm:$0xff] %v15719_v61  ;;  %v149_v61 = vld [vmem:[#allocation2 + $0xf8] sm:$0xff] }
 0x2cf   :  { %5144 = vmatpush.msra.mxu3 %v15431_v60  ;;  %4827 = vmatmul.f32.vlgmr.msrb.gmra.mxu1 %v21472_v8  ;;  %v15731_v49 = vpop.f32.mrf.mxu2 }
 0x2d0   :  { %4999 = vmatpush.msra.mxu0 %v15515_v47  ;;  %5036 = vmatpush.msra.mxu1 %v15431_v60  ;;  %v245_v60 = vld [vmem:[#allocation2 + $0x3f8] sm:$0xff]  ;;  %21488 = vst [vmem:[#allocation40_spill] sm:$0xff] %v15731_v49  ;;  %v15747_v47 = vpop.f32.mrf.mxu3  ;;  %v15902_v49 = vand.u32 4294901760, %v149_v61 }
 0x2d1   :  { %5093 = vmatpush.msra.mxu2 %v21486_v55  ;;  %5146 = vmatpush.msra.mxu3 %v15451_v53  ;;  %v15733_v23 = vpop.f32.mrf.mxu0  ;;  %21491 = vst [vmem:[#allocation42_spill] sm:$0xff] %v15747_v47 }
 0x2d2   :  { %5002 = vmatpush.msra.mxu0 %v15528_v35  ;;  %5038 = vmatpush.msra.mxu1 %v15451_v53  ;;  %21489 = vst [vmem:[#allocation41_spill] sm:$0xff] %v15733_v23  ;;  %v237_v53 = vld [vmem:[#allocation2 + $0x3b8] sm:$0xff]  ;;  %v15933_v36 = vsub.f32 %v149_v61, %v15902_v49 }
 0x2d3   :  { %5097 = vmatpush.msra.mxu2 %v21487_v7  ;;  %5148 = vmatpush.msra.mxu3 %v15466_v20  ;;  %v221_v35 = vld [vmem:[#allocation2 + $0x338] sm:$0xff] }
 0x2d4   :  { %5005 = vmatpush.msra.mxu0 %v15541_v31  ;;  %5040 = vmatpush.msra.mxu1 %v15466_v20  ;;  %v15743_v20 = vand.u32 4294901760, %v245_v60  ;;  %v213_v31 = vld [vmem:[#allocation2 + $0x2f8] sm:$0xff] }
 0x2d5   :  { %5101 = vmatpush.msra.mxu2 %v21490_v22  ;;  %5150 = vmatpush.msra.mxu3 %v15479_v21  ;;  %v15749_v3 = vpop.f32.mrf.mxu1  ;;  %v181_v7 = vld [vmem:[#allocation2 + $0x1f8] sm:$0xff] }
 0x2d6   :  { %5008 = vmatpush.msra.mxu0 %v15556_v18  ;;  %5042 = vmatpush.msra.mxu1 %v15479_v21  ;;  %21492 = vst [vmem:[#allocation43_spill] sm:$0xff] %v15749_v3  ;;  %v15754_v21 = vand.u32 4294901760, %v237_v53  ;;  %v21502_v3 = vld [vmem:[#allocation21_spill] sm:$0xff] }
 0x2d7   :  { %5105 = vmatpush.msra.mxu2 %v4928_v24  ;;  %5152 = vmatpush.msra.mxu3 %v15492_v28  ;;  %v15764_v24 = vsub.f32 %v245_v60, %v15743_v20  ;;  %v165_v60 = vld [vmem:[#allocation2 + $0x178] sm:$0xff] }
 0x2d8   :  { %5011 = vmatpush.msra.mxu0 %v15569_v6  ;;  %5044 = vmatpush.msra.mxu1 %v15492_v28  ;;  %v15761_v28 = vand.u32 4294901760, %v229_v25  ;;  %v15778_v18 = vsub.f32 %v237_v53, %v15754_v21  ;;  %v15793_v30 = vpop.f32.mrf.mxu3  ;;  %v173_v53 = vld [vmem:[#allocation2 + $0x1b8] sm:$0xff] }
 0x2d9   :  { %5109 = vmatpush.msra.mxu2 %v4934_v56  ;;  %5154 = vmatpush.msra.mxu3 %v15505_v27  ;;  %v15768_v56 = vpop.f32.mrf.mxu2  ;;  %v15770_v50 = vpop.f32.mrf.mxu0  ;;  %v20987_v6 = vand.u32 4294901760, %v15764_v24  ;;  %21496 = vst [vmem:[#allocation46_spill] sm:$0xff] %v15793_v30 }
 0x2da   :  { %5014 = vmatpush.msra.mxu0 %v15587_v5  ;;  %5046 = vmatpush.msra.mxu1 %v15505_v27  ;;  %21493 = vst [vmem:[#allocation44_spill] sm:$0xff] %v15768_v56  ;;  %v15775_v27 = vand.u32 4294901760, %v221_v35 }
 0x2db   :  { %5113 = vmatpush.msra.mxu2 %v4940_v14  ;;  %5156 = vmatpush.msra.mxu3 %v15517_v45  ;;  %21494 = vst [vmem:[#allocation45_spill] sm:$0xff] %v15770_v50  ;;  %v15785_v14 = vand.u32 4294901760, %v213_v31 }
 0x2dc   :  { %5017 = vmatpush.msra.mxu0 %v15600_v52  ;;  %5048 = vmatpush.msra.mxu1 %v15517_v45  ;;  %v205_v45 = vld [vmem:[#allocation2 + $0x2b8] sm:$0xff]  ;;  %v15804_v57 = vsub.f32 %v221_v35, %v15775_v27  ;;  %v5216_v52 = vsub.f32 %v15764_v24, %v20987_v6 }
 0x2dd   :  { %5117 = vmatpush.msra.mxu2 %v4946_v17  ;;  %5158 = vmatpush.msra.mxu3 %v15530_v12  ;;  %v15789_v17 = vsub.f32 %v229_v25, %v15761_v28  ;;  %v15800_v5 = vand.u32 4294901760, %v205_v45  ;;  %v15818_v55 = vsub.f32 %v213_v31, %v15785_v14  ;;  %v15837_v25 = vand.u32 4294901760, %v181_v7 }
 0x2de   :  { %5020 = vmatpush.msra.mxu0 %v15613_v32  ;;  %5050 = vmatpush.msra.mxu1 %v15530_v12  ;;  %v15795_v12 = vpop.f32.mrf.mxu1  ;;  %v5217_v31 = vand.u32 4294901760, %v5216_v52 }
 0x2df   :  { %5121 = vmatpush.msra.mxu2 %v4952_v54  ;;  %5160 = vmatpush.msra.mxu3 %v15543_v26  ;;  %21497 = vst [vmem:[#allocation47_spill] sm:$0xff] %v15795_v12  ;;  %v20986_v54 = vand.u32 4294901760, %v15778_v18  ;;  %v20988_v41 = vand.u32 4294901760, %v15789_v17  ;;  %v15833_v22 = vsub.f32 %v205_v45, %v15800_v5  ;;  %v15868_v23 = vsub.f32 %v181_v7, %v15837_v25 }
 0x2e0   :  { %5023 = vmatmul.f32.vlgmr.msra.gmra.mxu0 %v21495_v42  ;;  %5052 = vmatpush.msra.mxu1 %v15543_v26  ;;  %v189_v26 = vld [vmem:[#allocation2 + $0x238] sm:$0xff]  ;;  %v15854_v30 = vpop.f32.mrf.mxu3 }
 0x2e1   :  { %5173 = vmatpush.msrb.mxu0 %v15743_v20  ;;  %5125 = vmatpush.msra.mxu2 %v4958_v51  ;;  %v15814_v51 = vand.u32 4294901760, %v197_v43  ;;  %v5222_v32 = vsub.f32 %v15778_v18, %v20986_v54  ;;  %v15839_v35 = vpop.f32.mrf.mxu0  ;;  %v5228_v54 = vsub.f32 %v15789_v17, %v20988_v41  ;;  %21500 = vst [vmem:[#allocation50_spill] sm:$0xff] %v15854_v30  ;;  %v21501_v41 = vand.u32 4294901760, %v15804_v57 }
 0x2e2   :  { %5162 = vmatpush.msra.mxu3 %v15561_v62  ;;  %5054 = vmatpush.msra.mxu1 %v15561_v62  ;;  %v15822_v62 = vpop.f32.mrf.mxu2  ;;  %21499 = vst [vmem:[#allocation49_spill] sm:$0xff] %v15839_v35 }
 0x2e3   :  { %5175 = vmatpush.msrb.mxu0 %v15754_v21  ;;  %5129 = vmatpush.msra.mxu2 %v4964_v4  ;;  %21498 = vst [vmem:[#allocation48_spill] sm:$0xff] %v15822_v62  ;;  %v15829_v4 = vand.u32 4294901760, %v189_v26  ;;  %v15848_v6 = vsub.f32 %v197_v43, %v15814_v51  ;;  %v5223_v52 = vand.u32 4294901760, %v5222_v32  ;;  %v5234_v45 = vsub.f32 %v15804_v57, %v21501_v41 }
 0x2e4   :  { %5164 = vmatpush.msra.mxu3 %v15574_v16  ;;  %5131 = vmatmul.f32.vlgmr.msra.gmra.mxu2 %v21482_v46  ;;  %v5229_v32 = vand.u32 4294901760, %v5228_v54  ;;  %v21504_v41 = vand.u32 4294901760, %v15818_v55 }
 0x2e5   :  { %5177 = vmatpush.msrb.mxu0 %v15761_v28  ;;  %5316 = vmatpush.msrb.mxu2 %v15764_v24  ;;  %v15863_v56 = vsub.f32 %v189_v26, %v15829_v4  ;;  %v15876_v26 = vand.u32 4294901760, %v165_v60  ;;  %v5235_v54 = vand.u32 4294901760, %v5234_v45 }
 0x2e6   :  { %5056 = vmatpush.msra.mxu1 %v15574_v16  ;;  %5166 = vmatpush.msra.mxu3 %v15589_v13  ;;  %v15852_v16 = vand.u32 4294901760, %v173_v53  ;;  %v15870_v47 = vpop.f32.mrf.mxu1  ;;  %v5240_v43 = vsub.f32 %v15818_v55, %v21504_v41 }
 0x2e7   :  { %5168 = vmatmul.f32.vlgmr.msra.gmra.mxu3 %v21482_v46  ;;  %5179 = vmatpush.msrb.mxu0 %v15775_v27  ;;  %21503 = vst [vmem:[#allocation51_spill] sm:$0xff] %v15870_v47  ;;  %v15905_v9 = vsub.f32 %v165_v60, %v15876_v26 }
 0x2e8   :  { %5319 = vmatpush.msrb.mxu2 %v15778_v18  ;;  %5369 = vmatpush.msrb.mxu3 %v15743_v20  ;;  %v15882_v7 = vsub.f32 %v173_v53, %v15852_v16  ;;  %v5241_v45 = vand.u32 4294901760, %v5240_v43  ;;  %v21510_v53 = vand.u32 4294901760, %v15868_v23 }
 0x2e9   :  { %5058 = vmatpush.msra.mxu1 %v15589_v13  ;;  %5181 = vmatpush.msrb.mxu0 %v15785_v14  ;;  %v157_v13 = vld [vmem:[#allocation2 + $0x138] sm:$0xff] }
 0x2ea   :  { %5062 = vmatmul.f32.vlgmr.msra.gmra.mxu1 %v21502_v3  ;;  %5322 = vmatpush.msrb.mxu2 %v15789_v17  ;;  %v15888_v38 = vand.u32 4294901760, %v157_v13  ;;  %v15894_v2 = vpop.f32.mrf.mxu2 }
 0x2eb   :  { %5218 = vmatpush.msrb.mxu1 %v5217_v31  ;;  %5371 = vmatpush.msrb.mxu3 %v15754_v21  ;;  %v21505_v31 = vand.u32 4294901760, %v15833_v22  ;;  %21506 = vst [vmem:[#allocation52_spill] sm:$0xff] %v15894_v2  ;;  %v15943_v2 = vand.u32 4294901760, %v125_v0 }
 0x2ec   :  { %5183 = vmatpush.msrb.mxu0 %v15800_v5  ;;  %5325 = vmatpush.msrb.mxu2 %v15804_v57  ;;  %v15917_v60 = vsub.f32 %v157_v13, %v15888_v38  ;;  %v15929_v13 = vand.u32 4294901760, %v133_v48 }
 0x2ed   :  { %5224 = vmatpush.msrb.mxu1 %v5223_v52  ;;  %5373 = vmatpush.msrb.mxu3 %v15761_v28  ;;  %v5246_v41 = vsub.f32 %v15833_v22, %v21505_v31  ;;  %v15896_v52 = vpop.f32.mrf.mxu0  ;;  %v21508_v31 = vand.u32 4294901760, %v15848_v6  ;;  %21515 = vst [vmem:[#allocation57_spill] sm:$0xff] %v15943_v2 }
 0x2ee   :  { %5185 = vmatpush.msrb.mxu0 %v15814_v51  ;;  %5328 = vmatpush.msrb.mxu2 %v15818_v55  ;;  %21507 = vst [vmem:[#allocation53_spill] sm:$0xff] %v15896_v52  ;;  %v15926_v52 = vpop.f32.mrf.mxu1  ;;  %v15961_v61 = vsub.f32 %v133_v48, %v15929_v13 }
 0x2ef   :  { %5230 = vmatpush.msrb.mxu1 %v5229_v32  ;;  %5375 = vmatpush.msrb.mxu3 %v15775_v27  ;;  %v5252_v40 = vsub.f32 %v15848_v6, %v21508_v31  ;;  %v5247_v43 = vand.u32 4294901760, %v5246_v41  ;;  %v21509_v32 = vand.u32 4294901760, %v15863_v56  ;;  %v15924_v41 = vpop.f32.mrf.mxu3  ;;  %21512 = vst [vmem:[#allocation55_spill] sm:$0xff] %v15926_v52  ;;  %v15940_v52 = vand.u32 4294901760, %v373_v39 }
 0x2f0   :  { %5187 = vmatpush.msrb.mxu0 %v15829_v4  ;;  %5331 = vmatpush.msrb.mxu2 %v15833_v22  ;;  %21511 = vst [vmem:[#allocation54_spill] sm:$0xff] %v15924_v41 }
 0x2f1   :  { %5236 = vmatpush.msrb.mxu1 %v5235_v54  ;;  %5377 = vmatpush.msrb.mxu3 %v15785_v14  ;;  %v5258_v31 = vsub.f32 %v15863_v56, %v21509_v32  ;;  %v5264_v54 = vsub.f32 %v15868_v23, %v21510_v53  ;;  %v5253_v32 = vand.u32 4294901760, %v5252_v40  ;;  %v21513_v53 = vand.u32 4294901760, %v15882_v7  ;;  %21514 = vst [vmem:[#allocation56_spill] sm:$0xff] %v15940_v52 }
 0x2f2   :  { %5189 = vmatpush.msrb.mxu0 %v15837_v25  ;;  %5334 = vmatpush.msrb.mxu2 %v15848_v6  ;;  %v15951_v47 = vpop.f32.mrf.mxu2 }
 0x2f3   :  { %5242 = vmatpush.msrb.mxu1 %v5241_v45  ;;  %5379 = vmatpush.msrb.mxu3 %v15800_v5  ;;  %v5270_v41 = vsub.f32 %v15882_v7, %v21513_v53  ;;  %v365_v45 = vld [vmem:[#allocation2 + $0x7b8] sm:$0xff]  ;;  %v5259_v40 = vand.u32 4294901760, %v5258_v31  ;;  %v5265_v19 = vand.u32 4294901760, %v5264_v54  ;;  %21516 = vst [vmem:[#allocation58_spill] sm:$0xff] %v15951_v47  ;;  %v15976_v47 = vsub.f32 %v125_v0, %v15943_v2 }
 0x2f4   :  { %5191 = vmatpush.msrb.mxu0 %v15852_v16  ;;  %5337 = vmatpush.msrb.mxu2 %v15863_v56  ;;  %v357_v53 = vld [vmem:[#allocation2 + $0x778] sm:$0xff]  ;;  %v15963_v35 = vand.u32 4294901760, %v365_v45  ;;  %v21523_v0 = vand.u32 4294901760, %v15933_v36 }
 0x2f5   :  { %5248 = vmatpush.msrb.mxu1 %v5247_v43  ;;  %5381 = vmatpush.msrb.mxu3 %v15814_v51  ;;  %v15953_v1 = vpop.f32.mrf.mxu0  ;;  %v21518_v43 = vand.u32 4294901760, %v15905_v9  ;;  %v349_v54 = vld [vmem:[#allocation2 + $0x738] sm:$0xff]  ;;  %v15978_v3 = vand.u32 4294901760, %v357_v53 }
 0x2f6   :  { %5193 = vmatpush.msrb.mxu0 %v15876_v26  ;;  %5340 = vmatpush.msrb.mxu2 %v15868_v23  ;;  %21517 = vst [vmem:[#allocation59_spill] sm:$0xff] %v15953_v1  ;;  %v5271_v1 = vand.u32 4294901760, %v5270_v41  ;;  %v5288_v48 = vsub.f32 %v15933_v36, %v21523_v0  ;;  %v15994_v63 = vsub.f32 %v365_v45, %v15963_v35  ;;  %v21524_v0 = vand.u32 4294901760, %v15947_v59 }
 0x2f7   :  { %5254 = vmatpush.msrb.mxu1 %v5253_v32  ;;  %5383 = vmatpush.msrb.mxu3 %v15829_v4  ;;  %v5276_v31 = vsub.f32 %v15905_v9, %v21518_v43  ;;  %21519 = vst [vmem:[#allocation60_spill] sm:$0xff] %v15963_v35  ;;  %v15968_v32 = vsub.f32 %v373_v39, %v15940_v52  ;;  %v21520_v43 = vand.u32 4294901760, %v15917_v60  ;;  %v15982_v39 = vand.u32 4294901760, %v349_v54  ;;  %v15984_v41 = vpop.f32.mrf.mxu3 }
 0x2f8   :  { %5195 = vmatpush.msrb.mxu0 %v15888_v38  ;;  %5343 = vmatpush.msrb.mxu2 %v15882_v7  ;;  %21521 = vst [vmem:[#allocation61_spill] sm:$0xff] %v15984_v41  ;;  %v5294_v30 = vsub.f32 %v15947_v59, %v21524_v0  ;;  %v16007_v62 = vsub.f32 %v357_v53, %v15978_v3  ;;  %v21526_v0 = vand.u32 4294901760, %v15961_v61  ;;  %v21529_v53 = vand.u32 4294901760, %v15976_v47 }
 0x2f9   :  { %5260 = vmatpush.msrb.mxu1 %v5259_v40  ;;  %5385 = vmatpush.msrb.mxu3 %v15837_v25  ;;  %v5282_v10 = vsub.f32 %v15917_v60, %v21520_v43  ;;  %v15986_v40 = vpop.f32.mrf.mxu1  ;;  %v5277_v43 = vand.u32 4294901760, %v5276_v31  ;;  %v16012_v41 = vsub.f32 %v349_v54, %v15982_v39  ;;  %v21527_v54 = vand.u32 4294901760, %v15968_v32 }
 0x2fa   :  { %5197 = vmatpush.msrb.mxu0 %v15902_v49  ;;  %5346 = vmatpush.msrb.mxu2 %v15905_v9  ;;  %21522 = vst [vmem:[#allocation62_spill] sm:$0xff] %v15986_v40  ;;  %v15999_v40 = vand.u32 4294901760, %v341_v34  ;;  %v16014_v42 = vpop.f32.mrf.mxu2  ;;  %v5300_v45 = vsub.f32 %v15961_v61, %v21526_v0  ;;  %v5295_v0 = vand.u32 4294901760, %v5294_v30  ;;  %v5306_v44 = vsub.f32 %v15976_v47, %v21529_v53 }
 0x2fb   :  { %5266 = vmatpush.msrb.mxu1 %v5265_v19  ;;  %5387 = vmatpush.msrb.mxu3 %v15852_v16  ;;  %v333_v19 = vld [vmem:[#allocation2 + $0x6b8] sm:$0xff]  ;;  %v5283_v31 = vand.u32 4294901760, %v5282_v10  ;;  %21525 = vst [vmem:[#allocation63_spill] sm:$0xff] %v16014_v42  ;;  %v5289_v10 = vand.u32 4294901760, %v5288_v48  ;;  %v5557_v42 = vsub.f32 %v15968_v32, %v21527_v54  ;;  %v21530_v54 = vand.u32 4294901760, %v15764_v24 }
 0x2fc   :  { %5199 = vmatpush.msrb.mxu0 %v15914_v29  ;;  %5349 = vmatpush.msrb.mxu2 %v15917_v60  ;;  %v16021_v58 = vand.u32 4294901760, %v333_v19  ;;  %v317_v48 = vld [vmem:[#allocation2 + $0x638] sm:$0xff]  ;;  %v5301_v30 = vand.u32 4294901760, %v5300_v45  ;;  %v21532_v53 = vand.u32 4294901760, %v15994_v63  ;;  %v5307_v45 = vand.u32 4294901760, %v5306_v44 }
 0x2fd   :  { %5272 = vmatpush.msrb.mxu1 %v5271_v1  ;;  %5389 = vmatpush.msrb.mxu3 %v15876_v26  ;;  %v325_v1 = vld [vmem:[#allocation2 + $0x678] sm:$0xff]  ;;  %v16031_v12 = vpop.f32.mrf.mxu0  ;;  %v16053_v24 = vand.u32 4294901760, %v317_v48 }
 0x2fe   :  { %5201 = vmatpush.msrb.mxu0 %v15929_v13  ;;  %5352 = vmatpush.msrb.mxu2 %v15933_v36  ;;  %21528 = vst [vmem:[#allocation64_spill] sm:$0xff] %v16031_v12  ;;  %v16038_v46 = vand.u32 4294901760, %v325_v1  ;;  %v309_v12 = vld [vmem:[#allocation2 + $0x5f8] sm:$0xff]  ;;  %v5563_v50 = vsub.f32 %v15994_v63, %v21532_v53  ;;  %v16051_v37 = vsub.f32 %v333_v19, %v16021_v58  ;;  %v21535_v19 = vand.u32 4294901760, %v16007_v62 }
 0x2ff   :  { %5278 = vmatpush.msrb.mxu1 %v5277_v43  ;;  %5391 = vmatpush.msrb.mxu3 %v15888_v38  ;;  %v16029_v43 = vsub.f32 %v341_v34, %v15999_v40  ;;  %v5558_v34 = vand.u32 4294901760, %v5557_v42  ;;  %v21536_v42 = vand.u32 4294901760, %v15789_v17  ;;  %v21538_v17 = vand.u32 4294901760, %v15804_v57 }
 0x300   :  { %5203 = vmatpush.msrb.mxu0 %v15943_v2  ;;  %5355 = vmatpush.msrb.mxu2 %v15947_v59  ;;  %v5569_v53 = vsub.f32 %v16007_v62, %v21535_v19  ;;  %v16066_v11 = vsub.f32 %v325_v1, %v16038_v46  ;;  %v5564_v44 = vand.u32 4294901760, %v5563_v50  ;;  %v16079_v1 = vsub.f32 %v317_v48, %v16053_v24 }
 0x301   :  { %5284 = vmatpush.msrb.mxu1 %v5283_v31  ;;  %5393 = vmatpush.msrb.mxu3 %v15902_v49  ;;  %v16044_v31 = vpop.f32.mrf.mxu3  ;;  %v16059_v8 = vpop.f32.mrf.mxu1 }
 0x302   :  { %5410 = vmatpush.msra.mxu0 %v21530_v54  ;;  %5358 = vmatpush.msrb.mxu2 %v15961_v61  ;;  %21531 = vst [vmem:[#allocation65_spill] sm:$0xff] %v16044_v31  ;;  %v21533_v54 = vand.u32 4294901760, %v15778_v18  ;;  %v301_v31 = vld [vmem:[#allocation2 + $0x5b8] sm:$0xff]  ;;  %v16068_v18 = vand.u32 4294901760, %v309_v12  ;;  %v5570_v48 = vand.u32 4294901760, %v5569_v53 }
 0x303   :  { %5290 = vmatpush.msrb.mxu1 %v5289_v10  ;;  %5395 = vmatpush.msrb.mxu3 %v15914_v29  ;;  %21534 = vst [vmem:[#allocation66_spill] sm:$0xff] %v16059_v8  ;;  %v293_v10 = vld [vmem:[#allocation2 + $0x578] sm:$0xff]  ;;  %v16081_v8 = vand.u32 4294901760, %v301_v31 }
 0x304   :  { %5414 = vmatpush.msra.mxu0 %v21533_v54  ;;  %5361 = vmatpush.msrb.mxu2 %v15976_v47  ;;  %v21537_v54 = vand.u32 4294901760, %v16012_v41  ;;  %v16097_v57 = vand.u32 4294901760, %v293_v10 }
 0x305   :  { %5296 = vmatpush.msrb.mxu1 %v5295_v0  ;;  %5397 = vmatpush.msrb.mxu3 %v15929_v13  ;;  %v16091_v50 = vpop.f32.mrf.mxu0 }
 0x306   :  { %5418 = vmatpush.msra.mxu0 %v21536_v42  ;;  %5514 = vmatpush.msra.mxu2 %v15940_v52  ;;  %v5575_v0 = vsub.f32 %v16012_v41, %v21537_v54  ;;  %v21539_v42 = vand.u32 4294901760, %v16029_v43  ;;  %v16089_v52 = vpop.f32.mrf.mxu2  ;;  %21541 = vst [vmem:[#allocation68_spill] sm:$0xff] %v16091_v50  ;;  %v16125_v53 = vsub.f32 %v293_v10, %v16097_v57  ;;  %v21550_v50 = vand.u32 4294901760, %v15863_v56 }
 0x307   :  { %5302 = vmatpush.msrb.mxu1 %v5301_v30  ;;  %5399 = vmatpush.msrb.mxu3 %v15943_v2  ;;  %v285_v30 = vld [vmem:[#allocation2 + $0x538] sm:$0xff]  ;;  %21540 = vst [vmem:[#allocation67_spill] sm:$0xff] %v16089_v52  ;;  %v16095_v2 = vsub.f32 %v309_v12, %v16068_v18  ;;  %v16108_v12 = vsub.f32 %v301_v31, %v16081_v8 }
 0x308   :  { %5422 = vmatpush.msra.mxu0 %v21538_v17  ;;  %5516 = vmatpush.msra.mxu2 %v15963_v35  ;;  %v5581_v54 = vsub.f32 %v16029_v43, %v21539_v42  ;;  %v21542_v17 = vand.u32 4294901760, %v15818_v55  ;;  %v5576_v42 = vand.u32 4294901760, %v5575_v0  ;;  %v277_v35 = vld [vmem:[#allocation2 + $0x4f8] sm:$0xff]  ;;  %v16110_v19 = vand.u32 4294901760, %v285_v30 }
 0x309   :  { %5559 = vmatpush.msra.mxu3 %v5558_v34  ;;  %5308 = vmatpush.msrb.mxu1 %v5307_v45  ;;  %v21543_v34 = vand.u32 4294901760, %v16051_v37  ;;  %v21544_v55 = vand.u32 4294901760, %v15833_v22  ;;  %v16115_v0 = vpop.f32.mrf.mxu3  ;;  %v16127_v22 = vand.u32 4294901760, %v277_v35 }
 0x30a   :  { %5426 = vmatpush.msra.mxu0 %v21542_v17  ;;  %5518 = vmatpush.msra.mxu2 %v15978_v3  ;;  %21545 = vst [vmem:[#allocation69_spill] sm:$0xff] %v16115_v0  ;;  %v21547_v17 = vand.u32 4294901760, %v16066_v11  ;;  %v16138_v10 = vsub.f32 %v285_v30, %v16110_v19 }
 0x30b   :  { %5477 = vmatpush.msra.mxu1 %v15743_v20  ;;  %5565 = vmatpush.msra.mxu3 %v5564_v44  ;;  %v5587_v45 = vsub.f32 %v16051_v37, %v21543_v34  ;;  %v5582_v20 = vand.u32 4294901760, %v5581_v54  ;;  %v16117_v44 = vpop.f32.mrf.mxu1  ;;  %v21548_v54 = vand.u32 4294901760, %v15848_v6  ;;  %v16155_v56 = vsub.f32 %v277_v35, %v16127_v22 }
 0x30c   :  { %5430 = vmatpush.msra.mxu0 %v21544_v55  ;;  %21546 = vst [vmem:[#allocation70_spill] sm:$0xff] %v16117_v44  ;;  %5520 = vmatpush.msra.mxu2 %v15982_v39  ;;  %v5593_v31 = vsub.f32 %v16066_v11, %v21547_v17  ;;  %v21549_v55 = vand.u32 4294901760, %v16079_v1  ;;  %v261_v44 = vld [vmem:[#allocation2 + $0x478] sm:$0xff]  ;;  %v21555_v35 = vand.u32 4294901760, %v15882_v7 }
 0x30d   :  { %5479 = vmatpush.msra.mxu1 %v15754_v21  ;;  %5571 = vmatpush.msra.mxu3 %v5570_v48  ;;  %v269_v21 = vld [vmem:[#allocation2 + $0x4b8] sm:$0xff]  ;;  %v5588_v48 = vand.u32 4294901760, %v5587_v45  ;;  %v16160_v34 = vand.u32 4294901760, %v261_v44 }
 0x30e   :  { %5434 = vmatpush.msra.mxu0 %v21548_v54  ;;  %5522 = vmatpush.msra.mxu2 %v15999_v40  ;;  %v5599_v17 = vsub.f32 %v16079_v1, %v21549_v55  ;;  %v16145_v6 = vpop.f32.mrf.mxu2  ;;  %v5594_v45 = vand.u32 4294901760, %v5593_v31  ;;  %v21552_v54 = vand.u32 4294901760, %v16095_v2  ;;  %v21554_v31 = vand.u32 4294901760, %v16108_v12 }
 0x30f   :  { %5481 = vmatpush.msra.mxu1 %v15761_v28  ;;  %5577 = vmatpush.msra.mxu3 %v5576_v42  ;;  %v16143_v28 = vand.u32 4294901760, %v269_v21  ;;  %21551 = vst [vmem:[#allocation71_spill] sm:$0xff] %v16145_v6  ;;  %v16147_v42 = vpop.f32.mrf.mxu0 }
 0x310   :  { %5438 = vmatpush.msra.mxu0 %v21550_v50  ;;  %5524 = vmatpush.msra.mxu2 %v16021_v58  ;;  %v5605_v30 = vsub.f32 %v16095_v2, %v21552_v54  ;;  %v21553_v50 = vand.u32 4294901760, %v15868_v23  ;;  %v5611_v54 = vsub.f32 %v16108_v12, %v21554_v31  ;;  %v21557_v31 = vand.u32 4294901760, %v16125_v53 }
 0x311   :  { %5483 = vmatpush.msra.mxu1 %v15775_v27  ;;  %5583 = vmatpush.msra.mxu3 %v5582_v20  ;;  %v253_v27 = vld [vmem:[#allocation2 + $0x438] sm:$0xff]  ;;  %v5600_v20 = vand.u32 4294901760, %v5599_v17  ;;  %v16171_v23 = vsub.f32 %v269_v21, %v16143_v28  ;;  %v16188_v21 = vsub.f32 %v261_v44, %v16160_v34 }
 0x312   :  { %5442 = vmatpush.msra.mxu0 %v21553_v50  ;;  %5526 = vmatpush.msra.mxu2 %v16038_v46  ;;  %v16175_v50 = vpop.f32.mrf.mxu3  ;;  %v5606_v17 = vand.u32 4294901760, %v5605_v30  ;;  %v5617_v7 = vsub.f32 %v16125_v53, %v21557_v31  ;;  %v5612_v55 = vand.u32 4294901760, %v5611_v54  ;;  %v21560_v31 = vand.u32 4294901760, %v15917_v60 }
 0x313   :  { %5485 = vmatpush.msra.mxu1 %v15785_v14  ;;  %5589 = vmatpush.msra.mxu3 %v5588_v48  ;;  %v16173_v14 = vand.u32 4294901760, %v253_v27  ;;  %21556 = vst [vmem:[#allocation72_spill] sm:$0xff] %v16175_v50  ;;  %v16177_v48 = vpop.f32.mrf.mxu1  ;;  %v21561_v60 = vand.u32 4294901760, %v15933_v36  ;;  %v21601_v50 = vld [vmem:[#allocation21_spill] sm:$0xff] }
 0x314   :  { %5446 = vmatpush.msra.mxu0 %v21555_v35  ;;  %5528 = vmatpush.msra.mxu2 %v16053_v24  ;;  %v5628_v35 = vand.u32 4294901760, %v16155_v56 }
 0x315   :  { %5487 = vmatpush.msra.mxu1 %v15800_v5  ;;  %5595 = vmatpush.msra.mxu3 %v5594_v45  ;;  %v21558_v5 = vand.u32 4294901760, %v15905_v9  ;;  %v21559_v45 = vand.u32 4294901760, %v16138_v10  ;;  %v5634_v9 = vand.u32 4294901760, %v16171_v23 }
 0x316   :  { %5530 = vmatpush.msra.mxu2 %v16068_v18  ;;  %v16201_v44 = vpop.f32.mrf.mxu2  ;;  %v5629_v54 = vsub.f32 %v16155_v56, %v5628_v35  ;;  %5209 = vmatmul.f32.vlgmr.msrb.gmra.mxu0 %v12663_v33 }
 0x317   :  { %5450 = vmatpush.msra.mxu0 %v21558_v5  ;;  %5489 = vmatpush.msra.mxu1 %v15814_v51  ;;  %v5623_v30 = vsub.f32 %v16138_v10, %v21559_v45  ;;  %v16199_v51 = vsub.f32 %v253_v27, %v16173_v14  ;;  %v16211_v5 = vpop.f32.mrf.mxu0  ;;  %v5635_v36 = vsub.f32 %v16171_v23, %v5634_v9 }
 0x318   :  { %5601 = vmatpush.msra.mxu3 %v5600_v20  ;;  %5532 = vmatpush.msra.mxu2 %v16081_v8  ;;  %v5618_v20 = vand.u32 4294901760, %v5617_v7  ;;  %v5630_v45 = vand.u32 4294901760, %v5629_v54 }
 0x319   :  { %5454 = vmatpush.msra.mxu0 %v21560_v31  ;;  %5491 = vmatpush.msra.mxu1 %v15829_v4  ;;  %v5640_v4 = vand.u32 4294901760, %v16188_v21  ;;  %v5624_v27 = vand.u32 4294901760, %v5623_v30  ;;  %v20996_v7 = vand.u32 4294901760, %v16199_v51  ;;  %v21564_v30 = vand.u32 4294901760, %v15976_v47 }
 0x31a   :  { %5607 = vmatpush.msra.mxu3 %v5606_v17  ;;  %5534 = vmatpush.msra.mxu2 %v16097_v57  ;;  %v21562_v17 = vand.u32 4294901760, %v15947_v59  ;;  %v5636_v31 = vand.u32 4294901760, %v5635_v36  ;;  %v21565_v47 = vand.u32 4294901760, %v15968_v32  ;;  %v21569_v36 = vld [vmem:[#allocation57_spill] sm:$0xff] }
 0x31b   :  { %5458 = vmatpush.msra.mxu0 %v21561_v60  ;;  %5493 = vmatpush.msra.mxu1 %v15837_v25  ;;  %v16221_v25 = vpop.f32.mrf.mxu3  ;;  %v5641_v59 = vsub.f32 %v16188_v21, %v5640_v4  ;;  %v21567_v60 = vand.u32 4294901760, %v15994_v63 }
 0x31c   :  { %5613 = vmatpush.msra.mxu3 %v5612_v55  ;;  %5536 = vmatpush.msra.mxu2 %v16110_v19  ;;  %v21563_v55 = vand.u32 4294901760, %v15961_v61  ;;  %v5647_v61 = vsub.f32 %v16199_v51, %v20996_v7  ;;  %v21593_v7 = vld [vmem:[#allocation20_spill] sm:$0xff] }
 0x31d   :  { %5462 = vmatpush.msra.mxu0 %v21562_v17  ;;  %5495 = vmatpush.msra.mxu1 %v15852_v16  ;;  %v16230_v16 = vpop.f32.mrf.mxu1 }
 0x31e   :  { %5619 = vmatpush.msra.mxu3 %v5618_v20  ;;  %5538 = vmatpush.msra.mxu2 %v16127_v22  ;;  %v16242_v20 = vpop.f32.mrf.mxu2 }
 0x31f   :  { %5466 = vmatpush.msra.mxu0 %v21563_v55  ;;  %5497 = vmatpush.msra.mxu1 %v15876_v26  ;;  %v5642_v26 = vand.u32 4294901760, %v5641_v59  ;;  %v16244_v54 = vpop.f32.mrf.mxu0 }
 0x320   :  { %5625 = vmatpush.msra.mxu3 %v5624_v27  ;;  %5540 = vmatpush.msra.mxu2 %v16143_v28 }
 0x321   :  { %5470 = vmatpush.msra.mxu0 %v21564_v30  ;;  %5499 = vmatpush.msra.mxu1 %v15888_v38  ;;  %v5648_v38 = vand.u32 4294901760, %v5647_v61  ;;  %v21574_v30 = vld [vmem:[#allocation16_spill] sm:$0xff]  ;;  %v21577_v61 = vand.u32 4294901760, %v16051_v37 }
 0x322   :  { %5631 = vmatpush.msra.mxu3 %v5630_v45  ;;  %5542 = vmatpush.msra.mxu2 %v16160_v34  ;;  %v21572_v45 = vld [vmem:[#allocation60_spill] sm:$0xff] }
 0x323   :  { %5501 = vmatpush.msra.mxu1 %v15902_v49  ;;  %5657 = vmatpush.msrb.mxu0 %v15968_v32  ;;  %v16252_v33 = vpop.f32.mrf.mxu3  ;;  %v21570_v32 = vld [vmem:[#allocation17_spill] sm:$0xff] }
 0x324   :  { %5637 = vmatpush.msra.mxu3 %v5636_v31  ;;  %5544 = vmatpush.msra.mxu2 %v16173_v14  ;;  %v21576_v31 = vld [vmem:[#allocation19_spill] sm:$0xff] }
 0x325   :  { %5503 = vmatpush.msra.mxu1 %v15914_v29  ;;  %5660 = vmatpush.msrb.mxu0 %v15994_v63  ;;  %v16254_v49 = vpop.f32.mrf.mxu1  ;;  %v21566_v29 = vld [vmem:[#allocation18_spill] sm:$0xff]  ;;  %v21573_v63 = vand.u32 4294901760, %v16012_v41 }
 0x326   :  { %5643 = vmatpush.msra.mxu3 %v5642_v26  ;;  %5364 = vmatmul.f32.vlgmr.msrb.gmra.mxu2 %v12601_v15  ;;  %v21568_v15 = vld [vmem:[#allocation56_spill] sm:$0xff]  ;;  %v16265_v27 = vpop.f32.mrf.mxu2 }
 0x327   :  { %5663 = vmatpush.msrb.mxu0 %v16007_v62  ;;  %5751 = vmatpush.msrb.mxu2 %v21565_v47  ;;  %v16267_v17 = vpop.f32.mrf.mxu0 }
 0x328   :  { %5505 = vmatpush.msra.mxu1 %v15929_v13  ;;  %5649 = vmatpush.msra.mxu3 %v5648_v38  ;;  %v21571_v13 = vand.u32 4294901760, %v16007_v62  ;;  %v21575_v62 = vand.u32 4294901760, %v16029_v43  ;;  %v21579_v38 = vand.u32 4294901760, %v16079_v1 }
 0x329   :  { %5403 = vmatmul.f32.vlgmr.msrb.gmra.mxu3 %v21566_v29  ;;  %5666 = vmatpush.msrb.mxu0 %v16012_v41  ;;  %v21580_v29 = vand.u32 4294901760, %v16095_v2 }
 0x32a   :  { %5755 = vmatpush.msrb.mxu2 %v21567_v60  ;;  %5818 = vmatpush.msrb.mxu3 %v21568_v15 }
 0x32b   :  { %5507 = vmatpush.msra.mxu1 %v21569_v36  ;;  %5669 = vmatpush.msrb.mxu0 %v16029_v43  ;;  %v16279_v55 = vpop.f32.mrf.mxu3  ;;  %v21578_v43 = vand.u32 4294901760, %v16066_v11 }
 0x32c   :  { %5310 = vmatmul.f32.vlgmr.msrb.gmra.mxu1 %v21570_v32  ;;  %5759 = vmatpush.msrb.mxu2 %v21571_v13  ;;  %v5916_v13 = vld [vmem:[#allocation5 + $0x180] sm:$0xff] }
 0x32d   :  { %5710 = vmatpush.msrb.mxu1 %v21568_v15  ;;  %5820 = vmatpush.msrb.mxu3 %v21572_v45  ;;  %v16281_v59 = vpop.f32.mrf.mxu1 }
 0x32e   :  { %5672 = vmatpush.msrb.mxu0 %v16051_v37  ;;  %5763 = vmatpush.msrb.mxu2 %v21573_v63  ;;  %v16292_v41 = vpop.f32.mrf.mxu2  ;;  %v21584_v63 = vld [vmem:[#allocation45_spill] sm:$0xff] }
 0x32f   :  { %5712 = vmatpush.msrb.mxu1 %v21572_v45  ;;  %5822 = vmatpush.msrb.mxu3 %v15978_v3  ;;  %v16299_v26 = vpop.f32.mrf.mxu0 }
 0x330   :  { %5550 = vmatmul.f32.vlgmr.msra.gmra.mxu2 %v21574_v30  ;;  %5675 = vmatpush.msrb.mxu0 %v16066_v11  ;;  %v16320_v11 = vld [vmem:[%s20811_s5] sm:$0xff] }
 0x331   :  { %5714 = vmatpush.msrb.mxu1 %v15978_v3  ;;  %5767 = vmatpush.msrb.mxu2 %v21575_v62  ;;  %v376_v15 = vperm.slane %v16320_v11, 0  ;;  %v21585_v62 = vand.u32 4294901760, %v16125_v53 }
 0x332   :  { %5824 = vmatpush.msrb.mxu3 %v15982_v39  ;;  %5472 = vmatmul.f32.vlgmr.msra.gmra.mxu0 %v21570_v32 }
 0x333   :  { %5651 = vmatmul.f32.vlgmr.msra.gmra.mxu3 %v21576_v31  ;;  %5678 = vmatpush.msrb.mxu0 %v16079_v1  ;;  %v16305_v3 = vpop.f32.mrf.mxu3  ;;  %v5920_v1 = vld [vmem:[#allocation5 + $0x1a0] sm:$0xff] }
 0x334   :  { %5716 = vmatpush.msrb.mxu1 %v15982_v39  ;;  %5771 = vmatpush.msrb.mxu2 %v21577_v61  ;;  %v5928_v39 = vld [vmem:[#allocation5 + $0x1e0] sm:$0xff]  ;;  %v16348_v45 = vand.u32 4294901760, %v5920_v1 }
 0x335   :  { %5826 = vmatpush.msrb.mxu3 %v15999_v40  ;;  %5509 = vmatmul.f32.vlgmr.msra.gmra.mxu1 %v21570_v32  ;;  %v16312_v37 = vpop.f32.mrf.mxu1  ;;  %v16324_v47 = vand.u32 4294901760, %v5928_v39 }
 0x336   :  { %5681 = vmatpush.msrb.mxu0 %v16095_v2  ;;  %5718 = vmatpush.msrb.mxu1 %v15999_v40  ;;  %v5924_v40 = vld [vmem:[#allocation5 + $0x1c0] sm:$0xff]  ;;  %v16336_v36 = vpop.f32.mrf.mxu2  ;;  %v21583_v2 = vand.u32 4294901760, %v16108_v12 }
 0x337   :  { %5775 = vmatpush.msrb.mxu2 %v21578_v43  ;;  %5828 = vmatpush.msrb.mxu3 %v16021_v58  ;;  %v16332_v60 = vand.u32 4294901760, %v5924_v40  ;;  %21581 = vst [vmem:[#allocation18_spill] sm:$0xff] %v16336_v36  ;;  %v16338_v32 = vpop.f32.mrf.mxu0  ;;  %v21586_v43 = vld [vmem:[#allocation24_spill] sm:$0xff] }
 0x338   :  { %5684 = vmatpush.msrb.mxu0 %v16108_v12  ;;  %5720 = vmatpush.msrb.mxu1 %v16021_v58  ;;  %v378_v58 = vperm.slane %v16320_v11, 2  ;;  %21582 = vst [vmem:[#allocation56_spill] sm:$0xff] %v16338_v32  ;;  %v5912_v12 = vld [vmem:[#allocation5 + $0x160] sm:$0xff] }
 0x339   :  { %5779 = vmatpush.msrb.mxu2 %v21579_v38  ;;  %5830 = vmatpush.msrb.mxu3 %v16038_v46  ;;  %v16357_v61 = vsub.f32 %v5924_v40, %v16332_v60  ;;  %v16374_v40 = vsub.f32 %v5920_v1, %v16348_v45 }
 0x33a   :  { %5687 = vmatpush.msrb.mxu0 %v16125_v53  ;;  %5722 = vmatpush.msrb.mxu1 %v16038_v46  ;;  %v380_v46 = vperm.slane %v16320_v11, 4  ;;  %v1801_v30 = vadd.f32 %v21584_v63, %v378_v58 }
 0x33b   :  { %5783 = vmatpush.msrb.mxu2 %v21580_v29  ;;  %5832 = vmatpush.msrb.mxu3 %v16053_v24  ;;  %v16363_v58 = vpop.f32.mrf.mxu3  ;;  %v21589_v29 = vand.u32 4294901760, %v16138_v10 }
 0x33c   :  { %5690 = vmatpush.msrb.mxu0 %v16138_v10  ;;  %5724 = vmatpush.msrb.mxu1 %v16053_v24  ;;  %v16346_v24 = vsub.f32 %v5928_v39, %v16324_v47  ;;  %v437_v39 = vadd.f32 %v21586_v43, %v376_v15  ;;  %v3165_v38 = vadd.f32 %v16147_v42, %v380_v46  ;;  %v16376_v42 = vand.u32 4294901760, %v5912_v12  ;;  %v5904_v15 = vld [vmem:[#allocation5 + $0x120] sm:$0xff] }
 0x33d   :  { %5787 = vmatpush.msrb.mxu2 %v21583_v2  ;;  %5834 = vmatpush.msrb.mxu3 %v16068_v18  ;;  %21587 = vst [vmem:[#allocation57_spill] sm:$0xff] %v16363_v58  ;;  %v16365_v53 = vpop.f32.mrf.mxu1  ;;  %v5908_v2 = vld [vmem:[#allocation5 + $0x140] sm:$0xff]  ;;  %v20998_v10 = vand.u32 4294901760, %v16357_v61 }
 0x33e   :  { %5693 = vmatpush.msrb.mxu0 %v16155_v56  ;;  %5726 = vmatpush.msrb.mxu1 %v16068_v18  ;;  %v16359_v18 = vand.u32 4294901760, %v5916_v13  ;;  %21588 = vst [vmem:[#allocation17_spill] sm:$0xff] %v16365_v53  ;;  %v21590_v46 = vld [vmem:[#allocation47_spill] sm:$0xff]  ;;  %v3266_v56 = vadd.f32 %v16177_v48, %v3165_v38 }
 0x33f   :  { %5791 = vmatpush.msrb.mxu2 %v21585_v62  ;;  %5836 = vmatpush.msrb.mxu3 %v16081_v8  ;;  %v1902_v63 = vadd.f32 %v21590_v46, %v1801_v30  ;;  %v16389_v62 = vand.u32 4294901760, %v5908_v2  ;;  %v5900_v43 = vld [vmem:[#allocation5 + $0x100] sm:$0xff]  ;;  %v21591_v30 = vld [vmem:[#allocation25_spill] sm:$0xff]  ;;  %v16398_v46 = vand.u32 4294901760, %v5904_v15 }
 0x340   :  { %5696 = vmatpush.msrb.mxu0 %v16171_v23  ;;  %5728 = vmatpush.msrb.mxu1 %v16081_v8  ;;  %v20997_v8 = vand.u32 4294901760, %v16346_v24  ;;  %v16387_v1 = vsub.f32 %v5916_v13, %v16359_v18  ;;  %v21594_v23 = vld [vmem:[#allocation48_spill] sm:$0xff]  ;;  %v16413_v38 = vand.u32 4294901760, %v5900_v43 }
 0x341   :  { %5795 = vmatpush.msrb.mxu2 %v21589_v29  ;;  %5838 = vmatpush.msrb.mxu3 %v16097_v57  ;;  %v538_v29 = vadd.f32 %v21591_v30, %v437_v39  ;;  %v16407_v39 = vsub.f32 %v5912_v12, %v16376_v42  ;;  %v6056_v12 = vsub.f32 %v16357_v61, %v20998_v10 }
 0x342   :  { %5699 = vmatpush.msrb.mxu0 %v16188_v21  ;;  %5730 = vmatpush.msrb.mxu1 %v16097_v57  ;;  %v382_v57 = vperm.slane %v16320_v11, 6  ;;  %v6050_v13 = vsub.f32 %v16346_v24, %v20997_v8  ;;  %v20999_v30 = vand.u32 4294901760, %v16387_v1  ;;  %v5892_v21 = vld [vmem:[#allocation5 + $0xc0] sm:$0xff]  ;;  %v3320_v8 = vadd.f32 %v16201_v44, %v3266_v56 }
 0x343   :  { %5799 = vmatpush.msrb.mxu2 %v5628_v35  ;;  %5840 = vmatpush.msrb.mxu3 %v16110_v19  ;;  %v16393_v35 = vpop.f32.mrf.mxu2  ;;  %v16426_v48 = vpop.f32.mrf.mxu3  ;;  %v16448_v10 = vand.u32 4294901760, %v5892_v21  ;;  %v21600_v56 = vld [vmem:[#allocation28_spill] sm:$0xff] }
 0x344   :  { %5702 = vmatpush.msrb.mxu0 %v16199_v51  ;;  %5732 = vmatpush.msrb.mxu1 %v16110_v19  ;;  %21592 = vst [vmem:[#allocation60_spill] sm:$0xff] %v16393_v35  ;;  %v4528_v19 = vpop.f32.mrf.mxu0 }
 0x345   :  { %5803 = vmatpush.msrb.mxu2 %v5634_v9  ;;  %5842 = vmatpush.msrb.mxu3 %v16127_v22  ;;  %v1956_v9 = vadd.f32 %v21594_v23, %v1902_v63  ;;  %v16422_v63 = vsub.f32 %v5908_v2, %v16389_v62  ;;  %21596 = vst [vmem:[#allocation16_spill] sm:$0xff] %v16426_v48  ;;  %v6051_v2 = vand.u32 4294901760, %v6050_v13 }
 0x346   :  { %5705 = vmatmul.f32.vlgmr.msrb.gmra.mxu0 %v21593_v7  ;;  %5734 = vmatpush.msrb.mxu1 %v16127_v22  ;;  %v5896_v7 = vld [vmem:[#allocation5 + $0xe0] sm:$0xff]  ;;  %v4529_v22 = vadd.f32 %v4528_v19, %v382_v57  ;;  %v4629_v57 = vpop.f32.mrf.mxu1  ;;  %v16432_v19 = vsub.f32 %v5904_v15, %v16398_v46  ;;  %v16446_v15 = vsub.f32 %v5900_v43, %v16413_v38 }
 0x347   :  { %5807 = vmatpush.msrb.mxu2 %v5640_v4  ;;  %5844 = vmatpush.msrb.mxu3 %v16143_v28  ;;  %v21595_v4 = vld [vmem:[#allocation26_spill] sm:$0xff]  ;;  %v3359_v43 = vadd.f32 %v16221_v25, %v3320_v8 }
 0x348   :  { %5736 = vmatpush.msrb.mxu1 %v16143_v28  ;;  %6007 = vmatpush.msra.mxu0 %v16324_v47  ;;  %v592_v23 = vadd.f32 %v21595_v4, %v538_v29  ;;  %v21597_v28 = vand.u32 4294901760, %v16199_v51  ;;  %v21598_v29 = vand.u32 4294901760, %v16374_v40  ;;  %v16440_v4 = vand.u32 4294901760, %v5896_v7  ;;  %v21599_v51 = vld [vmem:[#allocation50_spill] sm:$0xff] }
 0x349   :  { %5846 = vmatpush.msrb.mxu3 %v16160_v34  ;;  %v4630_v13 = vadd.f32 %v4629_v57, %v4529_v22  ;;  %v21605_v6 = vand.u32 4294901760, %v16432_v19 }
 0x34a   :  { %5811 = vmatpush.msrb.mxu2 %v21597_v28  ;;  %5738 = vmatpush.msrb.mxu1 %v16160_v34  ;;  %v6062_v44 = vsub.f32 %v16374_v40, %v21598_v29  ;;  %v1995_v28 = vadd.f32 %v21599_v51, %v1956_v9  ;;  %v5888_v34 = vld [vmem:[#allocation5 + $0xa0] sm:$0xff]  ;;  %v6057_v29 = vand.u32 4294901760, %v6056_v12  ;;  %v6068_v9 = vsub.f32 %v16387_v1, %v20999_v30 }
 0x34b   :  { %5813 = vmatmul.f32.vlgmr.msrb.gmra.mxu2 %v21576_v31  ;;  %5848 = vmatpush.msrb.mxu3 %v16173_v14  ;;  %v21000_v51 = vand.u32 4294901760, %v16422_v63  ;;  %v631_v48 = vadd.f32 %v21600_v56, %v592_v23  ;;  %v4683_v35 = vpop.f32.mrf.mxu2  ;;  %v21602_v12 = vand.u32 4294901760, %v16407_v39  ;;  %v16465_v30 = vsub.f32 %v5896_v7, %v16440_v4 }
 0x34c   :  { %6009 = vmatpush.msra.mxu0 %v16332_v60  ;;  %5850 = vmatmul.f32.vlgmr.msrb.gmra.mxu3 %v21576_v31  ;;  %v6063_v22 = vand.u32 4294901760, %v6062_v44  ;;  %v16468_v25 = vand.u32 4294901760, %v5888_v34  ;;  %v5880_v44 = vld [vmem:[#allocation5 + $0x60] sm:$0xff]  ;;  %v4684_v56 = vadd.f32 %v4683_v35, %v4630_v13  ;;  %v6069_v7 = vand.u32 4294901760, %v6068_v9 }
 0x34d   :  { %5740 = vmatpush.msrb.mxu1 %v16173_v14  ;;  %v5884_v14 = vld [vmem:[#allocation5 + $0x80] sm:$0xff]  ;;  %v6074_v57 = vsub.f32 %v16407_v39, %v21602_v12  ;;  %6150 = vmatpush.msra.mxu2 %v16346_v24  ;;  %v6080_v12 = vsub.f32 %v16422_v63, %v21000_v51  ;;  %v3428_v23 = vadd.f32 %v16211_v5, %v3359_v43  ;;  %v16495_v5 = vand.u32 4294901760, %v5880_v44 }
 0x34e   :  { %5744 = vmatmul.f32.vlgmr.msrb.gmra.mxu1 %v21601_v50  ;;  %6011 = vmatpush.msra.mxu0 %v16348_v45  ;;  %v21603_v50 = vld [vmem:[#allocation49_spill] sm:$0xff]  ;;  %v6086_v35 = vsub.f32 %v16432_v19, %v21605_v6  ;;  %v5876_v13 = vld [vmem:[#allocation5 + $0x40] sm:$0xff]  ;;  %v16492_v51 = vsub.f32 %v5888_v34, %v16468_v25  ;;  %v21607_v6 = vand.u32 4294901760, %v16446_v15  ;;  %v4828_v36 = vpop.f32.mrf.mxu1 }
 0x34f   :  { %6052 = vmatpush.msra.mxu1 %v6051_v2  ;;  %v2064_v8 = vadd.f32 %v21603_v50, %v1995_v28  ;;  %v16474_v2 = vsub.f32 %v5892_v21, %v16448_v10  ;;  %6203 = vmatpush.msra.mxu3 %v16324_v47  ;;  %v16481_v28 = vand.u32 4294901760, %v5884_v14  ;;  %v21604_v50 = vld [vmem:[#allocation27_spill] sm:$0xff]  ;;  %v4722_v21 = vpop.f32.mrf.mxu3  ;;  %v6081_v34 = vand.u32 4294901760, %v6080_v12 }
 0x350   :  { %6013 = vmatpush.msra.mxu0 %v16359_v18  ;;  %6153 = vmatpush.msra.mxu2 %v16357_v61  ;;  %v700_v31 = vadd.f32 %v21604_v50, %v631_v48  ;;  %v21606_v48 = vld [vmem:[#allocation51_spill] sm:$0xff]  ;;  %v6092_v50 = vsub.f32 %v16446_v15, %v21607_v6  ;;  %v4723_v9 = vadd.f32 %v4722_v21, %v4684_v56  ;;  %v4791_v6 = vpop.f32.mrf.mxu0  ;;  %v6087_v0 = vand.u32 4294901760, %v6086_v35 }
 0x351   :  { %6058 = vmatpush.msra.mxu1 %v6057_v29  ;;  %6205 = vmatpush.msra.mxu3 %v16332_v60  ;;  %v6075_v29 = vand.u32 4294901760, %v6074_v57  ;;  %v2101_v43 = vadd.f32 %v21606_v48, %v2064_v8  ;;  %v5872_v57 = vld [vmem:[#allocation5 + $0x20] sm:$0xff]  ;;  %v16505_v53 = vsub.f32 %v5884_v14, %v16481_v28  ;;  %v16508_v8 = vand.u32 4294901760, %v5876_v13  ;;  %v21608_v48 = vld [vmem:[#allocation29_spill] sm:$0xff] }
 0x352   :  { %6015 = vmatpush.msra.mxu0 %v16376_v42  ;;  %6156 = vmatpush.msra.mxu2 %v16374_v40  ;;  %v737_v32 = vadd.f32 %v21608_v48, %v700_v31  ;;  %v3465_v58 = vadd.f32 %v16230_v16, %v3428_v23  ;;  %v5868_v56 = vld [vmem:[#allocation5] sm:$0xff]  ;;  %v16519_v21 = vsub.f32 %v5880_v44, %v16495_v5  ;;  %v16522_v16 = vand.u32 4294901760, %v5872_v57 }
 0x353   :  { %6064 = vmatpush.msra.mxu1 %v6063_v22  ;;  %v21001_v22 = vand.u32 4294901760, %v16474_v2  ;;  %6207 = vmatpush.msra.mxu3 %v16348_v45  ;;  %v21610_v31 = vld [vmem:[#allocation52_spill] sm:$0xff]  ;;  %v6093_v35 = vand.u32 4294901760, %v6092_v50  ;;  %v4792_v48 = vadd.f32 %v4791_v6, %v4723_v9  ;;  %v6115_v44 = vand.u32 4294901760, %v16505_v53  ;;  %v4869_v52 = vpop.f32.mrf.mxu2 }
 0x354   :  { %6017 = vmatpush.msra.mxu0 %v16389_v62  ;;  %6159 = vmatpush.msra.mxu2 %v16387_v1  ;;  %v2142_v23 = vadd.f32 %v21610_v31, %v2101_v43  ;;  %v16535_v12 = vand.u32 4294901760, %v5868_v56  ;;  %v21611_v43 = vld [vmem:[#allocation30_spill] sm:$0xff]  ;;  %v3506_v31 = vadd.f32 %v16242_v20, %v3465_v58 }
 0x355   :  { %6070 = vmatpush.msra.mxu1 %v6069_v7  ;;  %6209 = vmatpush.msra.mxu3 %v16359_v18  ;;  %v21609_v7 = vand.u32 4294901760, %v16465_v30  ;;  %v778_v50 = vadd.f32 %v21611_v43, %v737_v32  ;;  %v21613_v32 = vld [vmem:[#allocation54_spill] sm:$0xff] }
 0x356   :  { %6019 = vmatpush.msra.mxu0 %v16398_v46  ;;  %6162 = vmatpush.msra.mxu2 %v16407_v39  ;;  %v2243_v20 = vadd.f32 %v21613_v32, %v2142_v23  ;;  %v3607_v6 = vadd.f32 %v16252_v33, %v3506_v31 }
 0x357   :  { %6076 = vmatpush.msra.mxu1 %v6075_v29  ;;  %v6098_v14 = vsub.f32 %v16465_v30, %v21609_v7  ;;  %v6104_v29 = vsub.f32 %v16474_v2, %v21001_v22  ;;  %6211 = vmatpush.msra.mxu3 %v16376_v42  ;;  %v16532_v7 = vsub.f32 %v5876_v13, %v16508_v8 }
 0x358   :  { %6021 = vmatpush.msra.mxu0 %v16413_v38  ;;  %6165 = vmatpush.msra.mxu2 %v16422_v63  ;;  %v16546_v22 = vsub.f32 %v5872_v57, %v16522_v16  ;;  %v16557_v57 = vsub.f32 %v5868_v56, %v16535_v12  ;;  %v3661_v33 = vadd.f32 %v16244_v54, %v3607_v6  ;;  %v21619_v54 = vld [vmem:[#allocation33_spill] sm:$0xff] }
 0x359   :  { %6082 = vmatpush.msra.mxu1 %v6081_v34  ;;  %6213 = vmatpush.msra.mxu3 %v16389_v62  ;;  %v6099_v9 = vand.u32 4294901760, %v6098_v14  ;;  %v21612_v34 = vand.u32 4294901760, %v16492_v51  ;;  %v6105_v58 = vand.u32 4294901760, %v6104_v29  ;;  %v6116_v14 = vsub.f32 %v16505_v53, %v6115_v44  ;;  %v21615_v29 = vld [vmem:[#allocation53_spill] sm:$0xff] }
 0x35a   :  { %6023 = vmatpush.msra.mxu0 %v16440_v4  ;;  %6168 = vmatpush.msra.mxu2 %v16432_v19  ;;  %v6127_v43 = vand.u32 4294901760, %v16532_v7  ;;  %v2297_v32 = vadd.f32 %v21615_v29, %v2243_v20  ;;  %v21618_v20 = vld [vmem:[#allocation55_spill] sm:$0xff] }
 0x35b   :  { %6088 = vmatpush.msra.mxu1 %v6087_v0  ;;  %v6110_v13 = vsub.f32 %v16492_v51, %v21612_v34  ;;  %6215 = vmatpush.msra.mxu3 %v16398_v46  ;;  %v4829_v0 = vadd.f32 %v4828_v36, %v4792_v48  ;;  %v21614_v34 = vld [vmem:[#allocation32_spill] sm:$0xff]  ;;  %v6133_v48 = vand.u32 4294901760, %v16546_v22 }
 0x35c   :  { %6025 = vmatpush.msra.mxu0 %v16448_v10  ;;  %6171 = vmatpush.msra.mxu2 %v16446_v15  ;;  %v879_v23 = vadd.f32 %v21614_v34, %v778_v50  ;;  %v21617_v50 = vld [vmem:[#allocation31_spill] sm:$0xff]  ;;  %v2336_v29 = vadd.f32 %v21618_v20, %v2297_v32  ;;  %v3700_v32 = vadd.f32 %v16254_v49, %v3661_v33 }
 0x35d   :  { %6094 = vmatpush.msra.mxu1 %v6093_v35  ;;  %6217 = vmatpush.msra.mxu3 %v16413_v38  ;;  %v6111_v36 = vand.u32 4294901760, %v6110_v13  ;;  %v21616_v35 = vand.u32 4294901760, %v16519_v21  ;;  %v4870_v31 = vadd.f32 %v4869_v52, %v4829_v0  ;;  %v6128_v13 = vsub.f32 %v16532_v7, %v6127_v43  ;;  %v5024_v0 = vpop.f32.mrf.mxu0 }
 0x35e   :  { %6027 = vmatpush.msra.mxu0 %v16468_v25  ;;  %6174 = vmatpush.msra.mxu2 %v16465_v30  ;;  %v933_v34 = vadd.f32 %v21617_v50, %v879_v23  ;;  %v4970_v23 = vpop.f32.mrf.mxu3  ;;  %v3769_v33 = vadd.f32 %v16265_v27, %v3700_v32  ;;  %v21624_v27 = vld [vmem:[#allocation22_spill] sm:$0xff] }
 0x35f   :  { %6100 = vmatpush.msra.mxu1 %v6099_v9  ;;  %v6122_v56 = vsub.f32 %v16519_v21, %v21616_v35  ;;  %6219 = vmatpush.msra.mxu3 %v16440_v4  ;;  %v6117_v9 = vand.u32 4294901760, %v6116_v14  ;;  %v21002_v35 = vand.u32 4294901760, %v16557_v57  ;;  %v21620_v14 = vld [vmem:[#allocation58_spill] sm:$0xff]  ;;  %v4971_v20 = vadd.f32 %v4970_v23, %v4870_v31 }
 0x360   :  { %6029 = vmatpush.msra.mxu0 %v16481_v28  ;;  %6177 = vmatpush.msra.mxu2 %v16474_v2  ;;  %v972_v6 = vadd.f32 %v21619_v54, %v933_v34  ;;  %v2405_v50 = vadd.f32 %v21620_v14, %v2336_v29  ;;  %v6129_v34 = vand.u32 4294901760, %v6128_v13  ;;  %v21622_v13 = vld [vmem:[#allocation61_spill] sm:$0xff] }
 0x361   :  { %6106 = vmatpush.msra.mxu1 %v6105_v58  ;;  %6221 = vmatpush.msra.mxu3 %v16448_v10  ;;  %v6123_v52 = vand.u32 4294901760, %v6122_v56  ;;  %v6134_v58 = vsub.f32 %v16546_v22, %v6133_v48  ;;  %v6140_v49 = vsub.f32 %v16557_v57, %v21002_v35  ;;  %v5025_v54 = vadd.f32 %v5024_v0, %v4971_v20 }
 0x362   :  { %6031 = vmatpush.msra.mxu0 %v16495_v5  ;;  %6180 = vmatpush.msra.mxu2 %v16492_v51  ;;  %v2442_v23 = vadd.f32 %v21622_v13, %v2405_v50  ;;  %v21625_v0 = vand.u32 4294901760, %v16357_v61 }
 0x363   :  { %6112 = vmatpush.msra.mxu1 %v6111_v36  ;;  %6223 = vmatpush.msra.mxu3 %v16468_v25  ;;  %v21621_v36 = vld [vmem:[#allocation34_spill] sm:$0xff]  ;;  %v6135_v29 = vand.u32 4294901760, %v6134_v58  ;;  %v6141_v14 = vand.u32 4294901760, %v6140_v49  ;;  %v5992_v49 = vld [vmem:[#allocation5 + $0x3e0] sm:$0xff] }
 0x364   :  { %6033 = vmatpush.msra.mxu0 %v16508_v8  ;;  %6183 = vmatpush.msra.mxu2 %v16505_v53  ;;  %v1041_v56 = vadd.f32 %v21621_v36, %v972_v6  ;;  %v21623_v6 = vand.u32 4294901760, %v16346_v24  ;;  %v5856_v24 = vmax.f32 %v2442_v23, 0.0  ;;  %v5988_v36 = vld [vmem:[#allocation5 + $0x3c0] sm:$0xff] }
 0x365   :  { %6118 = vmatpush.msra.mxu1 %v6117_v9  ;;  %6225 = vmatpush.msra.mxu3 %v16481_v28  ;;  %v16619_v61 = vand.u32 4294901760, %v5988_v36 }
 0x366   :  { %6035 = vmatpush.msra.mxu0 %v16522_v16  ;;  %6186 = vmatpush.msra.mxu2 %v16519_v21  ;;  %v1078_v32 = vadd.f32 %v21624_v27, %v1041_v56  ;;  %v5984_v56 = vld [vmem:[#allocation5 + $0x3a0] sm:$0xff]  ;;  %v21628_v27 = vand.u32 4294901760, %v16407_v39  ;;  %v21629_v39 = vand.u32 4294901760, %v16422_v63 }
 0x367   :  { %6124 = vmatpush.msra.mxu1 %v6123_v52  ;;  %v5063_v31 = vpop.f32.mrf.mxu1  ;;  %v5132_v9 = vpop.f32.mrf.mxu2  ;;  %6227 = vmatpush.msra.mxu3 %v16495_v5  ;;  %v3806_v52 = vadd.f32 %v16279_v55, %v3769_v33  ;;  %v16617_v55 = vand.u32 4294901760, %v5992_v49  ;;  %v5980_v33 = vld [vmem:[#allocation5 + $0x380] sm:$0xff]  ;;  %v16633_v13 = vsub.f32 %v5988_v36, %v16619_v61 }
 0x368   :  { %6037 = vmatpush.msra.mxu0 %v16535_v12  ;;  %v5064_v35 = vadd.f32 %v5063_v31, %v5025_v54  ;;  %6189 = vmatpush.msra.mxu2 %v16532_v7  ;;  %v5854_v54 = vmax.f32 %v1078_v32, 0.0 }
 0x369   :  { %6130 = vmatpush.msra.mxu1 %v6129_v34  ;;  %6229 = vmatpush.msra.mxu3 %v16508_v8  ;;  %v21626_v34 = vand.u32 4294901760, %v16374_v40  ;;  %v21627_v40 = vand.u32 4294901760, %v16387_v1 }
 0x36a   :  { %6244 = vmatpush.msrb.mxu0 %v21623_v6  ;;  %v5133_v58 = vadd.f32 %v5132_v9, %v5064_v35  ;;  %v5169_v50 = vpop.f32.mrf.mxu3  ;;  %6192 = vmatpush.msra.mxu2 %v16546_v22  ;;  %v16621_v35 = vand.u32 4294901760, %v5984_v56  ;;  %v16626_v9 = vand.u32 4294901760, %v5980_v33  ;;  %v5862_v1 = vmax.f32 %v5854_v54, %v5856_v24 }
 0x36b   :  { %6136 = vmatpush.msra.mxu1 %v6135_v29  ;;  %6231 = vmatpush.msra.mxu3 %v16522_v16  ;;  %v5858_v29 = vmax.f32 %v3806_v52, 0.0  ;;  %v21630_v54 = vand.u32 4294901760, %v16432_v19 }
 0x36c   :  { %6248 = vmatpush.msrb.mxu0 %v21625_v0  ;;  %v5170_v20 = vadd.f32 %v5169_v50, %v5133_v58  ;;  %6195 = vmatpush.msra.mxu2 %v16557_v57  ;;  %v16636_v23 = vsub.f32 %v5984_v56, %v16621_v35  ;;  %v16642_v32 = vsub.f32 %v5980_v33, %v16626_v9  ;;  %v6396_v58 = vand.u32 4294901760, %v16633_v13  ;;  %v5972_v50 = vld [vmem:[#allocation5 + $0x340] sm:$0xff] }
 0x36d   :  { %6142 = vmatpush.msra.mxu1 %v6141_v14  ;;  %6233 = vmatpush.msra.mxu3 %v16535_v12  ;;  %v5976_v14 = vld [vmem:[#allocation5 + $0x360] sm:$0xff] }
 0x36e   :  { %6252 = vmatpush.msrb.mxu0 %v21626_v34  ;;  %v5860_v31 = vmax.f32 %v5170_v20, 0.0  ;;  %6348 = vmatpush.msrb.mxu2 %v16617_v55  ;;  %v6402_v0 = vand.u32 4294901760, %v16636_v23  ;;  %v6408_v20 = vand.u32 4294901760, %v16642_v32  ;;  %v6397_v36 = vsub.f32 %v16633_v13, %v6396_v58  ;;  %v5968_v56 = vld [vmem:[#allocation5 + $0x320] sm:$0xff] }
 0x36f   :  { %6311 = vmatpush.msrb.mxu1 %v16324_v47  ;;  %v16630_v47 = vsub.f32 %v5992_v49, %v16617_v55  ;;  %v16657_v49 = vand.u32 4294901760, %v5972_v50 }
 0x370   :  { %6256 = vmatpush.msrb.mxu0 %v21627_v40  ;;  %v5864_v6 = vmax.f32 %v5858_v29, %v5860_v31  ;;  %6350 = vmatpush.msrb.mxu2 %v16619_v61  ;;  %v6403_v63 = vsub.f32 %v16636_v23, %v6402_v0  ;;  %v6398_v40 = vand.u32 4294901760, %v6397_v36  ;;  %v21635_v36 = vand.u32 4294901760, %v16474_v2 }
 0x371   :  { %6313 = vmatpush.msrb.mxu1 %v16332_v60  ;;  %v16644_v60 = vand.u32 4294901760, %v5976_v14  ;;  %v6390_v52 = vand.u32 4294901760, %v16630_v47  ;;  %v16676_v29 = vsub.f32 %v5972_v50, %v16657_v49 }
 0x372   :  { %6260 = vmatpush.msrb.mxu0 %v21628_v27  ;;  %v5866_v24 = vmax.f32 %v5862_v1, %v5864_v6  ;;  %6352 = vmatpush.msrb.mxu2 %v16621_v35  ;;  %v16682_v1 = vand.u32 4294901760, %v5968_v56  ;;  %v21632_v6 = vand.u32 4294901760, %v16446_v15  ;;  %v6404_v27 = vand.u32 4294901760, %v6403_v63 }
 0x373   :  { %6315 = vmatpush.msrb.mxu1 %v16348_v45  ;;  %v16655_v34 = vsub.f32 %v5976_v14, %v16644_v60  ;;  %v6391_v45 = vsub.f32 %v16630_v47, %v6390_v52  ;;  %v6409_v14 = vsub.f32 %v16642_v32, %v6408_v20 }
 0x374   :  { %6264 = vmatpush.msrb.mxu0 %v21629_v39  ;;  %v16670_v33 = vand.u32 4294901760, %v5866_v24  ;;  %6354 = vmatpush.msrb.mxu2 %v16626_v9  ;;  %v16694_v50 = vsub.f32 %v5968_v56, %v16682_v1  ;;  %v21633_v39 = vand.u32 4294901760, %v16465_v30 }
 0x375   :  { %6317 = vmatpush.msrb.mxu1 %v16359_v18  ;;  %v6414_v18 = vand.u32 4294901760, %v16655_v34  ;;  %v6392_v31 = vand.u32 4294901760, %v6391_v45 }
 0x376   :  { %6268 = vmatpush.msrb.mxu0 %v21630_v54  ;;  %v16686_v19 = vsub.f32 %v5866_v24, %v16670_v33  ;;  %6144 = vmatmul.f32.vlgmr.msra.gmra.mxu1 %v16670_v33  ;;  %v6426_v45 = vand.u32 4294901760, %v16694_v50 }
 0x377   :  { %6319 = vmatpush.msrb.mxu1 %v16376_v42  ;;  %v6420_v42 = vand.u32 4294901760, %v16676_v29  ;;  %6393 = vmatpush.msrb.mxu3 %v6392_v31  ;;  %v6415_v15 = vsub.f32 %v16655_v34, %v6414_v18  ;;  %v21637_v31 = vand.u32 4294901760, %v16519_v21  ;;  %v5956_v21 = vld [vmem:[#allocation5 + $0x2c0] sm:$0xff] }
 0x378   :  { %21631 = vst [vmem:[#allocation19_spill] sm:$0xff] %v16686_v19  ;;  %6272 = vmatpush.msrb.mxu0 %v21632_v6  ;;  %6198 = vmatmul.f32.vlgmr.msra.gmra.mxu2 %v16686_v19  ;;  %v16700_v24 = vand.u32 4294901760, %v16686_v19  ;;  %v6427_v2 = vsub.f32 %v16694_v50, %v6426_v45  ;;  %v16751_v7 = vand.u32 4294901760, %v5956_v21 }
 0x379   :  { %6321 = vmatpush.msrb.mxu1 %v16389_v62  ;;  %6399 = vmatpush.msrb.mxu3 %v6398_v40  ;;  %v6410_v62 = vand.u32 4294901760, %v6409_v14  ;;  %v6421_v63 = vsub.f32 %v16676_v29, %v6420_v42  ;;  %v6416_v54 = vand.u32 4294901760, %v6415_v15 }
 0x37a   :  { %6276 = vmatpush.msrb.mxu0 %v21633_v39  ;;  %21634 = vst [vmem:[#allocation45_spill] sm:$0xff] %v16700_v24  ;;  %6237 = vmatmul.f32.vlgmr.msra.gmra.mxu3 %v16700_v24  ;;  %v6041_v30 = vsub.f32 %v16686_v19, %v16700_v24  ;;  %v6428_v40 = vand.u32 4294901760, %v6427_v2  ;;  %v16762_v6 = vsub.f32 %v5956_v21, %v16751_v7 }
 0x37b   :  { %6323 = vmatpush.msrb.mxu1 %v16398_v46  ;;  %6405 = vmatpush.msrb.mxu3 %v6404_v27  ;;  %v21636_v46 = vand.u32 4294901760, %v16492_v51  ;;  %v5964_v51 = vld [vmem:[#allocation5 + $0x300] sm:$0xff] }
 0x37c   :  { %6280 = vmatpush.msrb.mxu0 %v21635_v36  ;;  %v16718_v56 = vand.u32 4294901760, %v6041_v30  ;;  %6356 = vmatpush.msrb.mxu2 %v16644_v60  ;;  %v16732_v14 = vand.u32 4294901760, %v5964_v51  ;;  %v21011_v15 = vand.u32 4294901760, %v16762_v6  ;;  %v5944_v36 = vld [vmem:[#allocation5 + $0x260] sm:$0xff] }
 0x37d   :  { %6325 = vmatpush.msrb.mxu1 %v16413_v38  ;;  %6411 = vmatpush.msrb.mxu3 %v6410_v62  ;;  %v6422_v38 = vand.u32 4294901760, %v6421_v63 }
 0x37e   :  { %6284 = vmatpush.msrb.mxu0 %v21636_v46  ;;  %6358 = vmatpush.msrb.mxu2 %v16657_v49  ;;  %v16739_v53 = vsub.f32 %v5964_v51, %v16732_v14  ;;  %v6445_v63 = vsub.f32 %v16762_v6, %v21011_v15 }
 0x37f   :  { %6327 = vmatpush.msrb.mxu1 %v16440_v4  ;;  %6043 = vmatmul.f32.vlgmr.msra.gmra.mxu0 %v16718_v56  ;;  %v5960_v4 = vld [vmem:[#allocation5 + $0x2e0] sm:$0xff] }
 0x380   :  { %6288 = vmatpush.msrb.mxu0 %v6115_v44  ;;  %6417 = vmatpush.msrb.mxu3 %v6416_v54  ;;  %v16785_v54 = vand.u32 4294901760, %v5944_v36 }
 0x381   :  { %6329 = vmatpush.msrb.mxu1 %v16448_v10  ;;  %6360 = vmatpush.msrb.mxu2 %v16682_v1  ;;  %v16741_v10 = vand.u32 4294901760, %v5960_v4 }
 0x382   :  { %6292 = vmatpush.msrb.mxu0 %v21637_v31  ;;  %6423 = vmatpush.msrb.mxu3 %v6422_v38  ;;  %v6446_v38 = vand.u32 4294901760, %v6445_v63  ;;  %v16798_v31 = vsub.f32 %v5944_v36, %v16785_v54 }
 0x383   :  { %6331 = vmatpush.msrb.mxu1 %v16468_v25  ;;  %6362 = vmatpush.msrb.mxu2 %v16732_v14  ;;  %v6432_v25 = vand.u32 4294901760, %v16739_v53  ;;  %v16749_v44 = vsub.f32 %v5960_v4, %v16741_v10  ;;  %v5936_v4 = vld [vmem:[#allocation5 + $0x220] sm:$0xff] }
 0x384   :  { %6296 = vmatpush.msrb.mxu0 %v6127_v43  ;;  %6429 = vmatpush.msrb.mxu3 %v6428_v40  ;;  %v5952_v43 = vld [vmem:[#allocation5 + $0x2a0] sm:$0xff] }
 0x385   :  { %6333 = vmatpush.msrb.mxu1 %v16481_v28  ;;  %6364 = vmatpush.msrb.mxu2 %v16741_v10  ;;  %v21638_v28 = vand.u32 4294901760, %v16557_v57  ;;  %v6433_v22 = vsub.f32 %v16739_v53, %v6432_v25  ;;  %v16764_v27 = vand.u32 4294901760, %v5952_v43 }
 0x386   :  { %6300 = vmatpush.msrb.mxu0 %v6133_v48  ;;  %v6438_v48 = vand.u32 4294901760, %v16749_v44 }
 0x387   :  { %6335 = vmatpush.msrb.mxu1 %v16495_v5  ;;  %v5948_v5 = vld [vmem:[#allocation5 + $0x280] sm:$0xff]  ;;  %v6434_v57 = vand.u32 4294901760, %v6433_v22  ;;  %v16774_v62 = vsub.f32 %v5952_v43, %v16764_v27  ;;  %6366 = vmatpush.msrb.mxu2 %v16751_v7  ;;  %v21003_v43 = vand.u32 4294901760, %v16798_v31  ;;  %v16809_v22 = vand.u32 4294901760, %v5936_v4 }
 0x388   :  { %6304 = vmatpush.msrb.mxu0 %v21638_v28  ;;  %v6439_v39 = vsub.f32 %v16749_v44, %v6438_v48 }
 0x389   :  { %6337 = vmatpush.msrb.mxu1 %v16508_v8  ;;  %6306 = vmatmul.f32.vlgmr.msrb.gmra.mxu0 %v16670_v33  ;;  %v16778_v8 = vand.u32 4294901760, %v5948_v5  ;;  %v21008_v46 = vand.u32 4294901760, %v16774_v62 }
 0x38a   :  { %6491 = vmatpush.msra.mxu0 %v16630_v47  ;;  %6435 = vmatpush.msrb.mxu3 %v6434_v57  ;;  %v6440_v30 = vand.u32 4294901760, %v6439_v39  ;;  %v5932_v57 = vld [vmem:[#allocation5 + $0x200] sm:$0xff]  ;;  %v6463_v39 = vsub.f32 %v16798_v31, %v21003_v43 }
 0x38b   :  { %6339 = vmatpush.msrb.mxu1 %v16522_v16  ;;  %v16789_v2 = vsub.f32 %v5948_v5, %v16778_v8  ;;  %v5940_v16 = vld [vmem:[#allocation5 + $0x240] sm:$0xff]  ;;  %6368 = vmatpush.msrb.mxu2 %v16764_v27  ;;  %v6451_v51 = vsub.f32 %v16774_v62, %v21008_v46  ;;  %v16824_v63 = vand.u32 4294901760, %v5932_v57 }
 0x38c   :  { %6494 = vmatpush.msra.mxu0 %v16633_v13  ;;  %v16800_v40 = vand.u32 4294901760, %v5940_v16  ;;  %6441 = vmatpush.msrb.mxu3 %v6440_v30  ;;  %v16822_v30 = vsub.f32 %v5936_v4, %v16809_v22 }
 0x38d   :  { %6341 = vmatpush.msrb.mxu1 %v16535_v12  ;;  %v21006_v12 = vand.u32 4294901760, %v16789_v2  ;;  %v6452_v21 = vand.u32 4294901760, %v6451_v51  ;;  %6370 = vmatpush.msrb.mxu2 %v16778_v8  ;;  %v16834_v4 = vsub.f32 %v5932_v57, %v16824_v63  ;;  %v5929_v57 = vld [vmem:[#allocation5 + $0x1e8] sm:$0xff] }
 0x38e   :  { %6343 = vmatmul.f32.vlgmr.msrb.gmra.mxu1 %v16670_v33  ;;  %6497 = vmatpush.msra.mxu0 %v16636_v23  ;;  %v16807_v28 = vsub.f32 %v5940_v16, %v16800_v40  ;;  %v21005_v43 = vand.u32 4294901760, %v16822_v30 }
 0x38f   :  { %6544 = vmatpush.msra.mxu1 %v16617_v55  ;;  %6447 = vmatpush.msrb.mxu3 %v6446_v38  ;;  %v6457_v5 = vsub.f32 %v16789_v2, %v21006_v12  ;;  %v6464_v38 = vand.u32 4294901760, %v6463_v39  ;;  %v21007_v39 = vand.u32 4294901760, %v16834_v4  ;;  %v16852_v12 = vand.u32 4294901760, %v5929_v57 }
 0x390   :  { %6500 = vmatpush.msra.mxu0 %v16642_v32  ;;  %v21004_v36 = vand.u32 4294901760, %v16807_v28  ;;  %6372 = vmatpush.msrb.mxu2 %v16785_v54 }
 0x391   :  { %6546 = vmatpush.msra.mxu1 %v16619_v61  ;;  %6453 = vmatpush.msrb.mxu3 %v6452_v21  ;;  %v6458_v16 = vand.u32 4294901760, %v6457_v5  ;;  %v6475_v5 = vsub.f32 %v16822_v30, %v21005_v43  ;;  %v16866_v47 = vsub.f32 %v5929_v57, %v16852_v12  ;;  %v5905_v57 = vld [vmem:[#allocation5 + $0x128] sm:$0xff] }
 0x392   :  { %6503 = vmatpush.msra.mxu0 %v16655_v34  ;;  %v6469_v51 = vsub.f32 %v16807_v28, %v21004_v36  ;;  %6374 = vmatpush.msrb.mxu2 %v16800_v40 }
 0x393   :  { %6548 = vmatpush.msra.mxu1 %v16621_v35  ;;  %6459 = vmatpush.msrb.mxu3 %v6458_v16  ;;  %v6476_v36 = vand.u32 4294901760, %v6475_v5  ;;  %v6481_v16 = vsub.f32 %v16834_v4, %v21007_v39  ;;  %v21010_v23 = vand.u32 4294901760, %v16866_v47  ;;  %v21639_v39 = vld [vmem:[#allocation59_spill] sm:$0xff] }
 0x394   :  { %6506 = vmatpush.msra.mxu0 %v16676_v29  ;;  %v6470_v21 = vand.u32 4294901760, %v6469_v51  ;;  %6376 = vmatpush.msrb.mxu2 %v16809_v22  ;;  %v5925_v51 = vld [vmem:[#allocation5 + $0x1c8] sm:$0xff] }
 0x395   :  { %6550 = vmatpush.msra.mxu1 %v16626_v9  ;;  %6465 = vmatpush.msrb.mxu3 %v6464_v38  ;;  %v6482_v43 = vand.u32 4294901760, %v6481_v16  ;;  %v5921_v38 = vld [vmem:[#allocation5 + $0x1a8] sm:$0xff]  ;;  %v16858_v5 = vand.u32 4294901760, %v5925_v51  ;;  %v377_v16 = vperm.slane %v16320_v11, 1 }
 0x396   :  { %6509 = vmatpush.msra.mxu0 %v16694_v50  ;;  %6378 = vmatpush.msrb.mxu2 %v16824_v63  ;;  %v12026_v50 = vld [vmem:[%s20811_s5] sm:$0xff] }
 0x397   :  { %6552 = vmatpush.msra.mxu1 %v16644_v60  ;;  %6471 = vmatpush.msrb.mxu3 %v6470_v21  ;;  %v5917_v21 = vld [vmem:[#allocation5 + $0x188] sm:$0xff]  ;;  %v16876_v13 = vsub.f32 %v5925_v51, %v16858_v5  ;;  %v381_v51 = vperm.slane %v16320_v11, 5 }
 0x398   :  { %6512 = vmatpush.msra.mxu0 %v16739_v53  ;;  %6585 = vmatpush.msra.mxu2 %v6390_v52  ;;  %v16868_v52 = vand.u32 4294901760, %v5921_v38 }
 0x399   :  { %6554 = vmatpush.msra.mxu1 %v16657_v49  ;;  %6477 = vmatpush.msrb.mxu3 %v6476_v36  ;;  %v5913_v36 = vld [vmem:[#allocation5 + $0x168] sm:$0xff] }
 0x39a   :  { %6515 = vmatpush.msra.mxu0 %v16749_v44  ;;  %6589 = vmatpush.msra.mxu2 %v6396_v58  ;;  %v16878_v58 = vand.u32 4294901760, %v5917_v21 }
 0x39b   :  { %6556 = vmatpush.msra.mxu1 %v16682_v1  ;;  %6483 = vmatpush.msrb.mxu3 %v6482_v43  ;;  %v5909_v43 = vld [vmem:[#allocation5 + $0x148] sm:$0xff] }
 0x39c   :  { %6518 = vmatpush.msra.mxu0 %v16762_v6  ;;  %6593 = vmatpush.msra.mxu2 %v6402_v0  ;;  %v16890_v0 = vand.u32 4294901760, %v5913_v36  ;;  %v16901_v32 = vsub.f32 %v5917_v21, %v16878_v58 }
 0x39d   :  { %6558 = vmatpush.msra.mxu1 %v16732_v14  ;;  %6652 = vmatpush.msra.mxu3 %v16617_v55  ;;  %v379_v55 = vperm.slane %v16320_v11, 3  ;;  %v16907_v11 = vand.u32 4294901760, %v5905_v57 }
 0x39e   :  { %6521 = vmatpush.msra.mxu0 %v16774_v62  ;;  %6597 = vmatpush.msra.mxu2 %v6408_v20  ;;  %v16903_v20 = vand.u32 4294901760, %v5909_v43 }
 0x39f   :  { %6560 = vmatpush.msra.mxu1 %v16741_v10  ;;  %6654 = vmatpush.msra.mxu3 %v16619_v61  ;;  %v16888_v61 = vsub.f32 %v5921_v38, %v16868_v52  ;;  %v5901_v38 = vld [vmem:[#allocation5 + $0x108] sm:$0xff]  ;;  %v2483_v46 = vadd.f32 %v21639_v39, %v379_v55  ;;  %v21640_v39 = vld [vmem:[#allocation35_spill] sm:$0xff]  ;;  %v3847_v55 = vadd.f32 %v16267_v17, %v381_v51 }
 0x3a0   :  { %6524 = vmatpush.msra.mxu0 %v16789_v2  ;;  %6601 = vmatpush.msra.mxu2 %v6414_v18  ;;  %v16918_v18 = vsub.f32 %v5913_v36, %v16890_v0  ;;  %v1119_v21 = vadd.f32 %v21640_v39, %v377_v16  ;;  %v16923_v29 = vand.u32 4294901760, %v5901_v38  ;;  %v21013_v36 = vand.u32 4294901760, %v16901_v32  ;;  %v21641_v16 = vld [vmem:[#allocation62_spill] sm:$0xff] }
 0x3a1   :  { %6562 = vmatpush.msra.mxu1 %v16751_v7  ;;  %6656 = vmatpush.msra.mxu3 %v16621_v35  ;;  %v21009_v35 = vand.u32 4294901760, %v16876_v13  ;;  %v21012_v34 = vand.u32 4294901760, %v16888_v61  ;;  %v16934_v17 = vsub.f32 %v5909_v43, %v16903_v20  ;;  %v2584_v51 = vadd.f32 %v21641_v16, %v2483_v46 }
 0x3a2   :  { %6527 = vmatpush.msra.mxu0 %v16798_v31  ;;  %6605 = vmatpush.msra.mxu2 %v6420_v42  ;;  %v5897_v42 = vld [vmem:[#allocation5 + $0xe8] sm:$0xff]  ;;  %v16943_v39 = vsub.f32 %v5905_v57, %v16907_v11  ;;  %v3948_v57 = vadd.f32 %v16281_v59, %v3847_v55  ;;  %v6750_v46 = vsub.f32 %v16901_v32, %v21013_v36  ;;  %v21643_v59 = vld [vmem:[#allocation63_spill] sm:$0xff]  ;;  %v21644_v36 = vand.u32 4294901760, %v16918_v18 }
 0x3a3   :  { %6564 = vmatpush.msra.mxu1 %v16764_v27  ;;  %6658 = vmatpush.msra.mxu3 %v16626_v9  ;;  %v6732_v9 = vsub.f32 %v16866_v47, %v21010_v23  ;;  %v6744_v43 = vsub.f32 %v16888_v61, %v21012_v34  ;;  %v16950_v16 = vand.u32 4294901760, %v5897_v42  ;;  %v5889_v34 = vld [vmem:[#allocation5 + $0xa8] sm:$0xff] }
 0x3a4   :  { %6530 = vmatpush.msra.mxu0 %v16807_v28  ;;  %6609 = vmatpush.msra.mxu2 %v6426_v45  ;;  %v383_v45 = vperm.slane %v12026_v50, 7  ;;  %v21642_v50 = vld [vmem:[#allocation36_spill] sm:$0xff]  ;;  %v6756_v53 = vsub.f32 %v16918_v18, %v21644_v36  ;;  %v6751_v36 = vand.u32 4294901760, %v6750_v46  ;;  %v21649_v46 = vand.u32 4294901760, %v16774_v62 }
 0x3a5   :  { %6566 = vmatpush.msra.mxu1 %v16778_v8  ;;  %6660 = vmatpush.msra.mxu3 %v16644_v60  ;;  %v6738_v60 = vsub.f32 %v16876_v13, %v21009_v35  ;;  %v5210_v35 = vpop.f32.mrf.mxu0  ;;  %v6733_v23 = vand.u32 4294901760, %v6732_v9  ;;  %v1220_v15 = vadd.f32 %v21642_v50, %v1119_v21  ;;  %v16959_v9 = vsub.f32 %v5901_v38, %v16923_v29 }
 0x3a6   :  { %6533 = vmatpush.msra.mxu0 %v16822_v30  ;;  %6613 = vmatpush.msra.mxu2 %v6432_v25  ;;  %v2638_v21 = vadd.f32 %v21643_v59, %v2584_v51  ;;  %v5211_v55 = vadd.f32 %v5210_v35, %v383_v45  ;;  %v21014_v38 = vand.u32 4294901760, %v16943_v39  ;;  %v16979_v44 = vsub.f32 %v5897_v42, %v16950_v16  ;;  %v21645_v35 = vld [vmem:[#allocation23_spill] sm:$0xff]  ;;  %v5881_v59 = vld [vmem:[#allocation5 + $0x68] sm:$0xff] }
 0x3a7   :  { %6568 = vmatpush.msra.mxu1 %v16785_v54  ;;  %6662 = vmatpush.msra.mxu3 %v16657_v49  ;;  %v5893_v49 = vld [vmem:[#allocation5 + $0xc8] sm:$0xff]  ;;  %v1274_v51 = vadd.f32 %v21645_v35, %v1220_v15  ;;  %v4002_v45 = vadd.f32 %v16292_v41, %v3948_v57  ;;  %v21651_v62 = vand.u32 4294901760, %v16959_v9 }
 0x3a8   :  { %6536 = vmatpush.msra.mxu0 %v16834_v4  ;;  %v16966_v25 = vand.u32 4294901760, %v5893_v49  ;;  %6617 = vmatpush.msra.mxu2 %v6438_v48  ;;  %v16981_v48 = vand.u32 4294901760, %v5889_v34  ;;  %v21648_v57 = vld [vmem:[#allocation65_spill] sm:$0xff] }
 0x3a9   :  { %6570 = vmatpush.msra.mxu1 %v16800_v40  ;;  %6664 = vmatpush.msra.mxu3 %v16682_v1  ;;  %v6739_v1 = vand.u32 4294901760, %v6738_v60  ;;  %v5885_v60 = vld [vmem:[#allocation5 + $0x88] sm:$0xff]  ;;  %v5311_v50 = vpop.f32.mrf.mxu1  ;;  %v2677_v35 = vadd.f32 %v21648_v57, %v2638_v21  ;;  %v4041_v57 = vadd.f32 %v16305_v3, %v4002_v45 }
 0x3aa   :  { %6689 = vmatpush.msrb.mxu0 %v16852_v12  ;;  %v16994_v15 = vsub.f32 %v5893_v49, %v16966_v25  ;;  %v16996_v41 = vand.u32 4294901760, %v5885_v60  ;;  %v6779_v49 = vand.u32 4294901760, %v16979_v44  ;;  %v17008_v21 = vsub.f32 %v5889_v34, %v16981_v48  ;;  %v21653_v45 = vld [vmem:[#allocation64_spill] sm:$0xff] }
 0x3ab   :  { %6572 = vmatpush.msra.mxu1 %v16809_v22  ;;  %6666 = vmatpush.msra.mxu3 %v16732_v14  ;;  %v6745_v14 = vand.u32 4294901760, %v6744_v43  ;;  %v21646_v43 = vand.u32 4294901760, %v16762_v6  ;;  %v6768_v6 = vsub.f32 %v16943_v39, %v21014_v38 }
 0x3ac   :  { %6691 = vmatpush.msrb.mxu0 %v16858_v5  ;;  %v6785_v34 = vand.u32 4294901760, %v16994_v15 }
 0x3ad   :  { %6574 = vmatpush.msra.mxu1 %v16824_v63  ;;  %6668 = vmatpush.msra.mxu3 %v16741_v10  ;;  %v21647_v10 = vand.u32 4294901760, %v16934_v17 }
 0x3ae   :  { %6693 = vmatpush.msrb.mxu0 %v16868_v52  ;;  %6621 = vmatpush.msra.mxu2 %v21646_v43  ;;  %v5365_v43 = vpop.f32.mrf.mxu2 }
 0x3af   :  { %6734 = vmatpush.msrb.mxu1 %v6733_v23  ;;  %v6762_v42 = vsub.f32 %v16934_v17, %v21647_v10  ;;  %6670 = vmatpush.msra.mxu3 %v16751_v7  ;;  %v5312_v23 = vadd.f32 %v5311_v50, %v5211_v55  ;;  %v6757_v7 = vand.u32 4294901760, %v6756_v53  ;;  %v17010_v55 = vand.u32 4294901760, %v5881_v59  ;;  %v21650_v50 = vld [vmem:[#allocation38_spill] sm:$0xff] }
 0x3b0   :  { %6695 = vmatpush.msrb.mxu0 %v16878_v58  ;;  %6625 = vmatpush.msra.mxu2 %v21649_v46  ;;  %v1313_v10 = vadd.f32 %v21650_v50, %v1274_v51  ;;  %v21652_v53 = vand.u32 4294901760, %v16789_v2  ;;  %v17023_v51 = vsub.f32 %v5885_v60, %v16996_v41  ;;  %v2746_v50 = vadd.f32 %v21653_v45, %v2677_v35 }
 0x3b1   :  { %6740 = vmatpush.msrb.mxu1 %v6739_v1  ;;  %v5877_v1 = vld [vmem:[#allocation5 + $0x48] sm:$0xff]  ;;  %6672 = vmatpush.msra.mxu3 %v16764_v27  ;;  %v6763_v46 = vand.u32 4294901760, %v6762_v42  ;;  %v5366_v38 = vadd.f32 %v5365_v43, %v5312_v23  ;;  %v21654_v2 = vand.u32 4294901760, %v16798_v31  ;;  %v5404_v42 = vpop.f32.mrf.mxu3  ;;  %v21020_v60 = vand.u32 4294901760, %v17008_v21 }
 0x3b2   :  { %6697 = vmatpush.msrb.mxu0 %v16890_v0  ;;  %6629 = vmatpush.msra.mxu2 %v21652_v53  ;;  %v5873_v27 = vld [vmem:[#allocation5 + $0x28] sm:$0xff]  ;;  %v17025_v3 = vand.u32 4294901760, %v5877_v1  ;;  %v17037_v35 = vsub.f32 %v5881_v59, %v17010_v55  ;;  %v4110_v31 = vadd.f32 %v16299_v26, %v4041_v57  ;;  %v21656_v53 = vand.u32 4294901760, %v16807_v28  ;;  %v21657_v26 = vld [vmem:[#allocation66_spill] sm:$0xff] }
 0x3b3   :  { %6746 = vmatpush.msrb.mxu1 %v6745_v14  ;;  %v6774_v14 = vsub.f32 %v16959_v9, %v21651_v62  ;;  %6674 = vmatpush.msra.mxu3 %v16778_v8  ;;  %v6769_v62 = vand.u32 4294901760, %v6768_v6  ;;  %v6780_v8 = vsub.f32 %v16979_v44, %v6779_v49  ;;  %v17039_v23 = vand.u32 4294901760, %v5873_v27  ;;  %v21655_v6 = vld [vmem:[#allocation37_spill] sm:$0xff] }
 0x3b4   :  { %6699 = vmatpush.msrb.mxu0 %v16903_v20  ;;  %6633 = vmatpush.msra.mxu2 %v21654_v2  ;;  %v1382_v43 = vadd.f32 %v21655_v6, %v1313_v10  ;;  %v21019_v59 = vand.u32 4294901760, %v17023_v51  ;;  %v17052_v45 = vsub.f32 %v5877_v1, %v17025_v3  ;;  %v2783_v57 = vadd.f32 %v21657_v26, %v2746_v50 }
 0x3b5   :  { %6752 = vmatpush.msrb.mxu1 %v6751_v36  ;;  %v5869_v36 = vld [vmem:[#allocation5 + $0x8] sm:$0xff]  ;;  %6676 = vmatpush.msra.mxu3 %v16785_v54  ;;  %v6786_v54 = vsub.f32 %v16994_v15, %v6785_v34  ;;  %v21658_v28 = vand.u32 4294901760, %v16822_v30  ;;  %v6781_v2 = vand.u32 4294901760, %v6780_v8  ;;  %v21017_v1 = vand.u32 4294901760, %v17037_v35 }
 0x3b6   :  { %6701 = vmatpush.msrb.mxu0 %v16907_v11  ;;  %6637 = vmatpush.msra.mxu2 %v21656_v53  ;;  %v17054_v10 = vand.u32 4294901760, %v5869_v36  ;;  %v17066_v6 = vsub.f32 %v5873_v27, %v17039_v23  ;;  %v21660_v30 = vand.u32 4294901760, %v16834_v4  ;;  %v21015_v27 = vand.u32 4294901760, %v17052_v45  ;;  %v5510_v4 = vpop.f32.mrf.mxu1 }
 0x3b7   :  { %6758 = vmatpush.msrb.mxu1 %v6757_v7  ;;  %v6775_v7 = vand.u32 4294901760, %v6774_v14  ;;  %6678 = vmatpush.msra.mxu3 %v16800_v40  ;;  %v5405_v14 = vadd.f32 %v5404_v42, %v5366_v38  ;;  %v6792_v40 = vsub.f32 %v17008_v21, %v21020_v60  ;;  %v21659_v38 = vld [vmem:[#allocation39_spill] sm:$0xff]  ;;  %v4147_v42 = vadd.f32 %v16312_v37, %v4110_v31 }
 0x3b8   :  { %6703 = vmatpush.msrb.mxu0 %v16923_v29  ;;  %6641 = vmatpush.msra.mxu2 %v21658_v28  ;;  %v1419_v50 = vadd.f32 %v21659_v38, %v1382_v43  ;;  %v17079_v8 = vsub.f32 %v5869_v36, %v17054_v10  ;;  %v21661_v37 = vld [vmem:[#allocation67_spill] sm:$0xff]  ;;  %v6804_v53 = vsub.f32 %v17037_v35, %v21017_v1  ;;  %v21663_v36 = vld [vmem:[#allocation18_spill] sm:$0xff] }
 0x3b9   :  { %6764 = vmatpush.msrb.mxu1 %v6763_v46  ;;  %v5473_v46 = vpop.f32.mrf.mxu0  ;;  %6680 = vmatpush.msra.mxu3 %v16809_v22  ;;  %v6798_v22 = vsub.f32 %v17023_v51, %v21019_v59  ;;  %v2824_v31 = vadd.f32 %v21661_v37, %v2783_v57  ;;  %v4188_v28 = vadd.f32 %v21663_v36, %v4147_v42  ;;  %v21666_v37 = vld [vmem:[#allocation68_spill] sm:$0xff]  ;;  %v21667_v36 = vld [vmem:[#allocation57_spill] sm:$0xff]  ;;  %v5652_v1 = vpop.f32.mrf.mxu3 }
 0x3ba   :  { %6705 = vmatpush.msrb.mxu0 %v16950_v16  ;;  %6645 = vmatpush.msra.mxu2 %v21660_v30  ;;  %v5474_v43 = vadd.f32 %v5473_v46, %v5405_v14  ;;  %v6810_v57 = vsub.f32 %v17052_v45, %v21015_v27  ;;  %v21018_v46 = vand.u32 4294901760, %v17079_v8  ;;  %v5551_v30 = vpop.f32.mrf.mxu2 }
 0x3bb   :  { %6770 = vmatpush.msrb.mxu1 %v6769_v62  ;;  %v6787_v62 = vand.u32 4294901760, %v6786_v54  ;;  %6682 = vmatpush.msra.mxu3 %v16824_v63  ;;  %v21016_v54 = vand.u32 4294901760, %v17066_v6  ;;  %v21662_v63 = vld [vmem:[#allocation40_spill] sm:$0xff]  ;;  %v6799_v14 = vand.u32 4294901760, %v6798_v22  ;;  %v4289_v27 = vadd.f32 %v21667_v36, %v4188_v28  ;;  %v21671_v28 = vld [vmem:[#allocation43_spill] sm:$0xff] }
 0x3bc   :  { %6707 = vmatpush.msrb.mxu0 %v16966_v25  ;;  %v1460_v26 = vadd.f32 %v21662_v63, %v1419_v50  ;;  %v6805_v50 = vand.u32 4294901760, %v6804_v53 }
 0x3bd   :  { %6776 = vmatpush.msrb.mxu1 %v6775_v7  ;;  %v6793_v7 = vand.u32 4294901760, %v6792_v40  ;;  %v21664_v40 = vld [vmem:[#allocation69_spill] sm:$0xff]  ;;  %v6816_v42 = vsub.f32 %v17066_v6, %v21016_v54 }
 0x3be   :  { %6709 = vmatpush.msrb.mxu0 %v16981_v48  ;;  %v2925_v38 = vadd.f32 %v21664_v40, %v2824_v31  ;;  %v6822_v31 = vsub.f32 %v17079_v8, %v21018_v46  ;;  %v21669_v40 = vld [vmem:[#allocation70_spill] sm:$0xff]  ;;  %v21673_v46 = vld [vmem:[#allocation71_spill] sm:$0xff] }
 0x3bf   :  { %6782 = vmatpush.msrb.mxu1 %v6781_v2  ;;  %v5511_v2 = vadd.f32 %v5510_v4, %v5474_v43  ;;  %v6811_v43 = vand.u32 4294901760, %v6810_v57  ;;  %v21672_v57 = vld [vmem:[#allocation17_spill] sm:$0xff] }
 0x3c0   :  { %6711 = vmatpush.msrb.mxu0 %v16996_v41  ;;  %v2979_v63 = vadd.f32 %v21666_v37, %v2925_v38  ;;  %v6817_v38 = vand.u32 4294901760, %v6816_v42 }
 0x3c1   :  { %6788 = vmatpush.msrb.mxu1 %v6787_v62  ;;  %v21665_v62 = vld [vmem:[#allocation42_spill] sm:$0xff]  ;;  %v5552_v4 = vadd.f32 %v5551_v30, %v5511_v2  ;;  %v6823_v2 = vand.u32 4294901760, %v6822_v31 }
 0x3c2   :  { %6713 = vmatpush.msrb.mxu0 %v17010_v55  ;;  %v1561_v22 = vadd.f32 %v21665_v62, %v1460_v26  ;;  %v3018_v54 = vadd.f32 %v21669_v40, %v2979_v63  ;;  %v21670_v26 = vld [vmem:[#allocation56_spill] sm:$0xff] }
 0x3c3   :  { %6794 = vmatpush.msrb.mxu1 %v6793_v7  ;;  %v21668_v7 = vld [vmem:[#allocation41_spill] sm:$0xff]  ;;  %v4343_v62 = vadd.f32 %v21670_v26, %v4289_v27  ;;  %v5706_v36 = vpop.f32.mrf.mxu0  ;;  %v5653_v30 = vadd.f32 %v5652_v1, %v5552_v4  ;;  %v21674_v63 = vld [vmem:[#allocation44_spill] sm:$0xff] }
 0x3c4   :  { %6715 = vmatpush.msrb.mxu0 %v17025_v3  ;;  %v1615_v53 = vadd.f32 %v21668_v7, %v1561_v22  ;;  %v3087_v59 = vadd.f32 %v21673_v46, %v3018_v54  ;;  %v21675_v27 = vld [vmem:[#allocation60_spill] sm:$0xff] }
 0x3c5   :  { %6800 = vmatpush.msrb.mxu1 %v6799_v14  ;;  %v4382_v37 = vadd.f32 %v21672_v57, %v4343_v62  ;;  %v5707_v22 = vadd.f32 %v5706_v36, %v5653_v30  ;;  %v21676_v26 = vld [vmem:[#allocation72_spill] sm:$0xff] }
 0x3c6   :  { %6717 = vmatpush.msrb.mxu0 %v17039_v23  ;;  %v1654_v14 = vadd.f32 %v21671_v28, %v1615_v53  ;;  %v3124_v60 = vadd.f32 %v21676_v26, %v3087_v59  ;;  %v21677_v28 = vld [vmem:[#allocation46_spill] sm:$0xff]  ;;  %v21678_v57 = vld [vmem:[#allocation16_spill] sm:$0xff]  ;;  %v21681_v59 = vand.u32 4294901760, %v16866_v47 }
 0x3c7   :  { %6806 = vmatpush.msrb.mxu1 %v6805_v50  ;;  %v4451_v40 = vadd.f32 %v21675_v27, %v4382_v37 }
 0x3c8   :  { %6719 = vmatpush.msrb.mxu0 %v17054_v10  ;;  %v1723_v7 = vadd.f32 %v21674_v63, %v1654_v14  ;;  %v5857_v4 = vmax.f32 %v3124_v60, 0.0 }
 0x3c9   :  { %6812 = vmatpush.msrb.mxu1 %v6811_v43  ;;  %v4488_v43 = vadd.f32 %v21678_v57, %v4451_v40  ;;  %v21684_v40 = vand.u32 4294901760, %v16888_v61 }
 0x3ca   :  { %v1760_v62 = vadd.f32 %v21677_v28, %v1723_v7  ;;  %v21682_v7 = vand.u32 4294901760, %v16876_v13 }
 0x3cb   :  { %6818 = vmatpush.msrb.mxu1 %v6817_v38  ;;  %v5745_v50 = vpop.f32.mrf.mxu1  ;;  %v5859_v38 = vmax.f32 %v4488_v43, 0.0  ;;  %v21691_v43 = vand.u32 4294901760, %v17023_v51 }
 0x3cc   :  { %v5746_v42 = vadd.f32 %v5745_v50, %v5707_v22  ;;  %v5855_v46 = vmax.f32 %v1760_v62, 0.0  ;;  %v21685_v50 = vand.u32 4294901760, %v16901_v32  ;;  %v21690_v62 = vand.u32 4294901760, %v17008_v21 }
 0x3cd   :  { %6824 = vmatpush.msrb.mxu1 %v6823_v2 }
 0x3ce   :  { %v5814_v53 = vpop.f32.mrf.mxu2  ;;  %v5863_v14 = vmax.f32 %v5855_v46, %v5857_v4  ;;  %v21692_v4 = vand.u32 4294901760, %v17037_v35 }
 0x3cf   :  { %v5815_v31 = vadd.f32 %v5814_v53, %v5746_v42  ;;  %v5851_v1 = vpop.f32.mrf.mxu3  ;;  %v5985_v42 = vld [vmem:[#allocation5 + $0x3a8] sm:$0xff] }
 0x3d0   :  { %v17183_v53 = vand.u32 4294901760, %v5985_v42 }
 0x3d1   :  { %v5852_v54 = vadd.f32 %v5851_v1, %v5815_v31 }
 0x3d3   :  { %v5861_v36 = vmax.f32 %v5852_v54, 0.0 }
 0x3d5   :  { %v5865_v30 = vmax.f32 %v5859_v38, %v5861_v36  ;;  %v5961_v38 = vld [vmem:[#allocation5 + $0x2e8] sm:$0xff]  ;;  %v21693_v36 = vand.u32 4294901760, %v17052_v45 }
 0x3d7   :  { %v5867_v37 = vmax.f32 %v5863_v14, %v5865_v30 }
 0x3d9   :  { %v17119_v63 = vand.u32 4294901760, %v5867_v37 }
 0x3db   :  { %v17122_v2 = vsub.f32 %v5867_v37, %v17119_v63  ;;  %6485 = vmatmul.f32.vlgmr.msrb.gmra.mxu3 %v17119_v63 }
 0x3dc   :  { %6885 = vmatpush.msrb.mxu3 %v16852_v12 }
 0x3dd   :  { %21679 = vst [vmem:[#allocation24_spill] sm:$0xff] %v17122_v2  ;;  %6539 = vmatmul.f32.vlgmr.msra.gmra.mxu0 %v17122_v2  ;;  %v17128_v60 = vand.u32 4294901760, %v17122_v2 }
 0x3de   :  { %6887 = vmatpush.msrb.mxu3 %v16858_v5  ;;  %6926 = vmatpush.msra.mxu0 %v21681_v59  ;;  %v17259_v59 = vand.u32 4294901760, %v5961_v38 }
 0x3df   :  { %21680 = vst [vmem:[#allocation47_spill] sm:$0xff] %v17128_v60  ;;  %6578 = vmatmul.f32.vlgmr.msra.gmra.mxu1 %v17128_v60  ;;  %v6382_v22 = vsub.f32 %v17122_v2, %v17128_v60 }
 0x3e0   :  { %6889 = vmatpush.msrb.mxu3 %v16868_v52  ;;  %6930 = vmatpush.msra.mxu0 %v21682_v7 }
 0x3e1   :  { %6993 = vmatpush.msra.mxu1 %v16852_v12  ;;  %v17140_v27 = vand.u32 4294901760, %v6382_v22  ;;  %v21686_v12 = vand.u32 4294901760, %v16918_v18  ;;  %v21694_v22 = vand.u32 4294901760, %v17066_v6 }
 0x3e2   :  { %6891 = vmatpush.msrb.mxu3 %v16878_v58  ;;  %6934 = vmatpush.msra.mxu0 %v21684_v40 }
 0x3e3   :  { %21683 = vst [vmem:[#allocation25_spill] sm:$0xff] %v17140_v27  ;;  %6995 = vmatpush.msra.mxu1 %v16858_v5  ;;  %6384 = vmatmul.f32.vlgmr.msrb.gmra.mxu2 %v17140_v27  ;;  %v5993_v5 = vld [vmem:[#allocation5 + $0x3e8] sm:$0xff] }
 0x3e4   :  { %6684 = vmatmul.f32.vlgmr.msra.gmra.mxu3 %v17119_v63  ;;  %6832 = vmatpush.msrb.mxu2 %v16866_v47  ;;  %v21687_v47 = vand.u32 4294901760, %v16934_v17 }
 0x3e5   :  { %6893 = vmatpush.msrb.mxu3 %v16890_v0  ;;  %6938 = vmatpush.msra.mxu0 %v21685_v50  ;;  %v5953_v50 = vld [vmem:[#allocation5 + $0x2a8] sm:$0xff] }
 0x3e6   :  { %6997 = vmatpush.msra.mxu1 %v16868_v52  ;;  %6725 = vmatmul.f32.vlgmr.msrb.gmra.mxu0 %v16718_v56  ;;  %v5989_v52 = vld [vmem:[#allocation5 + $0x3c8] sm:$0xff] }
 0x3e7   :  { %6835 = vmatpush.msrb.mxu2 %v16876_v13  ;;  %6895 = vmatpush.msrb.mxu3 %v16903_v20  ;;  %v17166_v13 = vand.u32 4294901760, %v5993_v5 }
 0x3e8   :  { %6942 = vmatpush.msra.mxu0 %v21686_v12  ;;  %6999 = vmatpush.msra.mxu1 %v16878_v58  ;;  %v21688_v58 = vand.u32 4294901760, %v16943_v39 }
 0x3e9   :  { %6826 = vmatmul.f32.vlgmr.msrb.gmra.mxu1 %v16670_v33  ;;  %6838 = vmatpush.msrb.mxu2 %v16888_v61  ;;  %v17173_v61 = vand.u32 4294901760, %v5989_v52  ;;  %v17181_v26 = vsub.f32 %v5993_v5, %v17166_v13 }
 0x3ea   :  { %6897 = vmatpush.msrb.mxu3 %v16907_v11  ;;  %6946 = vmatpush.msra.mxu0 %v21687_v47 }
 0x3eb   :  { %7001 = vmatpush.msra.mxu1 %v16890_v0  ;;  %6841 = vmatpush.msrb.mxu2 %v16901_v32  ;;  %v5981_v0 = vld [vmem:[#allocation5 + $0x388] sm:$0xff]  ;;  %v21689_v32 = vand.u32 4294901760, %v16959_v9 }
 0x3ec   :  { %6899 = vmatpush.msrb.mxu3 %v16923_v29  ;;  %6950 = vmatpush.msra.mxu0 %v21688_v58  ;;  %v17193_v28 = vand.u32 4294901760, %v5981_v0  ;;  %v5949_v58 = vld [vmem:[#allocation5 + $0x288] sm:$0xff] }
 0x3ed   :  { %7003 = vmatpush.msra.mxu1 %v16903_v20  ;;  %6647 = vmatmul.f32.vlgmr.msra.gmra.mxu2 %v17119_v63  ;;  %v5977_v20 = vld [vmem:[#allocation5 + $0x368] sm:$0xff] }
 0x3ee   :  { %6844 = vmatpush.msrb.mxu2 %v16918_v18  ;;  %6901 = vmatpush.msrb.mxu3 %v16950_v16  ;;  %v17191_v18 = vsub.f32 %v5989_v52, %v17173_v61 }
 0x3ef   :  { %6954 = vmatpush.msra.mxu0 %v21689_v32  ;;  %7005 = vmatpush.msra.mxu1 %v16907_v11  ;;  %v21037_v11 = vand.u32 4294901760, %v17181_v26 }
 0x3f0   :  { %6847 = vmatpush.msrb.mxu2 %v16934_v17  ;;  %6903 = vmatpush.msrb.mxu3 %v16966_v25  ;;  %v17202_v17 = vsub.f32 %v5985_v42, %v17183_v53  ;;  %v17286_v42 = vand.u32 4294901760, %v5953_v50 }
 0x3f1   :  { %6958 = vmatpush.msra.mxu0 %v6779_v49  ;;  %7007 = vmatpush.msra.mxu1 %v16923_v29  ;;  %v17204_v29 = vand.u32 4294901760, %v5977_v20  ;;  %v5973_v49 = vld [vmem:[#allocation5 + $0x348] sm:$0xff] }
 0x3f2   :  { %6850 = vmatpush.msrb.mxu2 %v16943_v39  ;;  %6905 = vmatpush.msrb.mxu3 %v16981_v48  ;;  %v5969_v39 = vld [vmem:[#allocation5 + $0x328] sm:$0xff]  ;;  %v17217_v57 = vand.u32 4294901760, %v5973_v49  ;;  %v21034_v31 = vand.u32 4294901760, %v17202_v17 }
 0x3f3   :  { %6962 = vmatpush.msra.mxu0 %v6785_v34  ;;  %7009 = vmatpush.msra.mxu1 %v16950_v16  ;;  %v21036_v16 = vand.u32 4294901760, %v17191_v18  ;;  %v17213_v34 = vsub.f32 %v5981_v0, %v17193_v28  ;;  %v17227_v1 = vsub.f32 %v5977_v20, %v17204_v29  ;;  %v5945_v20 = vld [vmem:[#allocation5 + $0x268] sm:$0xff] }
 0x3f4   :  { %6853 = vmatpush.msrb.mxu2 %v16959_v9  ;;  %6907 = vmatpush.msrb.mxu3 %v16996_v41  ;;  %v5965_v9 = vld [vmem:[#allocation5 + $0x308] sm:$0xff]  ;;  %v7085_v14 = vsub.f32 %v17202_v17, %v21034_v31 }
 0x3f5   :  { %6966 = vmatpush.msra.mxu0 %v21690_v62  ;;  %7011 = vmatpush.msra.mxu1 %v16966_v25  ;;  %v7073_v25 = vsub.f32 %v17181_v26, %v21037_v11  ;;  %v21033_v54 = vand.u32 4294901760, %v17213_v34  ;;  %v17240_v46 = vand.u32 4294901760, %v5965_v9  ;;  %v21032_v30 = vand.u32 4294901760, %v17227_v1 }
 0x3f6   :  { %6856 = vmatpush.msrb.mxu2 %v16979_v44  ;;  %6909 = vmatpush.msrb.mxu3 %v17010_v55  ;;  %v17229_v44 = vand.u32 4294901760, %v5969_v39  ;;  %v7086_v5 = vand.u32 4294901760, %v7085_v14 }
 0x3f7   :  { %6970 = vmatpush.msra.mxu0 %v21691_v43  ;;  %7013 = vmatpush.msra.mxu1 %v16981_v48  ;;  %v7079_v48 = vsub.f32 %v17191_v18, %v21036_v16  ;;  %v7091_v7 = vsub.f32 %v17213_v34, %v21033_v54  ;;  %v17268_v40 = vsub.f32 %v5965_v9, %v17240_v46 }
 0x3f8   :  { %6859 = vmatpush.msrb.mxu2 %v16994_v15  ;;  %6911 = vmatpush.msrb.mxu3 %v17025_v3  ;;  %v17245_v15 = vsub.f32 %v5973_v49, %v17217_v57  ;;  %v17255_v37 = vsub.f32 %v5969_v39, %v17229_v44  ;;  %v7097_v47 = vsub.f32 %v17227_v1, %v21032_v30  ;;  %v17298_v39 = vand.u32 4294901760, %v5949_v58  ;;  %v5902_v30 = vld [vmem:[#allocation5 + $0x110] sm:$0xff] }
 0x3f9   :  { %6974 = vmatpush.msra.mxu0 %v21692_v4  ;;  %7015 = vmatpush.msra.mxu1 %v16996_v41  ;;  %v7074_v41 = vand.u32 4294901760, %v7073_v25  ;;  %v7092_v0 = vand.u32 4294901760, %v7091_v7  ;;  %v21029_v32 = vand.u32 4294901760, %v17268_v40  ;;  %v17308_v43 = vsub.f32 %v5953_v50, %v17286_v42 }
 0x3fa   :  { %6862 = vmatpush.msrb.mxu2 %v17008_v21  ;;  %6913 = vmatpush.msrb.mxu3 %v17039_v23  ;;  %v5957_v21 = vld [vmem:[#allocation5 + $0x2c8] sm:$0xff]  ;;  %v21030_v52 = vand.u32 4294901760, %v17255_v37  ;;  %v7098_v62 = vand.u32 4294901760, %v7097_v47  ;;  %v17310_v25 = vand.u32 4294901760, %v5945_v20  ;;  %v17454_v16 = vand.u32 4294901760, %v5902_v30 }
 0x3fb   :  { %6978 = vmatpush.msra.mxu0 %v21693_v36  ;;  %7017 = vmatpush.msra.mxu1 %v17010_v55  ;;  %v7080_v55 = vand.u32 4294901760, %v7079_v48  ;;  %v17273_v12 = vand.u32 4294901760, %v5957_v21  ;;  %v7115_v4 = vsub.f32 %v17268_v40, %v21029_v32  ;;  %v5937_v48 = vld [vmem:[#allocation5 + $0x228] sm:$0xff] }
 0x3fc   :  { %6865 = vmatpush.msrb.mxu2 %v17023_v51  ;;  %6915 = vmatpush.msrb.mxu3 %v17054_v10  ;;  %v21031_v51 = vand.u32 4294901760, %v17245_v15  ;;  %v7109_v9 = vsub.f32 %v17255_v37, %v21030_v52  ;;  %v17332_v7 = vsub.f32 %v5945_v20, %v17310_v25  ;;  %v17334_v50 = vand.u32 4294901760, %v5937_v48 }
 0x3fd   :  { %6982 = vmatpush.msra.mxu0 %v21694_v22  ;;  %7019 = vmatpush.msra.mxu1 %v17025_v3  ;;  %v21695_v3 = vand.u32 4294901760, %v17079_v8  ;;  %v17296_v49 = vsub.f32 %v5957_v21, %v17273_v12  ;;  %v5933_v21 = vld [vmem:[#allocation5 + $0x208] sm:$0xff] }
 0x3fe   :  { %6919 = vmatmul.f32.vlgmr.msrb.gmra.mxu3 %v16700_v24  ;;  %6868 = vmatpush.msrb.mxu2 %v17037_v35  ;;  %v17284_v35 = vsub.f32 %v5961_v38, %v17259_v59 }
 0x3ff   :  { %7075 = vmatpush.msra.mxu3 %v7074_v41  ;;  %6986 = vmatpush.msra.mxu0 %v21695_v3  ;;  %v21025_v36 = vand.u32 4294901760, %v17296_v49  ;;  %v17320_v41 = vsub.f32 %v5949_v58, %v17298_v39  ;;  %v17346_v58 = vand.u32 4294901760, %v5933_v21 }
 0x400   :  { %7021 = vmatpush.msra.mxu1 %v17039_v23  ;;  %6988 = vmatmul.f32.vlgmr.msra.gmra.mxu0 %v16670_v33  ;;  %v7103_v23 = vsub.f32 %v17245_v15, %v21031_v51  ;;  %v5906_v51 = vld [vmem:[#allocation5 + $0x130] sm:$0xff] }
 0x401   :  { %7081 = vmatpush.msra.mxu3 %v7080_v55  ;;  %7173 = vmatpush.msrb.mxu0 %v17181_v26  ;;  %v21023_v55 = vand.u32 4294901760, %v17308_v43  ;;  %v7127_v3 = vsub.f32 %v17296_v49, %v21025_v36  ;;  %v5918_v36 = vld [vmem:[#allocation5 + $0x190] sm:$0xff]  ;;  %v17441_v31 = vand.u32 4294901760, %v5906_v51 }
 0x402   :  { %6871 = vmatpush.msrb.mxu2 %v17052_v45  ;;  %7023 = vmatpush.msra.mxu1 %v17054_v10  ;;  %v5941_v45 = vld [vmem:[#allocation5 + $0x248] sm:$0xff]  ;;  %v21027_v10 = vand.u32 4294901760, %v17284_v35  ;;  %v7104_v38 = vand.u32 4294901760, %v7103_v23  ;;  %v21022_v23 = vand.u32 4294901760, %v17332_v7 }
 0x403   :  { %7025 = vmatmul.f32.vlgmr.msra.gmra.mxu1 %v16670_v33  ;;  %7087 = vmatpush.msra.mxu3 %v7086_v5  ;;  %v17322_v14 = vand.u32 4294901760, %v5941_v45  ;;  %v21021_v5 = vand.u32 4294901760, %v17320_v41  ;;  %v7133_v20 = vsub.f32 %v17308_v43, %v21023_v55  ;;  %v5922_v55 = vld [vmem:[#allocation5 + $0x1b0] sm:$0xff] }
 0x404   :  { %7176 = vmatpush.msrb.mxu0 %v17191_v18  ;;  %7226 = vmatpush.msrb.mxu1 %v17166_v13  ;;  %v7121_v22 = vsub.f32 %v17284_v35, %v21027_v10  ;;  %v5914_v10 = vld [vmem:[#allocation5 + $0x170] sm:$0xff] }
 0x405   :  { %6874 = vmatpush.msrb.mxu2 %v17066_v6  ;;  %7093 = vmatpush.msra.mxu3 %v7092_v0  ;;  %v7110_v6 = vand.u32 4294901760, %v7109_v9  ;;  %v17344_v47 = vsub.f32 %v5941_v45, %v17322_v14  ;;  %v7128_v9 = vand.u32 4294901760, %v7127_v3  ;;  %v7139_v45 = vsub.f32 %v17320_v41, %v21021_v5 }
 0x406   :  { %7179 = vmatpush.msrb.mxu0 %v17202_v17  ;;  %7228 = vmatpush.msrb.mxu1 %v17173_v61  ;;  %v7122_v0 = vand.u32 4294901760, %v7121_v22  ;;  %v7145_v22 = vsub.f32 %v17332_v7, %v21022_v23 }
 0x407   :  { %6877 = vmatpush.msrb.mxu2 %v17079_v8  ;;  %7099 = vmatpush.msra.mxu3 %v7098_v62  ;;  %v7116_v8 = vand.u32 4294901760, %v7115_v4  ;;  %v17356_v62 = vsub.f32 %v5937_v48, %v17334_v50  ;;  %v21024_v4 = vand.u32 4294901760, %v17344_v47  ;;  %v5930_v48 = vld [vmem:[#allocation5 + $0x1f0] sm:$0xff]  ;;  %v7140_v3 = vand.u32 4294901760, %v7139_v45 }
 0x408   :  { %6880 = vmatmul.f32.vlgmr.msrb.gmra.mxu2 %v16686_v19  ;;  %7182 = vmatpush.msrb.mxu0 %v17213_v34  ;;  %v17382_v5 = vand.u32 4294901760, %v5930_v48  ;;  %v7146_v23 = vand.u32 4294901760, %v7145_v22 }
 0x409   :  { %7030 = vmatpush.msra.mxu2 %v17166_v13  ;;  %7230 = vmatpush.msrb.mxu1 %v17183_v53 }
 0x40a   :  { %7105 = vmatpush.msra.mxu3 %v7104_v38  ;;  %7185 = vmatpush.msrb.mxu0 %v17227_v1  ;;  %v17366_v38 = vsub.f32 %v5933_v21, %v17346_v58  ;;  %v5926_v21 = vld [vmem:[#allocation5 + $0x1d0] sm:$0xff]  ;;  %v17399_v22 = vsub.f32 %v5930_v48, %v17382_v5  ;;  %v17411_v48 = vand.u32 4294901760, %v5918_v36 }
 0x40b   :  { %7032 = vmatpush.msra.mxu2 %v17173_v61  ;;  %7232 = vmatpush.msrb.mxu1 %v17193_v28  ;;  %v17390_v45 = vand.u32 4294901760, %v5926_v21 }
 0x40c   :  { %7111 = vmatpush.msra.mxu3 %v7110_v6  ;;  %7188 = vmatpush.msrb.mxu0 %v17245_v15  ;;  %21696 = vst [vmem:[#allocation20_spill] sm:$0xff] %v17366_v38  ;;  %v7134_v6 = vand.u32 4294901760, %v7133_v20  ;;  %v21028_v20 = vand.u32 4294901760, %v17366_v38  ;;  %v21035_v52 = vand.u32 4294901760, %v17399_v22 }
 0x40d   :  { %7034 = vmatpush.msra.mxu2 %v17183_v53  ;;  %7234 = vmatpush.msrb.mxu1 %v17204_v29 }
 0x40e   :  { %7117 = vmatpush.msra.mxu3 %v7116_v8  ;;  %7191 = vmatpush.msrb.mxu0 %v17255_v37  ;;  %v21026_v8 = vand.u32 4294901760, %v17356_v62 }
 0x40f   :  { %7036 = vmatpush.msra.mxu2 %v17193_v28  ;;  %7236 = vmatpush.msrb.mxu1 %v17217_v57 }
 0x410   :  { %7123 = vmatpush.msra.mxu3 %v7122_v0  ;;  %7194 = vmatpush.msrb.mxu0 %v17268_v40  ;;  %v7151_v0 = vsub.f32 %v17344_v47, %v21024_v4 }
 0x411   :  { %7038 = vmatpush.msra.mxu2 %v17204_v29  ;;  %7238 = vmatpush.msrb.mxu1 %v17229_v44 }
 0x412   :  { %7129 = vmatpush.msra.mxu3 %v7128_v9  ;;  %7197 = vmatpush.msrb.mxu0 %v17284_v35  ;;  %v7157_v9 = vsub.f32 %v17356_v62, %v21026_v8  ;;  %v7152_v4 = vand.u32 4294901760, %v7151_v0  ;;  %v17403_v8 = vand.u32 4294901760, %v5922_v55  ;;  %v17407_v0 = vsub.f32 %v5926_v21, %v17390_v45 }
 0x413   :  { %7040 = vmatpush.msra.mxu2 %v17217_v57  ;;  %7240 = vmatpush.msrb.mxu1 %v17240_v46 }
 0x414   :  { %7135 = vmatpush.msra.mxu3 %v7134_v6  ;;  %7200 = vmatpush.msrb.mxu0 %v17296_v49  ;;  %v7163_v6 = vsub.f32 %v17366_v38, %v21028_v20  ;;  %v5910_v20 = vld [vmem:[#allocation5 + $0x150] sm:$0xff]  ;;  %v17420_v21 = vsub.f32 %v5922_v55, %v17403_v8  ;;  %v7414_v55 = vsub.f32 %v17399_v22, %v21035_v52 }
 0x415   :  { %7042 = vmatpush.msra.mxu2 %v17229_v44  ;;  %7242 = vmatpush.msrb.mxu1 %v17259_v59  ;;  %v17465_v52 = vsub.f32 %v5906_v51, %v17441_v31  ;;  %v17478_v51 = vsub.f32 %v5902_v30, %v17454_v16 }
 0x416   :  { %7141 = vmatpush.msra.mxu3 %v7140_v3  ;;  %7203 = vmatpush.msrb.mxu0 %v17308_v43  ;;  %v7158_v3 = vand.u32 4294901760, %v7157_v9  ;;  %v7164_v32 = vand.u32 4294901760, %v7163_v6  ;;  %v21038_v9 = vand.u32 4294901760, %v17407_v0  ;;  %v17429_v6 = vsub.f32 %v5918_v36, %v17411_v48  ;;  %v5898_v36 = vld [vmem:[#allocation5 + $0xf0] sm:$0xff] }
 0x417   :  { %7044 = vmatpush.msra.mxu2 %v17240_v46  ;;  %7244 = vmatpush.msrb.mxu1 %v17273_v12  ;;  %v7415_v11 = vand.u32 4294901760, %v7414_v55  ;;  %v17467_v19 = vand.u32 4294901760, %v5898_v36 }
 0x418   :  { %7147 = vmatpush.msra.mxu3 %v7146_v23  ;;  %7206 = vmatpush.msrb.mxu0 %v17320_v41  ;;  %v17415_v23 = vand.u32 4294901760, %v5914_v10  ;;  %21697 = vst [vmem:[#allocation48_spill] sm:$0xff] %v17429_v6 }
 0x419   :  { %7046 = vmatpush.msra.mxu2 %v17259_v59  ;;  %7246 = vmatpush.msrb.mxu1 %v17286_v42  ;;  %v17490_v30 = vsub.f32 %v5898_v36, %v17467_v19 }
 0x41a   :  { %7153 = vmatpush.msra.mxu3 %v7152_v4  ;;  %7209 = vmatpush.msrb.mxu0 %v17332_v7  ;;  %v17424_v4 = vand.u32 4294901760, %v5910_v20 }
 0x41b   :  { %7048 = vmatpush.msra.mxu2 %v17273_v12  ;;  %7248 = vmatpush.msrb.mxu1 %v17298_v39 }
 0x41c   :  { %7159 = vmatpush.msra.mxu3 %v7158_v3  ;;  %7212 = vmatpush.msrb.mxu0 %v17344_v47  ;;  %v17436_v3 = vsub.f32 %v5914_v10, %v17415_v23  ;;  %v17449_v10 = vsub.f32 %v5910_v20, %v17424_v4 }
 0x41d   :  { %7050 = vmatpush.msra.mxu2 %v17286_v42  ;;  %7250 = vmatpush.msrb.mxu1 %v17310_v25 }
 0x41e   :  { %7165 = vmatpush.msra.mxu3 %v7164_v32  ;;  %7215 = vmatpush.msrb.mxu0 %v17356_v62  ;;  %21698 = vst [vmem:[#allocation26_spill] sm:$0xff] %v17436_v3  ;;  %v7420_v32 = vsub.f32 %v17407_v0, %v21038_v9  ;;  %v5894_v9 = vld [vmem:[#allocation5 + $0xd0] sm:$0xff] }
 0x41f   :  { %7052 = vmatpush.msra.mxu2 %v17298_v39  ;;  %7252 = vmatpush.msrb.mxu1 %v17322_v14  ;;  %21699 = vst [vmem:[#allocation50_spill] sm:$0xff] %v17449_v10  ;;  %v17480_v24 = vand.u32 4294901760, %v5894_v9 }
 0x420   :  { %7167 = vmatmul.f32.vlgmr.msra.gmra.mxu3 %v17119_v63  ;;  %7218 = vmatpush.msrb.mxu0 %v17366_v38  ;;  %v7421_v55 = vand.u32 4294901760, %v7420_v32  ;;  %v21702_v32 = vand.u32 4294901760, %v17436_v3  ;;  %v5886_v38 = vld [vmem:[#allocation5 + $0x90] sm:$0xff] }
 0x421   :  { %7334 = vmatpush.msrb.mxu3 %v17166_v13  ;;  %7054 = vmatpush.msra.mxu2 %v17310_v25  ;;  %v21700_v13 = vand.u32 4294901760, %v17420_v21  ;;  %v17502_v36 = vsub.f32 %v5894_v9, %v17480_v24 }
 0x422   :  { %7254 = vmatpush.msrb.mxu1 %v17334_v50  ;;  %7221 = vmatmul.f32.vlgmr.msrb.gmra.mxu0 %v17122_v2  ;;  %v5890_v2 = vld [vmem:[#allocation5 + $0xb0] sm:$0xff]  ;;  %v7438_v54 = vsub.f32 %v17436_v3, %v21702_v32 }
 0x423   :  { %7336 = vmatpush.msrb.mxu3 %v17173_v61  ;;  %7371 = vmatpush.msra.mxu0 %v17382_v5  ;;  %v7426_v20 = vsub.f32 %v17420_v21, %v21700_v13  ;;  %v21701_v61 = vand.u32 4294901760, %v17429_v6  ;;  %v5882_v3 = vld [vmem:[#allocation5 + $0x70] sm:$0xff] }
 0x424   :  { %7056 = vmatpush.msra.mxu2 %v17322_v14  ;;  %7256 = vmatpush.msrb.mxu1 %v17346_v58 }
 0x425   :  { %7260 = vmatmul.f32.vlgmr.msrb.gmra.mxu1 %v17128_v60  ;;  %7338 = vmatpush.msrb.mxu3 %v17183_v53  ;;  %v7432_v13 = vsub.f32 %v17429_v6, %v21701_v61  ;;  %v7427_v53 = vand.u32 4294901760, %v7426_v20  ;;  %v17492_v60 = vand.u32 4294901760, %v5890_v2  ;;  %v17504_v61 = vand.u32 4294901760, %v5886_v38  ;;  %v5878_v6 = vld [vmem:[#allocation5 + $0x50] sm:$0xff] }
 0x426   :  { %7373 = vmatpush.msra.mxu0 %v17390_v45  ;;  %7416 = vmatpush.msra.mxu1 %v7415_v11  ;;  %v21703_v11 = vand.u32 4294901760, %v17449_v10  ;;  %v17530_v20 = vand.u32 4294901760, %v5878_v6 }
 0x427   :  { %7058 = vmatpush.msra.mxu2 %v17334_v50  ;;  %7340 = vmatpush.msrb.mxu3 %v17193_v28  ;;  %v7433_v28 = vand.u32 4294901760, %v7432_v13  ;;  %v17515_v9 = vsub.f32 %v5890_v2, %v17492_v60  ;;  %v17528_v2 = vsub.f32 %v5886_v38, %v17504_v61 }
 0x428   :  { %7375 = vmatpush.msra.mxu0 %v17403_v8  ;;  %7422 = vmatpush.msra.mxu1 %v7421_v55  ;;  %v7444_v32 = vsub.f32 %v17449_v10, %v21703_v11  ;;  %v7439_v55 = vand.u32 4294901760, %v7438_v54  ;;  %v21704_v11 = vand.u32 4294901760, %v17181_v26  ;;  %v17517_v10 = vand.u32 4294901760, %v5882_v3 }
 0x429   :  { %7060 = vmatpush.msra.mxu2 %v17346_v58  ;;  %7342 = vmatpush.msrb.mxu3 %v17204_v29  ;;  %v21705_v29 = vand.u32 4294901760, %v17465_v52  ;;  %v21706_v26 = vand.u32 4294901760, %v17191_v18  ;;  %v21708_v18 = vand.u32 4294901760, %v17202_v17  ;;  %v21710_v17 = vand.u32 4294901760, %v17213_v34 }
 0x42a   :  { %7066 = vmatmul.f32.vlgmr.msra.gmra.mxu2 %v17140_v27  ;;  %7377 = vmatpush.msra.mxu0 %v17411_v48  ;;  %v7445_v54 = vand.u32 4294901760, %v7444_v32  ;;  %v5874_v27 = vld [vmem:[#allocation5 + $0x30] sm:$0xff]  ;;  %v21709_v32 = vand.u32 4294901760, %v17490_v30  ;;  %v17541_v38 = vsub.f32 %v5882_v3, %v17517_v10  ;;  %v17554_v3 = vsub.f32 %v5878_v6, %v17530_v20 }
 0x42b   :  { %7267 = vmatpush.msrb.mxu2 %v21704_v11  ;;  %7428 = vmatpush.msra.mxu1 %v7427_v53  ;;  %v7450_v13 = vsub.f32 %v17465_v52, %v21705_v29  ;;  %v21707_v53 = vand.u32 4294901760, %v17478_v51  ;;  %v7467_v29 = vand.u32 4294901760, %v17502_v36  ;;  %v21711_v34 = vand.u32 4294901760, %v17227_v1 }
 0x42c   :  { %7344 = vmatpush.msrb.mxu3 %v17217_v57  ;;  %7379 = vmatpush.msra.mxu0 %v17415_v23  ;;  %v21712_v6 = vand.u32 4294901760, %v17245_v15 }
 0x42d   :  { %7271 = vmatpush.msrb.mxu2 %v21706_v26  ;;  %7434 = vmatpush.msra.mxu1 %v7433_v28  ;;  %v7456_v11 = vsub.f32 %v17478_v51, %v21707_v53  ;;  %v7451_v57 = vand.u32 4294901760, %v7450_v13  ;;  %v7462_v28 = vsub.f32 %v17490_v30, %v21709_v32  ;;  %v7473_v26 = vand.u32 4294901760, %v17515_v9  ;;  %v5870_v53 = vld [vmem:[#allocation5 + $0x10] sm:$0xff] }
 0x42e   :  { %7346 = vmatpush.msrb.mxu3 %v17229_v44  ;;  %7381 = vmatpush.msra.mxu0 %v17424_v4  ;;  %v17545_v44 = vand.u32 4294901760, %v5874_v27  ;;  %v7468_v13 = vsub.f32 %v17502_v36, %v7467_v29  ;;  %v7485_v32 = vand.u32 4294901760, %v17541_v38 }
 0x42f   :  { %7275 = vmatpush.msrb.mxu2 %v21708_v18  ;;  %7440 = vmatpush.msra.mxu1 %v7439_v55  ;;  %v7457_v55 = vand.u32 4294901760, %v7456_v11  ;;  %v7479_v18 = vand.u32 4294901760, %v17528_v2  ;;  %v7474_v11 = vsub.f32 %v17515_v9, %v7473_v26 }
 0x430   :  { %7348 = vmatpush.msrb.mxu3 %v17240_v46  ;;  %7383 = vmatpush.msra.mxu0 %v17441_v31  ;;  %v17558_v46 = vand.u32 4294901760, %v5870_v53  ;;  %v7469_v1 = vand.u32 4294901760, %v7468_v13 }
 0x431   :  { %7279 = vmatpush.msrb.mxu2 %v21710_v17  ;;  %7446 = vmatpush.msra.mxu1 %v7445_v54  ;;  %v7463_v54 = vand.u32 4294901760, %v7462_v28  ;;  %v7491_v28 = vand.u32 4294901760, %v17554_v3  ;;  %v7475_v15 = vand.u32 4294901760, %v7474_v11  ;;  %v7486_v17 = vsub.f32 %v17541_v38, %v7485_v32 }
 0x432   :  { %7350 = vmatpush.msrb.mxu3 %v17259_v59  ;;  %7385 = vmatpush.msra.mxu0 %v17454_v16  ;;  %v17569_v59 = vsub.f32 %v5874_v27, %v17545_v44  ;;  %v21713_v27 = vand.u32 4294901760, %v17255_v37  ;;  %v21718_v11 = vand.u32 4294901760, %v17320_v41  ;;  %v21721_v41 = vand.u32 4294901760, %v17344_v47 }
 0x433   :  { %7283 = vmatpush.msrb.mxu2 %v21711_v34  ;;  %7452 = vmatpush.msra.mxu1 %v7451_v57  ;;  %v7480_v57 = vsub.f32 %v17528_v2, %v7479_v18  ;;  %v7492_v37 = vsub.f32 %v17554_v3, %v7491_v28  ;;  %v7487_v34 = vand.u32 4294901760, %v7486_v17  ;;  %v21724_v47 = vand.u32 4294901760, %v17420_v21 }
 0x434   :  { %7352 = vmatpush.msrb.mxu3 %v17273_v12  ;;  %7387 = vmatpush.msra.mxu0 %v17467_v19  ;;  %v17580_v12 = vsub.f32 %v5870_v53, %v17558_v46 }
 0x435   :  { %7287 = vmatpush.msrb.mxu2 %v21712_v6  ;;  %7458 = vmatpush.msra.mxu1 %v7457_v55  ;;  %v21714_v55 = vand.u32 4294901760, %v17268_v40  ;;  %v7481_v53 = vand.u32 4294901760, %v7480_v57  ;;  %v21722_v6 = vand.u32 4294901760, %v17407_v0  ;;  %v21725_v57 = vld [vmem:[#allocation20_spill] sm:$0xff] }
 0x436   :  { %7354 = vmatpush.msrb.mxu3 %v17286_v42  ;;  %7389 = vmatpush.msra.mxu0 %v17480_v24  ;;  %v7497_v42 = vand.u32 4294901760, %v17569_v59  ;;  %v7503_v13 = vand.u32 4294901760, %v17580_v12 }
 0x437   :  { %7291 = vmatpush.msrb.mxu2 %v21713_v27  ;;  %7464 = vmatpush.msra.mxu1 %v7463_v54  ;;  %v21716_v54 = vand.u32 4294901760, %v17296_v49  ;;  %v21726_v27 = vand.u32 4294901760, %v21725_v57 }
 0x438   :  { %7356 = vmatpush.msrb.mxu3 %v17298_v39  ;;  %7391 = vmatpush.msra.mxu0 %v17492_v60  ;;  %v21715_v39 = vand.u32 4294901760, %v17284_v35  ;;  %v7498_v40 = vsub.f32 %v17569_v59, %v7497_v42  ;;  %v7504_v35 = vsub.f32 %v17580_v12, %v7503_v13 }
 0x439   :  { %7295 = vmatpush.msrb.mxu2 %v21714_v55  ;;  %7470 = vmatpush.msra.mxu1 %v7469_v1  ;;  %v21723_v1 = vand.u32 4294901760, %v17356_v62  ;;  %v6044_v62 = vpop.f32.mrf.mxu0  ;;  %v21729_v55 = vld [vmem:[#allocation26_spill] sm:$0xff] }
 0x43a   :  { %7358 = vmatpush.msrb.mxu3 %v17310_v25  ;;  %7393 = vmatpush.msra.mxu0 %v17504_v61  ;;  %v7493_v25 = vand.u32 4294901760, %v7492_v37  ;;  %v7499_v49 = vand.u32 4294901760, %v7498_v40  ;;  %v5990_v40 = vld [vmem:[#allocation5 + $0x3d0] sm:$0xff] }
 0x43b   :  { %7299 = vmatpush.msrb.mxu2 %v21715_v39  ;;  %7476 = vmatpush.msra.mxu1 %v7475_v15  ;;  %v21727_v15 = vld [vmem:[#allocation48_spill] sm:$0xff]  ;;  %v21731_v39 = vld [vmem:[#allocation50_spill] sm:$0xff] }
 0x43c   :  { %7360 = vmatpush.msrb.mxu3 %v17322_v14  ;;  %7395 = vmatpush.msra.mxu0 %v17517_v10  ;;  %v21717_v14 = vand.u32 4294901760, %v17308_v43  ;;  %v21719_v43 = vand.u32 4294901760, %v17332_v7  ;;  %v5996_v7 = vld [vmem:[%s20812_s6] sm:$0xf]  ;;  %v21728_v17 = vand.u32 4294901760, %v21727_v15 }
 0x43d   :  { %7303 = vmatpush.msrb.mxu2 %v21716_v54  ;;  %7482 = vmatpush.msra.mxu1 %v7481_v53  ;;  %v5994_v53 = vld [vmem:[#allocation5 + $0x3f0] sm:$0xff]  ;;  %v17668_v54 = vand.u32 4294901760, %v5990_v40 }
 0x43e   :  { %7362 = vmatpush.msrb.mxu3 %v17334_v50  ;;  %7397 = vmatpush.msra.mxu0 %v17530_v20  ;;  %v7505_v50 = vand.u32 4294901760, %v7504_v35 }
 0x43f   :  { %7307 = vmatpush.msrb.mxu2 %v21717_v14  ;;  %7488 = vmatpush.msra.mxu1 %v7487_v34  ;;  %v21732_v34 = vand.u32 4294901760, %v21731_v39 }
 0x440   :  { %7364 = vmatpush.msrb.mxu3 %v17346_v58  ;;  %7399 = vmatpush.msra.mxu0 %v17545_v44  ;;  %v21720_v58 = vand.u32 4294901760, %v17399_v22 }
 0x441   :  { %7311 = vmatpush.msrb.mxu2 %v21718_v11  ;;  %7494 = vmatpush.msra.mxu1 %v7493_v25  ;;  %v6199_v11 = vpop.f32.mrf.mxu2  ;;  %v6307_v57 = vpop.f32.mrf.mxu0 }
 0x442   :  { %7366 = vmatmul.f32.vlgmr.msrb.gmra.mxu3 %v17119_v63  ;;  %7401 = vmatpush.msra.mxu0 %v17558_v46 }
 0x443   :  { %7567 = vmatpush.msra.mxu3 %v17382_v5  ;;  %7315 = vmatpush.msrb.mxu2 %v21719_v43 }
 0x444   :  { %7500 = vmatpush.msra.mxu1 %v7499_v49  ;;  %7407 = vmatmul.f32.vlgmr.msra.gmra.mxu0 %v16718_v56  ;;  %v5978_v49 = vld [vmem:[#allocation5 + $0x370] sm:$0xff] }
 0x445   :  { %7569 = vmatpush.msra.mxu3 %v17390_v45  ;;  %7608 = vmatpush.msrb.mxu0 %v21720_v58 }
 0x446   :  { %7319 = vmatpush.msrb.mxu2 %v21721_v41  ;;  %7506 = vmatpush.msra.mxu1 %v7505_v50  ;;  %v17686_v50 = vsub.f32 %v5990_v40, %v17668_v54 }
 0x447   :  { %7508 = vmatmul.f32.vlgmr.msra.gmra.mxu1 %v16670_v33  ;;  %7571 = vmatpush.msra.mxu3 %v17403_v8 }
 0x448   :  { %7612 = vmatpush.msrb.mxu0 %v21722_v6  ;;  %7675 = vmatpush.msrb.mxu1 %v17382_v5  ;;  %v5998_v5 = vperm.slane %v5996_v7, 0  ;;  %v5974_v6 = vld [vmem:[#allocation5 + $0x350] sm:$0xff] }
 0x449   :  { %7323 = vmatpush.msrb.mxu2 %v21723_v1  ;;  %7573 = vmatpush.msra.mxu3 %v17411_v48  ;;  %v5970_v7 = vld [vmem:[#allocation5 + $0x330] sm:$0xff]  ;;  %v6238_v1 = vpop.f32.mrf.mxu3 }
 0x44a   :  { %7616 = vmatpush.msrb.mxu0 %v21724_v47  ;;  %7677 = vmatpush.msrb.mxu1 %v17390_v45  ;;  %v21730_v45 = vand.u32 4294901760, %v21729_v55  ;;  %v6045_v37 = vadd.f32 %v6044_v62, %v5998_v5  ;;  %v17713_v47 = vand.u32 4294901760, %v5974_v6  ;;  %v17724_v5 = vand.u32 4294901760, %v5970_v7 }
 0x44b   :  { %7327 = vmatpush.msrb.mxu2 %v21726_v27  ;;  %7575 = vmatpush.msra.mxu3 %v17415_v23 }
 0x44c   :  { %7329 = vmatmul.f32.vlgmr.msrb.gmra.mxu2 %v17119_v63  ;;  %7620 = vmatpush.msrb.mxu0 %v21728_v17 }
 0x44d   :  { %7514 = vmatpush.msra.mxu2 %v17399_v22  ;;  %7679 = vmatpush.msrb.mxu1 %v17403_v8  ;;  %v17661_v8 = vand.u32 4294901760, %v5994_v53  ;;  %v21733_v22 = vand.u32 4294901760, %v17465_v52 }
 0x44e   :  { %7577 = vmatpush.msra.mxu3 %v17424_v4  ;;  %7624 = vmatpush.msrb.mxu0 %v21730_v45  ;;  %v5958_v45 = vld [vmem:[#allocation5 + $0x2d0] sm:$0xff] }
 0x44f   :  { %7517 = vmatpush.msra.mxu2 %v17407_v0  ;;  %7681 = vmatpush.msrb.mxu1 %v17411_v48  ;;  %v5986_v0 = vld [vmem:[#allocation5 + $0x3b0] sm:$0xff]  ;;  %v6145_v48 = vpop.f32.mrf.mxu1  ;;  %v17676_v35 = vsub.f32 %v5994_v53, %v17661_v8 }
 0x450   :  { %7579 = vmatpush.msra.mxu3 %v17441_v31  ;;  %7628 = vmatpush.msrb.mxu0 %v21732_v34  ;;  %v6146_v25 = vadd.f32 %v6145_v48, %v6045_v37  ;;  %v17678_v14 = vand.u32 4294901760, %v5986_v0  ;;  %v5954_v37 = vld [vmem:[#allocation5 + $0x2b0] sm:$0xff] }
 0x451   :  { %7520 = vmatpush.msra.mxu2 %v17420_v21  ;;  %7683 = vmatpush.msrb.mxu1 %v17415_v23  ;;  %v21734_v23 = vand.u32 4294901760, %v17478_v51  ;;  %v5982_v21 = vld [vmem:[#allocation5 + $0x390] sm:$0xff]  ;;  %v21072_v58 = vand.u32 4294901760, %v17676_v35 }
 0x452   :  { %7581 = vmatpush.msra.mxu3 %v17454_v16  ;;  %7632 = vmatpush.msrb.mxu0 %v21733_v22  ;;  %v6200_v43 = vadd.f32 %v6199_v11, %v6146_v25  ;;  %v17697_v41 = vsub.f32 %v5986_v0, %v17678_v14  ;;  %v21736_v34 = vld [vmem:[#allocation45_spill] sm:$0xff] }
 0x453   :  { %7523 = vmatpush.msra.mxu2 %v21727_v15  ;;  %7685 = vmatpush.msrb.mxu1 %v17424_v4  ;;  %v21735_v4 = vand.u32 4294901760, %v17490_v30  ;;  %v5962_v15 = vld [vmem:[#allocation5 + $0x2f0] sm:$0xff] }
 0x454   :  { %7583 = vmatpush.msra.mxu3 %v17467_v19  ;;  %7636 = vmatpush.msrb.mxu0 %v21734_v23  ;;  %v5950_v48 = vld [vmem:[#allocation5 + $0x290] sm:$0xff]  ;;  %v17781_v23 = vand.u32 4294901760, %v5954_v37 }
 0x455   :  { %7526 = vmatpush.msra.mxu2 %v21729_v55  ;;  %7687 = vmatpush.msrb.mxu1 %v17441_v31  ;;  %v17688_v31 = vand.u32 4294901760, %v5982_v21  ;;  %v17750_v55 = vsub.f32 %v5970_v7, %v17724_v5 }
 0x456   :  { %7585 = vmatpush.msra.mxu3 %v17480_v24  ;;  %7640 = vmatpush.msrb.mxu0 %v21735_v4 }
 0x457   :  { %7529 = vmatpush.msra.mxu2 %v21731_v39  ;;  %7689 = vmatpush.msrb.mxu1 %v17454_v16  ;;  %v17699_v16 = vand.u32 4294901760, %v5978_v49  ;;  %v6344_v39 = vpop.f32.mrf.mxu1  ;;  %v21065_v22 = vand.u32 4294901760, %v17750_v55 }
 0x458   :  { %7587 = vmatpush.msra.mxu3 %v17492_v60  ;;  %7644 = vmatpush.msrb.mxu0 %v7467_v29  ;;  %v6239_v29 = vadd.f32 %v6238_v1, %v6200_v43 }
 0x459   :  { %7532 = vmatpush.msra.mxu2 %v17465_v52  ;;  %7691 = vmatpush.msrb.mxu1 %v17467_v19  ;;  %v21071_v19 = vand.u32 4294901760, %v17686_v50  ;;  %v17708_v52 = vsub.f32 %v5982_v21, %v17688_v31  ;;  %v17722_v27 = vsub.f32 %v5978_v49, %v17699_v16  ;;  %v5946_v49 = vld [vmem:[#allocation5 + $0x270] sm:$0xff] }
 0x45a   :  { %7589 = vmatpush.msra.mxu3 %v17504_v61  ;;  %7648 = vmatpush.msrb.mxu0 %v7473_v26  ;;  %v5966_v26 = vld [vmem:[#allocation5 + $0x310] sm:$0xff]  ;;  %v6308_v17 = vadd.f32 %v6307_v57, %v6239_v29  ;;  %v6540_v29 = vpop.f32.mrf.mxu0  ;;  %v17803_v57 = vsub.f32 %v5954_v37, %v17781_v23 }
 0x45b   :  { %7535 = vmatpush.msra.mxu2 %v17478_v51  ;;  %7693 = vmatpush.msrb.mxu1 %v17480_v24  ;;  %v7755_v24 = vsub.f32 %v17676_v35, %v21072_v58  ;;  %v21070_v51 = vand.u32 4294901760, %v17697_v41  ;;  %v21067_v62 = vand.u32 4294901760, %v17722_v27 }
 0x45c   :  { %7591 = vmatpush.msra.mxu3 %v17517_v10  ;;  %7652 = vmatpush.msrb.mxu0 %v7479_v18  ;;  %v17735_v18 = vand.u32 4294901760, %v5966_v26  ;;  %v6345_v0 = vadd.f32 %v6344_v39, %v6308_v17  ;;  %v5938_v17 = vld [vmem:[#allocation5 + $0x230] sm:$0xff] }
 0x45d   :  { %7538 = vmatpush.msra.mxu2 %v17490_v30  ;;  %7695 = vmatpush.msrb.mxu1 %v17492_v60  ;;  %v7761_v60 = vsub.f32 %v17686_v50, %v21071_v19  ;;  %v21069_v30 = vand.u32 4294901760, %v17708_v52  ;;  %v7779_v40 = vsub.f32 %v17722_v27, %v21067_v62  ;;  %v5934_v39 = vld [vmem:[#allocation5 + $0x210] sm:$0xff] }
 0x45e   :  { %7593 = vmatpush.msra.mxu3 %v17530_v20  ;;  %7656 = vmatpush.msrb.mxu0 %v7485_v32  ;;  %v17741_v32 = vsub.f32 %v5974_v6, %v17713_v47  ;;  %v17763_v53 = vsub.f32 %v5966_v26, %v17735_v18  ;;  %v17793_v6 = vand.u32 4294901760, %v5950_v48 }
 0x45f   :  { %7541 = vmatpush.msra.mxu2 %v17502_v36  ;;  %7697 = vmatpush.msrb.mxu1 %v17504_v61  ;;  %v7756_v61 = vand.u32 4294901760, %v7755_v24  ;;  %v7767_v36 = vsub.f32 %v17697_v41, %v21070_v51  ;;  %v7780_v7 = vand.u32 4294901760, %v7779_v40  ;;  %v17805_v24 = vand.u32 4294901760, %v5946_v49  ;;  %v21743_v51 = vld [vmem:[#allocation24_spill] sm:$0xff] }
 0x460   :  { %7595 = vmatpush.msra.mxu3 %v17545_v44  ;;  %7660 = vmatpush.msrb.mxu0 %v7491_v28  ;;  %v17755_v28 = vand.u32 4294901760, %v5962_v15  ;;  %v21064_v21 = vand.u32 4294901760, %v17763_v53 }
 0x461   :  { %7544 = vmatpush.msra.mxu2 %v17515_v9  ;;  %7699 = vmatpush.msrb.mxu1 %v17517_v10  ;;  %v7762_v10 = vand.u32 4294901760, %v7761_v60  ;;  %v7773_v9 = vsub.f32 %v17708_v52, %v21069_v30 }
 0x462   :  { %7597 = vmatpush.msra.mxu3 %v17558_v46  ;;  %7664 = vmatpush.msrb.mxu0 %v7497_v42  ;;  %v21066_v42 = vand.u32 4294901760, %v17741_v32  ;;  %v17779_v25 = vsub.f32 %v5962_v15, %v17755_v28  ;;  %v7797_v60 = vsub.f32 %v17763_v53, %v21064_v21  ;;  %v5907_v21 = vld [vmem:[#allocation5 + $0x138] sm:$0xff] }
 0x463   :  { %7547 = vmatpush.msra.mxu2 %v17528_v2  ;;  %7701 = vmatpush.msrb.mxu1 %v17530_v20  ;;  %v17769_v2 = vand.u32 4294901760, %v5958_v45  ;;  %v7768_v20 = vand.u32 4294901760, %v7767_v36  ;;  %v17938_v62 = vand.u32 4294901760, %v5907_v21 }
 0x464   :  { %7601 = vmatmul.f32.vlgmr.msra.gmra.mxu3 %v21736_v34  ;;  %7668 = vmatpush.msrb.mxu0 %v7503_v13  ;;  %v7785_v11 = vsub.f32 %v17741_v32, %v21066_v42  ;;  %v21063_v26 = vand.u32 4294901760, %v17779_v25  ;;  %v5887_v34 = vld [vmem:[#allocation5 + $0x98] sm:$0xff] }
 0x465   :  { %7757 = vmatpush.msrb.mxu3 %v7756_v61  ;;  %7550 = vmatpush.msra.mxu2 %v17541_v38  ;;  %v7774_v38 = vand.u32 4294901760, %v7773_v9  ;;  %v17791_v43 = vsub.f32 %v5958_v45, %v17769_v2  ;;  %v6579_v61 = vpop.f32.mrf.mxu1 }
 0x466   :  { %7703 = vmatpush.msrb.mxu1 %v17545_v44  ;;  %7670 = vmatmul.f32.vlgmr.msrb.gmra.mxu0 %v16670_v33  ;;  %v6385_v13 = vpop.f32.mrf.mxu2  ;;  %v6486_v44 = vpop.f32.mrf.mxu3  ;;  %v7786_v36 = vand.u32 4294901760, %v7785_v11  ;;  %v7803_v40 = vsub.f32 %v17779_v25, %v21063_v26  ;;  %v17841_v11 = vand.u32 4294901760, %v5934_v39 }
 0x467   :  { %7763 = vmatpush.msrb.mxu3 %v7762_v10  ;;  %7855 = vmatpush.msra.mxu0 %v17676_v35  ;;  %v6386_v4 = vadd.f32 %v6385_v13, %v6345_v0  ;;  %v21062_v45 = vand.u32 4294901760, %v17791_v43  ;;  %v17815_v10 = vsub.f32 %v5950_v48, %v17793_v6  ;;  %v21060_v0 = vand.u32 4294901760, %v17803_v57 }
 0x468   :  { %7553 = vmatpush.msra.mxu2 %v17554_v3  ;;  %7705 = vmatpush.msrb.mxu1 %v17558_v46  ;;  %v7791_v3 = vsub.f32 %v17750_v55, %v21065_v22  ;;  %v5942_v46 = vld [vmem:[#allocation5 + $0x250] sm:$0xff]  ;;  %v17827_v48 = vsub.f32 %v5946_v49, %v17805_v24  ;;  %v17829_v13 = vand.u32 4294901760, %v5938_v17  ;;  %v5903_v22 = vld [vmem:[#allocation5 + $0x118] sm:$0xff] }
 0x469   :  { %7707 = vmatmul.f32.vlgmr.msrb.gmra.mxu1 %v16670_v33  ;;  %7769 = vmatpush.msrb.mxu3 %v7768_v20  ;;  %v6487_v1 = vadd.f32 %v6486_v44, %v6386_v4  ;;  %v17817_v9 = vand.u32 4294901760, %v5942_v46  ;;  %v21737_v20 = vld [vmem:[#allocation19_spill] sm:$0xff]  ;;  %v21058_v4 = vand.u32 4294901760, %v17815_v10  ;;  %v17951_v30 = vand.u32 4294901760, %v5903_v22 }
 0x46a   :  { %7858 = vmatpush.msra.mxu0 %v17686_v50  ;;  %7908 = vmatpush.msra.mxu1 %v17661_v8 }
 0x46b   :  { %7556 = vmatpush.msra.mxu2 %v17569_v59  ;;  %7775 = vmatpush.msrb.mxu3 %v7774_v38  ;;  %v6541_v15 = vadd.f32 %v6540_v29, %v6487_v1  ;;  %v7792_v59 = vand.u32 4294901760, %v7791_v3  ;;  %v7809_v38 = vsub.f32 %v17791_v43, %v21062_v45  ;;  %v17839_v49 = vsub.f32 %v5942_v46, %v17817_v9 }
 0x46c   :  { %7861 = vmatpush.msra.mxu0 %v17697_v41  ;;  %7910 = vmatpush.msra.mxu1 %v17668_v54  ;;  %v7804_v1 = vand.u32 4294901760, %v7803_v40  ;;  %v7815_v29 = vsub.f32 %v17803_v57, %v21060_v0  ;;  %v17851_v46 = vsub.f32 %v5938_v17, %v17829_v13  ;;  %v5931_v17 = vld [vmem:[#allocation5 + $0x1f8] sm:$0xff] }
 0x46d   :  { %7559 = vmatpush.msra.mxu2 %v17580_v12  ;;  %7781 = vmatpush.msrb.mxu3 %v7780_v7  ;;  %v6580_v37 = vadd.f32 %v6579_v61, %v6541_v15  ;;  %v7798_v12 = vand.u32 4294901760, %v7797_v60  ;;  %v21056_v60 = vand.u32 4294901760, %v17827_v48  ;;  %v7810_v61 = vand.u32 4294901760, %v7809_v38  ;;  %v5915_v0 = vld [vmem:[#allocation5 + $0x178] sm:$0xff] }
 0x46e   :  { %7562 = vmatmul.f32.vlgmr.msra.gmra.mxu2 %v21737_v20  ;;  %7864 = vmatpush.msra.mxu0 %v17708_v52  ;;  %v6685_v3 = vpop.f32.mrf.mxu3  ;;  %v7816_v40 = vand.u32 4294901760, %v7815_v29  ;;  %v21059_v38 = vand.u32 4294901760, %v17851_v46 }
 0x46f   :  { %7712 = vmatpush.msrb.mxu2 %v17661_v8  ;;  %7912 = vmatpush.msra.mxu1 %v17678_v14 }
 0x470   :  { %7787 = vmatpush.msrb.mxu3 %v7786_v36  ;;  %7867 = vmatpush.msra.mxu0 %v17722_v27  ;;  %v6648_v44 = vpop.f32.mrf.mxu2  ;;  %v7821_v36 = vsub.f32 %v17815_v10, %v21058_v4  ;;  %v5919_v4 = vld [vmem:[#allocation5 + $0x198] sm:$0xff] }
 0x471   :  { %7714 = vmatpush.msrb.mxu2 %v17668_v54  ;;  %7914 = vmatpush.msra.mxu1 %v17688_v31  ;;  %v6649_v7 = vadd.f32 %v6648_v44, %v6580_v37  ;;  %v17863_v37 = vsub.f32 %v5934_v39, %v17841_v11  ;;  %v5927_v39 = vld [vmem:[#allocation5 + $0x1d8] sm:$0xff] }
 0x472   :  { %7793 = vmatpush.msrb.mxu3 %v7792_v59  ;;  %7870 = vmatpush.msra.mxu0 %v17741_v32  ;;  %v21057_v59 = vand.u32 4294901760, %v17839_v49  ;;  %v7822_v44 = vand.u32 4294901760, %v7821_v36  ;;  %v17887_v36 = vand.u32 4294901760, %v5927_v39 }
 0x473   :  { %7716 = vmatpush.msrb.mxu2 %v17678_v14  ;;  %7916 = vmatpush.msra.mxu1 %v17699_v16  ;;  %v17855_v15 = vadd.f32 %v6685_v3, %v6649_v7  ;;  %21739 = vst [vmem:[#allocation21_spill] sm:$0xff] %v17863_v37  ;;  %v21061_v3 = vand.u32 4294901760, %v17863_v37 }
 0x474   :  { %7799 = vmatpush.msrb.mxu3 %v7798_v12  ;;  %7873 = vmatpush.msra.mxu0 %v17750_v55  ;;  %v7827_v12 = vsub.f32 %v17827_v48, %v21056_v60  ;;  %v7833_v7 = vsub.f32 %v17839_v49, %v21057_v59  ;;  %v5923_v60 = vld [vmem:[#allocation5 + $0x1b8] sm:$0xff] }
 0x475   :  { %21738 = vst [vmem:[#allocation28_spill] sm:$0xff] %v17855_v15  ;;  %7718 = vmatpush.msrb.mxu2 %v17688_v31  ;;  %7918 = vmatpush.msra.mxu1 %v17713_v47  ;;  %v5891_v15 = vld [vmem:[#allocation5 + $0xb8] sm:$0xff] }
 0x476   :  { %7805 = vmatpush.msrb.mxu3 %v7804_v1  ;;  %7876 = vmatpush.msra.mxu0 %v17763_v53  ;;  %v17879_v1 = vand.u32 4294901760, %v5931_v17  ;;  %v7828_v29 = vand.u32 4294901760, %v7827_v12  ;;  %v7834_v59 = vand.u32 4294901760, %v7833_v7  ;;  %v17904_v7 = vsub.f32 %v5927_v39, %v17887_v36 }
 0x477   :  { %7720 = vmatpush.msrb.mxu2 %v17699_v16  ;;  %7920 = vmatpush.msra.mxu1 %v17724_v5 }
 0x478   :  { %7811 = vmatpush.msrb.mxu3 %v7810_v61  ;;  %7879 = vmatpush.msra.mxu0 %v17779_v25  ;;  %v7839_v61 = vsub.f32 %v17851_v46, %v21059_v38  ;;  %v17896_v12 = vsub.f32 %v5931_v17, %v17879_v1  ;;  %v17900_v38 = vand.u32 4294901760, %v5923_v60  ;;  %v17908_v17 = vand.u32 4294901760, %v5919_v4 }
 0x479   :  { %7722 = vmatpush.msrb.mxu2 %v17713_v47  ;;  %7922 = vmatpush.msra.mxu1 %v17735_v18 }
 0x47a   :  { %7817 = vmatpush.msrb.mxu3 %v7816_v40  ;;  %7882 = vmatpush.msra.mxu0 %v17791_v43  ;;  %v7845_v40 = vsub.f32 %v17863_v37, %v21061_v3  ;;  %v5911_v3 = vld [vmem:[#allocation5 + $0x158] sm:$0xff]  ;;  %v21068_v26 = vand.u32 4294901760, %v17896_v12  ;;  %v17917_v39 = vsub.f32 %v5923_v60, %v17900_v38 }
 0x47b   :  { %7724 = vmatpush.msrb.mxu2 %v17724_v5  ;;  %7924 = vmatpush.msra.mxu1 %v17755_v28 }
 0x47c   :  { %7823 = vmatpush.msrb.mxu3 %v7822_v44  ;;  %7885 = vmatpush.msra.mxu0 %v17803_v57  ;;  %v7840_v44 = vand.u32 4294901760, %v7839_v61  ;;  %v7846_v45 = vand.u32 4294901760, %v7845_v40  ;;  %v21073_v61 = vand.u32 4294901760, %v17904_v7  ;;  %v17926_v40 = vsub.f32 %v5919_v4, %v17908_v17  ;;  %v5899_v4 = vld [vmem:[#allocation5 + $0xf8] sm:$0xff] }
 0x47d   :  { %7726 = vmatpush.msrb.mxu2 %v17735_v18  ;;  %7926 = vmatpush.msra.mxu1 %v17769_v2  ;;  %v8096_v60 = vsub.f32 %v17896_v12, %v21068_v26  ;;  %v21074_v42 = vand.u32 4294901760, %v17917_v39  ;;  %v17964_v26 = vand.u32 4294901760, %v5899_v4 }
 0x47e   :  { %7829 = vmatpush.msrb.mxu3 %v7828_v29  ;;  %7888 = vmatpush.msra.mxu0 %v17815_v10  ;;  %v17912_v29 = vand.u32 4294901760, %v5915_v0  ;;  %21740 = vst [vmem:[#allocation49_spill] sm:$0xff] %v17926_v40 }
 0x47f   :  { %7728 = vmatpush.msrb.mxu2 %v17755_v28  ;;  %7928 = vmatpush.msra.mxu1 %v17781_v23  ;;  %v8097_v19 = vand.u32 4294901760, %v8096_v60 }
 0x480   :  { %7835 = vmatpush.msrb.mxu3 %v7834_v59  ;;  %7891 = vmatpush.msra.mxu0 %v17827_v48  ;;  %v17921_v59 = vand.u32 4294901760, %v5911_v3 }
 0x481   :  { %7730 = vmatpush.msrb.mxu2 %v17769_v2  ;;  %7930 = vmatpush.msra.mxu1 %v17793_v6 }
 0x482   :  { %7841 = vmatpush.msrb.mxu3 %v7840_v44  ;;  %7894 = vmatpush.msra.mxu0 %v17839_v49  ;;  %v17933_v44 = vsub.f32 %v5915_v0, %v17912_v29  ;;  %v17946_v0 = vsub.f32 %v5911_v3, %v17921_v59  ;;  %v17962_v3 = vsub.f32 %v5907_v21, %v17938_v62 }
 0x483   :  { %7732 = vmatpush.msrb.mxu2 %v17781_v23  ;;  %7932 = vmatpush.msra.mxu1 %v17805_v24  ;;  %v17975_v21 = vsub.f32 %v5903_v22, %v17951_v30  ;;  %v17987_v22 = vsub.f32 %v5899_v4, %v17964_v26 }
 0x484   :  { %7847 = vmatpush.msrb.mxu3 %v7846_v45  ;;  %7897 = vmatpush.msra.mxu0 %v17851_v46  ;;  %21741 = vst [vmem:[#allocation27_spill] sm:$0xff] %v17933_v44  ;;  %v8102_v45 = vsub.f32 %v17904_v7, %v21073_v61  ;;  %v5895_v61 = vld [vmem:[#allocation5 + $0xd8] sm:$0xff] }
 0x485   :  { %7734 = vmatpush.msrb.mxu2 %v17793_v6  ;;  %7934 = vmatpush.msra.mxu1 %v17817_v9  ;;  %21742 = vst [vmem:[#allocation51_spill] sm:$0xff] %v17946_v0  ;;  %v17977_v20 = vand.u32 4294901760, %v5895_v61 }
 0x486   :  { %7849 = vmatmul.f32.vlgmr.msrb.gmra.mxu3 %v17119_v63  ;;  %7900 = vmatpush.msra.mxu0 %v17863_v37  ;;  %v8103_v60 = vand.u32 4294901760, %v8102_v45  ;;  %v21746_v45 = vand.u32 4294901760, %v17933_v44  ;;  %v5879_v37 = vld [vmem:[#allocation5 + $0x58] sm:$0xff] }
 0x487   :  { %8016 = vmatpush.msra.mxu3 %v17661_v8  ;;  %7736 = vmatpush.msrb.mxu2 %v17805_v24  ;;  %v8108_v8 = vsub.f32 %v17917_v39, %v21074_v42  ;;  %v17999_v4 = vsub.f32 %v5895_v61, %v17977_v20 }
 0x488   :  { %7936 = vmatpush.msra.mxu1 %v17829_v13  ;;  %7903 = vmatmul.f32.vlgmr.msra.gmra.mxu0 %v21743_v51  ;;  %v21745_v51 = vand.u32 4294901760, %v17926_v40  ;;  %v8120_v58 = vsub.f32 %v17933_v44, %v21746_v45  ;;  %v5883_v44 = vld [vmem:[#allocation5 + $0x78] sm:$0xff] }
 0x489   :  { %8018 = vmatpush.msra.mxu3 %v17668_v54  ;;  %8053 = vmatpush.msrb.mxu0 %v17879_v1  ;;  %v21744_v54 = vld [vmem:[#allocation47_spill] sm:$0xff] }
 0x48a   :  { %7738 = vmatpush.msrb.mxu2 %v17817_v9  ;;  %7938 = vmatpush.msra.mxu1 %v17841_v11  ;;  %v8114_v42 = vsub.f32 %v17926_v40, %v21745_v51  ;;  %v18001_v51 = vand.u32 4294901760, %v5887_v34  ;;  %v21748_v40 = vld [vmem:[#allocation25_spill] sm:$0xff] }
 0x48b   :  { %7942 = vmatmul.f32.vlgmr.msra.gmra.mxu1 %v21744_v54  ;;  %8020 = vmatpush.msra.mxu3 %v17678_v14  ;;  %v8109_v14 = vand.u32 4294901760, %v8108_v8  ;;  %v17989_v54 = vand.u32 4294901760, %v5891_v15  ;;  %v18027_v8 = vand.u32 4294901760, %v5879_v37 }
 0x48c   :  { %8055 = vmatpush.msrb.mxu0 %v17887_v36  ;;  %8098 = vmatpush.msrb.mxu1 %v8097_v19  ;;  %v21747_v19 = vand.u32 4294901760, %v17946_v0 }
 0x48d   :  { %7740 = vmatpush.msrb.mxu2 %v17829_v13  ;;  %8022 = vmatpush.msra.mxu3 %v17688_v31  ;;  %v8115_v31 = vand.u32 4294901760, %v8114_v42  ;;  %v18012_v61 = vsub.f32 %v5891_v15, %v17989_v54  ;;  %v18025_v15 = vsub.f32 %v5887_v34, %v18001_v51 }
 0x48e   :  { %8057 = vmatpush.msrb.mxu0 %v17900_v38  ;;  %8104 = vmatpush.msrb.mxu1 %v8103_v60  ;;  %v8126_v45 = vsub.f32 %v17946_v0, %v21747_v19  ;;  %v8121_v60 = vand.u32 4294901760, %v8120_v58  ;;  %v21749_v19 = vand.u32 4294901760, %v17676_v35  ;;  %v18014_v0 = vand.u32 4294901760, %v5883_v44 }
 0x48f   :  { %7742 = vmatpush.msrb.mxu2 %v17841_v11  ;;  %8024 = vmatpush.msra.mxu3 %v17699_v16  ;;  %v21750_v16 = vand.u32 4294901760, %v17962_v3  ;;  %v21751_v35 = vand.u32 4294901760, %v17686_v50  ;;  %v21753_v50 = vand.u32 4294901760, %v17697_v41  ;;  %v21755_v41 = vand.u32 4294901760, %v17708_v52 }
 0x490   :  { %7748 = vmatmul.f32.vlgmr.msrb.gmra.mxu2 %v21748_v40  ;;  %8059 = vmatpush.msrb.mxu0 %v17908_v17  ;;  %v8127_v58 = vand.u32 4294901760, %v8126_v45  ;;  %v5875_v40 = vld [vmem:[#allocation5 + $0x38] sm:$0xff]  ;;  %v21754_v45 = vand.u32 4294901760, %v17987_v22  ;;  %v18038_v34 = vsub.f32 %v5883_v44, %v18014_v0  ;;  %v18051_v44 = vsub.f32 %v5879_v37, %v18027_v8 }
 0x491   :  { %7949 = vmatpush.msra.mxu2 %v21749_v19  ;;  %8110 = vmatpush.msrb.mxu1 %v8109_v14  ;;  %v8132_v42 = vsub.f32 %v17962_v3, %v21750_v16  ;;  %v21752_v14 = vand.u32 4294901760, %v17975_v21  ;;  %v8149_v16 = vand.u32 4294901760, %v17999_v4  ;;  %v21756_v52 = vand.u32 4294901760, %v17722_v27 }
 0x492   :  { %8026 = vmatpush.msra.mxu3 %v17713_v47  ;;  %8061 = vmatpush.msrb.mxu0 %v17912_v29  ;;  %v21757_v37 = vand.u32 4294901760, %v17741_v32 }
 0x493   :  { %7953 = vmatpush.msra.mxu2 %v21751_v35  ;;  %8116 = vmatpush.msrb.mxu1 %v8115_v31  ;;  %v8138_v19 = vsub.f32 %v17975_v21, %v21752_v14  ;;  %v8133_v47 = vand.u32 4294901760, %v8132_v42  ;;  %v8144_v31 = vsub.f32 %v17987_v22, %v21754_v45  ;;  %v8155_v35 = vand.u32 4294901760, %v18012_v61  ;;  %v5871_v14 = vld [vmem:[#allocation5 + $0x18] sm:$0xff] }
 0x494   :  { %8028 = vmatpush.msra.mxu3 %v17724_v5  ;;  %8063 = vmatpush.msrb.mxu0 %v17921_v59  ;;  %v18042_v5 = vand.u32 4294901760, %v5875_v40  ;;  %v8150_v42 = vsub.f32 %v17999_v4, %v8149_v16  ;;  %v8167_v45 = vand.u32 4294901760, %v18038_v34 }
 0x495   :  { %7957 = vmatpush.msra.mxu2 %v21753_v50  ;;  %8122 = vmatpush.msrb.mxu1 %v8121_v60  ;;  %v8139_v60 = vand.u32 4294901760, %v8138_v19  ;;  %v8161_v50 = vand.u32 4294901760, %v18025_v15  ;;  %v8156_v19 = vsub.f32 %v18012_v61, %v8155_v35 }
 0x496   :  { %8030 = vmatpush.msra.mxu3 %v17735_v18  ;;  %8065 = vmatpush.msrb.mxu0 %v17938_v62  ;;  %v18055_v18 = vand.u32 4294901760, %v5871_v14  ;;  %v8151_v27 = vand.u32 4294901760, %v8150_v42 }
 0x497   :  { %7961 = vmatpush.msra.mxu2 %v21755_v41  ;;  %8128 = vmatpush.msrb.mxu1 %v8127_v58  ;;  %v8145_v58 = vand.u32 4294901760, %v8144_v31  ;;  %v8173_v31 = vand.u32 4294901760, %v18051_v44  ;;  %v8157_v32 = vand.u32 4294901760, %v8156_v19  ;;  %v8168_v41 = vsub.f32 %v18038_v34, %v8167_v45 }
 0x498   :  { %8032 = vmatpush.msra.mxu3 %v17755_v28  ;;  %8067 = vmatpush.msrb.mxu0 %v17951_v30  ;;  %v18066_v28 = vsub.f32 %v5875_v40, %v18042_v5  ;;  %v21758_v40 = vand.u32 4294901760, %v17750_v55  ;;  %v21763_v19 = vand.u32 4294901760, %v17815_v10  ;;  %v21766_v10 = vand.u32 4294901760, %v17839_v49  ;;  %v21770_v49 = vld [vmem:[#allocation21_spill] sm:$0xff] }
 0x499   :  { %7965 = vmatpush.msra.mxu2 %v21756_v52  ;;  %8134 = vmatpush.msrb.mxu1 %v8133_v47  ;;  %v8162_v47 = vsub.f32 %v18025_v15, %v8161_v50  ;;  %v8174_v55 = vsub.f32 %v18051_v44, %v8173_v31  ;;  %v8169_v52 = vand.u32 4294901760, %v8168_v41 }
 0x49a   :  { %8034 = vmatpush.msra.mxu3 %v17769_v2  ;;  %8069 = vmatpush.msrb.mxu0 %v17964_v26  ;;  %v18077_v2 = vsub.f32 %v5871_v14, %v18055_v18 }
 0x49b   :  { %7969 = vmatpush.msra.mxu2 %v21757_v37  ;;  %8140 = vmatpush.msrb.mxu1 %v8139_v60  ;;  %v21759_v60 = vand.u32 4294901760, %v17763_v53  ;;  %v8163_v14 = vand.u32 4294901760, %v8162_v47  ;;  %v21767_v37 = vand.u32 4294901760, %v17904_v7  ;;  %v21772_v47 = vld [vmem:[#allocation49_spill] sm:$0xff] }
 0x49c   :  { %8036 = vmatpush.msra.mxu3 %v17781_v23  ;;  %8071 = vmatpush.msrb.mxu0 %v17977_v20  ;;  %v8179_v23 = vand.u32 4294901760, %v18066_v28  ;;  %v8185_v42 = vand.u32 4294901760, %v18077_v2 }
 0x49d   :  { %7973 = vmatpush.msra.mxu2 %v21758_v40  ;;  %8146 = vmatpush.msrb.mxu1 %v8145_v58  ;;  %v21761_v58 = vand.u32 4294901760, %v17791_v43  ;;  %v21773_v40 = vand.u32 4294901760, %v21772_v47 }
 0x49e   :  { %8038 = vmatpush.msra.mxu3 %v17793_v6  ;;  %8073 = vmatpush.msrb.mxu0 %v17989_v54  ;;  %v21760_v6 = vand.u32 4294901760, %v17779_v25  ;;  %v8180_v53 = vsub.f32 %v18066_v28, %v8179_v23  ;;  %v8186_v25 = vsub.f32 %v18077_v2, %v8185_v42 }
 0x49f   :  { %7977 = vmatpush.msra.mxu2 %v21759_v60  ;;  %8152 = vmatpush.msrb.mxu1 %v8151_v27  ;;  %v21771_v27 = vand.u32 4294901760, %v21770_v49  ;;  %v5991_v60 = vld [vmem:[#allocation5 + $0x3d8] sm:$0xff] }
 0x4a0   :  { %8040 = vmatpush.msra.mxu3 %v17805_v24  ;;  %8075 = vmatpush.msrb.mxu0 %v18001_v51  ;;  %v8175_v24 = vand.u32 4294901760, %v8174_v55  ;;  %v8181_v43 = vand.u32 4294901760, %v8180_v53 }
 0x4a1   :  { %7981 = vmatpush.msra.mxu2 %v21760_v6  ;;  %8158 = vmatpush.msrb.mxu1 %v8157_v32  ;;  %v21776_v32 = vld [vmem:[#allocation51_spill] sm:$0xff] }
 0x4a2   :  { %8042 = vmatpush.msra.mxu3 %v17817_v9  ;;  %8077 = vmatpush.msrb.mxu0 %v18014_v0  ;;  %v21762_v9 = vand.u32 4294901760, %v17803_v57  ;;  %v21764_v57 = vand.u32 4294901760, %v17827_v48  ;;  %v21769_v48 = vand.u32 4294901760, %v17917_v39  ;;  %v21777_v41 = vand.u32 4294901760, %v21776_v32  ;;  %v5979_v6 = vld [vmem:[#allocation5 + $0x378] sm:$0xff] }
 0x4a3   :  { %7985 = vmatpush.msra.mxu2 %v21761_v58  ;;  %8164 = vmatpush.msrb.mxu1 %v8163_v14 }
 0x4a4   :  { %8044 = vmatpush.msra.mxu3 %v17829_v13  ;;  %8079 = vmatpush.msrb.mxu0 %v18027_v8  ;;  %v8187_v13 = vand.u32 4294901760, %v8186_v25  ;;  %v5971_v25 = vld [vmem:[#allocation5 + $0x338] sm:$0xff] }
 0x4a5   :  { %7989 = vmatpush.msra.mxu2 %v21762_v9  ;;  %8170 = vmatpush.msrb.mxu1 %v8169_v52  ;;  %v5967_v9 = vld [vmem:[#allocation5 + $0x318] sm:$0xff] }
 0x4a6   :  { %8046 = vmatpush.msra.mxu3 %v17841_v11  ;;  %8081 = vmatpush.msrb.mxu0 %v18042_v5  ;;  %v21765_v11 = vand.u32 4294901760, %v17896_v12 }
 0x4a7   :  { %7993 = vmatpush.msra.mxu2 %v21763_v19  ;;  %8176 = vmatpush.msrb.mxu1 %v8175_v24  ;;  %v5975_v24 = vld [vmem:[#allocation5 + $0x358] sm:$0xff] }
 0x4a8   :  { %8048 = vmatmul.f32.vlgmr.msra.gmra.mxu3 %v17119_v63  ;;  %8083 = vmatpush.msrb.mxu0 %v18055_v18  ;;  %v5963_v19 = vld [vmem:[#allocation5 + $0x2f8] sm:$0xff] }
 0x4a9   :  { %8249 = vmatpush.msrb.mxu3 %v17879_v1  ;;  %7997 = vmatpush.msra.mxu2 %v21764_v57 }
 0x4aa   :  { %8182 = vmatpush.msrb.mxu1 %v8181_v43  ;;  %8089 = vmatmul.f32.vlgmr.msrb.gmra.mxu0 %v16718_v56  ;;  %v21768_v56 = vand.u32 4294901760, %v17851_v46  ;;  %v21774_v46 = vld [vmem:[#allocation27_spill] sm:$0xff]  ;;  %v18218_v43 = vand.u32 4294901760, %v5971_v25 }
 0x4ab   :  { %8251 = vmatpush.msrb.mxu3 %v17887_v36  ;;  %8290 = vmatpush.msra.mxu0 %v21765_v11  ;;  %v5959_v11 = vld [vmem:[#allocation5 + $0x2d8] sm:$0xff] }
 0x4ac   :  { %8001 = vmatpush.msra.mxu2 %v21766_v10  ;;  %8188 = vmatpush.msrb.mxu1 %v8187_v13  ;;  %v18244_v57 = vsub.f32 %v5971_v25, %v18218_v43  ;;  %v21782_v25 = vld [vmem:[#allocation19_spill] sm:$0xff] }
 0x4ad   :  { %8190 = vmatmul.f32.vlgmr.msrb.gmra.mxu1 %v16670_v33  ;;  %8253 = vmatpush.msrb.mxu3 %v17900_v38 }
 0x4ae   :  { %8294 = vmatpush.msra.mxu0 %v21767_v37  ;;  %8357 = vmatpush.msra.mxu1 %v17879_v1  ;;  %v21775_v1 = vand.u32 4294901760, %v21774_v46  ;;  %v5955_v37 = vld [vmem:[#allocation5 + $0x2b8] sm:$0xff]  ;;  %v8472_v49 = vand.u32 4294901760, %v18244_v57 }
 0x4af   :  { %8005 = vmatpush.msra.mxu2 %v21768_v56  ;;  %8255 = vmatpush.msrb.mxu3 %v17908_v17  ;;  %v21781_v56 = vld [vmem:[#allocation45_spill] sm:$0xff] }
 0x4b0   :  { %8298 = vmatpush.msra.mxu0 %v21769_v48  ;;  %8359 = vmatpush.msra.mxu1 %v17887_v36  ;;  %v5995_v36 = vld [vmem:[#allocation5 + $0x3f8] sm:$0xff]  ;;  %v18263_v48 = vand.u32 4294901760, %v5959_v11 }
 0x4b1   :  { %8009 = vmatpush.msra.mxu2 %v21771_v27  ;;  %8257 = vmatpush.msrb.mxu3 %v17912_v29  ;;  %v5951_v27 = vld [vmem:[#allocation5 + $0x298] sm:$0xff] }
 0x4b2   :  { %8011 = vmatmul.f32.vlgmr.msra.gmra.mxu2 %v17119_v63  ;;  %8302 = vmatpush.msra.mxu0 %v21773_v40 }
 0x4b3   :  { %8196 = vmatpush.msrb.mxu2 %v17896_v12  ;;  %8361 = vmatpush.msra.mxu1 %v17900_v38  ;;  %v18155_v38 = vand.u32 4294901760, %v5995_v36  ;;  %v21778_v12 = vand.u32 4294901760, %v17962_v3 }
 0x4b4   :  { %8259 = vmatpush.msrb.mxu3 %v17921_v59  ;;  %8306 = vmatpush.msra.mxu0 %v21775_v1  ;;  %v18285_v1 = vsub.f32 %v5959_v11, %v18263_v48 }
 0x4b5   :  { %8199 = vmatpush.msrb.mxu2 %v17904_v7  ;;  %8363 = vmatpush.msra.mxu1 %v17908_v17  ;;  %v5987_v7 = vld [vmem:[#allocation5 + $0x3b8] sm:$0xff]  ;;  %v18162_v17 = vand.u32 4294901760, %v5991_v60  ;;  %v18170_v14 = vsub.f32 %v5995_v36, %v18155_v38  ;;  %v18287_v36 = vand.u32 4294901760, %v5951_v27 }
 0x4b6   :  { %8261 = vmatpush.msrb.mxu3 %v17938_v62  ;;  %8310 = vmatpush.msra.mxu0 %v21777_v41  ;;  %v18172_v55 = vand.u32 4294901760, %v5987_v7  ;;  %v8473_v41 = vsub.f32 %v18244_v57, %v8472_v49 }
 0x4b7   :  { %8202 = vmatpush.msrb.mxu2 %v17917_v39  ;;  %8365 = vmatpush.msra.mxu1 %v17912_v29  ;;  %v21779_v39 = vand.u32 4294901760, %v17975_v21  ;;  %v5983_v29 = vld [vmem:[#allocation5 + $0x398] sm:$0xff]  ;;  %v18180_v52 = vsub.f32 %v5991_v60, %v18162_v17 }
 0x4b8   :  { %8263 = vmatpush.msrb.mxu3 %v17951_v30  ;;  %8314 = vmatpush.msra.mxu0 %v21778_v12  ;;  %v18182_v53 = vand.u32 4294901760, %v5983_v29  ;;  %v18191_v58 = vsub.f32 %v5987_v7, %v18172_v55  ;;  %v5939_v7 = vld [vmem:[#allocation5 + $0x238] sm:$0xff] }
 0x4b9   :  { %8205 = vmatpush.msrb.mxu2 %v21772_v47  ;;  %8367 = vmatpush.msra.mxu1 %v17921_v59  ;;  %v21780_v59 = vand.u32 4294901760, %v17987_v22  ;;  %v18275_v47 = vand.u32 4294901760, %v5955_v37 }
 0x4ba   :  { %8265 = vmatpush.msrb.mxu3 %v17964_v26  ;;  %8318 = vmatpush.msra.mxu0 %v21779_v39 }
 0x4bb   :  { %8208 = vmatpush.msrb.mxu2 %v21774_v46  ;;  %8369 = vmatpush.msra.mxu1 %v17938_v62  ;;  %v8436_v62 = vand.u32 4294901760, %v18170_v14  ;;  %v5947_v46 = vld [vmem:[#allocation5 + $0x278] sm:$0xff]  ;;  %v18297_v60 = vsub.f32 %v5955_v37, %v18275_v47 }
 0x4bc   :  { %8267 = vmatpush.msrb.mxu3 %v17977_v20  ;;  %8322 = vmatpush.msra.mxu0 %v21780_v59  ;;  %v18299_v12 = vand.u32 4294901760, %v5947_v46  ;;  %v18309_v59 = vsub.f32 %v5951_v27, %v18287_v36 }
 0x4bd   :  { %8211 = vmatpush.msrb.mxu2 %v21776_v32  ;;  %8371 = vmatpush.msra.mxu1 %v17951_v30  ;;  %v18193_v30 = vand.u32 4294901760, %v5979_v6 }
 0x4be   :  { %8269 = vmatpush.msrb.mxu3 %v17989_v54  ;;  %8326 = vmatpush.msra.mxu0 %v8149_v16  ;;  %v18207_v16 = vand.u32 4294901760, %v5975_v24 }
 0x4bf   :  { %8214 = vmatpush.msrb.mxu2 %v17962_v3  ;;  %8373 = vmatpush.msra.mxu1 %v17964_v26  ;;  %v8442_v26 = vand.u32 4294901760, %v18180_v52  ;;  %v18202_v3 = vsub.f32 %v5983_v29, %v18182_v53  ;;  %v8490_v29 = vand.u32 4294901760, %v18285_v1 }
 0x4c0   :  { %8271 = vmatpush.msrb.mxu3 %v18001_v51  ;;  %8330 = vmatpush.msra.mxu0 %v8155_v35  ;;  %v18216_v35 = vsub.f32 %v5979_v6, %v18193_v30 }
 0x4c1   :  { %8217 = vmatpush.msrb.mxu2 %v17975_v21  ;;  %8375 = vmatpush.msra.mxu1 %v17977_v20  ;;  %v8437_v20 = vsub.f32 %v18170_v14, %v8436_v62  ;;  %v8448_v21 = vand.u32 4294901760, %v18191_v58 }
 0x4c2   :  { %8273 = vmatpush.msrb.mxu3 %v18014_v0  ;;  %8334 = vmatpush.msra.mxu0 %v8161_v50  ;;  %v18229_v50 = vand.u32 4294901760, %v5967_v9  ;;  %v8460_v13 = vand.u32 4294901760, %v18216_v35 }
 0x4c3   :  { %8220 = vmatpush.msrb.mxu2 %v17987_v22  ;;  %8377 = vmatpush.msra.mxu1 %v17989_v54  ;;  %v8443_v54 = vsub.f32 %v18180_v52, %v8442_v26  ;;  %v8454_v22 = vand.u32 4294901760, %v18202_v3 }
 0x4c4   :  { %8275 = vmatpush.msrb.mxu3 %v18027_v8  ;;  %8338 = vmatpush.msra.mxu0 %v8167_v45  ;;  %v18235_v45 = vsub.f32 %v5975_v24, %v18207_v16  ;;  %v18257_v10 = vsub.f32 %v5967_v9, %v18229_v50  ;;  %v5935_v24 = vld [vmem:[#allocation5 + $0x218] sm:$0xff] }
 0x4c5   :  { %8223 = vmatpush.msrb.mxu2 %v17999_v4  ;;  %8379 = vmatpush.msra.mxu1 %v18001_v51  ;;  %v8438_v51 = vand.u32 4294901760, %v8437_v20  ;;  %v8449_v4 = vsub.f32 %v18191_v58, %v8448_v21  ;;  %v8496_v20 = vand.u32 4294901760, %v18297_v60 }
 0x4c6   :  { %8277 = vmatpush.msrb.mxu3 %v18042_v5  ;;  %8342 = vmatpush.msra.mxu0 %v8173_v31  ;;  %v18249_v31 = vand.u32 4294901760, %v5963_v19  ;;  %v8478_v40 = vand.u32 4294901760, %v18257_v10 }
 0x4c7   :  { %8226 = vmatpush.msrb.mxu2 %v18012_v61  ;;  %8381 = vmatpush.msra.mxu1 %v18014_v0  ;;  %v8444_v0 = vand.u32 4294901760, %v8443_v54  ;;  %v8455_v61 = vsub.f32 %v18202_v3, %v8454_v22  ;;  %v18321_v54 = vsub.f32 %v5947_v46, %v18299_v12  ;;  %v8497_v37 = vsub.f32 %v18297_v60, %v8496_v20 }
 0x4c8   :  { %8279 = vmatpush.msrb.mxu3 %v18055_v18  ;;  %8346 = vmatpush.msra.mxu0 %v8179_v23  ;;  %v8466_v23 = vand.u32 4294901760, %v18235_v45 }
 0x4c9   :  { %8229 = vmatpush.msrb.mxu2 %v18025_v15  ;;  %8383 = vmatpush.msra.mxu1 %v18027_v8  ;;  %v8450_v8 = vand.u32 4294901760, %v8449_v4  ;;  %v8461_v15 = vsub.f32 %v18216_v35, %v8460_v13  ;;  %v8502_v4 = vand.u32 4294901760, %v18309_v59 }
 0x4ca   :  { %8283 = vmatmul.f32.vlgmr.msrb.gmra.mxu3 %v21781_v56  ;;  %8350 = vmatpush.msra.mxu0 %v8185_v42  ;;  %v18273_v42 = vsub.f32 %v5963_v19, %v18249_v31  ;;  %v18323_v19 = vand.u32 4294901760, %v5939_v7  ;;  %v8508_v56 = vand.u32 4294901760, %v18321_v54 }
 0x4cb   :  { %8439 = vmatpush.msra.mxu3 %v8438_v51  ;;  %8232 = vmatpush.msrb.mxu2 %v18038_v34  ;;  %v8456_v34 = vand.u32 4294901760, %v8455_v61  ;;  %v8462_v32 = vand.u32 4294901760, %v8461_v15  ;;  %v8491_v51 = vsub.f32 %v18285_v1, %v8490_v29  ;;  %v8503_v27 = vsub.f32 %v18309_v59, %v8502_v4 }
 0x4cc   :  { %8385 = vmatpush.msra.mxu1 %v18042_v5  ;;  %8352 = vmatmul.f32.vlgmr.msra.gmra.mxu0 %v16670_v33  ;;  %v8467_v5 = vsub.f32 %v18235_v45, %v8466_v23 }
 0x4cd   :  { %8445 = vmatpush.msra.mxu3 %v8444_v0  ;;  %8537 = vmatpush.msrb.mxu0 %v18170_v14  ;;  %v18335_v0 = vand.u32 4294901760, %v5935_v24  ;;  %v8492_v15 = vand.u32 4294901760, %v8491_v51  ;;  %v21783_v51 = vld [vmem:[#allocation24_spill] sm:$0xff] }
 0x4ce   :  { %8235 = vmatpush.msrb.mxu2 %v18051_v44  ;;  %8387 = vmatpush.msra.mxu1 %v18055_v18  ;;  %v5943_v44 = vld [vmem:[#allocation5 + $0x258] sm:$0xff]  ;;  %v8484_v18 = vand.u32 4294901760, %v18273_v42  ;;  %v8468_v39 = vand.u32 4294901760, %v8467_v5  ;;  %v8498_v5 = vand.u32 4294901760, %v8497_v37  ;;  %v8797_v14 = vld [vmem:[#allocation7 + $0x1c0] sm:$0xff] }
 0x4cf   :  { %8389 = vmatmul.f32.vlgmr.msra.gmra.mxu1 %v16670_v33  ;;  %8451 = vmatpush.msra.mxu3 %v8450_v8  ;;  %v8479_v33 = vsub.f32 %v18257_v10, %v8478_v40  ;;  %v18311_v6 = vand.u32 4294901760, %v5943_v44  ;;  %v18345_v8 = vsub.f32 %v5939_v7, %v18323_v19  ;;  %v18355_v46 = vsub.f32 %v5935_v24, %v18335_v0  ;;  %v8769_v37 = vld [vmem:[#allocation7 + $0xe0] sm:$0xff] }
 0x4d0   :  { %8540 = vmatpush.msrb.mxu0 %v18180_v52  ;;  %8590 = vmatpush.msrb.mxu1 %v18155_v38  ;;  %v8485_v9 = vsub.f32 %v18273_v42, %v8484_v18 }
 0x4d1   :  { %8238 = vmatpush.msrb.mxu2 %v18066_v28  ;;  %8457 = vmatpush.msra.mxu3 %v8456_v34  ;;  %v8474_v28 = vand.u32 4294901760, %v8473_v41  ;;  %v18333_v11 = vsub.f32 %v5943_v44, %v18311_v6  ;;  %v8520_v41 = vand.u32 4294901760, %v18345_v8  ;;  %v8504_v44 = vand.u32 4294901760, %v8503_v27 }
 0x4d2   :  { %8543 = vmatpush.msrb.mxu0 %v18191_v58  ;;  %8592 = vmatpush.msrb.mxu1 %v18162_v17  ;;  %v8486_v61 = vand.u32 4294901760, %v8485_v9  ;;  %v8526_v7 = vand.u32 4294901760, %v18355_v46  ;;  %v18549_v27 = vand.u32 4294901760, %v8769_v37 }
 0x4d3   :  { %8241 = vmatpush.msrb.mxu2 %v18077_v2  ;;  %8463 = vmatpush.msra.mxu3 %v8462_v32  ;;  %v8480_v2 = vand.u32 4294901760, %v8479_v33  ;;  %v8514_v34 = vand.u32 4294901760, %v18333_v11  ;;  %v8509_v32 = vsub.f32 %v18321_v54, %v8508_v56 }
 0x4d4   :  { %8244 = vmatmul.f32.vlgmr.msrb.gmra.mxu2 %v21782_v25  ;;  %8546 = vmatpush.msrb.mxu0 %v18202_v3  ;;  %v8527_v25 = vsub.f32 %v18355_v46, %v8526_v7 }
 0x4d5   :  { %8394 = vmatpush.msra.mxu2 %v18155_v38  ;;  %8594 = vmatpush.msrb.mxu1 %v18172_v55  ;;  %v8515_v33 = vsub.f32 %v18333_v11, %v8514_v34 }
 0x4d6   :  { %8469 = vmatpush.msra.mxu3 %v8468_v39  ;;  %8549 = vmatpush.msrb.mxu0 %v18216_v35  ;;  %v8510_v39 = vand.u32 4294901760, %v8509_v32 }
 0x4d7   :  { %8396 = vmatpush.msra.mxu2 %v18162_v17  ;;  %8596 = vmatpush.msrb.mxu1 %v18182_v53  ;;  %v8516_v24 = vand.u32 4294901760, %v8515_v33 }
 0x4d8   :  { %8475 = vmatpush.msra.mxu3 %v8474_v28  ;;  %8552 = vmatpush.msrb.mxu0 %v18235_v45  ;;  %v8521_v28 = vsub.f32 %v18345_v8, %v8520_v41 }
 0x4d9   :  { %8398 = vmatpush.msra.mxu2 %v18172_v55  ;;  %8598 = vmatpush.msrb.mxu1 %v18193_v30 }
 0x4da   :  { %8481 = vmatpush.msra.mxu3 %v8480_v2  ;;  %8555 = vmatpush.msrb.mxu0 %v18244_v57  ;;  %v8522_v9 = vand.u32 4294901760, %v8521_v28  ;;  %v8528_v2 = vand.u32 4294901760, %v8527_v25  ;;  %v18496_v57 = vpop.f32.mrf.mxu0  ;;  %v8761_v28 = vld [vmem:[#allocation7 + $0xa0] sm:$0xff] }
 0x4db   :  { %8400 = vmatpush.msra.mxu2 %v18182_v53  ;;  %8600 = vmatpush.msrb.mxu1 %v18207_v16 }
 0x4dc   :  { %8487 = vmatpush.msra.mxu3 %v8486_v61  ;;  %8558 = vmatpush.msrb.mxu0 %v18257_v10  ;;  %v21784_v61 = vld [vmem:[#allocation47_spill] sm:$0xff] }
 0x4dd   :  { %8402 = vmatpush.msra.mxu2 %v18193_v30  ;;  %8602 = vmatpush.msrb.mxu1 %v18218_v43 }
 0x4de   :  { %8493 = vmatpush.msra.mxu3 %v8492_v15  ;;  %8561 = vmatpush.msrb.mxu0 %v18273_v42 }
 0x4df   :  { %8404 = vmatpush.msra.mxu2 %v18207_v16  ;;  %8604 = vmatpush.msrb.mxu1 %v18229_v50 }
 0x4e0   :  { %8499 = vmatpush.msra.mxu3 %v8498_v5  ;;  %8564 = vmatpush.msrb.mxu0 %v18285_v1  ;;  %v18512_v1 = vpop.f32.mrf.mxu1 }
 0x4e1   :  { %8406 = vmatpush.msra.mxu2 %v18218_v43  ;;  %8606 = vmatpush.msrb.mxu1 %v18249_v31 }
 0x4e2   :  { %8505 = vmatpush.msra.mxu3 %v8504_v44  ;;  %8567 = vmatpush.msrb.mxu0 %v18297_v60 }
 0x4e3   :  { %8408 = vmatpush.msra.mxu2 %v18229_v50  ;;  %8608 = vmatpush.msrb.mxu1 %v18263_v48 }
 0x4e4   :  { %8511 = vmatpush.msra.mxu3 %v8510_v39  ;;  %8570 = vmatpush.msrb.mxu0 %v18309_v59  ;;  %v18526_v59 = vpop.f32.mrf.mxu2 }
 0x4e5   :  { %8410 = vmatpush.msra.mxu2 %v18249_v31  ;;  %8610 = vmatpush.msrb.mxu1 %v18275_v47 }
 0x4e6   :  { %8517 = vmatpush.msra.mxu3 %v8516_v24  ;;  %8573 = vmatpush.msrb.mxu0 %v18321_v54 }
 0x4e7   :  { %8412 = vmatpush.msra.mxu2 %v18263_v48  ;;  %8612 = vmatpush.msrb.mxu1 %v18287_v36 }
 0x4e8   :  { %8523 = vmatpush.msra.mxu3 %v8522_v9  ;;  %8576 = vmatpush.msrb.mxu0 %v18333_v11  ;;  %v18538_v11 = vpop.f32.mrf.mxu0  ;;  %v18564_v33 = vpop.f32.mrf.mxu1 }
 0x4e9   :  { %8414 = vmatpush.msra.mxu2 %v18275_v47  ;;  %8614 = vmatpush.msrb.mxu1 %v18299_v12 }
 0x4ea   :  { %8529 = vmatpush.msra.mxu3 %v8528_v2  ;;  %8579 = vmatpush.msrb.mxu0 %v18345_v8  ;;  %v18575_v2 = vand.u32 4294901760, %v8761_v28 }
 0x4eb   :  { %8416 = vmatpush.msra.mxu2 %v18287_v36  ;;  %8616 = vmatpush.msrb.mxu1 %v18311_v6 }
 0x4ec   :  { %8531 = vmatmul.f32.vlgmr.msra.gmra.mxu3 %v17119_v63  ;;  %8582 = vmatpush.msrb.mxu0 %v18355_v46  ;;  %v8765_v46 = vld [vmem:[#allocation7 + $0xc0] sm:$0xff] }
 0x4ed   :  { %8698 = vmatpush.msrb.mxu3 %v18155_v38  ;;  %8418 = vmatpush.msra.mxu2 %v18299_v12  ;;  %v21785_v38 = vld [vmem:[#allocation25_spill] sm:$0xff]  ;;  %v18562_v44 = vand.u32 4294901760, %v8765_v46 }
 0x4ee   :  { %8618 = vmatpush.msrb.mxu1 %v18323_v19  ;;  %8585 = vmatmul.f32.vlgmr.msrb.gmra.mxu0 %v21783_v51  ;;  %v18578_v51 = vpop.f32.mrf.mxu2 }
 0x4ef   :  { %8700 = vmatpush.msrb.mxu3 %v18162_v17  ;;  %8420 = vmatpush.msra.mxu2 %v18311_v6  ;;  %v8801_v17 = vld [vmem:[#allocation7 + $0x1e0] sm:$0xff]  ;;  %v18573_v9 = vsub.f32 %v8765_v46, %v18562_v44 }
 0x4f0   :  { %8620 = vmatpush.msrb.mxu1 %v18335_v0  ;;  %v18458_v52 = vand.u32 4294901760, %v8801_v17  ;;  %v8745_v46 = vld [vmem:[#allocation7 + $0x20] sm:$0xff] }
 0x4f1   :  { %8624 = vmatmul.f32.vlgmr.msrb.gmra.mxu1 %v21784_v61  ;;  %8702 = vmatpush.msrb.mxu3 %v18172_v55  ;;  %v8793_v55 = vld [vmem:[#allocation7 + $0x1a0] sm:$0xff] }
 0x4f2   :  { %8422 = vmatpush.msra.mxu2 %v18323_v19  ;;  %v18465_v58 = vsub.f32 %v8801_v17, %v18458_v52  ;;  %8816 = vmatpush.msra.mxu0 %v18458_v52 }
 0x4f3   :  { %8704 = vmatpush.msrb.mxu3 %v18182_v53  ;;  %v18460_v53 = vand.u32 4294901760, %v8797_v14 }
 0x4f4   :  { %8424 = vmatpush.msra.mxu2 %v18335_v0 }
 0x4f5   :  { %8430 = vmatmul.f32.vlgmr.msra.gmra.mxu2 %v21785_v38  ;;  %8706 = vmatpush.msrb.mxu3 %v18193_v30  ;;  %v18468_v30 = vsub.f32 %v8797_v14, %v18460_v53  ;;  %v8757_v38 = vld [vmem:[#allocation7 + $0x80] sm:$0xff]  ;;  %v21084_v14 = vand.u32 4294901760, %v18573_v9 }
 0x4f6   :  { %8631 = vmatpush.msrb.mxu2 %v8436_v62  ;;  %v18462_v62 = vand.u32 4294901760, %v8793_v55  ;;  %8818 = vmatpush.msra.mxu0 %v18460_v53 }
 0x4f7   :  { %8708 = vmatpush.msrb.mxu3 %v18207_v16  ;;  %v21095_v3 = vand.u32 4294901760, %v18468_v30 }
 0x4f8   :  { %8635 = vmatpush.msrb.mxu2 %v8442_v26  ;;  %v18471_v26 = vsub.f32 %v8793_v55, %v18462_v62  ;;  %8820 = vmatpush.msra.mxu0 %v18462_v62  ;;  %v18590_v55 = vsub.f32 %v8761_v28, %v18575_v2 }
 0x4f9   :  { %8710 = vmatpush.msrb.mxu3 %v18218_v43  ;;  %v8865_v35 = vsub.f32 %v18468_v30, %v21095_v3 }
 0x4fa   :  { %8639 = vmatpush.msrb.mxu2 %v8448_v21  ;;  %v21094_v16 = vand.u32 4294901760, %v18471_v26 }
 0x4fb   :  { %8712 = vmatpush.msrb.mxu3 %v18229_v50  ;;  %v8866_v45 = vand.u32 4294901760, %v8865_v35  ;;  %v18595_v35 = vpop.f32.mrf.mxu0 }
 0x4fc   :  { %8643 = vmatpush.msrb.mxu2 %v8454_v22  ;;  %v8871_v43 = vsub.f32 %v18471_v26, %v21094_v16  ;;  %v8789_v22 = vld [vmem:[#allocation7 + $0x180] sm:$0xff] }
 0x4fd   :  { %8714 = vmatpush.msrb.mxu3 %v18249_v31  ;;  %v8785_v31 = vld [vmem:[#allocation7 + $0x160] sm:$0xff] }
 0x4fe   :  { %8647 = vmatpush.msrb.mxu2 %v8460_v13  ;;  %v18493_v13 = vand.u32 4294901760, %v8789_v22  ;;  %v8872_v10 = vand.u32 4294901760, %v8871_v43 }
 0x4ff   :  { %8716 = vmatpush.msrb.mxu3 %v18263_v48  ;;  %v18501_v48 = vand.u32 4294901760, %v8785_v31 }
 0x500   :  { %8651 = vmatpush.msrb.mxu2 %v8466_v23  ;;  %v18499_v23 = vsub.f32 %v8789_v22, %v18493_v13  ;;  %8822 = vmatpush.msra.mxu0 %v18493_v13  ;;  %v8753_v22 = vld [vmem:[#allocation7 + $0x60] sm:$0xff] }
 0x501   :  { %8718 = vmatpush.msrb.mxu3 %v18275_v47  ;;  %v18507_v47 = vsub.f32 %v8785_v31, %v18501_v48  ;;  %v21083_v31 = vand.u32 4294901760, %v18590_v55 }
 0x502   :  { %8655 = vmatpush.msrb.mxu2 %v8472_v49  ;;  %v8781_v49 = vld [vmem:[#allocation7 + $0x140] sm:$0xff]  ;;  %v21093_v42 = vand.u32 4294901760, %v18499_v23  ;;  %8824 = vmatpush.msra.mxu0 %v18501_v48 }
 0x503   :  { %8720 = vmatpush.msrb.mxu3 %v18287_v36  ;;  %v8777_v36 = vld [vmem:[#allocation7 + $0x120] sm:$0xff]  ;;  %v21091_v60 = vand.u32 4294901760, %v18507_v47 }
 0x504   :  { %8659 = vmatpush.msrb.mxu2 %v8478_v40  ;;  %v18510_v40 = vand.u32 4294901760, %v8781_v49 }
 0x505   :  { %8722 = vmatpush.msrb.mxu3 %v18299_v12  ;;  %v8883_v54 = vsub.f32 %v18507_v47, %v21091_v60 }
 0x506   :  { %8663 = vmatpush.msrb.mxu2 %v8484_v18  ;;  %v8877_v18 = vsub.f32 %v18499_v23, %v21093_v42  ;;  %v18521_v12 = vsub.f32 %v8781_v49, %v18510_v40  ;;  %8826 = vmatpush.msra.mxu0 %v18510_v40  ;;  %v18608_v49 = vand.u32 4294901760, %v8753_v22 }
 0x507   :  { %8724 = vmatpush.msrb.mxu3 %v18311_v6  ;;  %v8773_v6 = vld [vmem:[#allocation7 + $0x100] sm:$0xff] }
 0x508   :  { %8667 = vmatpush.msrb.mxu2 %v8490_v29  ;;  %v18524_v29 = vand.u32 4294901760, %v8777_v36 }
 0x509   :  { %8726 = vmatpush.msrb.mxu3 %v18323_v19  ;;  %v21090_v19 = vand.u32 4294901760, %v18521_v12 }
 0x50a   :  { %8671 = vmatpush.msrb.mxu2 %v8496_v20  ;;  %v8878_v20 = vand.u32 4294901760, %v8877_v18  ;;  %8828 = vmatpush.msra.mxu0 %v18524_v29 }
 0x50b   :  { %8728 = vmatpush.msrb.mxu3 %v18335_v0  ;;  %v18540_v0 = vand.u32 4294901760, %v8773_v6  ;;  %v8889_v8 = vsub.f32 %v18521_v12, %v21090_v19 }
 0x50c   :  { %8675 = vmatpush.msrb.mxu2 %v8502_v4  ;;  %8730 = vmatmul.f32.vlgmr.msrb.gmra.mxu3 %v17119_v63  ;;  %v18535_v4 = vsub.f32 %v8777_v36, %v18524_v29  ;;  %v8749_v36 = vld [vmem:[#allocation7 + $0x40] sm:$0xff] }
 0x50d   :  { %9012 = vmatpush.msra.mxu3 %v18458_v52  ;;  %8830 = vmatpush.msra.mxu0 %v18540_v0  ;;  %v8890_v5 = vand.u32 4294901760, %v8889_v8  ;;  %v18623_v8 = vsub.f32 %v8753_v22, %v18608_v49 }
 0x50e   :  { %8679 = vmatpush.msrb.mxu2 %v8508_v56  ;;  %v8884_v56 = vand.u32 4294901760, %v8883_v54  ;;  %v21088_v15 = vand.u32 4294901760, %v18535_v4  ;;  %v18614_v54 = vand.u32 4294901760, %v8749_v36 }
 0x50f   :  { %9014 = vmatpush.msra.mxu3 %v18460_v53  ;;  %8832 = vmatpush.msra.mxu0 %v18549_v27 }
 0x510   :  { %8683 = vmatpush.msrb.mxu2 %v8514_v34  ;;  %v18552_v34 = vsub.f32 %v8773_v6, %v18540_v0  ;;  %v8895_v32 = vsub.f32 %v18535_v4, %v21088_v15  ;;  %v8919_v6 = vsub.f32 %v18590_v55, %v21083_v31  ;;  %v18630_v28 = vsub.f32 %v8749_v36, %v18614_v54  ;;  %v8802_v36 = vld [vmem:[#allocation7 + $0x1e8] sm:$0xff] }
 0x511   :  { %9016 = vmatpush.msra.mxu3 %v18462_v62  ;;  %8834 = vmatpush.msra.mxu0 %v18562_v44 }
 0x512   :  { %8687 = vmatpush.msrb.mxu2 %v8520_v41  ;;  %v18560_v41 = vsub.f32 %v8769_v37, %v18549_v27  ;;  %v21086_v39 = vand.u32 4294901760, %v18552_v34  ;;  %v8896_v24 = vand.u32 4294901760, %v8895_v32  ;;  %v18618_v37 = vpop.f32.mrf.mxu1  ;;  %v21089_v22 = vand.u32 4294901760, %v18630_v28 }
 0x513   :  { %9018 = vmatpush.msra.mxu3 %v18493_v13  ;;  %8836 = vmatpush.msra.mxu0 %v18575_v2 }
 0x514   :  { %8691 = vmatpush.msrb.mxu2 %v8526_v7  ;;  %v18566_v7 = vpop.f32.mrf.mxu3  ;;  %v21085_v25 = vand.u32 4294901760, %v18560_v41  ;;  %v8901_v61 = vsub.f32 %v18552_v34, %v21086_v39 }
 0x515   :  { %8693 = vmatmul.f32.vlgmr.msrb.gmra.mxu2 %v17119_v63  ;;  %v8858_v63 = vand.u32 4294901760, %v18465_v58  ;;  %9020 = vmatpush.msra.mxu3 %v18501_v48 }
 0x516   :  { %8959 = vmatpush.msra.mxu2 %v18465_v58  ;;  %v8907_v17 = vsub.f32 %v18560_v41, %v21085_v25  ;;  %v8902_v43 = vand.u32 4294901760, %v8901_v61  ;;  %v18636_v61 = vpop.f32.mrf.mxu2 }
 0x517   :  { %v8859_v21 = vsub.f32 %v18465_v58, %v8858_v63  ;;  %9022 = vmatpush.msra.mxu3 %v18510_v40  ;;  %v21789_v58 = vand.u32 4294901760, %v18468_v30 }
 0x518   :  { %8962 = vmatpush.msra.mxu2 %v18468_v30 }
 0x519   :  { %v8860_v50 = vand.u32 4294901760, %v8859_v21  ;;  %9024 = vmatpush.msra.mxu3 %v18524_v29  ;;  %v18592_v21 = vand.u32 4294901760, %v8757_v38 }
 0x51a   :  { %8965 = vmatpush.msra.mxu2 %v18471_v26 }
 0x51b   :  { %8861 = vmatpush.msra.mxu1 %v8860_v50  ;;  %9026 = vmatpush.msra.mxu3 %v18540_v0  ;;  %v8908_v50 = vand.u32 4294901760, %v8907_v17  ;;  %v8741_v17 = vld [vmem:[#allocation7] sm:$0xff] }
 0x51c   :  { %8968 = vmatpush.msra.mxu2 %v18499_v23  ;;  %8838 = vmatpush.msra.mxu0 %v18592_v21 }
 0x51d   :  { %8867 = vmatpush.msra.mxu1 %v8866_v45  ;;  %9028 = vmatpush.msra.mxu3 %v18549_v27  ;;  %v8913_v45 = vsub.f32 %v18573_v9, %v21084_v14  ;;  %v8937_v14 = vsub.f32 %v18630_v28, %v21089_v22 }
 0x51e   :  { %8971 = vmatpush.msra.mxu2 %v18507_v47  ;;  %8840 = vmatpush.msra.mxu0 %v18608_v49  ;;  %v18698_v16 = vpop.f32.mrf.mxu2 }
 0x51f   :  { %8873 = vmatpush.msra.mxu1 %v8872_v10  ;;  %9030 = vmatpush.msra.mxu3 %v18562_v44  ;;  %v18604_v10 = vsub.f32 %v8757_v38, %v18592_v21  ;;  %v8914_v18 = vand.u32 4294901760, %v8913_v45  ;;  %v21087_v38 = vand.u32 4294901760, %v18623_v8  ;;  %v18644_v45 = vand.u32 4294901760, %v8741_v17 }
 0x520   :  { %8974 = vmatpush.msra.mxu2 %v18521_v12  ;;  %8842 = vmatpush.msra.mxu0 %v18614_v54  ;;  %v8938_v19 = vand.u32 4294901760, %v8937_v14 }
 0x521   :  { %8879 = vmatpush.msra.mxu1 %v8878_v20  ;;  %9032 = vmatpush.msra.mxu3 %v18575_v2  ;;  %v21082_v20 = vand.u32 4294901760, %v18604_v10  ;;  %v18663_v39 = vsub.f32 %v8741_v17, %v18644_v45 }
 0x522   :  { %8977 = vmatpush.msra.mxu2 %v18535_v4 }
 0x523   :  { %8885 = vmatpush.msra.mxu1 %v8884_v56  ;;  %9034 = vmatpush.msra.mxu3 %v18592_v21  ;;  %v18620_v56 = vpop.f32.mrf.mxu3  ;;  %v8925_v32 = vsub.f32 %v18604_v10, %v21082_v20  ;;  %v18648_v20 = vpop.f32.mrf.mxu0  ;;  %v21096_v60 = vand.u32 4294901760, %v18663_v39 }
 0x524   :  { %8980 = vmatpush.msra.mxu2 %v18552_v34 }
 0x525   :  { %8891 = vmatpush.msra.mxu1 %v8890_v5  ;;  %v8920_v5 = vand.u32 4294901760, %v8919_v6  ;;  %9036 = vmatpush.msra.mxu3 %v18608_v49  ;;  %v8798_v6 = vld [vmem:[#allocation7 + $0x1c8] sm:$0xff]  ;;  %v8949_v42 = vsub.f32 %v18663_v39, %v21096_v60 }
 0x526   :  { %8983 = vmatpush.msra.mxu2 %v18560_v41  ;;  %v18656_v31 = vand.u32 4294901760, %v8798_v6 }
 0x527   :  { %8897 = vmatpush.msra.mxu1 %v8896_v24  ;;  %v18632_v24 = vand.u32 4294901760, %v8745_v46  ;;  %9038 = vmatpush.msra.mxu3 %v18614_v54  ;;  %v8950_v60 = vand.u32 4294901760, %v8949_v42  ;;  %v21790_v42 = vand.u32 4294901760, %v18471_v26  ;;  %v21793_v26 = vand.u32 4294901760, %v18499_v23  ;;  %v18746_v23 = vld [vmem:[%s20812_s6] sm:$0xf] }
 0x528   :  { %8986 = vmatpush.msra.mxu2 %v18573_v9  ;;  %v18674_v22 = vsub.f32 %v8798_v6, %v18656_v31 }
 0x529   :  { %8903 = vmatpush.msra.mxu1 %v8902_v43  ;;  %v8926_v43 = vand.u32 4294901760, %v8925_v32  ;;  %v8931_v32 = vsub.f32 %v18623_v8, %v21087_v38  ;;  %9040 = vmatpush.msra.mxu3 %v18632_v24 }
 0x52a   :  { %8989 = vmatpush.msra.mxu2 %v18590_v55  ;;  %8844 = vmatpush.msra.mxu0 %v18632_v24  ;;  %v21101_v14 = vand.u32 4294901760, %v18674_v22 }
 0x52b   :  { %8909 = vmatpush.msra.mxu1 %v8908_v50  ;;  %v18642_v50 = vsub.f32 %v8745_v46, %v18632_v24  ;;  %v18654_v46 = vand.u32 4294901760, %v8802_v36  ;;  %v8932_v38 = vand.u32 4294901760, %v8931_v32  ;;  %9042 = vmatpush.msra.mxu3 %v18644_v45  ;;  %v18684_v32 = vpop.f32.mrf.mxu3 }
 0x52c   :  { %8992 = vmatpush.msra.mxu2 %v18604_v10  ;;  %8846 = vmatpush.msra.mxu0 %v18644_v45  ;;  %21787 = vst [vmem:[#allocation52_spill] sm:$0xff] %v18684_v32 }
 0x52d   :  { %8915 = vmatpush.msra.mxu1 %v8914_v18  ;;  %v8794_v18 = vld [vmem:[#allocation7 + $0x1a8] sm:$0xff]  ;;  %21786 = vst [vmem:[#allocation29_spill] sm:$0xff] %v18654_v46  ;;  %v21092_v25 = vand.u32 4294901760, %v18642_v50  ;;  %v18671_v15 = vsub.f32 %v8802_v36, %v18654_v46 }
 0x52e   :  { %8995 = vmatpush.msra.mxu2 %v18623_v8  ;;  %9053 = vmatpush.msrb.mxu0 %v8858_v63  ;;  %v18710_v63 = vpop.f32.mrf.mxu0 }
 0x52f   :  { %8921 = vmatpush.msra.mxu1 %v8920_v5  ;;  %v18667_v5 = vand.u32 4294901760, %v8794_v18  ;;  %v8943_v17 = vsub.f32 %v18642_v50, %v21092_v25  ;;  %v21099_v36 = vand.u32 4294901760, %v18671_v15 }
 0x530   :  { %8998 = vmatpush.msra.mxu2 %v18630_v28  ;;  %9057 = vmatpush.msrb.mxu0 %v21789_v58 }
 0x531   :  { %8927 = vmatpush.msra.mxu1 %v8926_v43  ;;  %v18682_v43 = vpop.f32.mrf.mxu1  ;;  %v18690_v6 = vsub.f32 %v8794_v18, %v18667_v5  ;;  %v8944_v25 = vand.u32 4294901760, %v8943_v17  ;;  %v9200_v3 = vsub.f32 %v18671_v15, %v21099_v36  ;;  %v9206_v18 = vsub.f32 %v18674_v22, %v21101_v14 }
 0x532   :  { %9001 = vmatpush.msra.mxu2 %v18642_v50  ;;  %9061 = vmatpush.msrb.mxu0 %v21790_v42  ;;  %v21796_v42 = vand.u32 4294901760, %v18507_v47  ;;  %v21798_v47 = vand.u32 4294901760, %v18521_v12  ;;  %v8770_v12 = vld [vmem:[#allocation7 + $0xe8] sm:$0xff] }
 0x533   :  { %8933 = vmatpush.msra.mxu1 %v8932_v38  ;;  %21788 = vst [vmem:[#allocation30_spill] sm:$0xff] %v18690_v6  ;;  %v8790_v38 = vld [vmem:[#allocation7 + $0x188] sm:$0xff]  ;;  %v21100_v17 = vand.u32 4294901760, %v18690_v6 }
 0x534   :  { %9004 = vmatpush.msra.mxu2 %v18663_v39  ;;  %v18712_v32 = vand.u32 4294901760, %v8790_v38  ;;  %9065 = vmatpush.msrb.mxu0 %v21793_v26 }
 0x535   :  { %8939 = vmatpush.msra.mxu1 %v8938_v19  ;;  %v9201_v19 = vand.u32 4294901760, %v9200_v3  ;;  %v9212_v36 = vsub.f32 %v18690_v6, %v21100_v17  ;;  %v8786_v3 = vld [vmem:[#allocation7 + $0x168] sm:$0xff] }
 0x536   :  { %9157 = vmatpush.msrb.mxu2 %v18654_v46  ;;  %v9207_v46 = vand.u32 4294901760, %v9206_v18  ;;  %v18724_v18 = vpop.f32.mrf.mxu3  ;;  %v18726_v58 = vand.u32 4294901760, %v8786_v3  ;;  %v18729_v17 = vsub.f32 %v8790_v38, %v18712_v32  ;;  %v8778_v38 = vld [vmem:[#allocation7 + $0x128] sm:$0xff]  ;;  %9069 = vmatpush.msrb.mxu0 %v21796_v42 }
 0x537   :  { %8945 = vmatpush.msra.mxu1 %v8944_v25  ;;  %9202 = vmatpush.msrb.mxu3 %v9201_v19  ;;  %v9213_v30 = vand.u32 4294901760, %v9212_v36  ;;  %v18759_v14 = vand.u32 4294901760, %v8778_v38 }
 0x538   :  { %9159 = vmatpush.msrb.mxu2 %v18656_v31  ;;  %21791 = vst [vmem:[#allocation54_spill] sm:$0xff] %v18726_v58  ;;  %v21104_v36 = vand.u32 4294901760, %v18729_v17  ;;  %9073 = vmatpush.msrb.mxu0 %v21798_v47 }
 0x539   :  { %8951 = vmatpush.msra.mxu1 %v8950_v60  ;;  %v18722_v25 = vpop.f32.mrf.mxu1  ;;  %9208 = vmatpush.msrb.mxu3 %v9207_v46  ;;  %21792 = vst [vmem:[#allocation32_spill] sm:$0xff] %v18729_v17  ;;  %v8782_v60 = vld [vmem:[#allocation7 + $0x148] sm:$0xff]  ;;  %v18741_v46 = vsub.f32 %v8786_v3, %v18726_v58 }
 0x53a   :  { %9161 = vmatpush.msrb.mxu2 %v18667_v5  ;;  %v18738_v19 = vand.u32 4294901760, %v8782_v60  ;;  %v9218_v3 = vsub.f32 %v18729_v17, %v21104_v36 }
 0x53b   :  { %9120 = vmatpush.msrb.mxu1 %v18458_v52  ;;  %v18734_v52 = vpop.f32.mrf.mxu2  ;;  %9214 = vmatpush.msrb.mxu3 %v9213_v30  ;;  %21795 = vst [vmem:[#allocation31_spill] sm:$0xff] %v18741_v46  ;;  %v18752_v30 = vpop.f32.mrf.mxu0  ;;  %v21111_v26 = vand.u32 4294901760, %v18741_v46 }
 0x53c   :  { %9163 = vmatpush.msrb.mxu2 %v18712_v32  ;;  %21794 = vst [vmem:[#allocation53_spill] sm:$0xff] %v18738_v19  ;;  %v9219_v42 = vand.u32 4294901760, %v9218_v3  ;;  %v21800_v3 = vand.u32 4294901760, %v18535_v4 }
 0x53d   :  { %9122 = vmatpush.msrb.mxu1 %v18460_v53  ;;  %v5999_v53 = vperm.slane %v18746_v23, 1  ;;  %v9224_v36 = vsub.f32 %v18741_v46, %v21111_v26 }
 0x53e   :  { %9165 = vmatpush.msrb.mxu2 %v18726_v58  ;;  %v18762_v58 = vsub.f32 %v8782_v60, %v18738_v19  ;;  %9077 = vmatpush.msrb.mxu0 %v21800_v3  ;;  %v18784_v26 = vpop.f32.mrf.mxu3  ;;  %v21802_v3 = vand.u32 4294901760, %v18552_v34  ;;  %v6001_v34 = vperm.slane %v18746_v23, 3 }
 0x53f   :  { %9124 = vmatpush.msrb.mxu1 %v18462_v62  ;;  %v8774_v62 = vld [vmem:[#allocation7 + $0x108] sm:$0xff]  ;;  %v6727_v60 = vadd.f32 %v18496_v57, %v5999_v53  ;;  %9220 = vmatpush.msrb.mxu3 %v9219_v42  ;;  %v9225_v17 = vand.u32 4294901760, %v9224_v36 }
 0x540   :  { %9167 = vmatpush.msrb.mxu2 %v18738_v19  ;;  %21797 = vst [vmem:[#allocation55_spill] sm:$0xff] %v18762_v58  ;;  %v18772_v6 = vand.u32 4294901760, %v8774_v62  ;;  %v6000_v19 = vperm.slane %v18746_v23, 2  ;;  %v21801_v46 = vand.u32 4294901760, %v18762_v58  ;;  %9081 = vmatpush.msrb.mxu0 %v21802_v3  ;;  %v8762_v3 = vld [vmem:[#allocation7 + $0xa8] sm:$0xff] }
 0x541   :  { %9126 = vmatpush.msrb.mxu1 %v18493_v13  ;;  %v18778_v13 = vsub.f32 %v8778_v38, %v18759_v14  ;;  %v18782_v47 = vpop.f32.mrf.mxu1  ;;  %v8766_v38 = vld [vmem:[#allocation7 + $0xc8] sm:$0xff]  ;;  %9226 = vmatpush.msrb.mxu3 %v9225_v17 }
 0x542   :  { %9169 = vmatpush.msrb.mxu2 %v18759_v14  ;;  %21799 = vst [vmem:[#allocation33_spill] sm:$0xff] %v18772_v6  ;;  %v9230_v57 = vsub.f32 %v18762_v58, %v21801_v46  ;;  %v18793_v53 = vsub.f32 %v8774_v62, %v18772_v6  ;;  %v18803_v58 = vand.u32 4294901760, %v8766_v38  ;;  %v7409_v4 = vadd.f32 %v18648_v20, %v6000_v19 }
 0x543   :  { %9128 = vmatpush.msrb.mxu1 %v18501_v48  ;;  %v18790_v48 = vand.u32 4294901760, %v8770_v12  ;;  %v18799_v36 = vpop.f32.mrf.mxu2  ;;  %v21804_v17 = vand.u32 4294901760, %v18778_v13  ;;  %v21805_v46 = vand.u32 4294901760, %v18560_v41  ;;  %v18822_v19 = vand.u32 4294901760, %v8762_v3 }
 0x544   :  { %9171 = vmatpush.msrb.mxu2 %v18772_v6  ;;  %v9231_v42 = vand.u32 4294901760, %v9230_v57  ;;  %v8090_v6 = vpop.f32.mrf.mxu0 }
 0x545   :  { %9130 = vmatpush.msrb.mxu1 %v18510_v40  ;;  %v18806_v62 = vsub.f32 %v8770_v12, %v18790_v48  ;;  %v6828_v40 = vadd.f32 %v18512_v1, %v6727_v60  ;;  %v9236_v57 = vsub.f32 %v18778_v13, %v21804_v17  ;;  %9085 = vmatpush.msrb.mxu0 %v21805_v46  ;;  %v21806_v12 = vand.u32 4294901760, %v18793_v53  ;;  %v8758_v60 = vld [vmem:[#allocation7 + $0x88] sm:$0xff] }
 0x546   :  { %9173 = vmatpush.msrb.mxu2 %v18790_v48  ;;  %9232 = vmatpush.msrb.mxu3 %v9231_v42  ;;  %v21807_v42 = vand.u32 4294901760, %v18573_v9  ;;  %v8754_v9 = vld [vmem:[#allocation7 + $0x68] sm:$0xff] }
 0x547   :  { %21803 = vst [vmem:[#allocation58_spill] sm:$0xff] %v18806_v62  ;;  %9132 = vmatpush.msrb.mxu1 %v18524_v29  ;;  %v9242_v1 = vsub.f32 %v18793_v53, %v21806_v12  ;;  %v21118_v20 = vand.u32 4294901760, %v18806_v62  ;;  %v18825_v29 = vsub.f32 %v8766_v38, %v18803_v58  ;;  %v6882_v23 = vadd.f32 %v18526_v59, %v6828_v40 }
 0x548   :  { %9175 = vmatpush.msrb.mxu2 %v18803_v58  ;;  %v9237_v41 = vand.u32 4294901760, %v9236_v57  ;;  %9089 = vmatpush.msrb.mxu0 %v21807_v42  ;;  %v18836_v38 = vand.u32 4294901760, %v8758_v60  ;;  %v7510_v59 = vadd.f32 %v18682_v43, %v7409_v4  ;;  %v8091_v40 = vadd.f32 %v8090_v6, %v6001_v34 }
 0x549   :  { %9134 = vmatpush.msrb.mxu1 %v18540_v0  ;;  %v9243_v46 = vand.u32 4294901760, %v9242_v1  ;;  %v9248_v17 = vsub.f32 %v18806_v62, %v21118_v20  ;;  %v21121_v12 = vand.u32 4294901760, %v18825_v29  ;;  %v18841_v0 = vsub.f32 %v8762_v3, %v18822_v19  ;;  %v8191_v57 = vpop.f32.mrf.mxu1  ;;  %v18843_v1 = vpop.f32.mrf.mxu3  ;;  %v8750_v3 = vld [vmem:[#allocation7 + $0x48] sm:$0xff] }
 0x54a   :  { %9177 = vmatpush.msrb.mxu2 %v18822_v19  ;;  %9238 = vmatpush.msrb.mxu3 %v9237_v41  ;;  %v18849_v62 = vand.u32 4294901760, %v8754_v9  ;;  %v18852_v43 = vsub.f32 %v8758_v60, %v18836_v38  ;;  %v6921_v6 = vadd.f32 %v18566_v7, %v6882_v23  ;;  %v7564_v4 = vadd.f32 %v18698_v16, %v7510_v59 }
 0x54b   :  { %9136 = vmatpush.msrb.mxu1 %v18549_v27  ;;  %v9249_v42 = vand.u32 4294901760, %v9248_v17  ;;  %v9254_v20 = vsub.f32 %v18825_v29, %v21121_v12  ;;  %v21808_v27 = vand.u32 4294901760, %v18590_v55  ;;  %v9259_v34 = vand.u32 4294901760, %v18841_v0 }
 0x54c   :  { %9179 = vmatpush.msrb.mxu2 %v18836_v38  ;;  %9244 = vmatpush.msrb.mxu3 %v9243_v46  ;;  %v9265_v60 = vand.u32 4294901760, %v18852_v43  ;;  %v18862_v12 = vand.u32 4294901760, %v8750_v3  ;;  %v18865_v55 = vsub.f32 %v8754_v9, %v18849_v62  ;;  %v21809_v7 = vand.u32 4294901760, %v18604_v10 }
 0x54d   :  { %9093 = vmatpush.msrb.mxu0 %v21808_v27  ;;  %9138 = vmatpush.msrb.mxu1 %v18562_v44  ;;  %v9255_v17 = vand.u32 4294901760, %v9254_v20  ;;  %v8192_v16 = vadd.f32 %v8191_v57, %v8091_v40  ;;  %v9260_v44 = vsub.f32 %v18841_v0, %v9259_v34  ;;  %v8746_v20 = vld [vmem:[#allocation7 + $0x28] sm:$0xff]  ;;  %v7603_v40 = vadd.f32 %v18724_v18, %v7564_v4 }
 0x54e   :  { %9181 = vmatpush.msrb.mxu2 %v18849_v62  ;;  %9250 = vmatpush.msrb.mxu3 %v9249_v42  ;;  %v9266_v23 = vsub.f32 %v18852_v43, %v9265_v60  ;;  %v9271_v46 = vand.u32 4294901760, %v18865_v55  ;;  %v18878_v59 = vand.u32 4294901760, %v8746_v20  ;;  %v18881_v10 = vsub.f32 %v8750_v3, %v18862_v12 }
 0x54f   :  { %9097 = vmatpush.msrb.mxu0 %v21809_v7  ;;  %9140 = vmatpush.msrb.mxu1 %v18575_v2  ;;  %v21810_v2 = vand.u32 4294901760, %v18623_v8  ;;  %v9261_v57 = vand.u32 4294901760, %v9260_v44  ;;  %v6990_v42 = vadd.f32 %v18538_v11, %v6921_v6  ;;  %v8742_v8 = vld [vmem:[#allocation7 + $0x8] sm:$0xff] }
 0x550   :  { %9183 = vmatpush.msrb.mxu2 %v18862_v12  ;;  %9256 = vmatpush.msrb.mxu3 %v9255_v17  ;;  %v9267_v27 = vand.u32 4294901760, %v9266_v23  ;;  %v9272_v7 = vsub.f32 %v18865_v55, %v9271_v46  ;;  %v9277_v3 = vand.u32 4294901760, %v18881_v10  ;;  %v18899_v11 = vsub.f32 %v8746_v20, %v18878_v59 }
 0x551   :  { %9101 = vmatpush.msrb.mxu0 %v21810_v2  ;;  %9142 = vmatpush.msrb.mxu1 %v18592_v21  ;;  %v21811_v2 = vand.u32 4294901760, %v18630_v28  ;;  %v18896_v21 = vand.u32 4294901760, %v8742_v8  ;;  %v8284_v18 = vpop.f32.mrf.mxu3  ;;  %v7672_v28 = vadd.f32 %v18710_v63, %v7603_v40  ;;  %v7027_v44 = vadd.f32 %v18564_v33, %v6990_v42  ;;  %v8353_v40 = vpop.f32.mrf.mxu0 }
 0x552   :  { %9185 = vmatpush.msrb.mxu2 %v18878_v59  ;;  %9262 = vmatpush.msrb.mxu3 %v9261_v57  ;;  %v9273_v6 = vand.u32 4294901760, %v9272_v7  ;;  %v9278_v4 = vsub.f32 %v18881_v10, %v9277_v3  ;;  %v21813_v23 = vand.u32 4294901760, %v18663_v39 }
 0x553   :  { %9105 = vmatpush.msrb.mxu0 %v21811_v2  ;;  %9144 = vmatpush.msrb.mxu1 %v18608_v49  ;;  %v9283_v49 = vand.u32 4294901760, %v18899_v11  ;;  %v7068_v63 = vadd.f32 %v18578_v51, %v7027_v44  ;;  %v7709_v33 = vadd.f32 %v18722_v25, %v7672_v28 }
 0x554   :  { %9268 = vmatpush.msrb.mxu3 %v9267_v27  ;;  %v9279_v20 = vand.u32 4294901760, %v9278_v4  ;;  %9187 = vmatpush.msrb.mxu2 %v18896_v21  ;;  %v8390_v27 = vpop.f32.mrf.mxu1 }
 0x555   :  { %9146 = vmatpush.msrb.mxu1 %v18614_v54  ;;  %v9284_v54 = vsub.f32 %v18899_v11, %v9283_v49  ;;  %v7750_v57 = vadd.f32 %v18734_v52, %v7709_v33  ;;  %v7169_v51 = vadd.f32 %v18620_v56, %v7068_v63 }
 0x556   :  { %9274 = vmatpush.msrb.mxu3 %v9273_v6 }
 0x557   :  { %v8245_v41 = vpop.f32.mrf.mxu2  ;;  %9148 = vmatpush.msrb.mxu1 %v18632_v24  ;;  %v9285_v39 = vand.u32 4294901760, %v9284_v54  ;;  %v7851_v25 = vadd.f32 %v18784_v26, %v7750_v57 }
 0x558   :  { %v8246_v9 = vadd.f32 %v8245_v41, %v8192_v16  ;;  %v21812_v41 = vand.u32 4294901760, %v18642_v50  ;;  %v18910_v16 = vsub.f32 %v8742_v8, %v18896_v21  ;;  %9280 = vmatpush.msrb.mxu3 %v9279_v20 }
 0x559   :  { %9150 = vmatpush.msrb.mxu1 %v18644_v45  ;;  %v7223_v45 = vadd.f32 %v18595_v35, %v7169_v51  ;;  %v7905_v6 = vadd.f32 %v18752_v30, %v7851_v25  ;;  %v21819_v51 = vand.u32 4294901760, %v18671_v15  ;;  %v21820_v25 = vand.u32 4294901760, %v18674_v22 }
 0x55a   :  { %9109 = vmatpush.msrb.mxu0 %v21812_v41  ;;  %v8285_v17 = vadd.f32 %v8284_v18, %v8246_v9  ;;  %v9289_v50 = vand.u32 4294901760, %v18910_v16  ;;  %9286 = vmatpush.msrb.mxu3 %v9285_v39 }
 0x55b   :  { %v7262_v41 = vadd.f32 %v18618_v37, %v7223_v45  ;;  %v21815_v37 = vld [vmem:[#allocation28_spill] sm:$0xff]  ;;  %v21821_v45 = vld [vmem:[#allocation30_spill] sm:$0xff] }
 0x55c   :  { %9113 = vmatpush.msrb.mxu0 %v21813_v23  ;;  %v8354_v9 = vadd.f32 %v8353_v40, %v8285_v17  ;;  %v9290_v24 = vsub.f32 %v18910_v16, %v9289_v50  ;;  %v7944_v17 = vadd.f32 %v18782_v47, %v7905_v6  ;;  %v21814_v23 = vld [vmem:[#allocation52_spill] sm:$0xff]  ;;  %v8734_v39 = vmax.f32 %v21815_v37, 0.0  ;;  %v21823_v6 = vld [vmem:[#allocation54_spill] sm:$0xff] }
 0x55d   :  { %v7331_v28 = vadd.f32 %v18636_v61, %v7262_v41 }
 0x55e   :  { %v9291_v42 = vand.u32 4294901760, %v9290_v24  ;;  %v8391_v8 = vadd.f32 %v8390_v27, %v8354_v9  ;;  %v8013_v56 = vadd.f32 %v18799_v36, %v7944_v17  ;;  %v8803_v17 = vld [vmem:[#allocation7 + $0x1f0] sm:$0xff] }
 0x55f   :  { %v7368_v26 = vadd.f32 %v21814_v23, %v7331_v28 }
 0x560   :  { %9292 = vmatpush.msrb.mxu3 %v9291_v42  ;;  %v8050_v35 = vadd.f32 %v18843_v1, %v8013_v56  ;;  %v21831_v56 = vld [vmem:[#allocation33_spill] sm:$0xff] }
 0x561   :  { %v8735_v33 = vmax.f32 %v7368_v26, 0.0  ;;  %v8791_v26 = vld [vmem:[#allocation7 + $0x190] sm:$0xff] }
 0x562   :  { %v8736_v24 = vmax.f32 %v8050_v35, 0.0  ;;  %v19013_v37 = vand.u32 4294901760, %v8791_v26 }
 0x563   :  { %v8738_v57 = vmax.f32 %v8734_v39, %v8735_v33 }
 0x56b   :  { %v8586_v52 = vpop.f32.mrf.mxu0 }
 0x56e   :  { %v8625_v20 = vpop.f32.mrf.mxu1 }
 0x56f   :  { %v8532_v18 = vpop.f32.mrf.mxu3 }
 0x578   :  { %v8431_v7 = vpop.f32.mrf.mxu2 }
 0x579   :  { %v8432_v2 = vadd.f32 %v8431_v7, %v8391_v8  ;;  %v21817_v7 = vld [vmem:[#allocation29_spill] sm:$0xff] }
 0x57b   :  { %v8533_v4 = vadd.f32 %v8532_v18, %v8432_v2  ;;  %v21822_v18 = vand.u32 4294901760, %v21821_v45 }
 0x57d   :  { %v8587_v44 = vadd.f32 %v8586_v52, %v8533_v4  ;;  %v21824_v4 = vld [vmem:[#allocation32_spill] sm:$0xff]  ;;  %v21826_v52 = vld [vmem:[#allocation53_spill] sm:$0xff] }
 0x57e   :  { %v21825_v41 = vand.u32 4294901760, %v21824_v4 }
 0x57f   :  { %v8626_v54 = vadd.f32 %v8625_v20, %v8587_v44  ;;  %v8799_v44 = vld [vmem:[#allocation7 + $0x1d0] sm:$0xff] }
 0x580   :  { %v8795_v20 = vld [vmem:[#allocation7 + $0x1b0] sm:$0xff]  ;;  %v18993_v23 = vand.u32 4294901760, %v8799_v44 }
 0x581   :  { %v19003_v35 = vand.u32 4294901760, %v8795_v20 }
 0x58f   :  { %v8731_v30 = vpop.f32.mrf.mxu3 }
 0x598   :  { %v8694_v63 = vpop.f32.mrf.mxu2 }
 0x599   :  { %v8695_v40 = vadd.f32 %v8694_v63, %v8626_v54  ;;  %v21833_v54 = vand.u32 4294901760, %v18793_v53 }
 0x59b   :  { %v8732_v9 = vadd.f32 %v8731_v30, %v8695_v40  ;;  %v8787_v40 = vld [vmem:[#allocation7 + $0x170] sm:$0xff] }
 0x59c   :  { %v21834_v30 = vld [vmem:[#allocation58_spill] sm:$0xff] }
 0x59d   :  { %v8737_v61 = vmax.f32 %v8732_v9, 0.0  ;;  %v21835_v33 = vand.u32 4294901760, %v21834_v30  ;;  %v19011_v9 = vsub.f32 %v8799_v44, %v18993_v23 }
 0x59f   :  { %v8739_v47 = vmax.f32 %v8736_v24, %v8737_v61  ;;  %v19022_v24 = vsub.f32 %v8795_v20, %v19003_v35  ;;  %v19024_v61 = vand.u32 4294901760, %v8787_v40 }
 0x5a1   :  { %v8740_v42 = vmax.f32 %v8738_v57, %v8739_v47  ;;  %v8783_v57 = vld [vmem:[#allocation7 + $0x150] sm:$0xff]  ;;  %v19033_v47 = vsub.f32 %v8791_v26, %v19013_v37 }
 0x5a3   :  { %v18939_v27 = vand.u32 4294901760, %v8740_v42 }
 0x5a5   :  { %v18942_v36 = vsub.f32 %v8740_v42, %v18939_v27  ;;  %8953 = vmatmul.f32.vlgmr.msra.gmra.mxu1 %v18939_v27  ;;  %v19037_v42 = vand.u32 4294901760, %v8783_v57 }
 0x5a6   :  { %9353 = vmatpush.msra.mxu1 %v21817_v7 }
 0x5a7   :  { %21816 = vst [vmem:[#allocation34_spill] sm:$0xff] %v18942_v36  ;;  %9007 = vmatmul.f32.vlgmr.msra.gmra.mxu2 %v18942_v36  ;;  %v18948_v1 = vand.u32 4294901760, %v18942_v36 }
 0x5a8   :  { %9355 = vmatpush.msra.mxu1 %v18656_v31  ;;  %9394 = vmatpush.msra.mxu2 %v21819_v51 }
 0x5a9   :  { %21818 = vst [vmem:[#allocation61_spill] sm:$0xff] %v18948_v1  ;;  %9046 = vmatmul.f32.vlgmr.msra.gmra.mxu3 %v18948_v1  ;;  %v8850_v8 = vsub.f32 %v18942_v36, %v18948_v1 }
 0x5aa   :  { %9357 = vmatpush.msra.mxu1 %v18667_v5  ;;  %9398 = vmatpush.msra.mxu2 %v21820_v25  ;;  %v8771_v25 = vld [vmem:[#allocation7 + $0xf0] sm:$0xff] }
 0x5ab   :  { %9461 = vmatpush.msra.mxu3 %v21817_v7  ;;  %v18960_v2 = vand.u32 4294901760, %v8850_v8  ;;  %v19047_v7 = vsub.f32 %v8787_v40, %v19024_v61 }
 0x5ac   :  { %9359 = vmatpush.msra.mxu1 %v18712_v32  ;;  %9402 = vmatpush.msra.mxu2 %v21822_v18 }
 0x5ad   :  { %9463 = vmatpush.msra.mxu3 %v18656_v31  ;;  %8852 = vmatmul.f32.vlgmr.msra.gmra.mxu0 %v18960_v2  ;;  %v21827_v31 = vld [vmem:[#allocation31_spill] sm:$0xff] }
 0x5ae   :  { %9152 = vmatmul.f32.vlgmr.msrb.gmra.mxu1 %v18939_v27  ;;  %9300 = vmatpush.msra.mxu0 %v18671_v15  ;;  %v21828_v28 = vand.u32 4294901760, %v21827_v31  ;;  %v21829_v15 = vld [vmem:[#allocation55_spill] sm:$0xff] }
 0x5af   :  { %9361 = vmatpush.msra.mxu1 %v21823_v6  ;;  %9406 = vmatpush.msra.mxu2 %v21825_v41  ;;  %v8763_v41 = vld [vmem:[#allocation7 + $0xb0] sm:$0xff] }
 0x5b0   :  { %9465 = vmatpush.msra.mxu3 %v18667_v5  ;;  %9193 = vmatmul.f32.vlgmr.msrb.gmra.mxu2 %v18960_v2  ;;  %v21830_v5 = vand.u32 4294901760, %v21829_v15 }
 0x5b1   :  { %9303 = vmatpush.msra.mxu0 %v18674_v22  ;;  %9363 = vmatpush.msra.mxu1 %v21826_v52  ;;  %v18986_v22 = vand.u32 4294901760, %v8803_v17 }
 0x5b2   :  { %9410 = vmatpush.msra.mxu2 %v21828_v28  ;;  %9467 = vmatpush.msra.mxu3 %v18712_v32  ;;  %v21832_v32 = vand.u32 4294901760, %v18778_v13  ;;  %v8759_v28 = vld [vmem:[#allocation7 + $0x90] sm:$0xff] }
 0x5b3   :  { %9294 = vmatmul.f32.vlgmr.msrb.gmra.mxu3 %v18939_v27  ;;  %9306 = vmatpush.msra.mxu0 %v21821_v45  ;;  %v19001_v63 = vsub.f32 %v8803_v17, %v18986_v22  ;;  %v21134_v45 = vand.u32 4294901760, %v19047_v7  ;;  %v19106_v17 = vand.u32 4294901760, %v8763_v41 }
 0x5b4   :  { %9365 = vmatpush.msra.mxu1 %v18759_v14  ;;  %9414 = vmatpush.msra.mxu2 %v21830_v5  ;;  %v8755_v5 = vld [vmem:[#allocation7 + $0x70] sm:$0xff] }
 0x5b5   :  { %9469 = vmatpush.msra.mxu3 %v21823_v6  ;;  %9309 = vmatpush.msra.mxu0 %v21824_v4  ;;  %v21139_v39 = vand.u32 4294901760, %v19001_v63  ;;  %v19079_v6 = vand.u32 4294901760, %v8771_v25  ;;  %v19128_v26 = vsub.f32 %v8763_v41, %v19106_v17 }
 0x5b6   :  { %9367 = vmatpush.msra.mxu1 %v21831_v56  ;;  %9418 = vmatpush.msra.mxu2 %v21832_v32 }
 0x5b7   :  { %9471 = vmatpush.msra.mxu3 %v21826_v52  ;;  %9115 = vmatmul.f32.vlgmr.msrb.gmra.mxu0 %v18939_v27 }
 0x5b8   :  { %9312 = vmatpush.msra.mxu0 %v21827_v31  ;;  %9369 = vmatpush.msra.mxu1 %v18790_v48 }
 0x5b9   :  { %9422 = vmatpush.msra.mxu2 %v21833_v54  ;;  %9473 = vmatpush.msra.mxu3 %v18759_v14  ;;  %v21836_v14 = vand.u32 4294901760, %v18825_v29  ;;  %v19130_v54 = vand.u32 4294901760, %v8755_v5 }
 0x5ba   :  { %9315 = vmatpush.msra.mxu0 %v21829_v15  ;;  %9371 = vmatpush.msra.mxu1 %v18803_v58 }
 0x5bb   :  { %9426 = vmatpush.msra.mxu2 %v21835_v33  ;;  %9475 = vmatpush.msra.mxu3 %v21831_v56  ;;  %v19118_v56 = vand.u32 4294901760, %v8759_v28 }
 0x5bc   :  { %9318 = vmatpush.msra.mxu0 %v18778_v13  ;;  %9373 = vmatpush.msra.mxu1 %v18822_v19  ;;  %v8779_v13 = vld [vmem:[#allocation7 + $0x130] sm:$0xff] }
 0x5bd   :  { %9430 = vmatpush.msra.mxu2 %v21836_v14  ;;  %9477 = vmatpush.msra.mxu3 %v18790_v48  ;;  %v21138_v48 = vand.u32 4294901760, %v19011_v9  ;;  %v19049_v51 = vand.u32 4294901760, %v8779_v13 }
 0x5be   :  { %9321 = vmatpush.msra.mxu0 %v18793_v53  ;;  %9375 = vmatpush.msra.mxu1 %v18836_v38  ;;  %v8775_v53 = vld [vmem:[#allocation7 + $0x110] sm:$0xff] }
 0x5bf   :  { %9434 = vmatpush.msra.mxu2 %v9259_v34  ;;  %9479 = vmatpush.msra.mxu3 %v18803_v58  ;;  %v9541_v58 = vsub.f32 %v19001_v63, %v21139_v39  ;;  %v21137_v34 = vand.u32 4294901760, %v19022_v24  ;;  %v19060_v8 = vand.u32 4294901760, %v8775_v53  ;;  %v19075_v18 = vsub.f32 %v8779_v13, %v19049_v51  ;;  %v8764_v39 = vld [vmem:[#allocation7 + $0xb8] sm:$0xff] }
 0x5c0   :  { %9324 = vmatpush.msra.mxu0 %v21834_v30  ;;  %9377 = vmatpush.msra.mxu1 %v18849_v62  ;;  %v8747_v30 = vld [vmem:[#allocation7 + $0x30] sm:$0xff] }
 0x5c1   :  { %9438 = vmatpush.msra.mxu2 %v9265_v60  ;;  %9481 = vmatpush.msra.mxu3 %v18822_v19  ;;  %v9547_v19 = vsub.f32 %v19011_v9, %v21138_v48  ;;  %v21135_v60 = vand.u32 4294901760, %v19033_v47  ;;  %v19088_v4 = vsub.f32 %v8775_v53, %v19060_v8  ;;  %v21131_v31 = vand.u32 4294901760, %v19075_v18  ;;  %v8743_v53 = vld [vmem:[#allocation7 + $0x10] sm:$0xff]  ;;  %v8760_v48 = vld [vmem:[#allocation7 + $0x98] sm:$0xff] }
 0x5c2   :  { %9327 = vmatpush.msra.mxu0 %v18825_v29  ;;  %9379 = vmatpush.msra.mxu1 %v18862_v12  ;;  %v19065_v29 = vsub.f32 %v8783_v57, %v19037_v42  ;;  %v19140_v57 = vsub.f32 %v8759_v28, %v19118_v56 }
 0x5c3   :  { %9442 = vmatpush.msra.mxu2 %v9271_v46  ;;  %9483 = vmatpush.msra.mxu3 %v18836_v38  ;;  %v9542_v38 = vand.u32 4294901760, %v9541_v58  ;;  %v9553_v46 = vsub.f32 %v19022_v24, %v21137_v34  ;;  %v21130_v15 = vand.u32 4294901760, %v19088_v4  ;;  %v9577_v20 = vsub.f32 %v19075_v18, %v21131_v31 }
 0x5c4   :  { %9330 = vmatpush.msra.mxu0 %v18841_v0  ;;  %9381 = vmatpush.msra.mxu1 %v18878_v59  ;;  %v8767_v0 = vld [vmem:[#allocation7 + $0xd0] sm:$0xff] }
 0x5c5   :  { %9446 = vmatpush.msra.mxu2 %v9277_v3  ;;  %9485 = vmatpush.msra.mxu3 %v18849_v62  ;;  %v9548_v62 = vand.u32 4294901760, %v9547_v19  ;;  %v9559_v3 = vsub.f32 %v19033_v47, %v21135_v60  ;;  %v19093_v52 = vand.u32 4294901760, %v8767_v0  ;;  %v9583_v40 = vsub.f32 %v19088_v4, %v21130_v15 }
 0x5c6   :  { %9333 = vmatpush.msra.mxu0 %v18852_v43  ;;  %9383 = vmatpush.msra.mxu1 %v18896_v21  ;;  %v21133_v43 = vand.u32 4294901760, %v19065_v29  ;;  %v21127_v19 = vand.u32 4294901760, %v19128_v26 }
 0x5c7   :  { %9450 = vmatpush.msra.mxu2 %v9283_v49  ;;  %9487 = vmatpush.msra.mxu3 %v18862_v12  ;;  %v9554_v12 = vand.u32 4294901760, %v9553_v46  ;;  %v9565_v49 = vsub.f32 %v19047_v7, %v21134_v45  ;;  %v19116_v44 = vsub.f32 %v8767_v0, %v19093_v52  ;;  %v21126_v0 = vand.u32 4294901760, %v19140_v57 }
 0x5c8   :  { %9387 = vmatmul.f32.vlgmr.msra.gmra.mxu1 %v18948_v1  ;;  %9336 = vmatpush.msra.mxu0 %v18865_v55  ;;  %v19104_v55 = vsub.f32 %v8771_v25, %v19079_v6  ;;  %v19152_v25 = vsub.f32 %v8755_v5, %v19130_v54 }
 0x5c9   :  { %9543 = vmatpush.msrb.mxu1 %v9542_v38  ;;  %9454 = vmatpush.msra.mxu2 %v9289_v50  ;;  %v9560_v50 = vand.u32 4294901760, %v9559_v3  ;;  %v9566_v32 = vand.u32 4294901760, %v9565_v49  ;;  %v21128_v14 = vand.u32 4294901760, %v19116_v44  ;;  %v19154_v38 = vand.u32 4294901760, %v8747_v30 }
 0x5ca   :  { %9489 = vmatpush.msra.mxu3 %v18878_v59  ;;  %9456 = vmatmul.f32.vlgmr.msra.gmra.mxu2 %v18939_v27  ;;  %v9571_v59 = vsub.f32 %v19065_v29, %v21133_v43  ;;  %v19166_v3 = vand.u32 4294901760, %v8743_v53  ;;  %v21124_v49 = vand.u32 4294901760, %v19152_v25  ;;  %v9607_v5 = vsub.f32 %v19140_v57, %v21126_v0 }
 0x5cb   :  { %9549 = vmatpush.msrb.mxu1 %v9548_v62  ;;  %9641 = vmatpush.msrb.mxu2 %v19001_v63  ;;  %v9595_v46 = vsub.f32 %v19116_v44, %v21128_v14  ;;  %v19176_v28 = vsub.f32 %v8747_v30, %v19154_v38  ;;  %v8780_v14 = vld [vmem:[#allocation7 + $0x138] sm:$0xff] }
 0x5cc   :  { %9339 = vmatpush.msra.mxu0 %v18881_v10  ;;  %9491 = vmatpush.msra.mxu3 %v18896_v21  ;;  %v8751_v10 = vld [vmem:[#allocation7 + $0x50] sm:$0xff]  ;;  %v21129_v21 = vand.u32 4294901760, %v19104_v55  ;;  %v9572_v33 = vand.u32 4294901760, %v9571_v59  ;;  %v19261_v31 = vand.u32 4294901760, %v8780_v14 }
 0x5cd   :  { %9493 = vmatmul.f32.vlgmr.msra.gmra.mxu3 %v18939_v27  ;;  %9555 = vmatpush.msrb.mxu1 %v9554_v12  ;;  %v19142_v13 = vand.u32 4294901760, %v8751_v10  ;;  %v9601_v12 = vsub.f32 %v19128_v26, %v21127_v19  ;;  %v21123_v30 = vand.u32 4294901760, %v19176_v28 }
 0x5ce   :  { %9644 = vmatpush.msrb.mxu2 %v19011_v9  ;;  %9694 = vmatpush.msrb.mxu3 %v18986_v22  ;;  %v9589_v58 = vsub.f32 %v19104_v55, %v21129_v21  ;;  %v8776_v21 = vld [vmem:[#allocation7 + $0x118] sm:$0xff] }
 0x5cf   :  { %9342 = vmatpush.msra.mxu0 %v18899_v11  ;;  %9561 = vmatpush.msrb.mxu1 %v9560_v50  ;;  %v9578_v11 = vand.u32 4294901760, %v9577_v20  ;;  %v19164_v62 = vsub.f32 %v8751_v10, %v19142_v13  ;;  %v9596_v50 = vand.u32 4294901760, %v9595_v46  ;;  %v8804_v20 = vld [vmem:[#allocation7 + $0x1f8] sm:$0xff]  ;;  %v9602_v10 = vand.u32 4294901760, %v9601_v12 }
 0x5d0   :  { %9647 = vmatpush.msrb.mxu2 %v19022_v24  ;;  %9696 = vmatpush.msrb.mxu3 %v18993_v23  ;;  %v9590_v41 = vand.u32 4294901760, %v9589_v58  ;;  %v19274_v43 = vand.u32 4294901760, %v8776_v21 }
 0x5d1   :  { %9345 = vmatpush.msra.mxu0 %v18910_v16  ;;  %9567 = vmatpush.msrb.mxu1 %v9566_v32  ;;  %v9584_v16 = vand.u32 4294901760, %v9583_v40  ;;  %v21122_v59 = vand.u32 4294901760, %v19164_v62  ;;  %v19186_v32 = vsub.f32 %v8743_v53, %v19166_v3  ;;  %v9613_v40 = vsub.f32 %v19152_v25, %v21124_v49  ;;  %v8788_v49 = vld [vmem:[#allocation7 + $0x178] sm:$0xff] }
 0x5d2   :  { %9348 = vmatmul.f32.vlgmr.msra.gmra.mxu0 %v18942_v36  ;;  %9650 = vmatpush.msrb.mxu2 %v19033_v47 }
 0x5d3   :  { %9498 = vmatpush.msrb.mxu0 %v18986_v22  ;;  %9698 = vmatpush.msrb.mxu3 %v19003_v35  ;;  %v9619_v53 = vsub.f32 %v19164_v62, %v21122_v59  ;;  %v21125_v58 = vand.u32 4294901760, %v19186_v32  ;;  %v9614_v46 = vand.u32 4294901760, %v9613_v40  ;;  %v8792_v59 = vld [vmem:[#allocation7 + $0x198] sm:$0xff] }
 0x5d4   :  { %9573 = vmatpush.msrb.mxu1 %v9572_v33  ;;  %9653 = vmatpush.msrb.mxu2 %v19047_v7  ;;  %v8800_v33 = vld [vmem:[#allocation7 + $0x1d8] sm:$0xff] }
 0x5d5   :  { %9500 = vmatpush.msrb.mxu0 %v18993_v23  ;;  %9700 = vmatpush.msrb.mxu3 %v19013_v37  ;;  %v19210_v12 = vand.u32 4294901760, %v8800_v33 }
 0x5d6   :  { %9579 = vmatpush.msrb.mxu1 %v9578_v11  ;;  %9656 = vmatpush.msrb.mxu2 %v19065_v29  ;;  %v9608_v11 = vand.u32 4294901760, %v9607_v5  ;;  %v9620_v5 = vand.u32 4294901760, %v9619_v53 }
 0x5d7   :  { %9502 = vmatpush.msrb.mxu0 %v19003_v35  ;;  %9702 = vmatpush.msrb.mxu3 %v19024_v61  ;;  %v19227_v53 = vsub.f32 %v8800_v33, %v19210_v12 }
 0x5d8   :  { %9585 = vmatpush.msrb.mxu1 %v9584_v16  ;;  %9659 = vmatpush.msrb.mxu2 %v19075_v18  ;;  %v19202_v16 = vand.u32 4294901760, %v8804_v20 }
 0x5d9   :  { %9504 = vmatpush.msrb.mxu0 %v19013_v37  ;;  %9704 = vmatpush.msrb.mxu3 %v19037_v42 }
 0x5da   :  { %9591 = vmatpush.msrb.mxu1 %v9590_v41  ;;  %9662 = vmatpush.msrb.mxu2 %v19088_v4  ;;  %v9625_v41 = vsub.f32 %v19176_v28, %v21123_v30  ;;  %v19219_v40 = vsub.f32 %v8804_v20, %v19202_v16  ;;  %v19231_v20 = vand.u32 4294901760, %v8792_v59 }
 0x5db   :  { %9506 = vmatpush.msrb.mxu0 %v19024_v61  ;;  %9706 = vmatpush.msrb.mxu3 %v19049_v51 }
 0x5dc   :  { %9597 = vmatpush.msrb.mxu1 %v9596_v50  ;;  %9665 = vmatpush.msrb.mxu2 %v19104_v55  ;;  %v8796_v50 = vld [vmem:[#allocation7 + $0x1b8] sm:$0xff]  ;;  %v21132_v19 = vand.u32 4294901760, %v19219_v40 }
 0x5dd   :  { %9508 = vmatpush.msrb.mxu0 %v19037_v42  ;;  %9708 = vmatpush.msrb.mxu3 %v19060_v8  ;;  %v19223_v30 = vand.u32 4294901760, %v8796_v50 }
 0x5de   :  { %9603 = vmatpush.msrb.mxu1 %v9602_v10  ;;  %9668 = vmatpush.msrb.mxu2 %v19116_v44  ;;  %v9631_v10 = vsub.f32 %v19186_v32, %v21125_v58  ;;  %v8784_v58 = vld [vmem:[#allocation7 + $0x158] sm:$0xff] }
 0x5df   :  { %9510 = vmatpush.msrb.mxu0 %v19049_v51  ;;  %9710 = vmatpush.msrb.mxu3 %v19079_v6  ;;  %v19240_v33 = vsub.f32 %v8796_v50, %v19223_v30  ;;  %v9882_v50 = vsub.f32 %v19219_v40, %v21132_v19 }
 0x5e0   :  { %9609 = vmatpush.msrb.mxu1 %v9608_v11  ;;  %9671 = vmatpush.msrb.mxu2 %v19128_v26  ;;  %v9626_v11 = vand.u32 4294901760, %v9625_v41  ;;  %v9632_v0 = vand.u32 4294901760, %v9631_v10  ;;  %v21136_v41 = vand.u32 4294901760, %v19227_v53  ;;  %v19249_v10 = vsub.f32 %v8792_v59, %v19231_v20  ;;  %v8772_v59 = vld [vmem:[#allocation7 + $0xf8] sm:$0xff] }
 0x5e1   :  { %9512 = vmatpush.msrb.mxu0 %v19060_v8  ;;  %9712 = vmatpush.msrb.mxu3 %v19093_v52  ;;  %v21140_v15 = vand.u32 4294901760, %v19240_v33  ;;  %v9883_v45 = vand.u32 4294901760, %v9882_v50  ;;  %v19287_v34 = vand.u32 4294901760, %v8772_v59 }
 0x5e2   :  { %9615 = vmatpush.msrb.mxu1 %v9614_v46  ;;  %9674 = vmatpush.msrb.mxu2 %v19140_v57  ;;  %v19235_v46 = vand.u32 4294901760, %v8788_v49  ;;  %v21141_v19 = vand.u32 4294901760, %v19249_v10 }
 0x5e3   :  { %9514 = vmatpush.msrb.mxu0 %v19079_v6  ;;  %9714 = vmatpush.msrb.mxu3 %v19106_v17 }
 0x5e4   :  { %9621 = vmatpush.msrb.mxu1 %v9620_v5  ;;  %9677 = vmatpush.msrb.mxu2 %v19152_v25  ;;  %v19244_v5 = vand.u32 4294901760, %v8784_v58 }
 0x5e5   :  { %9516 = vmatpush.msrb.mxu0 %v19093_v52  ;;  %9716 = vmatpush.msrb.mxu3 %v19118_v56 }
 0x5e6   :  { %9627 = vmatpush.msrb.mxu1 %v9626_v11  ;;  %9680 = vmatpush.msrb.mxu2 %v19164_v62  ;;  %v19256_v11 = vsub.f32 %v8788_v49, %v19235_v46  ;;  %v19269_v49 = vsub.f32 %v8784_v58, %v19244_v5  ;;  %v19285_v58 = vsub.f32 %v8780_v14, %v19261_v31 }
 0x5e7   :  { %9518 = vmatpush.msrb.mxu0 %v19106_v17  ;;  %9718 = vmatpush.msrb.mxu3 %v19130_v54  ;;  %v19298_v14 = vsub.f32 %v8776_v21, %v19274_v43  ;;  %v19310_v21 = vsub.f32 %v8772_v59, %v19287_v34 }
 0x5e8   :  { %9633 = vmatpush.msrb.mxu1 %v9632_v0  ;;  %9683 = vmatpush.msrb.mxu2 %v19176_v28  ;;  %21837 = vst [vmem:[#allocation22_spill] sm:$0xff] %v19256_v11  ;;  %v9888_v0 = vsub.f32 %v19227_v53, %v21136_v41  ;;  %v21143_v60 = vand.u32 4294901760, %v19256_v11  ;;  %v8768_v41 = vld [vmem:[#allocation7 + $0xd8] sm:$0xff] }
 0x5e9   :  { %9520 = vmatpush.msrb.mxu0 %v19118_v56  ;;  %9720 = vmatpush.msrb.mxu3 %v19142_v13  ;;  %21838 = vst [vmem:[#allocation59_spill] sm:$0xff] %v19269_v49 }
 0x5ea   :  { %9635 = vmatmul.f32.vlgmr.msrb.gmra.mxu1 %v18939_v27  ;;  %9686 = vmatpush.msrb.mxu2 %v19186_v32  ;;  %21839 = vst [vmem:[#allocation35_spill] sm:$0xff] %v19285_v58  ;;  %v9889_v50 = vand.u32 4294901760, %v9888_v0  ;;  %v9906_v0 = vsub.f32 %v19256_v11, %v21143_v60  ;;  %v8752_v11 = vld [vmem:[#allocation7 + $0x58] sm:$0xff] }
 0x5eb   :  { %9802 = vmatpush.msra.mxu1 %v18986_v22  ;;  %9522 = vmatpush.msrb.mxu0 %v19130_v54  ;;  %v9894_v22 = vsub.f32 %v19240_v33, %v21140_v15  ;;  %v19300_v15 = vand.u32 4294901760, %v8768_v41 }
 0x5ec   :  { %9722 = vmatpush.msrb.mxu3 %v19154_v38  ;;  %9689 = vmatmul.f32.vlgmr.msrb.gmra.mxu2 %v18942_v36  ;;  %v19312_v36 = vand.u32 4294901760, %v8764_v39 }
 0x5ed   :  { %9804 = vmatpush.msra.mxu1 %v18993_v23  ;;  %9839 = vmatpush.msra.mxu2 %v19202_v16  ;;  %v9900_v23 = vsub.f32 %v19249_v10, %v21141_v19  ;;  %v19322_v59 = vsub.f32 %v8768_v41, %v19300_v15  ;;  %v19324_v19 = vand.u32 4294901760, %v8760_v48 }
 0x5ee   :  { %9524 = vmatpush.msrb.mxu0 %v19142_v13  ;;  %9724 = vmatpush.msrb.mxu3 %v19166_v3  ;;  %v19335_v41 = vsub.f32 %v8764_v39, %v19312_v36 }
 0x5ef   :  { %9728 = vmatmul.f32.vlgmr.msrb.gmra.mxu3 %v18948_v1  ;;  %9806 = vmatpush.msra.mxu1 %v19003_v35  ;;  %v9895_v35 = vand.u32 4294901760, %v9894_v22  ;;  %v8756_v1 = vld [vmem:[#allocation7 + $0x78] sm:$0xff]  ;;  %v19348_v39 = vsub.f32 %v8760_v48, %v19324_v19  ;;  %v19350_v22 = vand.u32 4294901760, %v8752_v11 }
 0x5f0   :  { %9841 = vmatpush.msra.mxu2 %v19210_v12  ;;  %9884 = vmatpush.msra.mxu3 %v9883_v45  ;;  %v21840_v45 = vand.u32 4294901760, %v19269_v49 }
 0x5f1   :  { %9526 = vmatpush.msrb.mxu0 %v19154_v38  ;;  %9808 = vmatpush.msra.mxu1 %v19013_v37  ;;  %v9901_v37 = vand.u32 4294901760, %v9900_v23 }
 0x5f2   :  { %9843 = vmatpush.msra.mxu2 %v19223_v30  ;;  %9890 = vmatpush.msra.mxu3 %v9889_v50  ;;  %v9912_v60 = vsub.f32 %v19269_v49, %v21840_v45  ;;  %v9907_v50 = vand.u32 4294901760, %v9906_v0  ;;  %v21841_v45 = vand.u32 4294901760, %v19001_v63  ;;  %v19337_v49 = vand.u32 4294901760, %v8756_v1 }
 0x5f3   :  { %9528 = vmatpush.msrb.mxu0 %v19166_v3  ;;  %9810 = vmatpush.msra.mxu1 %v19024_v61  ;;  %v21842_v61 = vand.u32 4294901760, %v19285_v58  ;;  %v21843_v63 = vand.u32 4294901760, %v19011_v9  ;;  %v21845_v9 = vand.u32 4294901760, %v19022_v24  ;;  %v21847_v24 = vand.u32 4294901760, %v19033_v47 }
 0x5f4   :  { %9534 = vmatmul.f32.vlgmr.msrb.gmra.mxu0 %v18960_v2  ;;  %9845 = vmatpush.msra.mxu2 %v19231_v20  ;;  %v9913_v0 = vand.u32 4294901760, %v9912_v60  ;;  %v21846_v60 = vand.u32 4294901760, %v19310_v21  ;;  %v19361_v48 = vsub.f32 %v8756_v1, %v19337_v49  ;;  %v19374_v1 = vsub.f32 %v8752_v11, %v19350_v22 }
 0x5f5   :  { %9735 = vmatpush.msra.mxu0 %v21841_v45  ;;  %9896 = vmatpush.msra.mxu3 %v9895_v35  ;;  %v9918_v23 = vsub.f32 %v19285_v58, %v21842_v61  ;;  %v21844_v35 = vand.u32 4294901760, %v19298_v14  ;;  %v9935_v61 = vand.u32 4294901760, %v19322_v59  ;;  %v8748_v58 = vld [vmem:[#allocation7 + $0x38] sm:$0xff]  ;;  %v21848_v47 = vand.u32 4294901760, %v19047_v7 }
 0x5f6   :  { %9812 = vmatpush.msra.mxu1 %v19037_v42  ;;  %9847 = vmatpush.msra.mxu2 %v19235_v46  ;;  %v21849_v11 = vand.u32 4294901760, %v19065_v29 }
 0x5f7   :  { %9739 = vmatpush.msra.mxu0 %v21843_v63  ;;  %9902 = vmatpush.msra.mxu3 %v9901_v37  ;;  %v9924_v45 = vsub.f32 %v19298_v14, %v21844_v35  ;;  %v9919_v42 = vand.u32 4294901760, %v9918_v23  ;;  %v9930_v37 = vsub.f32 %v19310_v21, %v21846_v60  ;;  %v9941_v63 = vand.u32 4294901760, %v19335_v41  ;;  %v8744_v35 = vld [vmem:[#allocation7 + $0x18] sm:$0xff] }
 0x5f8   :  { %9814 = vmatpush.msra.mxu1 %v19049_v51  ;;  %9849 = vmatpush.msra.mxu2 %v19244_v5  ;;  %v19365_v51 = vand.u32 4294901760, %v8748_v58  ;;  %v9936_v23 = vsub.f32 %v19322_v59, %v9935_v61  ;;  %v9953_v60 = vand.u32 4294901760, %v19361_v48 }
 0x5f9   :  { %9743 = vmatpush.msra.mxu0 %v21845_v9  ;;  %9908 = vmatpush.msra.mxu3 %v9907_v50  ;;  %v9925_v50 = vand.u32 4294901760, %v9924_v45  ;;  %v9947_v9 = vand.u32 4294901760, %v19348_v39  ;;  %v9942_v45 = vsub.f32 %v19335_v41, %v9941_v63 }
 0x5fa   :  { %9816 = vmatpush.msra.mxu1 %v19060_v8  ;;  %9851 = vmatpush.msra.mxu2 %v19261_v31  ;;  %v19378_v8 = vand.u32 4294901760, %v8744_v35  ;;  %v9937_v7 = vand.u32 4294901760, %v9936_v23 }
 0x5fb   :  { %9747 = vmatpush.msra.mxu0 %v21847_v24  ;;  %9914 = vmatpush.msra.mxu3 %v9913_v0  ;;  %v9931_v0 = vand.u32 4294901760, %v9930_v37  ;;  %v9959_v37 = vand.u32 4294901760, %v19374_v1  ;;  %v9943_v29 = vand.u32 4294901760, %v9942_v45  ;;  %v9954_v24 = vsub.f32 %v19361_v48, %v9953_v60 }
 0x5fc   :  { %9818 = vmatpush.msra.mxu1 %v19079_v6  ;;  %9853 = vmatpush.msra.mxu2 %v19274_v43  ;;  %v19389_v6 = vsub.f32 %v8748_v58, %v19365_v51  ;;  %v21850_v58 = vand.u32 4294901760, %v19075_v18  ;;  %v21855_v45 = vand.u32 4294901760, %v19140_v57  ;;  %v21858_v57 = vand.u32 4294901760, %v19164_v62 }
 0x5fd   :  { %9751 = vmatpush.msra.mxu0 %v21848_v47  ;;  %9920 = vmatpush.msra.mxu3 %v9919_v42  ;;  %v9948_v42 = vsub.f32 %v19348_v39, %v9947_v9  ;;  %v9960_v18 = vsub.f32 %v19374_v1, %v9959_v37  ;;  %v9955_v47 = vand.u32 4294901760, %v9954_v24  ;;  %v21862_v62 = vand.u32 4294901760, %v19186_v32  ;;  %v21866_v32 = vld [vmem:[#allocation59_spill] sm:$0xff] }
 0x5fe   :  { %9820 = vmatpush.msra.mxu1 %v19093_v52  ;;  %9855 = vmatpush.msra.mxu2 %v19287_v34  ;;  %v19400_v52 = vsub.f32 %v8744_v35, %v19378_v8 }
 0x5ff   :  { %9755 = vmatpush.msra.mxu0 %v21849_v11  ;;  %9926 = vmatpush.msra.mxu3 %v9925_v50  ;;  %v21851_v50 = vand.u32 4294901760, %v19088_v4  ;;  %v9949_v35 = vand.u32 4294901760, %v9948_v42  ;;  %v21859_v11 = vand.u32 4294901760, %v19227_v53 }
 0x600   :  { %9822 = vmatpush.msra.mxu1 %v19106_v17  ;;  %9857 = vmatpush.msra.mxu2 %v19300_v15  ;;  %v9965_v17 = vand.u32 4294901760, %v19389_v6  ;;  %v9971_v23 = vand.u32 4294901760, %v19400_v52 }
 0x601   :  { %9759 = vmatpush.msra.mxu0 %v21850_v58  ;;  %9932 = vmatpush.msra.mxu3 %v9931_v0  ;;  %v21853_v0 = vand.u32 4294901760, %v19116_v44 }
 0x602   :  { %9824 = vmatpush.msra.mxu1 %v19118_v56  ;;  %9859 = vmatpush.msra.mxu2 %v19312_v36  ;;  %v21852_v56 = vand.u32 4294901760, %v19104_v55  ;;  %v9966_v4 = vsub.f32 %v19389_v6, %v9965_v17  ;;  %v9972_v55 = vsub.f32 %v19400_v52, %v9971_v23 }
 0x603   :  { %9763 = vmatpush.msra.mxu0 %v21851_v50  ;;  %9938 = vmatpush.msra.mxu3 %v9937_v7  ;;  %v21863_v7 = vand.u32 4294901760, %v19249_v10  ;;  %v10218_v50 = vld [vmem:[#allocation8 + $0x100] sm:$0xff] }
 0x604   :  { %9826 = vmatpush.msra.mxu1 %v19130_v54  ;;  %9861 = vmatpush.msra.mxu2 %v19324_v19  ;;  %v9961_v54 = vand.u32 4294901760, %v9960_v18  ;;  %v9967_v44 = vand.u32 4294901760, %v9966_v4  ;;  %v10214_v4 = vld [vmem:[#allocation8 + $0xe0] sm:$0xff] }
 0x605   :  { %9767 = vmatpush.msra.mxu0 %v21852_v56  ;;  %9944 = vmatpush.msra.mxu3 %v9943_v29 }
 0x606   :  { %9828 = vmatpush.msra.mxu1 %v19142_v13  ;;  %9863 = vmatpush.msra.mxu2 %v19337_v49  ;;  %v21854_v13 = vand.u32 4294901760, %v19128_v26  ;;  %v21856_v26 = vand.u32 4294901760, %v19152_v25  ;;  %v21861_v25 = vand.u32 4294901760, %v19240_v33 }
 0x607   :  { %9771 = vmatpush.msra.mxu0 %v21853_v0  ;;  %9950 = vmatpush.msra.mxu3 %v9949_v35 }
 0x608   :  { %9830 = vmatpush.msra.mxu1 %v19154_v38  ;;  %9865 = vmatpush.msra.mxu2 %v19350_v22  ;;  %v9973_v38 = vand.u32 4294901760, %v9972_v55 }
 0x609   :  { %9775 = vmatpush.msra.mxu0 %v21854_v13  ;;  %9956 = vmatpush.msra.mxu3 %v9955_v47  ;;  %v19610_v47 = vand.u32 4294901760, %v10218_v50  ;;  %v19618_v13 = vand.u32 4294901760, %v10214_v4 }
 0x60a   :  { %9832 = vmatpush.msra.mxu1 %v19166_v3  ;;  %9867 = vmatpush.msra.mxu2 %v19365_v51  ;;  %v21857_v3 = vand.u32 4294901760, %v19219_v40 }
 0x60b   :  { %9779 = vmatpush.msra.mxu0 %v21855_v45  ;;  %9962 = vmatpush.msra.mxu3 %v9961_v54  ;;  %v10210_v45 = vld [vmem:[#allocation8 + $0xc0] sm:$0xff] }
 0x60c   :  { %9834 = vmatmul.f32.vlgmr.msra.gmra.mxu1 %v18939_v27  ;;  %9869 = vmatpush.msra.mxu2 %v19378_v8 }
 0x60d   :  { %10035 = vmatpush.msrb.mxu1 %v19202_v16  ;;  %9783 = vmatpush.msra.mxu0 %v21856_v26 }
 0x60e   :  { %9968 = vmatpush.msra.mxu3 %v9967_v44  ;;  %9875 = vmatmul.f32.vlgmr.msra.gmra.mxu2 %v18960_v2  ;;  %v21860_v2 = vand.u32 4294901760, %v19176_v28  ;;  %v21864_v28 = vld [vmem:[#allocation22_spill] sm:$0xff]  ;;  %v19621_v44 = vsub.f32 %v10218_v50, %v19610_v47  ;;  %v10186_v50 = vld [vmem:[#allocation8] sm:$0xff] }
 0x60f   :  { %10037 = vmatpush.msrb.mxu1 %v19210_v12  ;;  %10076 = vmatpush.msrb.mxu2 %v21857_v3  ;;  %v19629_v3 = vsub.f32 %v10214_v4, %v19618_v13 }
 0x610   :  { %9787 = vmatpush.msra.mxu0 %v21858_v57  ;;  %9974 = vmatpush.msra.mxu3 %v9973_v38  ;;  %v19631_v57 = vand.u32 4294901760, %v10210_v45 }
 0x611   :  { %9976 = vmatmul.f32.vlgmr.msra.gmra.mxu3 %v18939_v27  ;;  %10039 = vmatpush.msrb.mxu1 %v19223_v30 }
 0x612   :  { %10080 = vmatpush.msrb.mxu2 %v21859_v11  ;;  %10143 = vmatpush.msrb.mxu3 %v19202_v16  ;;  %v21865_v16 = vand.u32 4294901760, %v21864_v28  ;;  %v10345_v11 = vand.u32 4294901760, %v19621_v44 }
 0x613   :  { %9791 = vmatpush.msra.mxu0 %v21860_v2  ;;  %10041 = vmatpush.msrb.mxu1 %v19231_v20  ;;  %v10206_v2 = vld [vmem:[#allocation8 + $0xa0] sm:$0xff] }
 0x614   :  { %10084 = vmatpush.msrb.mxu2 %v21861_v25  ;;  %10145 = vmatpush.msrb.mxu3 %v19210_v12  ;;  %v21867_v12 = vand.u32 4294901760, %v21866_v32 }
 0x615   :  { %9795 = vmatpush.msra.mxu0 %v21862_v62  ;;  %10043 = vmatpush.msrb.mxu1 %v19235_v46  ;;  %v10351_v62 = vand.u32 4294901760, %v19629_v3 }
 0x616   :  { %9797 = vmatmul.f32.vlgmr.msra.gmra.mxu0 %v18939_v27  ;;  %10088 = vmatpush.msrb.mxu2 %v21863_v7  ;;  %v19638_v7 = vsub.f32 %v10210_v45, %v19631_v57 }
 0x617   :  { %9982 = vmatpush.msrb.mxu0 %v19219_v40  ;;  %10147 = vmatpush.msrb.mxu3 %v19223_v30  ;;  %v21868_v30 = vld [vmem:[#allocation35_spill] sm:$0xff] }
 0x618   :  { %10045 = vmatpush.msrb.mxu1 %v19244_v5  ;;  %10092 = vmatpush.msrb.mxu2 %v21865_v16  ;;  %v21869_v40 = vand.u32 4294901760, %v21868_v30  ;;  %v10346_v16 = vsub.f32 %v19621_v44, %v10345_v11 }
 0x619   :  { %9985 = vmatpush.msrb.mxu0 %v19227_v53  ;;  %10149 = vmatpush.msrb.mxu3 %v19231_v20  ;;  %v21870_v53 = vand.u32 4294901760, %v19298_v14  ;;  %v21871_v20 = vand.u32 4294901760, %v19310_v21 }
 0x61a   :  { %10047 = vmatpush.msrb.mxu1 %v19261_v31  ;;  %10096 = vmatpush.msrb.mxu2 %v21867_v12  ;;  %v10352_v12 = vsub.f32 %v19629_v3, %v10351_v62 }
 0x61b   :  { %9988 = vmatpush.msrb.mxu0 %v19240_v33  ;;  %10151 = vmatpush.msrb.mxu3 %v19235_v46 }
 0x61c   :  { %10049 = vmatpush.msrb.mxu1 %v19274_v43  ;;  %10100 = vmatpush.msrb.mxu2 %v21869_v40 }
 0x61d   :  { %9991 = vmatpush.msrb.mxu0 %v19249_v10  ;;  %10153 = vmatpush.msrb.mxu3 %v19244_v5 }
 0x61e   :  { %10051 = vmatpush.msrb.mxu1 %v19287_v34  ;;  %10104 = vmatpush.msrb.mxu2 %v21870_v53  ;;  %v10347_v53 = vand.u32 4294901760, %v10346_v16 }
 0x61f   :  { %9994 = vmatpush.msrb.mxu0 %v21864_v28  ;;  %10155 = vmatpush.msrb.mxu3 %v19261_v31  ;;  %v10242_v31 = vld [vmem:[#allocation8 + $0x1c0] sm:$0xff]  ;;  %v19640_v28 = vand.u32 4294901760, %v10206_v2 }
 0x620   :  { %10053 = vmatpush.msrb.mxu1 %v19300_v15  ;;  %10108 = vmatpush.msrb.mxu2 %v21871_v20  ;;  %v19537_v46 = vand.u32 4294901760, %v10242_v31 }
 0x621   :  { %9997 = vmatpush.msrb.mxu0 %v21866_v32  ;;  %10157 = vmatpush.msrb.mxu3 %v19274_v43  ;;  %v10246_v43 = vld [vmem:[#allocation8 + $0x1e0] sm:$0xff]  ;;  %v19653_v40 = vsub.f32 %v10206_v2, %v19640_v28 }
 0x622   :  { %10055 = vmatpush.msrb.mxu1 %v19312_v36  ;;  %10112 = vmatpush.msrb.mxu2 %v9935_v61  ;;  %v10202_v32 = vld [vmem:[#allocation8 + $0x80] sm:$0xff] }
 0x623   :  { %10000 = vmatpush.msrb.mxu0 %v21868_v30  ;;  %10159 = vmatpush.msrb.mxu3 %v19287_v34  ;;  %v21873_v34 = vld [vmem:[#allocation34_spill] sm:$0xff]  ;;  %v10357_v30 = vand.u32 4294901760, %v19638_v7  ;;  %v19657_v20 = vand.u32 4294901760, %v10202_v32 }
 0x624   :  { %10057 = vmatpush.msrb.mxu1 %v19324_v19  ;;  %10116 = vmatpush.msrb.mxu2 %v9941_v63  ;;  %v10234_v63 = vld [vmem:[#allocation8 + $0x180] sm:$0xff] }
 0x625   :  { %10003 = vmatpush.msrb.mxu0 %v19298_v14  ;;  %10161 = vmatpush.msrb.mxu3 %v19300_v15  ;;  %v10238_v15 = vld [vmem:[#allocation8 + $0x1a0] sm:$0xff] }
 0x626   :  { %10059 = vmatpush.msrb.mxu1 %v19337_v49  ;;  %10120 = vmatpush.msrb.mxu2 %v9947_v9  ;;  %v19539_v33 = vand.u32 4294901760, %v10238_v15  ;;  %v10230_v9 = vld [vmem:[#allocation8 + $0x160] sm:$0xff] }
 0x627   :  { %10006 = vmatpush.msrb.mxu0 %v19310_v21  ;;  %10163 = vmatpush.msrb.mxu3 %v19312_v36  ;;  %v21872_v36 = vld [vmem:[#allocation61_spill] sm:$0xff] }
 0x628   :  { %10061 = vmatpush.msrb.mxu1 %v19350_v22  ;;  %10124 = vmatpush.msrb.mxu2 %v9953_v60  ;;  %v19548_v10 = vsub.f32 %v10238_v15, %v19539_v33  ;;  %v10226_v60 = vld [vmem:[#allocation8 + $0x140] sm:$0xff]  ;;  %v19666_v15 = vsub.f32 %v10202_v32, %v19657_v20 }
 0x629   :  { %10009 = vmatpush.msrb.mxu0 %v19322_v59  ;;  %10165 = vmatpush.msrb.mxu3 %v19324_v19  ;;  %v19535_v19 = vand.u32 4294901760, %v10246_v43 }
 0x62a   :  { %10063 = vmatpush.msrb.mxu1 %v19365_v51  ;;  %10128 = vmatpush.msrb.mxu2 %v9959_v37  ;;  %v10315_v21 = vand.u32 4294901760, %v19548_v10  ;;  %v19585_v37 = vand.u32 4294901760, %v10226_v60 }
 0x62b   :  { %10012 = vmatpush.msrb.mxu0 %v19335_v41  ;;  %10167 = vmatpush.msrb.mxu3 %v19337_v49  ;;  %v19542_v5 = vsub.f32 %v10246_v43, %v19535_v19  ;;  %v10358_v43 = vsub.f32 %v19638_v7, %v10357_v30 }
 0x62c   :  { %10065 = vmatpush.msrb.mxu1 %v19378_v8  ;;  %10132 = vmatpush.msrb.mxu2 %v9965_v17  ;;  %v10316_v41 = vsub.f32 %v19548_v10, %v10315_v21  ;;  %v19594_v24 = vsub.f32 %v10226_v60, %v19585_v37 }
 0x62d   :  { %10015 = vmatpush.msrb.mxu0 %v19348_v39  ;;  %10169 = vmatpush.msrb.mxu3 %v19350_v22  ;;  %v10303_v49 = vand.u32 4294901760, %v19542_v5 }
 0x62e   :  { %10069 = vmatmul.f32.vlgmr.msrb.gmra.mxu1 %v21872_v36  ;;  %10136 = vmatpush.msrb.mxu2 %v9971_v23  ;;  %v10333_v23 = vand.u32 4294901760, %v19594_v24  ;;  %v10198_v36 = vld [vmem:[#allocation8 + $0x60] sm:$0xff] }
 0x62f   :  { %10018 = vmatpush.msrb.mxu0 %v19361_v48  ;;  %10171 = vmatpush.msrb.mxu3 %v19365_v51  ;;  %v10304_v22 = vsub.f32 %v19542_v5, %v10303_v49  ;;  %v19571_v48 = vand.u32 4294901760, %v10234_v63  ;;  %v10317_v51 = vand.u32 4294901760, %v10316_v41  ;;  %v10359_v41 = vand.u32 4294901760, %v10358_v43 }
 0x630   :  { %10138 = vmatmul.f32.vlgmr.msrb.gmra.mxu2 %v18939_v27  ;;  %v10334_v54 = vsub.f32 %v19594_v24, %v10333_v23 }
 0x631   :  { %10021 = vmatpush.msrb.mxu0 %v19374_v1  ;;  %10173 = vmatpush.msrb.mxu3 %v19378_v8  ;;  %v10305_v61 = vand.u32 4294901760, %v10304_v22  ;;  %v19574_v1 = vsub.f32 %v10234_v63, %v19571_v48  ;;  %v19576_v8 = vand.u32 4294901760, %v10230_v9  ;;  %v19669_v22 = vand.u32 4294901760, %v10198_v36 }
 0x632   :  { %10175 = vmatmul.f32.vlgmr.msrb.gmra.mxu3 %v18939_v27  ;;  %v19545_v27 = vsub.f32 %v10242_v31, %v19537_v46  ;;  %10404 = vmatpush.msra.mxu2 %v19542_v5  ;;  %v10335_v38 = vand.u32 4294901760, %v10334_v54  ;;  %v10363_v31 = vand.u32 4294901760, %v19653_v40  ;;  %v10369_v63 = vand.u32 4294901760, %v19666_v15 }
 0x633   :  { %10024 = vmatpush.msrb.mxu0 %v19389_v6  ;;  %10457 = vmatpush.msra.mxu3 %v19535_v19  ;;  %v10321_v6 = vand.u32 4294901760, %v19574_v1  ;;  %v19582_v42 = vsub.f32 %v10230_v9, %v19576_v8  ;;  %v10190_v9 = vld [vmem:[#allocation8 + $0x20] sm:$0xff] }
 0x634   :  { %v10309_v14 = vand.u32 4294901760, %v19545_v27  ;;  %10407 = vmatpush.msra.mxu2 %v19545_v27  ;;  %10306 = vmatpush.msra.mxu1 %v10305_v61  ;;  %v10364_v61 = vsub.f32 %v19653_v40, %v10363_v31 }
 0x635   :  { %10027 = vmatpush.msrb.mxu0 %v19400_v52  ;;  %10459 = vmatpush.msra.mxu3 %v19537_v46  ;;  %v10222_v52 = vld [vmem:[#allocation8 + $0x120] sm:$0xff]  ;;  %v10322_v58 = vsub.f32 %v19574_v1, %v10321_v6  ;;  %v10327_v29 = vand.u32 4294901760, %v19582_v42 }
 0x636   :  { %10030 = vmatmul.f32.vlgmr.msrb.gmra.mxu0 %v21873_v34  ;;  %v10310_v59 = vsub.f32 %v19545_v27, %v10309_v14  ;;  %10410 = vmatpush.msra.mxu2 %v19548_v10  ;;  %v19597_v17 = vand.u32 4294901760, %v10222_v52  ;;  %v10353_v34 = vand.u32 4294901760, %v10352_v12  ;;  %v10365_v60 = vand.u32 4294901760, %v10364_v61 }
 0x637   :  { %10261 = vmatpush.msra.mxu0 %v19535_v19  ;;  %10461 = vmatpush.msra.mxu3 %v19539_v33  ;;  %v10323_v35 = vand.u32 4294901760, %v10322_v58  ;;  %v10328_v18 = vsub.f32 %v19582_v42, %v10327_v29  ;;  %v19686_v58 = vand.u32 4294901760, %v10190_v9 }
 0x638   :  { %v10311_v39 = vand.u32 4294901760, %v10310_v59  ;;  %10413 = vmatpush.msra.mxu2 %v19574_v1  ;;  %v19606_v56 = vsub.f32 %v10222_v52, %v19597_v17  ;;  %v10194_v59 = vld [vmem:[#allocation8 + $0x40] sm:$0xff]  ;;  %v19774_v1 = vpop.f32.mrf.mxu0 }
 0x639   :  { %10263 = vmatpush.msra.mxu0 %v19537_v46  ;;  %10463 = vmatpush.msra.mxu3 %v19571_v48  ;;  %v10329_v0 = vand.u32 4294901760, %v10328_v18  ;;  %v10370_v18 = vsub.f32 %v19666_v15, %v10369_v63 }
 0x63a   :  { %10312 = vmatpush.msra.mxu1 %v10311_v39  ;;  %10416 = vmatpush.msra.mxu2 %v19582_v42  ;;  %v10339_v55 = vand.u32 4294901760, %v19606_v56  ;;  %v19674_v39 = vand.u32 4294901760, %v10194_v59  ;;  %v10223_v42 = vld [vmem:[#allocation8 + $0x128] sm:$0xff] }
 0x63b   :  { %10265 = vmatpush.msra.mxu0 %v19539_v33  ;;  %10465 = vmatpush.msra.mxu3 %v19576_v8 }
 0x63c   :  { %10318 = vmatpush.msra.mxu1 %v10317_v51  ;;  %10419 = vmatpush.msra.mxu2 %v19594_v24  ;;  %v10340_v26 = vsub.f32 %v19606_v56, %v10339_v55  ;;  %v19680_v51 = vsub.f32 %v10198_v36, %v19669_v22  ;;  %v19684_v52 = vsub.f32 %v10194_v59, %v19674_v39 }
 0x63d   :  { %10267 = vmatpush.msra.mxu0 %v19571_v48  ;;  %10467 = vmatpush.msra.mxu3 %v19585_v37 }
 0x63e   :  { %10324 = vmatpush.msra.mxu1 %v10323_v35  ;;  %10422 = vmatpush.msra.mxu2 %v19606_v56  ;;  %v10341_v25 = vand.u32 4294901760, %v10340_v26  ;;  %v10247_v35 = vld [vmem:[#allocation8 + $0x1e8] sm:$0xff]  ;;  %v10375_v4 = vand.u32 4294901760, %v19680_v51  ;;  %v10381_v45 = vand.u32 4294901760, %v19684_v52  ;;  %v10371_v26 = vand.u32 4294901760, %v10370_v18 }
 0x63f   :  { %10269 = vmatpush.msra.mxu0 %v19576_v8  ;;  %10469 = vmatpush.msra.mxu3 %v19597_v17  ;;  %v19697_v54 = vand.u32 4294901760, %v10247_v35  ;;  %v10215_v56 = vld [vmem:[#allocation8 + $0xe8] sm:$0xff] }
 0x640   :  { %10330 = vmatpush.msra.mxu1 %v10329_v0  ;;  %10425 = vmatpush.msra.mxu2 %v19621_v44  ;;  %v19695_v0 = vand.u32 4294901760, %v10186_v50  ;;  %v10376_v2 = vsub.f32 %v19680_v51, %v10375_v4  ;;  %v10382_v32 = vsub.f32 %v19684_v52, %v10381_v45 }
 0x641   :  { %10271 = vmatpush.msra.mxu0 %v19585_v37  ;;  %10471 = vmatpush.msra.mxu3 %v19610_v47  ;;  %v19713_v16 = vsub.f32 %v10247_v35, %v19697_v54 }
 0x642   :  { %10336 = vmatpush.msra.mxu1 %v10335_v38  ;;  %10428 = vmatpush.msra.mxu2 %v19629_v3  ;;  %v19701_v38 = vsub.f32 %v10190_v9, %v19686_v58  ;;  %v10377_v36 = vand.u32 4294901760, %v10376_v2  ;;  %v10383_v59 = vand.u32 4294901760, %v10382_v32  ;;  %v19845_v3 = vpop.f32.mrf.mxu0 }
 0x643   :  { %10273 = vmatpush.msra.mxu0 %v19597_v17  ;;  %10473 = vmatpush.msra.mxu3 %v19618_v13  ;;  %v21165_v43 = vand.u32 4294901760, %v19713_v16 }
 0x644   :  { %10342 = vmatpush.msra.mxu1 %v10341_v25  ;;  %10431 = vmatpush.msra.mxu2 %v19638_v7  ;;  %v19710_v25 = vsub.f32 %v10186_v50, %v19695_v0  ;;  %v10387_v12 = vand.u32 4294901760, %v19701_v38 }
 0x645   :  { %10275 = vmatpush.msra.mxu0 %v19610_v47  ;;  %10475 = vmatpush.msra.mxu3 %v19631_v57 }
 0x646   :  { %10348 = vmatpush.msra.mxu1 %v10347_v53  ;;  %10434 = vmatpush.msra.mxu2 %v19653_v40  ;;  %v10243_v53 = vld [vmem:[#allocation8 + $0x1c8] sm:$0xff] }
 0x647   :  { %10277 = vmatpush.msra.mxu0 %v19618_v13  ;;  %10477 = vmatpush.msra.mxu3 %v19640_v28  ;;  %v19733_v9 = vand.u32 4294901760, %v10243_v53 }
 0x648   :  { %10354 = vmatpush.msra.mxu1 %v10353_v34  ;;  %10437 = vmatpush.msra.mxu2 %v19666_v15  ;;  %v10393_v34 = vand.u32 4294901760, %v19710_v25  ;;  %v10191_v15 = vld [vmem:[#allocation8 + $0x28] sm:$0xff] }
 0x649   :  { %10279 = vmatpush.msra.mxu0 %v19631_v57  ;;  %10479 = vmatpush.msra.mxu3 %v19657_v20  ;;  %v19747_v32 = vsub.f32 %v10243_v53, %v19733_v9 }
 0x64a   :  { %10360 = vmatpush.msra.mxu1 %v10359_v41  ;;  %10440 = vmatpush.msra.mxu2 %v19680_v51  ;;  %v10388_v41 = vsub.f32 %v19701_v38, %v10387_v12  ;;  %v10394_v61 = vsub.f32 %v19710_v25, %v10393_v34 }
 0x64b   :  { %10281 = vmatpush.msra.mxu0 %v19640_v28  ;;  %10481 = vmatpush.msra.mxu3 %v19669_v22  ;;  %v21164_v5 = vand.u32 4294901760, %v19747_v32 }
 0x64c   :  { %10366 = vmatpush.msra.mxu1 %v10365_v60  ;;  %10443 = vmatpush.msra.mxu2 %v19684_v52  ;;  %v10645_v60 = vsub.f32 %v19713_v16, %v21165_v43  ;;  %v10389_v50 = vand.u32 4294901760, %v10388_v41  ;;  %v10395_v35 = vand.u32 4294901760, %v10394_v61  ;;  %v10187_v52 = vld [vmem:[#allocation8 + $0x8] sm:$0xff] }
 0x64d   :  { %10283 = vmatpush.msra.mxu0 %v19657_v20  ;;  %10483 = vmatpush.msra.mxu3 %v19674_v39  ;;  %v10651_v10 = vsub.f32 %v19747_v32, %v21164_v5 }
 0x64e   :  { %10372 = vmatpush.msra.mxu1 %v10371_v26  ;;  %10446 = vmatpush.msra.mxu2 %v19701_v38  ;;  %v10646_v18 = vand.u32 4294901760, %v10645_v60  ;;  %v10239_v26 = vld [vmem:[#allocation8 + $0x1a8] sm:$0xff] }
 0x64f   :  { %10285 = vmatpush.msra.mxu0 %v19669_v22  ;;  %10485 = vmatpush.msra.mxu3 %v19686_v58  ;;  %v19744_v2 = vand.u32 4294901760, %v10239_v26  ;;  %v10652_v41 = vand.u32 4294901760, %v10651_v10 }
 0x650   :  { %10378 = vmatpush.msra.mxu1 %v10377_v36  ;;  %10449 = vmatpush.msra.mxu2 %v19710_v25  ;;  %v10235_v36 = vld [vmem:[#allocation8 + $0x188] sm:$0xff] }
 0x651   :  { %10287 = vmatpush.msra.mxu0 %v19674_v39  ;;  %10487 = vmatpush.msra.mxu3 %v19695_v0  ;;  %v19756_v27 = vsub.f32 %v10239_v26, %v19744_v2  ;;  %v19797_v26 = vand.u32 4294901760, %v10223_v42 }
 0x652   :  { %10602 = vmatpush.msrb.mxu2 %v19697_v54  ;;  %10384 = vmatpush.msra.mxu1 %v10383_v59 }
 0x653   :  { %10289 = vmatpush.msra.mxu0 %v19686_v58  ;;  %10647 = vmatpush.msrb.mxu3 %v10646_v18 }
 0x654   :  { %10604 = vmatpush.msrb.mxu2 %v19733_v9  ;;  %10390 = vmatpush.msra.mxu1 %v10389_v50 }
 0x655   :  { %10291 = vmatpush.msra.mxu0 %v19695_v0  ;;  %10653 = vmatpush.msrb.mxu3 %v10652_v41 }
 0x656   :  { %10396 = vmatpush.msra.mxu1 %v10395_v35  ;;  %10606 = vmatpush.msrb.mxu2 %v19744_v2 }
 0x657   :  { %10498 = vmatpush.msrb.mxu0 %v10303_v49  ;;  %v19753_v49 = vand.u32 4294901760, %v10235_v36 }
 0x658   :  { %10565 = vmatpush.msrb.mxu1 %v19535_v19  ;;  %v10227_v19 = vld [vmem:[#allocation8 + $0x148] sm:$0xff] }
 0x659   :  { %10502 = vmatpush.msrb.mxu0 %v10309_v14  ;;  %v10231_v14 = vld [vmem:[#allocation8 + $0x168] sm:$0xff]  ;;  %10608 = vmatpush.msrb.mxu2 %v19753_v49  ;;  %v19769_v59 = vsub.f32 %v10235_v36, %v19753_v49  ;;  %v19783_v50 = vand.u32 4294901760, %v10227_v19  ;;  %v19806_v36 = vpop.f32.mrf.mxu3 }
 0x65a   :  { %v19766_v53 = vand.u32 4294901760, %v10231_v14  ;;  %10567 = vmatpush.msrb.mxu1 %v19537_v46 }
 0x65b   :  { %10506 = vmatpush.msrb.mxu0 %v10315_v21  ;;  %v21163_v21 = vand.u32 4294901760, %v19756_v27  ;;  %v21155_v60 = vand.u32 4294901760, %v19769_v59 }
 0x65c   :  { %10610 = vmatpush.msrb.mxu2 %v19766_v53  ;;  %10569 = vmatpush.msrb.mxu1 %v19539_v33  ;;  %v19787_v46 = vsub.f32 %v10231_v14, %v19766_v53  ;;  %v19800_v33 = vsub.f32 %v10227_v19, %v19783_v50  ;;  %v19813_v19 = vsub.f32 %v10223_v42, %v19797_v26  ;;  %v19826_v42 = vand.u32 4294901760, %v10215_v56 }
 0x65d   :  { %10510 = vmatpush.msrb.mxu0 %v10321_v6  ;;  %v19776_v6 = vpop.f32.mrf.mxu2  ;;  %v10657_v61 = vsub.f32 %v19756_v27, %v21163_v21  ;;  %v10663_v18 = vsub.f32 %v19769_v59, %v21155_v60 }
 0x65e   :  { %10612 = vmatpush.msrb.mxu2 %v19783_v50  ;;  %10571 = vmatpush.msrb.mxu1 %v19571_v48  ;;  %v21153_v24 = vand.u32 4294901760, %v19787_v46  ;;  %v21151_v10 = vand.u32 4294901760, %v19800_v33 }
 0x65f   :  { %10514 = vmatpush.msrb.mxu0 %v10327_v29  ;;  %v19791_v29 = vpop.f32.mrf.mxu1  ;;  %v10658_v35 = vand.u32 4294901760, %v10657_v61  ;;  %v10664_v14 = vand.u32 4294901760, %v10663_v18  ;;  %v21152_v61 = vand.u32 4294901760, %v19813_v19  ;;  %v10211_v18 = vld [vmem:[#allocation8 + $0xc8] sm:$0xff] }
 0x660   :  { %10614 = vmatpush.msrb.mxu2 %v19797_v26  ;;  %10573 = vmatpush.msrb.mxu1 %v19576_v8  ;;  %v10669_v48 = vsub.f32 %v19787_v46, %v21153_v24 }
 0x661   :  { %10518 = vmatpush.msrb.mxu0 %v10333_v23  ;;  %v10219_v23 = vld [vmem:[#allocation8 + $0x108] sm:$0xff]  ;;  %10659 = vmatpush.msrb.mxu3 %v10658_v35 }
 0x662   :  { %v19810_v41 = vand.u32 4294901760, %v10219_v23  ;;  %10575 = vmatpush.msrb.mxu1 %v19585_v37  ;;  %v10670_v35 = vand.u32 4294901760, %v10669_v48  ;;  %v19843_v37 = vsub.f32 %v10215_v56, %v19826_v42 }
 0x663   :  { %10522 = vmatpush.msrb.mxu0 %v10339_v55  ;;  %10665 = vmatpush.msrb.mxu3 %v10664_v14  ;;  %v10675_v55 = vsub.f32 %v19800_v33, %v21151_v10  ;;  %v19839_v10 = vand.u32 4294901760, %v10211_v18 }
 0x664   :  { %10616 = vmatpush.msrb.mxu2 %v19810_v41  ;;  %v19829_v8 = vsub.f32 %v10219_v23, %v19810_v41  ;;  %10577 = vmatpush.msrb.mxu1 %v19597_v17  ;;  %v10207_v23 = vld [vmem:[#allocation8 + $0xa8] sm:$0xff]  ;;  %v21157_v56 = vand.u32 4294901760, %v19843_v37 }
 0x665   :  { %10526 = vmatpush.msrb.mxu0 %v10345_v11  ;;  %v10676_v44 = vand.u32 4294901760, %v10675_v55  ;;  %v10681_v11 = vsub.f32 %v19813_v19, %v21152_v61  ;;  %10671 = vmatpush.msrb.mxu3 %v10670_v35  ;;  %v19853_v61 = vand.u32 4294901760, %v10207_v23  ;;  %v19856_v17 = vsub.f32 %v10211_v18, %v19839_v10  ;;  %v10203_v35 = vld [vmem:[#allocation8 + $0x88] sm:$0xff]  ;;  %v19877_v18 = vpop.f32.mrf.mxu3 }
 0x666   :  { %10618 = vmatpush.msrb.mxu2 %v19826_v42  ;;  %v21154_v14 = vand.u32 4294901760, %v19829_v8  ;;  %10579 = vmatpush.msrb.mxu1 %v19610_v47  ;;  %v19866_v60 = vand.u32 4294901760, %v10203_v35  ;;  %v10693_v47 = vsub.f32 %v19843_v37, %v21157_v56 }
 0x667   :  { %10530 = vmatpush.msrb.mxu0 %v10351_v62  ;;  %v19847_v62 = vpop.f32.mrf.mxu2  ;;  %v10682_v48 = vand.u32 4294901760, %v10681_v11  ;;  %10677 = vmatpush.msrb.mxu3 %v10676_v44  ;;  %v19862_v11 = vpop.f32.mrf.mxu1  ;;  %v19875_v7 = vsub.f32 %v10207_v23, %v19853_v61 }
 0x668   :  { %v10687_v55 = vsub.f32 %v19829_v8, %v21154_v14  ;;  %10620 = vmatpush.msrb.mxu2 %v19839_v10  ;;  %v21156_v14 = vand.u32 4294901760, %v19856_v17  ;;  %10581 = vmatpush.msrb.mxu1 %v19618_v13  ;;  %v19886_v13 = vsub.f32 %v10203_v35, %v19866_v60 }
 0x669   :  { %10534 = vmatpush.msrb.mxu0 %v10357_v30  ;;  %10683 = vmatpush.msrb.mxu3 %v10682_v48  ;;  %v10199_v30 = vld [vmem:[#allocation8 + $0x68] sm:$0xff]  ;;  %v21159_v23 = vand.u32 4294901760, %v19875_v7 }
 0x66a   :  { %v10688_v24 = vand.u32 4294901760, %v10687_v55  ;;  %10622 = vmatpush.msrb.mxu2 %v19853_v61  ;;  %v10699_v44 = vsub.f32 %v19856_v17, %v21156_v14  ;;  %v19883_v40 = vand.u32 4294901760, %v10199_v30  ;;  %10583 = vmatpush.msrb.mxu1 %v19631_v57  ;;  %v10195_v48 = vld [vmem:[#allocation8 + $0x48] sm:$0xff]  ;;  %v21158_v14 = vand.u32 4294901760, %v19886_v13 }
 0x66b   :  { %10538 = vmatpush.msrb.mxu0 %v10363_v31  ;;  %v10694_v31 = vand.u32 4294901760, %v10693_v47  ;;  %v19894_v56 = vand.u32 4294901760, %v10195_v48  ;;  %v10705_v57 = vsub.f32 %v19875_v7, %v21159_v23 }
 0x66c   :  { %10624 = vmatpush.msrb.mxu2 %v19866_v60  ;;  %10689 = vmatpush.msrb.mxu3 %v10688_v24  ;;  %v10700_v55 = vand.u32 4294901760, %v10699_v44  ;;  %v19897_v35 = vsub.f32 %v10199_v30, %v19883_v40  ;;  %v10711_v47 = vsub.f32 %v19886_v13, %v21158_v14  ;;  %v8805_v44 = vld [vmem:[%s20813_s7] sm:$0xf] }
 0x66d   :  { %10542 = vmatpush.msrb.mxu0 %v10369_v63  ;;  %10585 = vmatpush.msrb.mxu1 %v19640_v28  ;;  %v9349_v63 = vpop.f32.mrf.mxu0  ;;  %v19915_v28 = vsub.f32 %v10195_v48, %v19894_v56  ;;  %v10706_v30 = vand.u32 4294901760, %v10705_v57  ;;  %v8808_v38 = vperm.slane %v8805_v44, 1 }
 0x66e   :  { %10626 = vmatpush.msrb.mxu2 %v19883_v40  ;;  %10695 = vmatpush.msrb.mxu3 %v10694_v31  ;;  %v21160_v51 = vand.u32 4294901760, %v19897_v35  ;;  %v10712_v14 = vand.u32 4294901760, %v10711_v47 }
 0x66f   :  { %10546 = vmatpush.msrb.mxu0 %v10375_v4  ;;  %v19905_v24 = vpop.f32.mrf.mxu2  ;;  %v19912_v4 = vand.u32 4294901760, %v10191_v15  ;;  %10587 = vmatpush.msrb.mxu1 %v19657_v20  ;;  %v9388_v31 = vpop.f32.mrf.mxu1  ;;  %v21161_v48 = vand.u32 4294901760, %v19915_v28  ;;  %v19931_v20 = vand.u32 4294901760, %v10187_v52 }
 0x670   :  { %10628 = vmatpush.msrb.mxu2 %v19894_v56  ;;  %10701 = vmatpush.msrb.mxu3 %v10700_v55  ;;  %v10717_v23 = vsub.f32 %v19897_v35, %v21160_v51  ;;  %v9494_v55 = vpop.f32.mrf.mxu3  ;;  %v8807_v51 = vperm.slane %v8805_v44, 0 }
 0x671   :  { %10550 = vmatpush.msrb.mxu0 %v10381_v45  ;;  %10589 = vmatpush.msrb.mxu1 %v19669_v22  ;;  %v19934_v45 = vsub.f32 %v10191_v15, %v19912_v4  ;;  %v10723_v47 = vsub.f32 %v19915_v28, %v21161_v48 }
 0x672   :  { %10630 = vmatpush.msrb.mxu2 %v19912_v4  ;;  %10707 = vmatpush.msrb.mxu3 %v10706_v30  ;;  %v10718_v57 = vand.u32 4294901760, %v10717_v23  ;;  %v8809_v23 = vperm.slane %v8805_v44, 2  ;;  %v8854_v30 = vadd.f32 %v19774_v1, %v8807_v51  ;;  %v8810_v51 = vperm.slane %v8805_v44, 3 }
 0x673   :  { %10554 = vmatpush.msrb.mxu0 %v10387_v12  ;;  %21874 = vst [vmem:[#allocation62_spill] sm:$0xff] %v19934_v45  ;;  %10591 = vmatpush.msrb.mxu1 %v19674_v39  ;;  %v21162_v22 = vand.u32 4294901760, %v19934_v45  ;;  %v19944_v12 = vsub.f32 %v10187_v52, %v19931_v20  ;;  %v10724_v15 = vand.u32 4294901760, %v10723_v47  ;;  %v9195_v52 = vadd.f32 %v19847_v62, %v8808_v38 }
 0x674   :  { %10713 = vmatpush.msrb.mxu3 %v10712_v14  ;;  %10632 = vmatpush.msrb.mxu2 %v19931_v20  ;;  %v8955_v5 = vadd.f32 %v19791_v29, %v8854_v30 }
 0x675   :  { %10558 = vmatpush.msrb.mxu0 %v10393_v34  ;;  %21875 = vst [vmem:[#allocation36_spill] sm:$0xff] %v19944_v12  ;;  %10593 = vmatpush.msrb.mxu1 %v19686_v58  ;;  %v10729_v25 = vsub.f32 %v19934_v45, %v21162_v22  ;;  %v21168_v34 = vand.u32 4294901760, %v19944_v12  ;;  %v9535_v39 = vpop.f32.mrf.mxu0  ;;  %v9296_v43 = vadd.f32 %v19877_v18, %v9195_v52 }
 0x676   :  { %10719 = vmatpush.msrb.mxu3 %v10718_v57  ;;  %v9536_v48 = vadd.f32 %v9535_v39, %v8809_v23 }
 0x677   :  { %v9690_v14 = vpop.f32.mrf.mxu2  ;;  %10595 = vmatpush.msrb.mxu1 %v19695_v0  ;;  %v10730_v47 = vand.u32 4294901760, %v10729_v25  ;;  %v10735_v58 = vsub.f32 %v19944_v12, %v21168_v34  ;;  %v9636_v57 = vpop.f32.mrf.mxu1  ;;  %v9350_v1 = vadd.f32 %v9349_v63, %v9296_v43 }
 0x678   :  { %10725 = vmatpush.msrb.mxu3 %v10724_v15  ;;  %v9729_v21 = vpop.f32.mrf.mxu3  ;;  %v9637_v62 = vadd.f32 %v9636_v57, %v9536_v48  ;;  %v9009_v15 = vadd.f32 %v19776_v6, %v8955_v5 }
 0x679   :  { %v10736_v22 = vand.u32 4294901760, %v10735_v58  ;;  %v9389_v45 = vadd.f32 %v9388_v31, %v9350_v1 }
 0x67a   :  { %10731 = vmatpush.msrb.mxu3 %v10730_v47  ;;  %v9691_v34 = vadd.f32 %v9690_v14, %v9637_v62  ;;  %v9048_v39 = vadd.f32 %v19806_v36, %v9009_v15  ;;  %v21880_v15 = vand.u32 4294901760, %v19756_v27 }
 0x67b   :  { %v9458_v47 = vadd.f32 %v19905_v24, %v9389_v45 }
 0x67c   :  { %10737 = vmatpush.msrb.mxu3 %v10736_v22  ;;  %v9730_v29 = vadd.f32 %v9729_v21, %v9691_v34  ;;  %v9117_v43 = vadd.f32 %v19845_v3, %v9048_v39 }
 0x67d   :  { %v9495_v22 = vadd.f32 %v9494_v55, %v9458_v47  ;;  %v21878_v55 = vand.u32 4294901760, %v19713_v16 }
 0x67e   :  { %v9154_v6 = vadd.f32 %v19862_v11, %v9117_v43  ;;  %v10228_v43 = vld [vmem:[#allocation8 + $0x150] sm:$0xff] }
 0x67f   :  { %v10180_v57 = vmax.f32 %v9495_v22, 0.0  ;;  %v21889_v22 = vand.u32 4294901760, %v19886_v13 }
 0x680   :  { %v10179_v1 = vmax.f32 %v9154_v6, 0.0  ;;  %v21890_v6 = vand.u32 4294901760, %v19897_v35 }
 0x682   :  { %v10183_v45 = vmax.f32 %v10179_v1, %v10180_v57  ;;  %v21891_v57 = vand.u32 4294901760, %v19915_v28 }
 0x689   :  { %v9835_v25 = vpop.f32.mrf.mxu1 }
 0x691   :  { %v9876_v38 = vpop.f32.mrf.mxu2 }
 0x692   :  { %v9877_v12 = vadd.f32 %v9876_v38, %v8810_v51 }
 0x693   :  { %v9798_v0 = vpop.f32.mrf.mxu0 }
 0x694   :  { %v9977_v23 = vpop.f32.mrf.mxu3  ;;  %v9799_v63 = vadd.f32 %v9798_v0, %v9730_v29  ;;  %v21879_v0 = vand.u32 4294901760, %v19747_v32 }
 0x695   :  { %v9978_v30 = vadd.f32 %v9977_v23, %v9877_v12  ;;  %v10240_v23 = vld [vmem:[#allocation8 + $0x1b0] sm:$0xff] }
 0x696   :  { %v9836_v31 = vadd.f32 %v9835_v25, %v9799_v63  ;;  %v21881_v25 = vand.u32 4294901760, %v19769_v59  ;;  %v20029_v47 = vand.u32 4294901760, %v10240_v23  ;;  %v21888_v63 = vand.u32 4294901760, %v19875_v7 }
 0x698   :  { %v10181_v24 = vmax.f32 %v9836_v31, 0.0 }
 0x6ab   :  { %v10070_v48 = vpop.f32.mrf.mxu1 }
 0x6b3   :  { %v10031_v18 = vpop.f32.mrf.mxu0  ;;  %v10139_v5 = vpop.f32.mrf.mxu2 }
 0x6b4   :  { %v10032_v44 = vadd.f32 %v10031_v18, %v9978_v30  ;;  %v20048_v18 = vsub.f32 %v10240_v23, %v20029_v47 }
 0x6b5   :  { %v10176_v58 = vpop.f32.mrf.mxu3 }
 0x6b6   :  { %v10071_v52 = vadd.f32 %v10070_v48, %v10032_v44  ;;  %v20063_v48 = vand.u32 4294901760, %v10228_v43 }
 0x6b8   :  { %v10140_v14 = vadd.f32 %v10139_v5, %v10071_v52  ;;  %v21186_v52 = vand.u32 4294901760, %v20048_v18 }
 0x6ba   :  { %v10177_v36 = vadd.f32 %v10176_v58, %v10140_v14  ;;  %v10216_v58 = vld [vmem:[#allocation8 + $0xf0] sm:$0xff] }
 0x6bc   :  { %v10182_v21 = vmax.f32 %v10177_v36, 0.0  ;;  %v10998_v36 = vsub.f32 %v20048_v18, %v21186_v52 }
 0x6be   :  { %v10184_v12 = vmax.f32 %v10181_v24, %v10182_v21  ;;  %v20105_v21 = vand.u32 4294901760, %v10216_v58 }
 0x6c0   :  { %v10185_v34 = vmax.f32 %v10183_v45, %v10184_v12  ;;  %v21892_v45 = vld [vmem:[#allocation62_spill] sm:$0xff] }
 0x6c1   :  { %v21893_v12 = vand.u32 4294901760, %v21892_v45 }
 0x6c2   :  { %v19965_v3 = vand.u32 4294901760, %v10185_v34 }
 0x6c4   :  { %v19968_v62 = vsub.f32 %v10185_v34, %v19965_v3  ;;  %10398 = vmatmul.f32.vlgmr.msra.gmra.mxu1 %v19965_v3 }
 0x6c5   :  { %10798 = vmatpush.msra.mxu1 %v19697_v54 }
 0x6c6   :  { %21876 = vst [vmem:[#allocation63_spill] sm:$0xff] %v19968_v62  ;;  %10452 = vmatmul.f32.vlgmr.msra.gmra.mxu2 %v19968_v62  ;;  %v19974_v11 = vand.u32 4294901760, %v19968_v62 }
 0x6c7   :  { %10800 = vmatpush.msra.mxu1 %v19733_v9  ;;  %10839 = vmatpush.msra.mxu2 %v21878_v55 }
 0x6c8   :  { %21877 = vst [vmem:[#allocation23_spill] sm:$0xff] %v19974_v11  ;;  %10491 = vmatmul.f32.vlgmr.msra.gmra.mxu3 %v19974_v11  ;;  %v10295_v51 = vsub.f32 %v19968_v62, %v19974_v11 }
 0x6c9   :  { %10802 = vmatpush.msra.mxu1 %v19744_v2  ;;  %10843 = vmatpush.msra.mxu2 %v21879_v0 }
 0x6ca   :  { %10906 = vmatpush.msra.mxu3 %v19697_v54  ;;  %v19986_v38 = vand.u32 4294901760, %v10295_v51  ;;  %v21882_v54 = vand.u32 4294901760, %v19787_v46  ;;  %v10208_v51 = vld [vmem:[#allocation8 + $0xb0] sm:$0xff] }
 0x6cb   :  { %10804 = vmatpush.msra.mxu1 %v19753_v49  ;;  %10847 = vmatpush.msra.mxu2 %v21880_v15  ;;  %v21894_v15 = vld [vmem:[#allocation36_spill] sm:$0xff] }
 0x6cc   :  { %10908 = vmatpush.msra.mxu3 %v19733_v9  ;;  %10297 = vmatmul.f32.vlgmr.msra.gmra.mxu0 %v19986_v38  ;;  %v10248_v9 = vld [vmem:[#allocation8 + $0x1f0] sm:$0xff] }
 0x6cd   :  { %10597 = vmatmul.f32.vlgmr.msrb.gmra.mxu1 %v19965_v3  ;;  %10745 = vmatpush.msra.mxu0 %v19713_v16  ;;  %v21883_v16 = vand.u32 4294901760, %v19800_v33 }
 0x6ce   :  { %10806 = vmatpush.msra.mxu1 %v19766_v53  ;;  %10851 = vmatpush.msra.mxu2 %v21881_v25  ;;  %v10999_v25 = vand.u32 4294901760, %v10998_v36 }
 0x6cf   :  { %10910 = vmatpush.msra.mxu3 %v19744_v2  ;;  %10638 = vmatmul.f32.vlgmr.msrb.gmra.mxu2 %v19986_v38  ;;  %v10244_v2 = vld [vmem:[#allocation8 + $0x1d0] sm:$0xff] }
 0x6d0   :  { %10748 = vmatpush.msra.mxu0 %v19747_v32  ;;  %10808 = vmatpush.msra.mxu1 %v19783_v50  ;;  %v20012_v32 = vand.u32 4294901760, %v10248_v9 }
 0x6d1   :  { %10855 = vmatpush.msra.mxu2 %v21882_v54  ;;  %10912 = vmatpush.msra.mxu3 %v19753_v49  ;;  %v21884_v49 = vand.u32 4294901760, %v19813_v19 }
 0x6d2   :  { %10739 = vmatmul.f32.vlgmr.msrb.gmra.mxu3 %v19965_v3  ;;  %10751 = vmatpush.msra.mxu0 %v19756_v27  ;;  %v20019_v27 = vand.u32 4294901760, %v10244_v2  ;;  %v20027_v39 = vsub.f32 %v10248_v9, %v20012_v32 }
 0x6d3   :  { %10810 = vmatpush.msra.mxu1 %v19797_v26  ;;  %10859 = vmatpush.msra.mxu2 %v21883_v16  ;;  %v10204_v16 = vld [vmem:[#allocation8 + $0x90] sm:$0xff] }
 0x6d4   :  { %10914 = vmatpush.msra.mxu3 %v19766_v53  ;;  %10754 = vmatpush.msra.mxu0 %v19769_v59  ;;  %v10236_v53 = vld [vmem:[#allocation8 + $0x190] sm:$0xff]  ;;  %v21885_v59 = vand.u32 4294901760, %v19829_v8  ;;  %v20037_v29 = vsub.f32 %v10244_v2, %v20019_v27  ;;  %v20132_v2 = vand.u32 4294901760, %v10208_v51 }
 0x6d5   :  { %10812 = vmatpush.msra.mxu1 %v19810_v41  ;;  %10863 = vmatpush.msra.mxu2 %v21884_v49  ;;  %v20039_v30 = vand.u32 4294901760, %v10236_v53 }
 0x6d6   :  { %10916 = vmatpush.msra.mxu3 %v19783_v50  ;;  %10560 = vmatmul.f32.vlgmr.msrb.gmra.mxu0 %v19965_v3  ;;  %v10232_v50 = vld [vmem:[#allocation8 + $0x170] sm:$0xff] }
 0x6d7   :  { %10757 = vmatpush.msra.mxu0 %v19787_v46  ;;  %10814 = vmatpush.msra.mxu1 %v19826_v42  ;;  %v21886_v46 = vand.u32 4294901760, %v19843_v37  ;;  %v20059_v44 = vsub.f32 %v10236_v53, %v20039_v30  ;;  %v10200_v53 = vld [vmem:[#allocation8 + $0x70] sm:$0xff] }
 0x6d8   :  { %10867 = vmatpush.msra.mxu2 %v21885_v59  ;;  %10918 = vmatpush.msra.mxu3 %v19797_v26  ;;  %v21887_v26 = vand.u32 4294901760, %v19856_v17 }
 0x6d9   :  { %10760 = vmatpush.msra.mxu0 %v19800_v33  ;;  %10816 = vmatpush.msra.mxu1 %v19839_v10  ;;  %v21188_v33 = vand.u32 4294901760, %v20027_v39  ;;  %v21184_v31 = vand.u32 4294901760, %v20059_v44 }
 0x6da   :  { %10871 = vmatpush.msra.mxu2 %v21886_v46  ;;  %10920 = vmatpush.msra.mxu3 %v19810_v41  ;;  %v20050_v41 = vand.u32 4294901760, %v10232_v50 }
 0x6db   :  { %10763 = vmatpush.msra.mxu0 %v19813_v19  ;;  %10818 = vmatpush.msra.mxu1 %v19853_v61  ;;  %v10224_v19 = vld [vmem:[#allocation8 + $0x130] sm:$0xff]  ;;  %v11004_v34 = vsub.f32 %v20059_v44, %v21184_v31 }
 0x6dc   :  { %10875 = vmatpush.msra.mxu2 %v21887_v26  ;;  %10922 = vmatpush.msra.mxu3 %v19826_v42  ;;  %v21187_v42 = vand.u32 4294901760, %v20037_v29  ;;  %v20073_v5 = vsub.f32 %v10232_v50, %v20050_v41  ;;  %v20144_v50 = vand.u32 4294901760, %v10204_v16 }
 0x6dd   :  { %10766 = vmatpush.msra.mxu0 %v19829_v8  ;;  %10820 = vmatpush.msra.mxu1 %v19866_v60  ;;  %v10220_v8 = vld [vmem:[#allocation8 + $0x110] sm:$0xff]  ;;  %v11005_v49 = vand.u32 4294901760, %v11004_v34 }
 0x6de   :  { %10879 = vmatpush.msra.mxu2 %v21888_v63  ;;  %10924 = vmatpush.msra.mxu3 %v19839_v10  ;;  %v10986_v10 = vsub.f32 %v20027_v39, %v21188_v33  ;;  %v20086_v14 = vand.u32 4294901760, %v10220_v8  ;;  %v21183_v1 = vand.u32 4294901760, %v20073_v5  ;;  %v10209_v33 = vld [vmem:[#allocation8 + $0xb8] sm:$0xff] }
 0x6df   :  { %10769 = vmatpush.msra.mxu0 %v19843_v37  ;;  %10822 = vmatpush.msra.mxu1 %v19883_v40  ;;  %v20075_v37 = vand.u32 4294901760, %v10224_v19 }
 0x6e0   :  { %10883 = vmatpush.msra.mxu2 %v21889_v22  ;;  %10926 = vmatpush.msra.mxu3 %v19853_v61  ;;  %v10992_v61 = vsub.f32 %v20037_v29, %v21187_v42  ;;  %v20114_v55 = vsub.f32 %v10220_v8, %v20086_v14  ;;  %v11010_v54 = vsub.f32 %v20073_v5, %v21183_v1  ;;  %v10192_v8 = vld [vmem:[#allocation8 + $0x30] sm:$0xff]  ;;  %v10205_v42 = vld [vmem:[#allocation8 + $0x98] sm:$0xff] }
 0x6e1   :  { %10772 = vmatpush.msra.mxu0 %v19856_v17  ;;  %10824 = vmatpush.msra.mxu1 %v19894_v56  ;;  %v20091_v17 = vsub.f32 %v10228_v43, %v20063_v48  ;;  %v20101_v24 = vsub.f32 %v10224_v19, %v20075_v37  ;;  %v20154_v43 = vsub.f32 %v10208_v51, %v20132_v2  ;;  %v20156_v19 = vand.u32 4294901760, %v10200_v53 }
 0x6e2   :  { %10887 = vmatpush.msra.mxu2 %v21890_v6  ;;  %10928 = vmatpush.msra.mxu3 %v19866_v60  ;;  %v10987_v60 = vand.u32 4294901760, %v10986_v10  ;;  %v21179_v23 = vand.u32 4294901760, %v20114_v55  ;;  %v11011_v46 = vand.u32 4294901760, %v11010_v54  ;;  %v20166_v6 = vsub.f32 %v10204_v16, %v20144_v50 }
 0x6e3   :  { %10775 = vmatpush.msra.mxu0 %v19875_v7  ;;  %10826 = vmatpush.msra.mxu1 %v19912_v4  ;;  %v10212_v7 = vld [vmem:[#allocation8 + $0xd0] sm:$0xff]  ;;  %v21180_v9 = vand.u32 4294901760, %v20101_v24  ;;  %v21176_v36 = vand.u32 4294901760, %v20154_v43 }
 0x6e4   :  { %10891 = vmatpush.msra.mxu2 %v21891_v57  ;;  %10930 = vmatpush.msra.mxu3 %v19883_v40  ;;  %v10993_v40 = vand.u32 4294901760, %v10992_v61  ;;  %v20119_v0 = vand.u32 4294901760, %v10212_v7  ;;  %v11028_v63 = vsub.f32 %v20114_v55, %v21179_v23  ;;  %v10188_v57 = vld [vmem:[#allocation8 + $0x10] sm:$0xff]  ;;  %v21175_v34 = vand.u32 4294901760, %v20166_v6 }
 0x6e5   :  { %10778 = vmatpush.msra.mxu0 %v19886_v13  ;;  %10828 = vmatpush.msra.mxu1 %v19931_v20  ;;  %v21182_v13 = vand.u32 4294901760, %v20091_v17  ;;  %v11022_v26 = vsub.f32 %v20101_v24, %v21180_v9 }
 0x6e6   :  { %10895 = vmatpush.msra.mxu2 %v21893_v12  ;;  %10932 = vmatpush.msra.mxu3 %v19894_v56  ;;  %v21895_v56 = vand.u32 4294901760, %v21894_v15  ;;  %v20142_v59 = vsub.f32 %v10212_v7, %v20119_v0  ;;  %v20178_v7 = vsub.f32 %v10200_v53, %v20156_v19  ;;  %v11029_v12 = vand.u32 4294901760, %v11028_v63 }
 0x6e7   :  { %10832 = vmatmul.f32.vlgmr.msra.gmra.mxu1 %v19974_v11  ;;  %10781 = vmatpush.msra.mxu0 %v19897_v35  ;;  %v20130_v35 = vsub.f32 %v10216_v58, %v20105_v21  ;;  %v11023_v58 = vand.u32 4294901760, %v11022_v26  ;;  %v11052_v53 = vsub.f32 %v20166_v6, %v21175_v34  ;;  %v10249_v26 = vld [vmem:[#allocation8 + $0x1f8] sm:$0xff] }
 0x6e8   :  { %10988 = vmatpush.msrb.mxu1 %v10987_v60  ;;  %10899 = vmatpush.msra.mxu2 %v21895_v56  ;;  %v21177_v10 = vand.u32 4294901760, %v20142_v59  ;;  %v21173_v54 = vand.u32 4294901760, %v20178_v7 }
 0x6e9   :  { %10934 = vmatpush.msra.mxu3 %v19912_v4  ;;  %10901 = vmatmul.f32.vlgmr.msra.gmra.mxu2 %v19965_v3  ;;  %v11016_v4 = vsub.f32 %v20091_v17, %v21182_v13 }
 0x6ea   :  { %10994 = vmatpush.msrb.mxu1 %v10993_v40  ;;  %11086 = vmatpush.msrb.mxu2 %v20027_v39  ;;  %v11040_v40 = vsub.f32 %v20142_v59, %v21177_v10  ;;  %v11058_v63 = vsub.f32 %v20178_v7, %v21173_v54  ;;  %v10233_v54 = vld [vmem:[#allocation8 + $0x178] sm:$0xff] }
 0x6eb   :  { %10784 = vmatpush.msra.mxu0 %v19915_v28  ;;  %10936 = vmatpush.msra.mxu3 %v19931_v20  ;;  %v10196_v28 = vld [vmem:[#allocation8 + $0x50] sm:$0xff]  ;;  %v21178_v20 = vand.u32 4294901760, %v20130_v35  ;;  %v11017_v22 = vand.u32 4294901760, %v11016_v4  ;;  %v10225_v10 = vld [vmem:[#allocation8 + $0x138] sm:$0xff] }
 0x6ec   :  { %10938 = vmatmul.f32.vlgmr.msra.gmra.mxu3 %v19965_v3  ;;  %11000 = vmatpush.msrb.mxu1 %v10999_v25  ;;  %v20168_v61 = vand.u32 4294901760, %v10196_v28  ;;  %v11046_v25 = vsub.f32 %v20154_v43, %v21176_v36  ;;  %v20287_v9 = vand.u32 4294901760, %v10225_v10 }
 0x6ed   :  { %11089 = vmatpush.msrb.mxu2 %v20037_v29  ;;  %11139 = vmatpush.msrb.mxu3 %v20012_v32  ;;  %v11034_v60 = vsub.f32 %v20130_v35, %v21178_v20  ;;  %v10221_v20 = vld [vmem:[#allocation8 + $0x118] sm:$0xff] }
 0x6ee   :  { %10787 = vmatpush.msra.mxu0 %v21892_v45  ;;  %11006 = vmatpush.msrb.mxu1 %v11005_v49  ;;  %v20180_v45 = vand.u32 4294901760, %v10192_v8  ;;  %v20190_v51 = vsub.f32 %v10196_v28, %v20168_v61  ;;  %v11041_v49 = vand.u32 4294901760, %v11040_v40  ;;  %v11047_v28 = vand.u32 4294901760, %v11046_v25 }
 0x6ef   :  { %11092 = vmatpush.msrb.mxu2 %v20048_v18  ;;  %11141 = vmatpush.msrb.mxu3 %v20019_v27  ;;  %v11035_v56 = vand.u32 4294901760, %v11034_v60  ;;  %v11059_v40 = vand.u32 4294901760, %v11058_v63  ;;  %v20300_v13 = vand.u32 4294901760, %v10221_v20 }
 0x6f0   :  { %10790 = vmatpush.msra.mxu0 %v21894_v15  ;;  %11012 = vmatpush.msrb.mxu1 %v11011_v46  ;;  %v20192_v15 = vand.u32 4294901760, %v10188_v57  ;;  %v20202_v16 = vsub.f32 %v10192_v8, %v20180_v45  ;;  %v21171_v4 = vand.u32 4294901760, %v20190_v51 }
 0x6f1   :  { %10793 = vmatmul.f32.vlgmr.msra.gmra.mxu0 %v19968_v62  ;;  %11095 = vmatpush.msrb.mxu2 %v20059_v44 }
 0x6f2   :  { %10943 = vmatpush.msrb.mxu0 %v20012_v32  ;;  %11143 = vmatpush.msrb.mxu3 %v20029_v47  ;;  %v20212_v46 = vsub.f32 %v10188_v57, %v20192_v15  ;;  %v21172_v8 = vand.u32 4294901760, %v20202_v16  ;;  %v11064_v57 = vsub.f32 %v20190_v51, %v21171_v4  ;;  %v10237_v4 = vld [vmem:[#allocation8 + $0x198] sm:$0xff] }
 0x6f3   :  { %11018 = vmatpush.msrb.mxu1 %v11017_v22  ;;  %11098 = vmatpush.msrb.mxu2 %v20073_v5  ;;  %v10245_v22 = vld [vmem:[#allocation8 + $0x1d8] sm:$0xff] }
 0x6f4   :  { %10945 = vmatpush.msrb.mxu0 %v20019_v27  ;;  %11145 = vmatpush.msrb.mxu3 %v20039_v30  ;;  %v21174_v60 = vand.u32 4294901760, %v20212_v46  ;;  %v20236_v25 = vand.u32 4294901760, %v10245_v22 }
 0x6f5   :  { %11024 = vmatpush.msrb.mxu1 %v11023_v58  ;;  %11101 = vmatpush.msrb.mxu2 %v20091_v17  ;;  %v11053_v58 = vand.u32 4294901760, %v11052_v53  ;;  %v11065_v53 = vand.u32 4294901760, %v11064_v57 }
 0x6f6   :  { %10947 = vmatpush.msrb.mxu0 %v20029_v47  ;;  %11147 = vmatpush.msrb.mxu3 %v20050_v41  ;;  %v20253_v57 = vsub.f32 %v10245_v22, %v20236_v25 }
 0x6f7   :  { %11030 = vmatpush.msrb.mxu1 %v11029_v12  ;;  %11104 = vmatpush.msrb.mxu2 %v20101_v24  ;;  %v20228_v12 = vand.u32 4294901760, %v10249_v26 }
 0x6f8   :  { %10949 = vmatpush.msrb.mxu0 %v20039_v30  ;;  %11149 = vmatpush.msrb.mxu3 %v20063_v48 }
 0x6f9   :  { %11036 = vmatpush.msrb.mxu1 %v11035_v56  ;;  %11107 = vmatpush.msrb.mxu2 %v20114_v55  ;;  %v11070_v56 = vsub.f32 %v20202_v16, %v21172_v8  ;;  %v20245_v63 = vsub.f32 %v10249_v26, %v20228_v12  ;;  %v20257_v26 = vand.u32 4294901760, %v10237_v4 }
 0x6fa   :  { %10951 = vmatpush.msrb.mxu0 %v20050_v41  ;;  %11151 = vmatpush.msrb.mxu3 %v20075_v37 }
 0x6fb   :  { %11042 = vmatpush.msrb.mxu1 %v11041_v49  ;;  %11110 = vmatpush.msrb.mxu2 %v20130_v35  ;;  %v10241_v49 = vld [vmem:[#allocation8 + $0x1b8] sm:$0xff]  ;;  %v21181_v36 = vand.u32 4294901760, %v20245_v63 }
 0x6fc   :  { %10953 = vmatpush.msrb.mxu0 %v20063_v48  ;;  %11153 = vmatpush.msrb.mxu3 %v20086_v14  ;;  %v20249_v8 = vand.u32 4294901760, %v10241_v49 }
 0x6fd   :  { %11048 = vmatpush.msrb.mxu1 %v11047_v28  ;;  %11113 = vmatpush.msrb.mxu2 %v20142_v59  ;;  %v11076_v28 = vsub.f32 %v20212_v46, %v21174_v60  ;;  %v10229_v60 = vld [vmem:[#allocation8 + $0x158] sm:$0xff] }
 0x6fe   :  { %10955 = vmatpush.msrb.mxu0 %v20075_v37  ;;  %11155 = vmatpush.msrb.mxu3 %v20105_v21  ;;  %v20266_v22 = vsub.f32 %v10241_v49, %v20249_v8  ;;  %v11327_v49 = vsub.f32 %v20245_v63, %v21181_v36 }
 0x6ff   :  { %11054 = vmatpush.msrb.mxu1 %v11053_v58  ;;  %11116 = vmatpush.msrb.mxu2 %v20154_v43  ;;  %v11071_v58 = vand.u32 4294901760, %v11070_v56  ;;  %v11077_v34 = vand.u32 4294901760, %v11076_v28  ;;  %v21185_v56 = vand.u32 4294901760, %v20253_v57  ;;  %v20275_v28 = vsub.f32 %v10237_v4, %v20257_v26  ;;  %v10217_v4 = vld [vmem:[#allocation8 + $0xf8] sm:$0xff] }
 0x700   :  { %10957 = vmatpush.msrb.mxu0 %v20086_v14  ;;  %11157 = vmatpush.msrb.mxu3 %v20119_v0  ;;  %v21189_v23 = vand.u32 4294901760, %v20266_v22  ;;  %v11328_v1 = vand.u32 4294901760, %v11327_v49  ;;  %v20313_v52 = vand.u32 4294901760, %v10217_v4 }
 0x701   :  { %11060 = vmatpush.msrb.mxu1 %v11059_v40  ;;  %11119 = vmatpush.msrb.mxu2 %v20166_v6  ;;  %v20261_v40 = vand.u32 4294901760, %v10233_v54  ;;  %v21190_v36 = vand.u32 4294901760, %v20275_v28 }
 0x702   :  { %10959 = vmatpush.msrb.mxu0 %v20105_v21  ;;  %11159 = vmatpush.msrb.mxu3 %v20132_v2 }
 0x703   :  { %11066 = vmatpush.msrb.mxu1 %v11065_v53  ;;  %11122 = vmatpush.msrb.mxu2 %v20178_v7  ;;  %v20270_v53 = vand.u32 4294901760, %v10229_v60 }
 0x704   :  { %10961 = vmatpush.msrb.mxu0 %v20119_v0  ;;  %11161 = vmatpush.msrb.mxu3 %v20144_v50 }
 0x705   :  { %11072 = vmatpush.msrb.mxu1 %v11071_v58  ;;  %11125 = vmatpush.msrb.mxu2 %v20190_v51  ;;  %v20282_v58 = vsub.f32 %v10233_v54, %v20261_v40  ;;  %v20295_v54 = vsub.f32 %v10229_v60, %v20270_v53  ;;  %v20311_v60 = vsub.f32 %v10225_v10, %v20287_v9 }
 0x706   :  { %10963 = vmatpush.msrb.mxu0 %v20132_v2  ;;  %11163 = vmatpush.msrb.mxu3 %v20156_v19  ;;  %v20324_v10 = vsub.f32 %v10221_v20, %v20300_v13  ;;  %v20336_v20 = vsub.f32 %v10217_v4, %v20313_v52 }
 0x707   :  { %11078 = vmatpush.msrb.mxu1 %v11077_v34  ;;  %11128 = vmatpush.msrb.mxu2 %v20202_v16  ;;  %21896 = vst [vmem:[#allocation65_spill] sm:$0xff] %v20282_v58  ;;  %v11333_v34 = vsub.f32 %v20253_v57, %v21185_v56  ;;  %v21192_v31 = vand.u32 4294901760, %v20282_v58  ;;  %v10213_v56 = vld [vmem:[#allocation8 + $0xd8] sm:$0xff] }
 0x708   :  { %10965 = vmatpush.msrb.mxu0 %v20144_v50  ;;  %11165 = vmatpush.msrb.mxu3 %v20168_v61  ;;  %21897 = vst [vmem:[#allocation38_spill] sm:$0xff] %v20295_v54 }
 0x709   :  { %11080 = vmatmul.f32.vlgmr.msrb.gmra.mxu1 %v19965_v3  ;;  %11131 = vmatpush.msrb.mxu2 %v20212_v46  ;;  %21898 = vst [vmem:[#allocation64_spill] sm:$0xff] %v20311_v60  ;;  %v11334_v49 = vand.u32 4294901760, %v11333_v34  ;;  %v11351_v34 = vsub.f32 %v20282_v58, %v21192_v31  ;;  %v10197_v58 = vld [vmem:[#allocation8 + $0x58] sm:$0xff] }
 0x70a   :  { %11247 = vmatpush.msra.mxu1 %v20012_v32  ;;  %10967 = vmatpush.msrb.mxu0 %v20156_v19  ;;  %v11339_v32 = vsub.f32 %v20266_v22, %v21189_v23  ;;  %v20326_v23 = vand.u32 4294901760, %v10213_v56 }
 0x70b   :  { %11167 = vmatpush.msrb.mxu3 %v20180_v45  ;;  %11134 = vmatmul.f32.vlgmr.msrb.gmra.mxu2 %v19968_v62  ;;  %v20338_v62 = vand.u32 4294901760, %v10209_v33 }
 0x70c   :  { %11249 = vmatpush.msra.mxu1 %v20019_v27  ;;  %11284 = vmatpush.msra.mxu2 %v20228_v12  ;;  %v11345_v27 = vsub.f32 %v20275_v28, %v21190_v36  ;;  %v20348_v4 = vsub.f32 %v10213_v56, %v20326_v23  ;;  %v20350_v36 = vand.u32 4294901760, %v10205_v42 }
 0x70d   :  { %10969 = vmatpush.msrb.mxu0 %v20168_v61  ;;  %11169 = vmatpush.msrb.mxu3 %v20192_v15  ;;  %v20361_v56 = vsub.f32 %v10209_v33, %v20338_v62 }
 0x70e   :  { %11173 = vmatmul.f32.vlgmr.msrb.gmra.mxu3 %v19974_v11  ;;  %11251 = vmatpush.msra.mxu1 %v20029_v47  ;;  %v11340_v47 = vand.u32 4294901760, %v11339_v32  ;;  %v10201_v11 = vld [vmem:[#allocation8 + $0x78] sm:$0xff]  ;;  %v20374_v33 = vsub.f32 %v10205_v42, %v20350_v36  ;;  %v20376_v32 = vand.u32 4294901760, %v10197_v58 }
 0x70f   :  { %11286 = vmatpush.msra.mxu2 %v20236_v25  ;;  %11329 = vmatpush.msra.mxu3 %v11328_v1  ;;  %v21899_v1 = vand.u32 4294901760, %v20295_v54 }
 0x710   :  { %10971 = vmatpush.msrb.mxu0 %v20180_v45  ;;  %11253 = vmatpush.msra.mxu1 %v20039_v30  ;;  %v11346_v30 = vand.u32 4294901760, %v11345_v27 }
 0x711   :  { %11288 = vmatpush.msra.mxu2 %v20249_v8  ;;  %11335 = vmatpush.msra.mxu3 %v11334_v49  ;;  %v11357_v31 = vsub.f32 %v20295_v54, %v21899_v1  ;;  %v11352_v49 = vand.u32 4294901760, %v11351_v34  ;;  %v21900_v1 = vand.u32 4294901760, %v20027_v39  ;;  %v20363_v54 = vand.u32 4294901760, %v10201_v11 }
 0x712   :  { %10973 = vmatpush.msrb.mxu0 %v20192_v15  ;;  %11255 = vmatpush.msra.mxu1 %v20050_v41  ;;  %v21901_v41 = vand.u32 4294901760, %v20311_v60  ;;  %v21902_v39 = vand.u32 4294901760, %v20037_v29  ;;  %v21904_v29 = vand.u32 4294901760, %v20048_v18  ;;  %v21906_v18 = vand.u32 4294901760, %v20059_v44 }
 0x713   :  { %10979 = vmatmul.f32.vlgmr.msrb.gmra.mxu0 %v19986_v38  ;;  %11290 = vmatpush.msra.mxu2 %v20257_v26  ;;  %v11358_v34 = vand.u32 4294901760, %v11357_v31  ;;  %v21905_v31 = vand.u32 4294901760, %v20336_v20  ;;  %v20387_v42 = vsub.f32 %v10201_v11, %v20363_v54  ;;  %v20400_v11 = vsub.f32 %v10197_v58, %v20376_v32 }
 0x714   :  { %11180 = vmatpush.msra.mxu0 %v21900_v1  ;;  %11341 = vmatpush.msra.mxu3 %v11340_v47  ;;  %v11363_v27 = vsub.f32 %v20311_v60, %v21901_v41  ;;  %v21903_v47 = vand.u32 4294901760, %v20324_v10  ;;  %v11380_v41 = vand.u32 4294901760, %v20348_v4  ;;  %v10193_v60 = vld [vmem:[#allocation8 + $0x38] sm:$0xff]  ;;  %v21907_v44 = vand.u32 4294901760, %v20073_v5 }
 0x715   :  { %11257 = vmatpush.msra.mxu1 %v20063_v48  ;;  %11292 = vmatpush.msra.mxu2 %v20261_v40  ;;  %v21908_v58 = vand.u32 4294901760, %v20091_v17 }
 0x716   :  { %11184 = vmatpush.msra.mxu0 %v21902_v39  ;;  %11347 = vmatpush.msra.mxu3 %v11346_v30  ;;  %v11369_v1 = vsub.f32 %v20324_v10, %v21903_v47  ;;  %v11364_v48 = vand.u32 4294901760, %v11363_v27  ;;  %v11375_v30 = vsub.f32 %v20336_v20, %v21905_v31  ;;  %v11386_v39 = vand.u32 4294901760, %v20361_v56  ;;  %v10189_v47 = vld [vmem:[#allocation8 + $0x18] sm:$0xff] }
 0x717   :  { %11259 = vmatpush.msra.mxu1 %v20075_v37  ;;  %11294 = vmatpush.msra.mxu2 %v20270_v53  ;;  %v20391_v37 = vand.u32 4294901760, %v10193_v60  ;;  %v11381_v27 = vsub.f32 %v20348_v4, %v11380_v41  ;;  %v11398_v31 = vand.u32 4294901760, %v20387_v42 }
 0x718   :  { %11188 = vmatpush.msra.mxu0 %v21904_v29  ;;  %11353 = vmatpush.msra.mxu3 %v11352_v49  ;;  %v11370_v49 = vand.u32 4294901760, %v11369_v1  ;;  %v11392_v29 = vand.u32 4294901760, %v20374_v33  ;;  %v11387_v1 = vsub.f32 %v20361_v56, %v11386_v39 }
 0x719   :  { %11261 = vmatpush.msra.mxu1 %v20086_v14  ;;  %11296 = vmatpush.msra.mxu2 %v20287_v9  ;;  %v20404_v14 = vand.u32 4294901760, %v10189_v47  ;;  %v11382_v5 = vand.u32 4294901760, %v11381_v27 }
 0x71a   :  { %11192 = vmatpush.msra.mxu0 %v21906_v18  ;;  %11359 = vmatpush.msra.mxu3 %v11358_v34  ;;  %v11376_v34 = vand.u32 4294901760, %v11375_v30  ;;  %v11404_v30 = vand.u32 4294901760, %v20400_v11  ;;  %v11388_v17 = vand.u32 4294901760, %v11387_v1  ;;  %v11399_v18 = vsub.f32 %v20387_v42, %v11398_v31 }
 0x71b   :  { %11263 = vmatpush.msra.mxu1 %v20105_v21  ;;  %11298 = vmatpush.msra.mxu2 %v20300_v13  ;;  %v20415_v21 = vsub.f32 %v10193_v60, %v20391_v37  ;;  %v21909_v60 = vand.u32 4294901760, %v20101_v24  ;;  %v21914_v1 = vand.u32 4294901760, %v20166_v6  ;;  %v21917_v6 = vand.u32 4294901760, %v20190_v51 }
 0x71c   :  { %11196 = vmatpush.msra.mxu0 %v21907_v44  ;;  %11365 = vmatpush.msra.mxu3 %v11364_v48  ;;  %v11393_v48 = vsub.f32 %v20374_v33, %v11392_v29  ;;  %v11405_v24 = vsub.f32 %v20400_v11, %v11404_v30  ;;  %v11400_v44 = vand.u32 4294901760, %v11399_v18  ;;  %v21921_v51 = vand.u32 4294901760, %v20212_v46  ;;  %v21925_v46 = vld [vmem:[#allocation38_spill] sm:$0xff] }
 0x71d   :  { %11265 = vmatpush.msra.mxu1 %v20119_v0  ;;  %11300 = vmatpush.msra.mxu2 %v20313_v52  ;;  %v20426_v0 = vsub.f32 %v10189_v47, %v20404_v14 }
 0x71e   :  { %11200 = vmatpush.msra.mxu0 %v21908_v58  ;;  %11371 = vmatpush.msra.mxu3 %v11370_v49  ;;  %v21910_v49 = vand.u32 4294901760, %v20114_v55  ;;  %v11394_v47 = vand.u32 4294901760, %v11393_v48  ;;  %v21918_v58 = vand.u32 4294901760, %v20253_v57 }
 0x71f   :  { %11267 = vmatpush.msra.mxu1 %v20132_v2  ;;  %11302 = vmatpush.msra.mxu2 %v20326_v23  ;;  %v11410_v2 = vand.u32 4294901760, %v20415_v21  ;;  %v11416_v27 = vand.u32 4294901760, %v20426_v0 }
 0x720   :  { %11204 = vmatpush.msra.mxu0 %v21909_v60  ;;  %11377 = vmatpush.msra.mxu3 %v11376_v34  ;;  %v21912_v34 = vand.u32 4294901760, %v20142_v59 }
 0x721   :  { %11269 = vmatpush.msra.mxu1 %v20144_v50  ;;  %11304 = vmatpush.msra.mxu2 %v20338_v62  ;;  %v21911_v50 = vand.u32 4294901760, %v20130_v35  ;;  %v11411_v55 = vsub.f32 %v20415_v21, %v11410_v2  ;;  %v11417_v35 = vsub.f32 %v20426_v0, %v11416_v27 }
 0x722   :  { %11208 = vmatpush.msra.mxu0 %v21910_v49  ;;  %11383 = vmatpush.msra.mxu3 %v11382_v5  ;;  %v21922_v5 = vand.u32 4294901760, %v20275_v28  ;;  %v11639_v49 = vld [vmem:[#allocation10 + $0x40] sm:$0xff] }
 0x723   :  { %11271 = vmatpush.msra.mxu1 %v20156_v19  ;;  %11306 = vmatpush.msra.mxu2 %v20350_v36  ;;  %v11406_v19 = vand.u32 4294901760, %v11405_v24  ;;  %v11412_v59 = vand.u32 4294901760, %v11411_v55  ;;  %v11638_v55 = vld [vmem:[#allocation10 + $0x38] sm:$0xff] }
 0x724   :  { %11212 = vmatpush.msra.mxu0 %v21911_v50  ;;  %11389 = vmatpush.msra.mxu3 %v11388_v17 }
 0x725   :  { %11273 = vmatpush.msra.mxu1 %v20168_v61  ;;  %11308 = vmatpush.msra.mxu2 %v20363_v54  ;;  %v21913_v61 = vand.u32 4294901760, %v20154_v43  ;;  %v21915_v43 = vand.u32 4294901760, %v20178_v7  ;;  %v21920_v7 = vand.u32 4294901760, %v20266_v22 }
 0x726   :  { %11216 = vmatpush.msra.mxu0 %v21912_v34  ;;  %11395 = vmatpush.msra.mxu3 %v11394_v47 }
 0x727   :  { %11275 = vmatpush.msra.mxu1 %v20180_v45  ;;  %11310 = vmatpush.msra.mxu2 %v20376_v32  ;;  %v11418_v45 = vand.u32 4294901760, %v11417_v35  ;;  %v20642_v35 = vand.u32 4294901760, %v11638_v55 }
 0x728   :  { %11220 = vmatpush.msra.mxu0 %v21913_v61  ;;  %11401 = vmatpush.msra.mxu3 %v11400_v44  ;;  %v20634_v44 = vand.u32 4294901760, %v11639_v49 }
 0x729   :  { %11277 = vmatpush.msra.mxu1 %v20192_v15  ;;  %11312 = vmatpush.msra.mxu2 %v20391_v37  ;;  %v21916_v15 = vand.u32 4294901760, %v20245_v63 }
 0x72a   :  { %11224 = vmatpush.msra.mxu0 %v21914_v1  ;;  %11407 = vmatpush.msra.mxu3 %v11406_v19  ;;  %v11637_v1 = vld [vmem:[#allocation10 + $0x30] sm:$0xff] }
 0x72b   :  { %11279 = vmatmul.f32.vlgmr.msra.gmra.mxu1 %v19965_v3  ;;  %11314 = vmatpush.msra.mxu2 %v20404_v14 }
 0x72c   :  { %11480 = vmatpush.msrb.mxu1 %v20228_v12  ;;  %11228 = vmatpush.msra.mxu0 %v21915_v43 }
 0x72d   :  { %11413 = vmatpush.msra.mxu3 %v11412_v59  ;;  %11320 = vmatmul.f32.vlgmr.msra.gmra.mxu2 %v19986_v38  ;;  %v21919_v38 = vand.u32 4294901760, %v20202_v16  ;;  %v21923_v16 = vld [vmem:[#allocation65_spill] sm:$0xff]  ;;  %v20646_v59 = vsub.f32 %v11639_v49, %v20634_v44 }
 0x72e   :  { %11482 = vmatpush.msrb.mxu1 %v20236_v25  ;;  %11521 = vmatpush.msrb.mxu2 %v21916_v15  ;;  %v20654_v15 = vsub.f32 %v11638_v55, %v20642_v35 }
 0x72f   :  { %11232 = vmatpush.msra.mxu0 %v21917_v6  ;;  %11419 = vmatpush.msra.mxu3 %v11418_v45  ;;  %v11736_v6 = vand.u32 4294901760, %v20646_v59 }
 0x730   :  { %11421 = vmatmul.f32.vlgmr.msra.gmra.mxu3 %v19965_v3  ;;  %11484 = vmatpush.msrb.mxu1 %v20249_v8 }
 0x731   :  { %11525 = vmatpush.msrb.mxu2 %v21918_v58  ;;  %11588 = vmatpush.msrb.mxu3 %v20228_v12  ;;  %v21924_v12 = vand.u32 4294901760, %v21923_v16  ;;  %v20658_v58 = vand.u32 4294901760, %v11637_v1 }
 0x732   :  { %11236 = vmatpush.msra.mxu0 %v21919_v38  ;;  %11486 = vmatpush.msrb.mxu1 %v20257_v26  ;;  %v11636_v38 = vld [vmem:[#allocation10 + $0x28] sm:$0xff] }
 0x733   :  { %11529 = vmatpush.msrb.mxu2 %v21920_v7  ;;  %11590 = vmatpush.msrb.mxu3 %v20236_v25  ;;  %v21926_v25 = vand.u32 4294901760, %v21925_v46 }
 0x734   :  { %11240 = vmatpush.msra.mxu0 %v21921_v51  ;;  %11488 = vmatpush.msrb.mxu1 %v20261_v40  ;;  %v11742_v51 = vand.u32 4294901760, %v20654_v15 }
 0x735   :  { %11242 = vmatmul.f32.vlgmr.msra.gmra.mxu0 %v19965_v3  ;;  %11533 = vmatpush.msrb.mxu2 %v21922_v5  ;;  %v20662_v5 = vand.u32 4294901760, %v11636_v38 }
 0x736   :  { %11427 = vmatpush.msrb.mxu0 %v20245_v63  ;;  %11592 = vmatpush.msrb.mxu3 %v20249_v8  ;;  %v21927_v8 = vld [vmem:[#allocation64_spill] sm:$0xff] }
 0x737   :  { %11490 = vmatpush.msrb.mxu1 %v20270_v53  ;;  %11537 = vmatpush.msrb.mxu2 %v21924_v12  ;;  %v21928_v63 = vand.u32 4294901760, %v21927_v8  ;;  %v11634_v12 = vld [vmem:[#allocation10 + $0x18] sm:$0xff] }
 0x738   :  { %11430 = vmatpush.msrb.mxu0 %v20253_v57  ;;  %11594 = vmatpush.msrb.mxu3 %v20257_v26  ;;  %v21929_v57 = vand.u32 4294901760, %v20324_v10  ;;  %v21930_v26 = vand.u32 4294901760, %v20336_v20 }
 0x739   :  { %11492 = vmatpush.msrb.mxu1 %v20287_v9  ;;  %11541 = vmatpush.msrb.mxu2 %v21926_v25  ;;  %v11737_v25 = vsub.f32 %v20646_v59, %v11736_v6 }
 0x73a   :  { %11433 = vmatpush.msrb.mxu0 %v20266_v22  ;;  %11596 = vmatpush.msrb.mxu3 %v20261_v40 }
 0x73b   :  { %11494 = vmatpush.msrb.mxu1 %v20300_v13  ;;  %11545 = vmatpush.msrb.mxu2 %v21928_v63 }
 0x73c   :  { %11436 = vmatpush.msrb.mxu0 %v20275_v28  ;;  %11598 = vmatpush.msrb.mxu3 %v20270_v53 }
 0x73d   :  { %11496 = vmatpush.msrb.mxu1 %v20313_v52  ;;  %11549 = vmatpush.msrb.mxu2 %v21929_v57  ;;  %v20674_v57 = vand.u32 4294901760, %v11634_v12 }
 0x73e   :  { %11439 = vmatpush.msrb.mxu0 %v21923_v16  ;;  %11600 = vmatpush.msrb.mxu3 %v20287_v9  ;;  %v11635_v16 = vld [vmem:[#allocation10 + $0x20] sm:$0xff] }
 0x73f   :  { %11498 = vmatpush.msrb.mxu1 %v20326_v23  ;;  %11553 = vmatpush.msrb.mxu2 %v21930_v26  ;;  %v20672_v63 = vand.u32 4294901760, %v11635_v16  ;;  %v11632_v26 = vld [vmem:[#allocation10 + $0x8] sm:$0xff] }
 0x740   :  { %11442 = vmatpush.msrb.mxu0 %v21925_v46  ;;  %11602 = vmatpush.msrb.mxu3 %v20300_v13  ;;  %v11646_v13 = vld [vmem:[#allocation10 + $0x78] sm:$0xff]  ;;  %v11633_v46 = vld [vmem:[#allocation10 + $0x10] sm:$0xff] }
 0x741   :  { %11500 = vmatpush.msrb.mxu1 %v20338_v62  ;;  %11557 = vmatpush.msrb.mxu2 %v11380_v41  ;;  %v20561_v9 = vand.u32 4294901760, %v11646_v13 }
 0x742   :  { %11445 = vmatpush.msrb.mxu0 %v21927_v8  ;;  %11604 = vmatpush.msrb.mxu3 %v20313_v52  ;;  %v21932_v52 = vld [vmem:[#allocation63_spill] sm:$0xff]  ;;  %v20670_v8 = vsub.f32 %v11637_v1, %v20658_v58 }
 0x743   :  { %11502 = vmatpush.msrb.mxu1 %v20350_v36  ;;  %11561 = vmatpush.msrb.mxu2 %v11386_v39 }
 0x744   :  { %11448 = vmatpush.msrb.mxu0 %v20324_v10  ;;  %11606 = vmatpush.msrb.mxu3 %v20326_v23  ;;  %v11645_v23 = vld [vmem:[#allocation10 + $0x70] sm:$0xff] }
 0x745   :  { %11504 = vmatpush.msrb.mxu1 %v20363_v54  ;;  %11565 = vmatpush.msrb.mxu2 %v11392_v29  ;;  %v20566_v40 = vand.u32 4294901760, %v11645_v23  ;;  %v11641_v29 = vld [vmem:[#allocation10 + $0x50] sm:$0xff] }
 0x746   :  { %11451 = vmatpush.msrb.mxu0 %v20336_v20  ;;  %11608 = vmatpush.msrb.mxu3 %v20338_v62  ;;  %v21931_v62 = vld [vmem:[#allocation23_spill] sm:$0xff] }
 0x747   :  { %11506 = vmatpush.msrb.mxu1 %v20376_v32  ;;  %11569 = vmatpush.msrb.mxu2 %v11398_v31  ;;  %v20572_v53 = vsub.f32 %v11645_v23, %v20566_v40  ;;  %v20685_v23 = vand.u32 4294901760, %v11632_v26 }
 0x748   :  { %11454 = vmatpush.msrb.mxu0 %v20348_v4  ;;  %11610 = vmatpush.msrb.mxu3 %v20350_v36  ;;  %v20564_v36 = vsub.f32 %v11646_v13, %v20561_v9  ;;  %v20683_v13 = vand.u32 4294901760, %v11633_v46 }
 0x749   :  { %11508 = vmatpush.msrb.mxu1 %v20391_v37  ;;  %11573 = vmatpush.msrb.mxu2 %v11404_v30  ;;  %v11700_v20 = vand.u32 4294901760, %v20572_v53  ;;  %v11640_v30 = vld [vmem:[#allocation10 + $0x48] sm:$0xff] }
 0x74a   :  { %11457 = vmatpush.msrb.mxu0 %v20361_v56  ;;  %11612 = vmatpush.msrb.mxu3 %v20363_v54  ;;  %v11694_v22 = vand.u32 4294901760, %v20564_v36  ;;  %v11643_v54 = vld [vmem:[#allocation10 + $0x60] sm:$0xff]  ;;  %v11642_v56 = vld [vmem:[#allocation10 + $0x58] sm:$0xff]  ;;  %v20621_v18 = vand.u32 4294901760, %v11640_v30 }
 0x74b   :  { %11510 = vmatpush.msrb.mxu1 %v20404_v14  ;;  %11577 = vmatpush.msrb.mxu2 %v11410_v2  ;;  %v20586_v4 = vand.u32 4294901760, %v11643_v54 }
 0x74c   :  { %11460 = vmatpush.msrb.mxu0 %v20374_v33  ;;  %11614 = vmatpush.msrb.mxu3 %v20376_v32  ;;  %v11695_v10 = vsub.f32 %v20564_v36, %v11694_v22  ;;  %v11701_v33 = vsub.f32 %v20572_v53, %v11700_v20 }
 0x74d   :  { %11514 = vmatmul.f32.vlgmr.msrb.gmra.mxu1 %v21931_v62  ;;  %11581 = vmatpush.msrb.mxu2 %v11416_v27  ;;  %v20628_v27 = vsub.f32 %v11640_v30, %v20621_v18  ;;  %v11743_v62 = vsub.f32 %v20654_v15, %v11742_v51 }
 0x74e   :  { %11463 = vmatpush.msrb.mxu0 %v20387_v42  ;;  %11616 = vmatpush.msrb.mxu3 %v20391_v37  ;;  %v11696_v41 = vand.u32 4294901760, %v11695_v10  ;;  %v20596_v42 = vsub.f32 %v11643_v54, %v20586_v4  ;;  %v20600_v37 = vand.u32 4294901760, %v11642_v56  ;;  %v11748_v54 = vand.u32 4294901760, %v20670_v8 }
 0x74f   :  { %11583 = vmatmul.f32.vlgmr.msrb.gmra.mxu2 %v19965_v3  ;;  %v11730_v19 = vand.u32 4294901760, %v20628_v27  ;;  %v20691_v10 = vsub.f32 %v11635_v16, %v20672_v63 }
 0x750   :  { %11466 = vmatpush.msrb.mxu0 %v20400_v11  ;;  %11618 = vmatpush.msrb.mxu3 %v20404_v14  ;;  %v11702_v11 = vand.u32 4294901760, %v11701_v33  ;;  %v11712_v31 = vand.u32 4294901760, %v20596_v42  ;;  %v20611_v48 = vsub.f32 %v11642_v56, %v20600_v37  ;;  %v20694_v56 = vsub.f32 %v11634_v12, %v20674_v57 }
 0x751   :  { %11620 = vmatmul.f32.vlgmr.msrb.gmra.mxu3 %v19965_v3  ;;  %v11644_v3 = vld [vmem:[#allocation10 + $0x68] sm:$0xff]  ;;  %11795 = vmatpush.msra.mxu2 %v20564_v36  ;;  %v11731_v43 = vsub.f32 %v20628_v27, %v11730_v19  ;;  %v11760_v30 = vand.u32 4294901760, %v20691_v10  ;;  %v10399_v36 = vpop.f32.mrf.mxu1 }
 0x752   :  { %11469 = vmatpush.msrb.mxu0 %v20415_v21  ;;  %11848 = vmatpush.msra.mxu3 %v20561_v9  ;;  %v20574_v28 = vand.u32 4294901760, %v11644_v3  ;;  %v20607_v21 = vand.u32 4294901760, %v11641_v29  ;;  %v11713_v60 = vsub.f32 %v20596_v42, %v11712_v31  ;;  %v11718_v2 = vand.u32 4294901760, %v20611_v48 }
 0x753   :  { %11798 = vmatpush.msra.mxu2 %v20572_v53  ;;  %11697 = vmatpush.msra.mxu1 %v11696_v41  ;;  %v11732_v7 = vand.u32 4294901760, %v11731_v43  ;;  %v11744_v41 = vand.u32 4294901760, %v11743_v62  ;;  %v11631_v43 = vld [vmem:[#allocation10] sm:$0xff] }
 0x754   :  { %11472 = vmatpush.msrb.mxu0 %v20426_v0  ;;  %11850 = vmatpush.msra.mxu3 %v20566_v40  ;;  %v20584_v32 = vsub.f32 %v11644_v3, %v20574_v28  ;;  %v20619_v17 = vsub.f32 %v11641_v29, %v20607_v21  ;;  %v11714_v47 = vand.u32 4294901760, %v11713_v60  ;;  %v11719_v50 = vsub.f32 %v20611_v48, %v11718_v2 }
 0x755   :  { %11475 = vmatmul.f32.vlgmr.msrb.gmra.mxu0 %v21932_v52  ;;  %11703 = vmatpush.msra.mxu1 %v11702_v11  ;;  %v20681_v52 = vsub.f32 %v11636_v38, %v20662_v5  ;;  %v11738_v3 = vand.u32 4294901760, %v11737_v25  ;;  %v20699_v29 = vsub.f32 %v11633_v46, %v20683_v13  ;;  %v20702_v11 = vsub.f32 %v11632_v26, %v20685_v23 }
 0x756   :  { %11652 = vmatpush.msra.mxu0 %v20561_v9  ;;  %11852 = vmatpush.msra.mxu3 %v20574_v28  ;;  %v11706_v39 = vand.u32 4294901760, %v20584_v32  ;;  %v11724_v24 = vand.u32 4294901760, %v20619_v17  ;;  %v11720_v61 = vand.u32 4294901760, %v11719_v50  ;;  %v11761_v50 = vsub.f32 %v20691_v10, %v11760_v30 }
 0x757   :  { %11801 = vmatpush.msra.mxu2 %v20584_v32  ;;  %v11754_v33 = vand.u32 4294901760, %v20681_v52  ;;  %v11772_v49 = vand.u32 4294901760, %v20699_v29  ;;  %v20732_v38 = vand.u32 4294901760, %v11631_v43 }
 0x758   :  { %11654 = vmatpush.msra.mxu0 %v20566_v40  ;;  %11854 = vmatpush.msra.mxu3 %v20586_v4  ;;  %v11707_v14 = vsub.f32 %v20584_v32, %v11706_v39  ;;  %v11725_v34 = vsub.f32 %v20619_v17, %v11724_v24  ;;  %v11762_v1 = vand.u32 4294901760, %v11761_v50 }
 0x759   :  { %11804 = vmatpush.msra.mxu2 %v20596_v42  ;;  %v11755_v60 = vsub.f32 %v20681_v52, %v11754_v33  ;;  %v20741_v12 = vsub.f32 %v11631_v43, %v20732_v38 }
 0x75a   :  { %11656 = vmatpush.msra.mxu0 %v20574_v28  ;;  %11856 = vmatpush.msra.mxu3 %v20600_v37  ;;  %v11708_v0 = vand.u32 4294901760, %v11707_v14  ;;  %v11726_v45 = vand.u32 4294901760, %v11725_v34  ;;  %v11749_v14 = vsub.f32 %v20670_v8, %v11748_v54  ;;  %v11778_v34 = vand.u32 4294901760, %v20702_v11 }
 0x75b   :  { %11807 = vmatpush.msra.mxu2 %v20611_v48  ;;  %v11784_v25 = vand.u32 4294901760, %v20741_v12 }
 0x75c   :  { %11658 = vmatpush.msra.mxu0 %v20586_v4  ;;  %11709 = vmatpush.msra.mxu1 %v11708_v0  ;;  %v11766_v0 = vand.u32 4294901760, %v20694_v56  ;;  %v11779_v16 = vsub.f32 %v20702_v11, %v11778_v34 }
 0x75d   :  { %11858 = vmatpush.msra.mxu3 %v20607_v21  ;;  %11810 = vmatpush.msra.mxu2 %v20619_v17  ;;  %v11785_v62 = vsub.f32 %v20741_v12, %v11784_v25 }
 0x75e   :  { %11660 = vmatpush.msra.mxu0 %v20600_v37  ;;  %11715 = vmatpush.msra.mxu1 %v11714_v47  ;;  %v11750_v47 = vand.u32 4294901760, %v11749_v14  ;;  %v11767_v55 = vsub.f32 %v20694_v56, %v11766_v0  ;;  %v11780_v26 = vand.u32 4294901760, %v11779_v16 }
 0x75f   :  { %11860 = vmatpush.msra.mxu3 %v20621_v18  ;;  %11813 = vmatpush.msra.mxu2 %v20628_v27  ;;  %v11786_v14 = vand.u32 4294901760, %v11785_v62 }
 0x760   :  { %11662 = vmatpush.msra.mxu0 %v20607_v21  ;;  %11721 = vmatpush.msra.mxu1 %v11720_v61  ;;  %v11756_v61 = vand.u32 4294901760, %v11755_v60 }
 0x761   :  { %11862 = vmatpush.msra.mxu3 %v20634_v44  ;;  %11816 = vmatpush.msra.mxu2 %v20646_v59 }
 0x762   :  { %11664 = vmatpush.msra.mxu0 %v20621_v18  ;;  %11727 = vmatpush.msra.mxu1 %v11726_v45  ;;  %v11773_v45 = vsub.f32 %v20699_v29, %v11772_v49 }
 0x763   :  { %11864 = vmatpush.msra.mxu3 %v20642_v35  ;;  %11819 = vmatpush.msra.mxu2 %v20654_v15 }
 0x764   :  { %11666 = vmatpush.msra.mxu0 %v20634_v44  ;;  %11733 = vmatpush.msra.mxu1 %v11732_v7  ;;  %v11768_v7 = vand.u32 4294901760, %v11767_v55  ;;  %v11774_v46 = vand.u32 4294901760, %v11773_v45 }
 0x765   :  { %11866 = vmatpush.msra.mxu3 %v20658_v58  ;;  %11822 = vmatpush.msra.mxu2 %v20670_v8 }
 0x766   :  { %11668 = vmatpush.msra.mxu0 %v20642_v35  ;;  %11739 = vmatpush.msra.mxu1 %v11738_v3  ;;  %v10298_v3 = vpop.f32.mrf.mxu0 }
 0x767   :  { %11868 = vmatpush.msra.mxu3 %v20662_v5  ;;  %11825 = vmatpush.msra.mxu2 %v20681_v52 }
 0x768   :  { %11670 = vmatpush.msra.mxu0 %v20658_v58  ;;  %11745 = vmatpush.msra.mxu1 %v11744_v41  ;;  %v10453_v41 = vpop.f32.mrf.mxu2 }
 0x769   :  { %11870 = vmatpush.msra.mxu3 %v20672_v63  ;;  %11828 = vmatpush.msra.mxu2 %v20691_v10 }
 0x76a   :  { %11672 = vmatpush.msra.mxu0 %v20662_v5  ;;  %11751 = vmatpush.msra.mxu1 %v11750_v47 }
 0x76b   :  { %11872 = vmatpush.msra.mxu3 %v20674_v57  ;;  %11831 = vmatpush.msra.mxu2 %v20694_v56 }
 0x76c   :  { %11674 = vmatpush.msra.mxu0 %v20672_v63  ;;  %11757 = vmatpush.msra.mxu1 %v11756_v61 }
 0x76d   :  { %11874 = vmatpush.msra.mxu3 %v20683_v13  ;;  %11834 = vmatpush.msra.mxu2 %v20699_v29 }
 0x76e   :  { %11676 = vmatpush.msra.mxu0 %v20674_v57  ;;  %11763 = vmatpush.msra.mxu1 %v11762_v1  ;;  %v10561_v53 = vpop.f32.mrf.mxu0 }
 0x76f   :  { %11876 = vmatpush.msra.mxu3 %v20685_v23  ;;  %11837 = vmatpush.msra.mxu2 %v20702_v11 }
 0x770   :  { %11678 = vmatpush.msra.mxu0 %v20683_v13  ;;  %11769 = vmatpush.msra.mxu1 %v11768_v7 }
 0x771   :  { %11878 = vmatpush.msra.mxu3 %v20732_v38  ;;  %11840 = vmatpush.msra.mxu2 %v20741_v12 }
 0x772   :  { %11680 = vmatpush.msra.mxu0 %v20685_v23  ;;  %11775 = vmatpush.msra.mxu1 %v11774_v46 }
 0x774   :  { %11682 = vmatpush.msra.mxu0 %v20732_v38  ;;  %11781 = vmatpush.msra.mxu1 %v11780_v26 }
 0x776   :  { %11889 = vmatpush.msrb.mxu0 %v11694_v22  ;;  %v10492_v22 = vpop.f32.mrf.mxu3  ;;  %11787 = vmatpush.msra.mxu1 %v11786_v14  ;;  %v12025_v14 = vld [vmem:[%s20816_s10] ss:$0 sm:$0xff] }
 0x778   :  { %11893 = vmatpush.msrb.mxu0 %v11700_v20  ;;  %11956 = vmatpush.msrb.mxu1 %v20561_v9  ;;  %v10639_v20 = vpop.f32.mrf.mxu2  ;;  %v10598_v9 = vpop.f32.mrf.mxu1 }
 0x77a   :  { %11897 = vmatpush.msrb.mxu0 %v11706_v39  ;;  %11958 = vmatpush.msrb.mxu1 %v20566_v40 }
 0x77c   :  { %11901 = vmatpush.msrb.mxu0 %v11712_v31  ;;  %11960 = vmatpush.msrb.mxu1 %v20574_v28  ;;  %v10794_v28 = vpop.f32.mrf.mxu0 }
 0x77e   :  { %11905 = vmatpush.msrb.mxu0 %v11718_v2  ;;  %11962 = vmatpush.msrb.mxu1 %v20586_v4  ;;  %v10740_v40 = vpop.f32.mrf.mxu3  ;;  %v10250_v4 = vld [vmem:[%s20814_s8] sm:$0xf] }
 0x77f   :  { %v10253_v31 = vperm.slane %v10250_v4, 1 }
 0x780   :  { %11909 = vmatpush.msrb.mxu0 %v11724_v24  ;;  %11964 = vmatpush.msrb.mxu1 %v20600_v37  ;;  %v10902_v32 = vpop.f32.mrf.mxu2  ;;  %v10833_v39 = vpop.f32.mrf.mxu1  ;;  %v10252_v37 = vperm.slane %v10250_v4, 0 }
 0x781   :  { %v10640_v2 = vadd.f32 %v10639_v20, %v10253_v31 }
 0x782   :  { %11913 = vmatpush.msrb.mxu0 %v11730_v19  ;;  %11966 = vmatpush.msrb.mxu1 %v20607_v21  ;;  %v10254_v21 = vperm.slane %v10250_v4, 2 }
 0x784   :  { %11917 = vmatpush.msrb.mxu0 %v11736_v6  ;;  %11968 = vmatpush.msrb.mxu1 %v20621_v18  ;;  %v10299_v18 = vadd.f32 %v10298_v3, %v10252_v37  ;;  %v10255_v6 = vperm.slane %v10250_v4, 3 }
 0x786   :  { %11921 = vmatpush.msrb.mxu0 %v11742_v51  ;;  %11970 = vmatpush.msrb.mxu1 %v20634_v44  ;;  %v10939_v42 = vpop.f32.mrf.mxu3  ;;  %v10400_v19 = vadd.f32 %v10399_v36, %v10299_v18 }
 0x788   :  { %11925 = vmatpush.msrb.mxu0 %v11748_v54  ;;  %11972 = vmatpush.msrb.mxu1 %v20642_v35  ;;  %v11081_v24 = vpop.f32.mrf.mxu1  ;;  %v10741_v35 = vadd.f32 %v10740_v40, %v10640_v2 }
 0x78a   :  { %11929 = vmatpush.msrb.mxu0 %v11754_v33  ;;  %11974 = vmatpush.msrb.mxu1 %v20658_v58  ;;  %v10795_v59 = vadd.f32 %v10794_v28, %v10741_v35 }
 0x78c   :  { %11933 = vmatpush.msrb.mxu0 %v11760_v30  ;;  %11976 = vmatpush.msrb.mxu1 %v20662_v5  ;;  %v10454_v5 = vadd.f32 %v10453_v41, %v10400_v19 }
 0x78e   :  { %11937 = vmatpush.msrb.mxu0 %v11766_v0  ;;  %v11135_v17 = vpop.f32.mrf.mxu2  ;;  %11978 = vmatpush.msrb.mxu1 %v20672_v63  ;;  %v10834_v63 = vadd.f32 %v10833_v39, %v10795_v59  ;;  %v10493_v10 = vadd.f32 %v10492_v22, %v10454_v5 }
 0x790   :  { %11941 = vmatpush.msrb.mxu0 %v11772_v49  ;;  %v10980_v48 = vpop.f32.mrf.mxu0  ;;  %11980 = vmatpush.msrb.mxu1 %v20674_v57  ;;  %v10903_v56 = vadd.f32 %v10902_v32, %v10834_v63  ;;  %v10562_v11 = vadd.f32 %v10561_v53, %v10493_v10 }
 0x791   :  { %v10981_v27 = vadd.f32 %v10980_v48, %v10254_v21  ;;  %v11174_v44 = vpop.f32.mrf.mxu3 }
 0x792   :  { %11945 = vmatpush.msrb.mxu0 %v11778_v34  ;;  %11982 = vmatpush.msrb.mxu1 %v20683_v13  ;;  %v10599_v50 = vadd.f32 %v10598_v9, %v10562_v11 }
 0x793   :  { %v11082_v15 = vadd.f32 %v11081_v24, %v10981_v27 }
 0x794   :  { %11949 = vmatpush.msrb.mxu0 %v11784_v25  ;;  %11984 = vmatpush.msrb.mxu1 %v20685_v23  ;;  %v10940_v23 = vadd.f32 %v10939_v42, %v10903_v56  ;;  %v11624_v43 = vmax.f32 %v10599_v50, 0.0 }
 0x795   :  { %v11136_v52 = vadd.f32 %v11135_v17, %v11082_v15 }
 0x796   :  { %11986 = vmatpush.msrb.mxu1 %v20732_v38  ;;  %v11625_v1 = vmax.f32 %v10940_v23, 0.0 }
 0x797   :  { %v11175_v33 = vadd.f32 %v11174_v44, %v11136_v52 }
 0x798   :  { %v11628_v16 = vmax.f32 %v11624_v43, %v11625_v1 }
 0x7a8   :  { %v11280_v8 = vpop.f32.mrf.mxu1 }
 0x7b0   :  { %v11321_v51 = vpop.f32.mrf.mxu2 }
 0x7b1   :  { %v11322_v54 = vadd.f32 %v11321_v51, %v10255_v6 }
 0x7b2   :  { %v11243_v58 = vpop.f32.mrf.mxu0 }
 0x7b3   :  { %v11422_v57 = vpop.f32.mrf.mxu3  ;;  %v11244_v30 = vadd.f32 %v11243_v58, %v11175_v33 }
 0x7b4   :  { %v11423_v29 = vadd.f32 %v11422_v57, %v11322_v54 }
 0x7b5   :  { %v11281_v55 = vadd.f32 %v11280_v8, %v11244_v30 }
 0x7b7   :  { %v11626_v38 = vmax.f32 %v11281_v55, 0.0 }
 0x7ca   :  { %v11515_v60 = vpop.f32.mrf.mxu1 }
 0x7d2   :  { %v11476_v13 = vpop.f32.mrf.mxu0  ;;  %v11584_v47 = vpop.f32.mrf.mxu2 }
 0x7d3   :  { %v11477_v0 = vadd.f32 %v11476_v13, %v11423_v29 }
 0x7d4   :  { %v11621_v61 = vpop.f32.mrf.mxu3 }
 0x7d5   :  { %v11516_v49 = vadd.f32 %v11515_v60, %v11477_v0 }
 0x7d7   :  { %v11585_v34 = vadd.f32 %v11584_v47, %v11516_v49 }
 0x7d9   :  { %v11622_v45 = vadd.f32 %v11621_v61, %v11585_v34 }
 0x7db   :  { %v11627_v7 = vmax.f32 %v11622_v45, 0.0 }
 0x7dd   :  { %v11629_v12 = vmax.f32 %v11626_v38, %v11627_v7 }
 0x7df   :  { %v11630_v46 = vmax.f32 %v11628_v16, %v11629_v12 }
 0x7e1   :  { %v11683_v25 = vand.u32 4294901760, %v11630_v46 }
 0x7e3   :  { %v11684_v26 = vsub.f32 %v11630_v46, %v11683_v25  ;;  %11789 = vmatmul.f32.vlgmr.msra.gmra.mxu1 %v11683_v25 }
 0x7e5   :  { %v11685_v62 = vand.u32 4294901760, %v11684_v26  ;;  %11843 = vmatmul.f32.vlgmr.msra.gmra.mxu2 %v11684_v26 }
 0x7e7   :  { %v11686_v3 = vsub.f32 %v11684_v26, %v11685_v62  ;;  %11882 = vmatmul.f32.vlgmr.msra.gmra.mxu3 %v11685_v62 }
 0x7e9   :  { %v11687_v41 = vand.u32 4294901760, %v11686_v3 }
 0x7eb   :  { %11688 = vmatmul.f32.vlgmr.msra.gmra.mxu0 %v11687_v41  ;;  %11988 = vmatmul.f32.vlgmr.msrb.gmra.mxu1 %v11683_v25 }
 0x7f3   :  { %11951 = vmatmul.f32.vlgmr.msrb.gmra.mxu0 %v11683_v25 }
 0x860   :  { %v11790_v36 = vpop.f32.mrf.mxu1 }
 0x868   :  { %v11689_v22 = vpop.f32.mrf.mxu0  ;;  %v11844_v9 = vpop.f32.mrf.mxu2 }
 0x869   :  { %v11690_v53 = vadd.f32 %v12025_v14, %v11689_v22  ;;  %v11989_v42 = vpop.f32.mrf.mxu1 }
 0x86a   :  { %v11883_v28 = vpop.f32.mrf.mxu3 }
 0x86b   :  { %v11791_v20 = vadd.f32 %v11790_v36, %v11690_v53 }
 0x86d   :  { %v11845_v40 = vadd.f32 %v11844_v9, %v11791_v20 }
 0x86f   :  { %v11884_v32 = vadd.f32 %v11883_v28, %v11845_v40 }
 0x870   :  { %v11952_v4 = vpop.f32.mrf.mxu0 }
 0x871   :  { %v11953_v39 = vadd.f32 %v11952_v4, %v11884_v32 }
 0x873   :  { %v11990_v37 = vadd.f32 %v11989_v42, %v11953_v39 }
 0x875   :  { %11993 = vst.msk [vmem:[#allocation11] sm:$0x3] %vm11992_vm0, %v11990_v37 }
 0x876   :  { %12004 = dma.vmem_to_hbm [thread:$0]  %s12000_s4, 32, %s12002_s18, [#allocation4]  }
 0x877   :  { %12178 = dma.done.wait [#allocation4], 32  }
 0x878   :  { %12179 = vsyncadd [#allocation4], 4294967264 }
 0x879   :  { %12009 = vsyncpa [#allocation3], 1 }
 0x87a   :  { %12010 = vsyncpa [#allocation6], 1 }
 0x87b   :  { %12011 = vsyncpa [#allocation9], 1 }
 0x87c   :  { %12012 = vsyncpa [#allocation4], 1 }

</bundles_post_ra>
